<compile_context>
chip_gen: v6e
topology: v6e:2x2x1
jax: 0.10.0
libtpu: 0.0.40
codegen_flags: <defaults>
</compile_context>

<pallas_src>
import math

import jax
import jax.numpy as jnp
from jax.experimental import pallas as pl
from jax.experimental.pallas import tpu as pltpu

BN_EPS = 1e-5
NEG_SLOPE = 0.2                      # LeakyReLU(0.2) used everywhere in the module
INV_SQRT2 = 1.0 / math.sqrt(2.0)

_PAD0 = 8   # conv data starts at scratch row 8 so conv-input stores are sublane-tile aligned


# ----------------------------- in-kernel helpers -----------------------------

def _leaky_relu(x):
    return jnp.where(x >= 0, x, NEG_SLOPE * x)


def _batchnorm(x, gamma, beta, axes):
    # PyTorch BatchNorm1d in training mode: biased batch statistics, eps=1e-5 (f32).
    mean = jnp.mean(x, axis=axes, keepdims=True)
    var = jnp.mean(jnp.square(x - mean), axis=axes, keepdims=True)
    return (x - mean) * jax.lax.rsqrt(var + BN_EPS) * gamma + beta


def _mm_bf16(x, w):
    # (B, T, Cin) @ (Cin, Cout) -> (B, T, Cout); bf16 MXU operands, f32 accumulation.
    B, T, Cin = x.shape
    y = jnp.dot(x.reshape(B * T, Cin).astype(jnp.bfloat16), w,
                preferred_element_type=jnp.float32)
    return y.reshape(B, T, w.shape[-1])


# --------------------------------- fused kernel -------------------------------

def _make_fused_kernel(B, T0, C, scale, n_dec):
    def kernel(noise_ref,
               nd_w1_ref, nd_b1_ref, nd_g1_ref, nd_be1_ref,
               nd_w2_ref, nd_b2_ref,
               rb_w_ref, rb_b_ref, rb_g_ref, rb_be_ref,
               rb_sw_ref, rb_sb_ref,
               dec_w_ref, dec_b_ref, dec_g_ref, dec_be_ref,
               lg_w_ref, lg_b_ref,
               out_ref,
               pad_ref):
        # Zero the conv-padding scratch once.  Layer time-lengths only grow, so
        # the rows just outside the data written so far stay zero for the whole
        # kernel and provide the Conv1d(padding=1) zero halo for free.
        pad_ref[...] = jnp.zeros_like(pad_ref)

        def conv1d_k3(x, w_ref, layer, b_ref):
            # Conv1d(kernel_size=3, stride=1, padding=1), channels-last:
            # one tile-aligned store of the input into the padded scratch, then
            # three shifted views -> three MXU matmuls (no concatenate copies).
            Bc, Tc, Cin = x.shape
            pad_ref[:, _PAD0:_PAD0 + Tc, :] = x
            x_prev = pad_ref[:, _PAD0 - 1:_PAD0 - 1 + Tc, :]
            x_next = pad_ref[:, _PAD0 + 1:_PAD0 + 1 + Tc, :]
            y = (_mm_bf16(x_prev, w_ref[3 * layer])
                 + _mm_bf16(x, w_ref[3 * layer + 1])
                 + _mm_bf16(x_next, w_ref[3 * layer + 2]))
            return y + b_ref[layer]

        def upsample2x(x):
            # nn.Upsample(scale_factor=2, mode='nearest') along time, in-kernel.
            Bc, Tc, Cin = x.shape
            rows = []
            for t in range(Tc):
                row = x[:, t:t + 1, :]
                rows.append(row)
                rows.append(row)
            return jnp.concatenate(rows, axis=1)

        # ------------------------------ noise_dec ------------------------------
        nz = noise_ref[...].astype(jnp.bfloat16)
        h = jnp.dot(nz, nd_w1_ref[...],
                    preferred_element_type=jnp.float32) + nd_b1_ref[...]
        h = _leaky_relu(_batchnorm(h, nd_g1_ref[...], nd_be1_ref[...], axes=(0,)))
        h = h.astype(jnp.bfloat16)
        # Second Linear: one column block per time step -> (B, T0, C) channels-last.
        # (The weight columns were permuted at parameter-build time, so this is
        # exactly PyTorch's `.view(-1, C, T0)` followed by the NCT->NTC layout.)
        cols = [(jnp.dot(h, nd_w2_ref[t], preferred_element_type=jnp.float32)
                 + nd_b2_ref[t]).reshape(B, 1, C) for t in range(T0)]
        x = jnp.concatenate(cols, axis=1)

        # ----------------- upconv: `scale` x ResBlock(upsample=2x) -------------
        for r in range(scale):
            x_up = upsample2x(x)
            skip = _mm_bf16(x_up, rb_sw_ref[r]) + rb_sb_ref[r]        # k=1 skip conv
            h = conv1d_k3(x_up, rb_w_ref, 2 * r, rb_b_ref)
            h = _leaky_relu(_batchnorm(h, rb_g_ref[2 * r], rb_be_ref[2 * r], (0, 1)))
            h = conv1d_k3(h, rb_w_ref, 2 * r + 1, rb_b_ref)
            h = _leaky_relu(_batchnorm(h, rb_g_ref[2 * r + 1],
                                       rb_be_ref[2 * r + 1], (0, 1)))
            x = (h + skip) * INV_SQRT2

        # --------------------- decoder: n_dec x ConvNormRelu -------------------
        for d in range(n_dec):
            h = conv1d_k3(x, dec_w_ref, d, dec_b_ref)
            x = _leaky_relu(_batchnorm(h, dec_g_ref[d], dec_be_ref[d], (0, 1)))

        # ------------- logits (k=1 conv) + permute(0,2,1), lane-dense ----------
        # channels-last output is already (B, T, out_feats); padded to 128 lanes.
        out_ref[...] = _mm_bf16(x, lg_w_ref[...]) + lg_b_ref[...]

    return kernel


# ------------------------------ model wrapper ---------------------------------

class JointLateClusterNoise2PoseG:
    """Deterministic synthetic parameterization of the PyTorch module."""

    N_DECODER = 4

    def __init__(self, key, time_steps=64, in_channels=256, out_feats=96,
                 in_noise_dim=100, out_noise_dim=256):
        assert in_channels == out_noise_dim, "decoder channels must match upconv output"
        self.scale = 3
        assert time_steps % (2 ** self.scale) == 0
        self.time_steps = time_steps
        self.in_noise_dim = in_noise_dim
        self.out_noise_dim = out_noise_dim
        self.out_feats = out_feats
        self.padded_feats = ((out_feats + 127) // 128) * 128   # lane-dense logits width

        C = out_noise_dim
        T0 = time_steps // 2 ** self.scale
        keys = iter(jax.random.split(key, 32))

        def w(shape, s=0.1):
            # matmul weights are stored bf16 (MXU-native); accumulation stays f32.
            return (s * jax.random.normal(next(keys), shape, jnp.float32)
                    ).astype(jnp.bfloat16)

        def v(shape, s=0.05):
            return s * jax.random.normal(next(keys), shape, jnp.float32)

        # noise_dec: Linear(Nin,Nin) -> BN(Nin) -> LeakyReLU(0.2) -> Linear(Nin, T0*C).
        # The second Linear is stored as (T0, Nin, C): the column permutation
        # new_col = t*C + c  <-  old_col = c*T0 + t of the PyTorch weight, applied
        # at parameter-build time so the kernel needs no activation transpose.
        self.nd_w1 = w((in_noise_dim, in_noise_dim))
        self.nd_b1 = v((1, in_noise_dim))
        self.nd_g1 = 1.0 + v((1, in_noise_dim))
        self.nd_be1 = v((1, in_noise_dim))
        self.nd_w2 = w((T0, in_noise_dim, C))
        self.nd_b2 = v((T0, 1, C))

        # upconv: 3 x ResBlock(C, C, upsample=True).  k=3 conv taps are flattened
        # into the leading dim: layer l occupies rows [3l, 3l+3).
        self.rb_w = w((2 * self.scale * 3, C, C))
        self.rb_b = v((2 * self.scale, 1, C))
        self.rb_g = 1.0 + v((2 * self.scale, 1, C))
        self.rb_be = v((2 * self.scale, 1, C))
        self.rb_sw = w((self.scale, C, C))          # k=1 skip convs
        self.rb_sb = v((self.scale, 1, C))

        # decoder: 4 x ConvNormRelu(C, C).
        self.dec_w = w((self.N_DECODER * 3, C, C))
        self.dec_b = v((self.N_DECODER, 1, C))
        self.dec_g = 1.0 + v((self.N_DECODER, 1, C))
        self.dec_be = v((self.N_DECODER, 1, C))

        # logits: Conv1d(C, out_feats, kernel_size=1), zero-padded to 128 lanes.
        Fp = self.padded_feats
        lg_w = 0.1 * jax.random.normal(next(keys), (C, out_feats), jnp.float32)
        lg_b = 0.05 * jax.random.normal(next(keys), (1, out_feats), jnp.float32)
        self.lg_w = jnp.zeros((C, Fp), jnp.float32).at[:, :out_feats].set(lg_w
                    ).astype(jnp.bfloat16)
        self.lg_b = jnp.zeros((1, Fp), jnp.float32).at[:, :out_feats].set(lg_b)

    def __call__(self, noise):
        """Forward with explicit noise (PyTorch sample_flag=False path)."""
        B = noise.shape[0]
        C = self.out_noise_dim
        T = self.time_steps
        T0 = T // 2 ** self.scale
        Fp = self.padded_feats
        internal_losses = []

        kernel = _make_fused_kernel(B=B, T0=T0, C=C, scale=self.scale,
                                    n_dec=self.N_DECODER)
        args = (noise,
                self.nd_w1, self.nd_b1, self.nd_g1, self.nd_be1,
                self.nd_w2, self.nd_b2,
                self.rb_w, self.rb_b, self.rb_g, self.rb_be,
                self.rb_sw, self.rb_sb,
                self.dec_w, self.dec_b, self.dec_g, self.dec_be,
                self.lg_w, self.lg_b)

        out_padded = pl.pallas_call(
            kernel,
            out_shape=jax.ShapeDtypeStruct((B, T, Fp), jnp.float32),
            in_specs=[pl.BlockSpec(memory_space=pltpu.MemorySpace.VMEM)] * len(args),
            out_specs=pl.BlockSpec(memory_space=pltpu.MemorySpace.VMEM),
            # Zero-padded conv scratch; data lives at rows [_PAD0, _PAD0 + T).
            scratch_shapes=[pltpu.VMEM((B, T + 2 * _PAD0, C), jnp.float32)],
            compiler_params=pltpu.CompilerParams(
                vmem_limit_bytes=32 * 1024 * 1024),
        )(*args)

        # Drop the lane padding of the logits output.
        return out_padded[:, :, : self.out_feats], internal_losses


# ----------------------------------- main -------------------------------------

if __name__ == "__main__":
    key = jax.random.PRNGKey(0)
    k_param, k_noise = jax.random.split(key)

    # Small but lane-aligned config: B=2, time_steps=32 (T0=4), channels=128
    # (multiple of 128 so C fills the lane axis), in_noise_dim=16, out_feats=24.
    model = JointLateClusterNoise2PoseG(k_param, time_steps=32, in_channels=128,
                                        out_feats=24, in_noise_dim=16,
                                        out_noise_dim=128)

    B = 2
    noise = jax.random.uniform(k_noise, (B, 16), dtype=jnp.float32)

    out, losses = model(noise)
    out = jax.block_until_ready(out)

    assert out.shape == (B, 32, 24), out.shape
    assert out.dtype == jnp.float32
    assert losses == []
    print("KERNEL_OK")
</pallas_src>

<mosaic_0001>
module attributes {stable_mosaic.version = 11 : i64} {
  func.func @kernel(%arg0: memref<2x16xf32, #tpu.memory_space<vmem>>, %arg1: memref<16x16xbf16, #tpu.memory_space<vmem>>, %arg2: memref<1x16xf32, #tpu.memory_space<vmem>>, %arg3: memref<1x16xf32, #tpu.memory_space<vmem>>, %arg4: memref<1x16xf32, #tpu.memory_space<vmem>>, %arg5: memref<4x16x128xbf16, #tpu.memory_space<vmem>>, %arg6: memref<4x1x128xf32, #tpu.memory_space<vmem>>, %arg7: memref<18x128x128xbf16, #tpu.memory_space<vmem>>, %arg8: memref<6x1x128xf32, #tpu.memory_space<vmem>>, %arg9: memref<6x1x128xf32, #tpu.memory_space<vmem>>, %arg10: memref<6x1x128xf32, #tpu.memory_space<vmem>>, %arg11: memref<3x128x128xbf16, #tpu.memory_space<vmem>>, %arg12: memref<3x1x128xf32, #tpu.memory_space<vmem>>, %arg13: memref<12x128x128xbf16, #tpu.memory_space<vmem>>, %arg14: memref<4x1x128xf32, #tpu.memory_space<vmem>>, %arg15: memref<4x1x128xf32, #tpu.memory_space<vmem>>, %arg16: memref<4x1x128xf32, #tpu.memory_space<vmem>>, %arg17: memref<128x128xbf16, #tpu.memory_space<vmem>>, %arg18: memref<1x128xf32, #tpu.memory_space<vmem>>, %arg19: memref<2x32x128xf32, #tpu.memory_space<vmem>>, %arg20: memref<2x48x128xf32, #tpu.memory_space<vmem>>) attributes {dimension_semantics = [], scalar_prefetch = 0 : i64, scratch_operands = 1 : i64, tpu.core_type = #tpu.core_type<tc>} {
    %cst = arith.constant 0.000000e+00 : f32
    %0 = vector.broadcast %cst : f32 to vector<2x48x128xf32>
    %c0 = arith.constant 0 : index
    %c0_0 = arith.constant 0 : index
    %c0_1 = arith.constant 0 : index
    %1 = vector.load %arg20[%c0, %c0_0, %c0_1] : memref<2x48x128xf32, #tpu.memory_space<vmem>>, vector<2x48x128xf32>
    tpu.vector_store %arg20[%c0, %c0_0, %c0_1], %0 {strides = array<i32>} : memref<2x48x128xf32, #tpu.memory_space<vmem>>, vector<2x48x128xf32>,
    %c0_2 = arith.constant 0 : index
    %c0_3 = arith.constant 0 : index
    %2 = vector.load %arg0[%c0_2, %c0_3] : memref<2x16xf32, #tpu.memory_space<vmem>>, vector<2x16xf32>
    %3 = arith.truncf %2 : vector<2x16xf32> to vector<2x16xbf16>
    %c0_4 = arith.constant 0 : index
    %c0_5 = arith.constant 0 : index
    %4 = vector.load %arg1[%c0_4, %c0_5] : memref<16x16xbf16, #tpu.memory_space<vmem>>, vector<16x16xbf16>
    %cst_6 = arith.constant dense<0.000000e+00> : vector<2x16xf32>
    %5 = tpu.matmul %3, %4, %cst_6 {dimension_numbers = #tpu.dot_dimension_numbers<[1], [0], [0], [1], [0, 0, 1, 1], [], []>} : vector<2x16xbf16>, vector<16x16xbf16>, vector<2x16xf32> -> vector<2x16xf32>
    %c0_7 = arith.constant 0 : index
    %c0_8 = arith.constant 0 : index
    %6 = vector.load %arg2[%c0_7, %c0_8] : memref<1x16xf32, #tpu.memory_space<vmem>>, vector<1x16xf32>
    %7 = vector.broadcast %6 : vector<1x16xf32> to vector<2x16xf32>
    %8 = arith.addf %5, %7 : vector<2x16xf32>
    %c0_9 = arith.constant 0 : index
    %c0_10 = arith.constant 0 : index
    %9 = vector.load %arg3[%c0_9, %c0_10] : memref<1x16xf32, #tpu.memory_space<vmem>>, vector<1x16xf32>
    %c0_11 = arith.constant 0 : index
    %c0_12 = arith.constant 0 : index
    %10 = vector.load %arg4[%c0_11, %c0_12] : memref<1x16xf32, #tpu.memory_space<vmem>>, vector<1x16xf32>
    %cst_13 = arith.constant dense<0.000000e+00> : vector<16xf32>
    %11 = vector.multi_reduction <add>, %8, %cst_13 [0] : vector<2x16xf32> to vector<16xf32>
    %12 = vector.shape_cast %11 : vector<16xf32> to vector<1x16xf32>
    %cst_14 = arith.constant 2.000000e+00 : f32
    %13 = vector.broadcast %cst_14 : f32 to vector<1x16xf32>
    %14 = arith.divf %12, %13 : vector<1x16xf32>
    %15 = vector.broadcast %14 : vector<1x16xf32> to vector<2x16xf32>
    %16 = arith.subf %8, %15 : vector<2x16xf32>
    %17 = arith.mulf %16, %16 : vector<2x16xf32>
    %cst_15 = arith.constant dense<0.000000e+00> : vector<16xf32>
    %18 = vector.multi_reduction <add>, %17, %cst_15 [0] : vector<2x16xf32> to vector<16xf32>
    %19 = vector.shape_cast %18 : vector<16xf32> to vector<1x16xf32>
    %cst_16 = arith.constant 2.000000e+00 : f32
    %20 = vector.broadcast %cst_16 : f32 to vector<1x16xf32>
    %21 = arith.divf %19, %20 : vector<1x16xf32>
    %22 = vector.broadcast %14 : vector<1x16xf32> to vector<2x16xf32>
    %23 = arith.subf %8, %22 : vector<2x16xf32>
    %cst_17 = arith.constant 9.99999974E-6 : f32
    %24 = vector.broadcast %cst_17 : f32 to vector<1x16xf32>
    %25 = arith.addf %21, %24 : vector<1x16xf32>
    %26 = math.rsqrt %25 : vector<1x16xf32>
    %27 = vector.broadcast %26 : vector<1x16xf32> to vector<2x16xf32>
    %28 = arith.mulf %23, %27 : vector<2x16xf32>
    %29 = vector.broadcast %9 : vector<1x16xf32> to vector<2x16xf32>
    %30 = arith.mulf %28, %29 : vector<2x16xf32>
    %31 = vector.broadcast %10 : vector<1x16xf32> to vector<2x16xf32>
    %32 = arith.addf %30, %31 : vector<2x16xf32>
    %cst_18 = arith.constant 0.000000e+00 : f32
    %33 = vector.broadcast %cst_18 : f32 to vector<2x16xf32>
    %34 = arith.cmpf oge, %32, %33 : vector<2x16xf32>
    %cst_19 = arith.constant 2.000000e-01 : f32
    %35 = vector.broadcast %cst_19 : f32 to vector<2x16xf32>
    %36 = arith.mulf %35, %32 : vector<2x16xf32>
    %37 = arith.select %34, %32, %36 : vector<2x16xi1>, vector<2x16xf32>
    %38 = arith.truncf %37 : vector<2x16xf32> to vector<2x16xbf16>
    %c0_20 = arith.constant 0 : index
    %c0_21 = arith.constant 0 : index
    %c0_22 = arith.constant 0 : index
    %39 = vector.load %arg5[%c0_20, %c0_21, %c0_22] : memref<4x16x128xbf16, #tpu.memory_space<vmem>>, vector<1x16x128xbf16>
    %40 = vector.shape_cast %39 : vector<1x16x128xbf16> to vector<16x128xbf16>
    %cst_23 = arith.constant dense<0.000000e+00> : vector<2x128xf32>
    %41 = tpu.matmul %38, %40, %cst_23 {dimension_numbers = #tpu.dot_dimension_numbers<[1], [0], [0], [1], [0, 0, 1, 1], [], []>} : vector<2x16xbf16>, vector<16x128xbf16>, vector<2x128xf32> -> vector<2x128xf32>
    %c0_24 = arith.constant 0 : index
    %c0_25 = arith.constant 0 : index
    %c0_26 = arith.constant 0 : index
    %42 = vector.load %arg6[%c0_24, %c0_25, %c0_26] : memref<4x1x128xf32, #tpu.memory_space<vmem>>, vector<1x1x128xf32>
    %43 = vector.shape_cast %42 : vector<1x1x128xf32> to vector<1x128xf32>
    %44 = vector.broadcast %43 : vector<1x128xf32> to vector<2x128xf32>
    %45 = arith.addf %41, %44 : vector<2x128xf32>
    %46 = vector.shape_cast %45 : vector<2x128xf32> to vector<2x1x128xf32>
    %c1 = arith.constant 1 : index
    %c0_27 = arith.constant 0 : index
    %c0_28 = arith.constant 0 : index
    %47 = vector.load %arg5[%c1, %c0_27, %c0_28] : memref<4x16x128xbf16, #tpu.memory_space<vmem>>, vector<1x16x128xbf16>
    %48 = vector.shape_cast %47 : vector<1x16x128xbf16> to vector<16x128xbf16>
    %cst_29 = arith.constant dense<0.000000e+00> : vector<2x128xf32>
    %49 = tpu.matmul %38, %48, %cst_29 {dimension_numbers = #tpu.dot_dimension_numbers<[1], [0], [0], [1], [0, 0, 1, 1], [], []>} : vector<2x16xbf16>, vector<16x128xbf16>, vector<2x128xf32> -> vector<2x128xf32>
    %c1_30 = arith.constant 1 : index
    %c0_31 = arith.constant 0 : index
    %c0_32 = arith.constant 0 : index
    %50 = vector.load %arg6[%c1_30, %c0_31, %c0_32] : memref<4x1x128xf32, #tpu.memory_space<vmem>>, vector<1x1x128xf32>
    %51 = vector.shape_cast %50 : vector<1x1x128xf32> to vector<1x128xf32>
    %52 = vector.broadcast %51 : vector<1x128xf32> to vector<2x128xf32>
    %53 = arith.addf %49, %52 : vector<2x128xf32>
    %54 = vector.shape_cast %53 : vector<2x128xf32> to vector<2x1x128xf32>
    %c2 = arith.constant 2 : index
    %c0_33 = arith.constant 0 : index
    %c0_34 = arith.constant 0 : index
    %55 = vector.load %arg5[%c2, %c0_33, %c0_34] : memref<4x16x128xbf16, #tpu.memory_space<vmem>>, vector<1x16x128xbf16>
    %56 = vector.shape_cast %55 : vector<1x16x128xbf16> to vector<16x128xbf16>
    %cst_35 = arith.constant dense<0.000000e+00> : vector<2x128xf32>
    %57 = tpu.matmul %38, %56, %cst_35 {dimension_numbers = #tpu.dot_dimension_numbers<[1], [0], [0], [1], [0, 0, 1, 1], [], []>} : vector<2x16xbf16>, vector<16x128xbf16>, vector<2x128xf32> -> vector<2x128xf32>
    %c2_36 = arith.constant 2 : index
    %c0_37 = arith.constant 0 : index
    %c0_38 = arith.constant 0 : index
    %58 = vector.load %arg6[%c2_36, %c0_37, %c0_38] : memref<4x1x128xf32, #tpu.memory_space<vmem>>, vector<1x1x128xf32>
    %59 = vector.shape_cast %58 : vector<1x1x128xf32> to vector<1x128xf32>
    %60 = vector.broadcast %59 : vector<1x128xf32> to vector<2x128xf32>
    %61 = arith.addf %57, %60 : vector<2x128xf32>
    %62 = vector.shape_cast %61 : vector<2x128xf32> to vector<2x1x128xf32>
    %c3 = arith.constant 3 : index
    %c0_39 = arith.constant 0 : index
    %c0_40 = arith.constant 0 : index
    %63 = vector.load %arg5[%c3, %c0_39, %c0_40] : memref<4x16x128xbf16, #tpu.memory_space<vmem>>, vector<1x16x128xbf16>
    %64 = vector.shape_cast %63 : vector<1x16x128xbf16> to vector<16x128xbf16>
    %cst_41 = arith.constant dense<0.000000e+00> : vector<2x128xf32>
    %65 = tpu.matmul %38, %64, %cst_41 {dimension_numbers = #tpu.dot_dimension_numbers<[1], [0], [0], [1], [0, 0, 1, 1], [], []>} : vector<2x16xbf16>, vector<16x128xbf16>, vector<2x128xf32> -> vector<2x128xf32>
    %c3_42 = arith.constant 3 : index
    %c0_43 = arith.constant 0 : index
    %c0_44 = arith.constant 0 : index
    %66 = vector.load %arg6[%c3_42, %c0_43, %c0_44] : memref<4x1x128xf32, #tpu.memory_space<vmem>>, vector<1x1x128xf32>
    %67 = vector.shape_cast %66 : vector<1x1x128xf32> to vector<1x128xf32>
    %68 = vector.broadcast %67 : vector<1x128xf32> to vector<2x128xf32>
    %69 = arith.addf %65, %68 : vector<2x128xf32>
    %70 = vector.shape_cast %69 : vector<2x128xf32> to vector<2x1x128xf32>
    %71 = tpu.concatenate %46, %54, %62, %70 in 1 : vector<2x1x128xf32>, vector<2x1x128xf32>, vector<2x1x128xf32>, vector<2x1x128xf32> -> vector<2x4x128xf32>
    %72 = vector.extract_strided_slice %71 {offsets = [0, 0, 0], sizes = [2, 1, 128], strides = [1, 1, 1]} : vector<2x4x128xf32> to vector<2x1x128xf32>
    %73 = vector.extract_strided_slice %71 {offsets = [0, 1, 0], sizes = [2, 1, 128], strides = [1, 1, 1]} : vector<2x4x128xf32> to vector<2x1x128xf32>
    %74 = vector.extract_strided_slice %71 {offsets = [0, 2, 0], sizes = [2, 1, 128], strides = [1, 1, 1]} : vector<2x4x128xf32> to vector<2x1x128xf32>
    %75 = vector.extract_strided_slice %71 {offsets = [0, 3, 0], sizes = [2, 1, 128], strides = [1, 1, 1]} : vector<2x4x128xf32> to vector<2x1x128xf32>
    %76 = tpu.concatenate %72, %72, %73, %73, %74, %74, %75, %75 in 1 : vector<2x1x128xf32>, vector<2x1x128xf32>, vector<2x1x128xf32>, vector<2x1x128xf32>, vector<2x1x128xf32>, vector<2x1x128xf32>, vector<2x1x128xf32>, vector<2x1x128xf32> -> vector<2x8x128xf32>
    %c0_45 = arith.constant 0 : index
    %c0_46 = arith.constant 0 : index
    %c0_47 = arith.constant 0 : index
    %77 = vector.load %arg11[%c0_45, %c0_46, %c0_47] : memref<3x128x128xbf16, #tpu.memory_space<vmem>>, vector<1x128x128xbf16>
    %78 = vector.shape_cast %77 : vector<1x128x128xbf16> to vector<128x128xbf16>
    %79 = vector.shape_cast %76 : vector<2x8x128xf32> to vector<16x128xf32>
    %80 = arith.truncf %79 : vector<16x128xf32> to vector<16x128xbf16>
    %cst_48 = arith.constant dense<0.000000e+00> : vector<16x128xf32>
    %81 = tpu.matmul %80, %78, %cst_48 {dimension_numbers = #tpu.dot_dimension_numbers<[1], [0], [0], [1], [0, 0, 1, 1], [], []>} : vector<16x128xbf16>, vector<128x128xbf16>, vector<16x128xf32> -> vector<16x128xf32>
    %82 = vector.shape_cast %81 : vector<16x128xf32> to vector<2x8x128xf32>
    %c0_49 = arith.constant 0 : index
    %c0_50 = arith.constant 0 : index
    %c0_51 = arith.constant 0 : index
    %83 = vector.load %arg12[%c0_49, %c0_50, %c0_51] : memref<3x1x128xf32, #tpu.memory_space<vmem>>, vector<1x1x128xf32>
    %84 = vector.shape_cast %83 : vector<1x1x128xf32> to vector<1x128xf32>
    %85 = vector.shape_cast %84 : vector<1x128xf32> to vector<1x1x128xf32>
    %86 = vector.broadcast %85 : vector<1x1x128xf32> to vector<2x8x128xf32>
    %87 = arith.addf %82, %86 : vector<2x8x128xf32>
    %c0_52 = arith.constant 0 : index
    %c8 = arith.constant 8 : index
    %c0_53 = arith.constant 0 : index
    %88 = vector.load %arg20[%c0_52, %c8, %c0_53] : memref<2x48x128xf32, #tpu.memory_space<vmem>>, vector<2x8x128xf32>
    tpu.vector_store %arg20[%c0_52, %c8, %c0_53], %76 {strides = array<i32>} : memref<2x48x128xf32, #tpu.memory_space<vmem>>, vector<2x8x128xf32>,
    %c0_54 = arith.constant 0 : index
    %c7 = arith.constant 7 : index
    %c0_55 = arith.constant 0 : index
    %89 = vector.load %arg20[%c0_54, %c7, %c0_55] : memref<2x48x128xf32, #tpu.memory_space<vmem>>, vector<2x8x128xf32>
    %c0_56 = arith.constant 0 : index
    %c9 = arith.constant 9 : index
    %c0_57 = arith.constant 0 : index
    %90 = vector.load %arg20[%c0_56, %c9, %c0_57] : memref<2x48x128xf32, #tpu.memory_space<vmem>>, vector<2x8x128xf32>
    %c0_58 = arith.constant 0 : index
    %c0_59 = arith.constant 0 : index
    %c0_60 = arith.constant 0 : index
    %91 = vector.load %arg7[%c0_58, %c0_59, %c0_60] : memref<18x128x128xbf16, #tpu.memory_space<vmem>>, vector<1x128x128xbf16>
    %92 = vector.shape_cast %91 : vector<1x128x128xbf16> to vector<128x128xbf16>
    %93 = vector.shape_cast %89 : vector<2x8x128xf32> to vector<16x128xf32>
    %94 = arith.truncf %93 : vector<16x128xf32> to vector<16x128xbf16>
    %cst_61 = arith.constant dense<0.000000e+00> : vector<16x128xf32>
    %95 = tpu.matmul %94, %92, %cst_61 {dimension_numbers = #tpu.dot_dimension_numbers<[1], [0], [0], [1], [0, 0, 1, 1], [], []>} : vector<16x128xbf16>, vector<128x128xbf16>, vector<16x128xf32> -> vector<16x128xf32>
    %96 = vector.shape_cast %95 : vector<16x128xf32> to vector<2x8x128xf32>
    %c1_62 = arith.constant 1 : index
    %c0_63 = arith.constant 0 : index
    %c0_64 = arith.constant 0 : index
    %97 = vector.load %arg7[%c1_62, %c0_63, %c0_64] : memref<18x128x128xbf16, #tpu.memory_space<vmem>>, vector<1x128x128xbf16>
    %98 = vector.shape_cast %97 : vector<1x128x128xbf16> to vector<128x128xbf16>
    %99 = vector.shape_cast %76 : vector<2x8x128xf32> to vector<16x128xf32>
    %100 = arith.truncf %99 : vector<16x128xf32> to vector<16x128xbf16>
    %cst_65 = arith.constant dense<0.000000e+00> : vector<16x128xf32>
    %101 = tpu.matmul %100, %98, %cst_65 {dimension_numbers = #tpu.dot_dimension_numbers<[1], [0], [0], [1], [0, 0, 1, 1], [], []>} : vector<16x128xbf16>, vector<128x128xbf16>, vector<16x128xf32> -> vector<16x128xf32>
    %102 = vector.shape_cast %101 : vector<16x128xf32> to vector<2x8x128xf32>
    %103 = arith.addf %96, %102 : vector<2x8x128xf32>
    %c2_66 = arith.constant 2 : index
    %c0_67 = arith.constant 0 : index
    %c0_68 = arith.constant 0 : index
    %104 = vector.load %arg7[%c2_66, %c0_67, %c0_68] : memref<18x128x128xbf16, #tpu.memory_space<vmem>>, vector<1x128x128xbf16>
    %105 = vector.shape_cast %104 : vector<1x128x128xbf16> to vector<128x128xbf16>
    %106 = vector.shape_cast %90 : vector<2x8x128xf32> to vector<16x128xf32>
    %107 = arith.truncf %106 : vector<16x128xf32> to vector<16x128xbf16>
    %cst_69 = arith.constant dense<0.000000e+00> : vector<16x128xf32>
    %108 = tpu.matmul %107, %105, %cst_69 {dimension_numbers = #tpu.dot_dimension_numbers<[1], [0], [0], [1], [0, 0, 1, 1], [], []>} : vector<16x128xbf16>, vector<128x128xbf16>, vector<16x128xf32> -> vector<16x128xf32>
    %109 = vector.shape_cast %108 : vector<16x128xf32> to vector<2x8x128xf32>
    %110 = arith.addf %103, %109 : vector<2x8x128xf32>
    %c0_70 = arith.constant 0 : index
    %c0_71 = arith.constant 0 : index
    %c0_72 = arith.constant 0 : index
    %111 = vector.load %arg8[%c0_70, %c0_71, %c0_72] : memref<6x1x128xf32, #tpu.memory_space<vmem>>, vector<1x1x128xf32>
    %112 = vector.shape_cast %111 : vector<1x1x128xf32> to vector<1x128xf32>
    %113 = vector.shape_cast %112 : vector<1x128xf32> to vector<1x1x128xf32>
    %114 = vector.broadcast %113 : vector<1x1x128xf32> to vector<2x8x128xf32>
    %115 = arith.addf %110, %114 : vector<2x8x128xf32>
    %c0_73 = arith.constant 0 : index
    %c0_74 = arith.constant 0 : index
    %c0_75 = arith.constant 0 : index
    %116 = vector.load %arg9[%c0_73, %c0_74, %c0_75] : memref<6x1x128xf32, #tpu.memory_space<vmem>>, vector<1x1x128xf32>
    %117 = vector.shape_cast %116 : vector<1x1x128xf32> to vector<1x128xf32>
    %c0_76 = arith.constant 0 : index
    %c0_77 = arith.constant 0 : index
    %c0_78 = arith.constant 0 : index
    %118 = vector.load %arg10[%c0_76, %c0_77, %c0_78] : memref<6x1x128xf32, #tpu.memory_space<vmem>>, vector<1x1x128xf32>
    %119 = vector.shape_cast %118 : vector<1x1x128xf32> to vector<1x128xf32>
    %cst_79 = arith.constant dense<0.000000e+00> : vector<128xf32>
    %120 = vector.multi_reduction <add>, %115, %cst_79 [0, 1] : vector<2x8x128xf32> to vector<128xf32>
    %121 = vector.shape_cast %120 : vector<128xf32> to vector<1x1x128xf32>
    %cst_80 = arith.constant 1.600000e+01 : f32
    %122 = vector.broadcast %cst_80 : f32 to vector<1x1x128xf32>
    %123 = arith.divf %121, %122 : vector<1x1x128xf32>
    %124 = vector.broadcast %123 : vector<1x1x128xf32> to vector<2x8x128xf32>
    %125 = arith.subf %115, %124 : vector<2x8x128xf32>
    %126 = arith.mulf %125, %125 : vector<2x8x128xf32>
    %cst_81 = arith.constant dense<0.000000e+00> : vector<128xf32>
    %127 = vector.multi_reduction <add>, %126, %cst_81 [0, 1] : vector<2x8x128xf32> to vector<128xf32>
    %128 = vector.shape_cast %127 : vector<128xf32> to vector<1x1x128xf32>
    %cst_82 = arith.constant 1.600000e+01 : f32
    %129 = vector.broadcast %cst_82 : f32 to vector<1x1x128xf32>
    %130 = arith.divf %128, %129 : vector<1x1x128xf32>
    %131 = vector.broadcast %123 : vector<1x1x128xf32> to vector<2x8x128xf32>
    %132 = arith.subf %115, %131 : vector<2x8x128xf32>
    %cst_83 = arith.constant 9.99999974E-6 : f32
    %133 = vector.broadcast %cst_83 : f32 to vector<1x1x128xf32>
    %134 = arith.addf %130, %133 : vector<1x1x128xf32>
    %135 = math.rsqrt %134 : vector<1x1x128xf32>
    %136 = vector.broadcast %135 : vector<1x1x128xf32> to vector<2x8x128xf32>
    %137 = arith.mulf %132, %136 : vector<2x8x128xf32>
    %138 = vector.shape_cast %117 : vector<1x128xf32> to vector<1x1x128xf32>
    %139 = vector.broadcast %138 : vector<1x1x128xf32> to vector<2x8x128xf32>
    %140 = arith.mulf %137, %139 : vector<2x8x128xf32>
    %141 = vector.shape_cast %119 : vector<1x128xf32> to vector<1x1x128xf32>
    %142 = vector.broadcast %141 : vector<1x1x128xf32> to vector<2x8x128xf32>
    %143 = arith.addf %140, %142 : vector<2x8x128xf32>
    %cst_84 = arith.constant 0.000000e+00 : f32
    %144 = vector.broadcast %cst_84 : f32 to vector<2x8x128xf32>
    %145 = arith.cmpf oge, %143, %144 : vector<2x8x128xf32>
    %cst_85 = arith.constant 2.000000e-01 : f32
    %146 = vector.broadcast %cst_85 : f32 to vector<2x8x128xf32>
    %147 = arith.mulf %146, %143 : vector<2x8x128xf32>
    %148 = arith.select %145, %143, %147 : vector<2x8x128xi1>, vector<2x8x128xf32>
    %c0_86 = arith.constant 0 : index
    %c8_87 = arith.constant 8 : index
    %c0_88 = arith.constant 0 : index
    %149 = vector.load %arg20[%c0_86, %c8_87, %c0_88] : memref<2x48x128xf32, #tpu.memory_space<vmem>>, vector<2x8x128xf32>
    tpu.vector_store %arg20[%c0_86, %c8_87, %c0_88], %148 {strides = array<i32>} : memref<2x48x128xf32, #tpu.memory_space<vmem>>, vector<2x8x128xf32>,
    %c0_89 = arith.constant 0 : index
    %c7_90 = arith.constant 7 : index
    %c0_91 = arith.constant 0 : index
    %150 = vector.load %arg20[%c0_89, %c7_90, %c0_91] : memref<2x48x128xf32, #tpu.memory_space<vmem>>, vector<2x8x128xf32>
    %c0_92 = arith.constant 0 : index
    %c9_93 = arith.constant 9 : index
    %c0_94 = arith.constant 0 : index
    %151 = vector.load %arg20[%c0_92, %c9_93, %c0_94] : memref<2x48x128xf32, #tpu.memory_space<vmem>>, vector<2x8x128xf32>
    %c3_95 = arith.constant 3 : index
    %c0_96 = arith.constant 0 : index
    %c0_97 = arith.constant 0 : index
    %152 = vector.load %arg7[%c3_95, %c0_96, %c0_97] : memref<18x128x128xbf16, #tpu.memory_space<vmem>>, vector<1x128x128xbf16>
    %153 = vector.shape_cast %152 : vector<1x128x128xbf16> to vector<128x128xbf16>
    %154 = vector.shape_cast %150 : vector<2x8x128xf32> to vector<16x128xf32>
    %155 = arith.truncf %154 : vector<16x128xf32> to vector<16x128xbf16>
    %cst_98 = arith.constant dense<0.000000e+00> : vector<16x128xf32>
    %156 = tpu.matmul %155, %153, %cst_98 {dimension_numbers = #tpu.dot_dimension_numbers<[1], [0], [0], [1], [0, 0, 1, 1], [], []>} : vector<16x128xbf16>, vector<128x128xbf16>, vector<16x128xf32> -> vector<16x128xf32>
    %157 = vector.shape_cast %156 : vector<16x128xf32> to vector<2x8x128xf32>
    %c4 = arith.constant 4 : index
    %c0_99 = arith.constant 0 : index
    %c0_100 = arith.constant 0 : index
    %158 = vector.load %arg7[%c4, %c0_99, %c0_100] : memref<18x128x128xbf16, #tpu.memory_space<vmem>>, vector<1x128x128xbf16>
    %159 = vector.shape_cast %158 : vector<1x128x128xbf16> to vector<128x128xbf16>
    %160 = vector.shape_cast %148 : vector<2x8x128xf32> to vector<16x128xf32>
    %161 = arith.truncf %160 : vector<16x128xf32> to vector<16x128xbf16>
    %cst_101 = arith.constant dense<0.000000e+00> : vector<16x128xf32>
    %162 = tpu.matmul %161, %159, %cst_101 {dimension_numbers = #tpu.dot_dimension_numbers<[1], [0], [0], [1], [0, 0, 1, 1], [], []>} : vector<16x128xbf16>, vector<128x128xbf16>, vector<16x128xf32> -> vector<16x128xf32>
    %163 = vector.shape_cast %162 : vector<16x128xf32> to vector<2x8x128xf32>
    %164 = arith.addf %157, %163 : vector<2x8x128xf32>
    %c5 = arith.constant 5 : index
    %c0_102 = arith.constant 0 : index
    %c0_103 = arith.constant 0 : index
    %165 = vector.load %arg7[%c5, %c0_102, %c0_103] : memref<18x128x128xbf16, #tpu.memory_space<vmem>>, vector<1x128x128xbf16>
    %166 = vector.shape_cast %165 : vector<1x128x128xbf16> to vector<128x128xbf16>
    %167 = vector.shape_cast %151 : vector<2x8x128xf32> to vector<16x128xf32>
    %168 = arith.truncf %167 : vector<16x128xf32> to vector<16x128xbf16>
    %cst_104 = arith.constant dense<0.000000e+00> : vector<16x128xf32>
    %169 = tpu.matmul %168, %166, %cst_104 {dimension_numbers = #tpu.dot_dimension_numbers<[1], [0], [0], [1], [0, 0, 1, 1], [], []>} : vector<16x128xbf16>, vector<128x128xbf16>, vector<16x128xf32> -> vector<16x128xf32>
    %170 = vector.shape_cast %169 : vector<16x128xf32> to vector<2x8x128xf32>
    %171 = arith.addf %164, %170 : vector<2x8x128xf32>
    %c1_105 = arith.constant 1 : index
    %c0_106 = arith.constant 0 : index
    %c0_107 = arith.constant 0 : index
    %172 = vector.load %arg8[%c1_105, %c0_106, %c0_107] : memref<6x1x128xf32, #tpu.memory_space<vmem>>, vector<1x1x128xf32>
    %173 = vector.shape_cast %172 : vector<1x1x128xf32> to vector<1x128xf32>
    %174 = vector.shape_cast %173 : vector<1x128xf32> to vector<1x1x128xf32>
    %175 = vector.broadcast %174 : vector<1x1x128xf32> to vector<2x8x128xf32>
    %176 = arith.addf %171, %175 : vector<2x8x128xf32>
    %c1_108 = arith.constant 1 : index
    %c0_109 = arith.constant 0 : index
    %c0_110 = arith.constant 0 : index
    %177 = vector.load %arg9[%c1_108, %c0_109, %c0_110] : memref<6x1x128xf32, #tpu.memory_space<vmem>>, vector<1x1x128xf32>
    %178 = vector.shape_cast %177 : vector<1x1x128xf32> to vector<1x128xf32>
    %c1_111 = arith.constant 1 : index
    %c0_112 = arith.constant 0 : index
    %c0_113 = arith.constant 0 : index
    %179 = vector.load %arg10[%c1_111, %c0_112, %c0_113] : memref<6x1x128xf32, #tpu.memory_space<vmem>>, vector<1x1x128xf32>
    %180 = vector.shape_cast %179 : vector<1x1x128xf32> to vector<1x128xf32>
    %cst_114 = arith.constant dense<0.000000e+00> : vector<128xf32>
    %181 = vector.multi_reduction <add>, %176, %cst_114 [0, 1] : vector<2x8x128xf32> to vector<128xf32>
    %182 = vector.shape_cast %181 : vector<128xf32> to vector<1x1x128xf32>
    %cst_115 = arith.constant 1.600000e+01 : f32
    %183 = vector.broadcast %cst_115 : f32 to vector<1x1x128xf32>
    %184 = arith.divf %182, %183 : vector<1x1x128xf32>
    %185 = vector.broadcast %184 : vector<1x1x128xf32> to vector<2x8x128xf32>
    %186 = arith.subf %176, %185 : vector<2x8x128xf32>
    %187 = arith.mulf %186, %186 : vector<2x8x128xf32>
    %cst_116 = arith.constant dense<0.000000e+00> : vector<128xf32>
    %188 = vector.multi_reduction <add>, %187, %cst_116 [0, 1] : vector<2x8x128xf32> to vector<128xf32>
    %189 = vector.shape_cast %188 : vector<128xf32> to vector<1x1x128xf32>
    %cst_117 = arith.constant 1.600000e+01 : f32
    %190 = vector.broadcast %cst_117 : f32 to vector<1x1x128xf32>
    %191 = arith.divf %189, %190 : vector<1x1x128xf32>
    %192 = vector.broadcast %184 : vector<1x1x128xf32> to vector<2x8x128xf32>
    %193 = arith.subf %176, %192 : vector<2x8x128xf32>
    %cst_118 = arith.constant 9.99999974E-6 : f32
    %194 = vector.broadcast %cst_118 : f32 to vector<1x1x128xf32>
    %195 = arith.addf %191, %194 : vector<1x1x128xf32>
    %196 = math.rsqrt %195 : vector<1x1x128xf32>
    %197 = vector.broadcast %196 : vector<1x1x128xf32> to vector<2x8x128xf32>
    %198 = arith.mulf %193, %197 : vector<2x8x128xf32>
    %199 = vector.shape_cast %178 : vector<1x128xf32> to vector<1x1x128xf32>
    %200 = vector.broadcast %199 : vector<1x1x128xf32> to vector<2x8x128xf32>
    %201 = arith.mulf %198, %200 : vector<2x8x128xf32>
    %202 = vector.shape_cast %180 : vector<1x128xf32> to vector<1x1x128xf32>
    %203 = vector.broadcast %202 : vector<1x1x128xf32> to vector<2x8x128xf32>
    %204 = arith.addf %201, %203 : vector<2x8x128xf32>
    %cst_119 = arith.constant 0.000000e+00 : f32
    %205 = vector.broadcast %cst_119 : f32 to vector<2x8x128xf32>
    %206 = arith.cmpf oge, %204, %205 : vector<2x8x128xf32>
    %cst_120 = arith.constant 2.000000e-01 : f32
    %207 = vector.broadcast %cst_120 : f32 to vector<2x8x128xf32>
    %208 = arith.mulf %207, %204 : vector<2x8x128xf32>
    %209 = arith.select %206, %204, %208 : vector<2x8x128xi1>, vector<2x8x128xf32>
    %210 = arith.addf %209, %87 : vector<2x8x128xf32>
    %cst_121 = arith.constant 0.707106769 : f32
    %211 = vector.broadcast %cst_121 : f32 to vector<2x8x128xf32>
    %212 = arith.mulf %210, %211 : vector<2x8x128xf32>
    %213 = vector.extract_strided_slice %212 {offsets = [0, 0, 0], sizes = [2, 1, 128], strides = [1, 1, 1]} : vector<2x8x128xf32> to vector<2x1x128xf32>
    %214 = vector.extract_strided_slice %212 {offsets = [0, 1, 0], sizes = [2, 1, 128], strides = [1, 1, 1]} : vector<2x8x128xf32> to vector<2x1x128xf32>
    %215 = vector.extract_strided_slice %212 {offsets = [0, 2, 0], sizes = [2, 1, 128], strides = [1, 1, 1]} : vector<2x8x128xf32> to vector<2x1x128xf32>
    %216 = vector.extract_strided_slice %212 {offsets = [0, 3, 0], sizes = [2, 1, 128], strides = [1, 1, 1]} : vector<2x8x128xf32> to vector<2x1x128xf32>
    %217 = vector.extract_strided_slice %212 {offsets = [0, 4, 0], sizes = [2, 1, 128], strides = [1, 1, 1]} : vector<2x8x128xf32> to vector<2x1x128xf32>
    %218 = vector.extract_strided_slice %212 {offsets = [0, 5, 0], sizes = [2, 1, 128], strides = [1, 1, 1]} : vector<2x8x128xf32> to vector<2x1x128xf32>
    %219 = vector.extract_strided_slice %212 {offsets = [0, 6, 0], sizes = [2, 1, 128], strides = [1, 1, 1]} : vector<2x8x128xf32> to vector<2x1x128xf32>
    %220 = vector.extract_strided_slice %212 {offsets = [0, 7, 0], sizes = [2, 1, 128], strides = [1, 1, 1]} : vector<2x8x128xf32> to vector<2x1x128xf32>
    %221 = tpu.concatenate %213, %213, %214, %214, %215, %215, %216, %216, %217, %217, %218, %218, %219, %219, %220, %220 in 1 : vector<2x1x128xf32>, vector<2x1x128xf32>, vector<2x1x128xf32>, vector<2x1x128xf32>, vector<2x1x128xf32>, vector<2x1x128xf32>, vector<2x1x128xf32>, vector<2x1x128xf32>, vector<2x1x128xf32>, vector<2x1x128xf32>, vector<2x1x128xf32>, vector<2x1x128xf32>, vector<2x1x128xf32>, vector<2x1x128xf32>, vector<2x1x128xf32>, vector<2x1x128xf32> -> vector<2x16x128xf32>
    %c1_122 = arith.constant 1 : index
    %c0_123 = arith.constant 0 : index
    %c0_124 = arith.constant 0 : index
    %222 = vector.load %arg11[%c1_122, %c0_123, %c0_124] : memref<3x128x128xbf16, #tpu.memory_space<vmem>>, vector<1x128x128xbf16>
    %223 = vector.shape_cast %222 : vector<1x128x128xbf16> to vector<128x128xbf16>
    %224 = vector.shape_cast %221 : vector<2x16x128xf32> to vector<32x128xf32>
    %225 = arith.truncf %224 : vector<32x128xf32> to vector<32x128xbf16>
    %cst_125 = arith.constant dense<0.000000e+00> : vector<32x128xf32>
    %226 = tpu.matmul %225, %223, %cst_125 {dimension_numbers = #tpu.dot_dimension_numbers<[1], [0], [0], [1], [0, 0, 1, 1], [], []>} : vector<32x128xbf16>, vector<128x128xbf16>, vector<32x128xf32> -> vector<32x128xf32>
    %227 = vector.shape_cast %226 : vector<32x128xf32> to vector<2x16x128xf32>
    %c1_126 = arith.constant 1 : index
    %c0_127 = arith.constant 0 : index
    %c0_128 = arith.constant 0 : index
    %228 = vector.load %arg12[%c1_126, %c0_127, %c0_128] : memref<3x1x128xf32, #tpu.memory_space<vmem>>, vector<1x1x128xf32>
    %229 = vector.shape_cast %228 : vector<1x1x128xf32> to vector<1x128xf32>
    %230 = vector.shape_cast %229 : vector<1x128xf32> to vector<1x1x128xf32>
    %231 = vector.broadcast %230 : vector<1x1x128xf32> to vector<2x16x128xf32>
    %232 = arith.addf %227, %231 : vector<2x16x128xf32>
    %c0_129 = arith.constant 0 : index
    %c8_130 = arith.constant 8 : index
    %c0_131 = arith.constant 0 : index
    %233 = vector.load %arg20[%c0_129, %c8_130, %c0_131] : memref<2x48x128xf32, #tpu.memory_space<vmem>>, vector<2x16x128xf32>
    tpu.vector_store %arg20[%c0_129, %c8_130, %c0_131], %221 {strides = array<i32>} : memref<2x48x128xf32, #tpu.memory_space<vmem>>, vector<2x16x128xf32>,
    %c0_132 = arith.constant 0 : index
    %c7_133 = arith.constant 7 : index
    %c0_134 = arith.constant 0 : index
    %234 = vector.load %arg20[%c0_132, %c7_133, %c0_134] : memref<2x48x128xf32, #tpu.memory_space<vmem>>, vector<2x16x128xf32>
    %c0_135 = arith.constant 0 : index
    %c9_136 = arith.constant 9 : index
    %c0_137 = arith.constant 0 : index
    %235 = vector.load %arg20[%c0_135, %c9_136, %c0_137] : memref<2x48x128xf32, #tpu.memory_space<vmem>>, vector<2x16x128xf32>
    %c6 = arith.constant 6 : index
    %c0_138 = arith.constant 0 : index
    %c0_139 = arith.constant 0 : index
    %236 = vector.load %arg7[%c6, %c0_138, %c0_139] : memref<18x128x128xbf16, #tpu.memory_space<vmem>>, vector<1x128x128xbf16>
    %237 = vector.shape_cast %236 : vector<1x128x128xbf16> to vector<128x128xbf16>
    %238 = vector.shape_cast %234 : vector<2x16x128xf32> to vector<32x128xf32>
    %239 = arith.truncf %238 : vector<32x128xf32> to vector<32x128xbf16>
    %cst_140 = arith.constant dense<0.000000e+00> : vector<32x128xf32>
    %240 = tpu.matmul %239, %237, %cst_140 {dimension_numbers = #tpu.dot_dimension_numbers<[1], [0], [0], [1], [0, 0, 1, 1], [], []>} : vector<32x128xbf16>, vector<128x128xbf16>, vector<32x128xf32> -> vector<32x128xf32>
    %241 = vector.shape_cast %240 : vector<32x128xf32> to vector<2x16x128xf32>
    %c7_141 = arith.constant 7 : index
    %c0_142 = arith.constant 0 : index
    %c0_143 = arith.constant 0 : index
    %242 = vector.load %arg7[%c7_141, %c0_142, %c0_143] : memref<18x128x128xbf16, #tpu.memory_space<vmem>>, vector<1x128x128xbf16>
    %243 = vector.shape_cast %242 : vector<1x128x128xbf16> to vector<128x128xbf16>
    %244 = vector.shape_cast %221 : vector<2x16x128xf32> to vector<32x128xf32>
    %245 = arith.truncf %244 : vector<32x128xf32> to vector<32x128xbf16>
    %cst_144 = arith.constant dense<0.000000e+00> : vector<32x128xf32>
    %246 = tpu.matmul %245, %243, %cst_144 {dimension_numbers = #tpu.dot_dimension_numbers<[1], [0], [0], [1], [0, 0, 1, 1], [], []>} : vector<32x128xbf16>, vector<128x128xbf16>, vector<32x128xf32> -> vector<32x128xf32>
    %247 = vector.shape_cast %246 : vector<32x128xf32> to vector<2x16x128xf32>
    %248 = arith.addf %241, %247 : vector<2x16x128xf32>
    %c8_145 = arith.constant 8 : index
    %c0_146 = arith.constant 0 : index
    %c0_147 = arith.constant 0 : index
    %249 = vector.load %arg7[%c8_145, %c0_146, %c0_147] : memref<18x128x128xbf16, #tpu.memory_space<vmem>>, vector<1x128x128xbf16>
    %250 = vector.shape_cast %249 : vector<1x128x128xbf16> to vector<128x128xbf16>
    %251 = vector.shape_cast %235 : vector<2x16x128xf32> to vector<32x128xf32>
    %252 = arith.truncf %251 : vector<32x128xf32> to vector<32x128xbf16>
    %cst_148 = arith.constant dense<0.000000e+00> : vector<32x128xf32>
    %253 = tpu.matmul %252, %250, %cst_148 {dimension_numbers = #tpu.dot_dimension_numbers<[1], [0], [0], [1], [0, 0, 1, 1], [], []>} : vector<32x128xbf16>, vector<128x128xbf16>, vector<32x128xf32> -> vector<32x128xf32>
    %254 = vector.shape_cast %253 : vector<32x128xf32> to vector<2x16x128xf32>
    %255 = arith.addf %248, %254 : vector<2x16x128xf32>
    %c2_149 = arith.constant 2 : index
    %c0_150 = arith.constant 0 : index
    %c0_151 = arith.constant 0 : index
    %256 = vector.load %arg8[%c2_149, %c0_150, %c0_151] : memref<6x1x128xf32, #tpu.memory_space<vmem>>, vector<1x1x128xf32>
    %257 = vector.shape_cast %256 : vector<1x1x128xf32> to vector<1x128xf32>
    %258 = vector.shape_cast %257 : vector<1x128xf32> to vector<1x1x128xf32>
    %259 = vector.broadcast %258 : vector<1x1x128xf32> to vector<2x16x128xf32>
    %260 = arith.addf %255, %259 : vector<2x16x128xf32>
    %c2_152 = arith.constant 2 : index
    %c0_153 = arith.constant 0 : index
    %c0_154 = arith.constant 0 : index
    %261 = vector.load %arg9[%c2_152, %c0_153, %c0_154] : memref<6x1x128xf32, #tpu.memory_space<vmem>>, vector<1x1x128xf32>
    %262 = vector.shape_cast %261 : vector<1x1x128xf32> to vector<1x128xf32>
    %c2_155 = arith.constant 2 : index
    %c0_156 = arith.constant 0 : index
    %c0_157 = arith.constant 0 : index
    %263 = vector.load %arg10[%c2_155, %c0_156, %c0_157] : memref<6x1x128xf32, #tpu.memory_space<vmem>>, vector<1x1x128xf32>
    %264 = vector.shape_cast %263 : vector<1x1x128xf32> to vector<1x128xf32>
    %cst_158 = arith.constant dense<0.000000e+00> : vector<128xf32>
    %265 = vector.multi_reduction <add>, %260, %cst_158 [0, 1] : vector<2x16x128xf32> to vector<128xf32>
    %266 = vector.shape_cast %265 : vector<128xf32> to vector<1x1x128xf32>
    %cst_159 = arith.constant 3.200000e+01 : f32
    %267 = vector.broadcast %cst_159 : f32 to vector<1x1x128xf32>
    %268 = arith.divf %266, %267 : vector<1x1x128xf32>
    %269 = vector.broadcast %268 : vector<1x1x128xf32> to vector<2x16x128xf32>
    %270 = arith.subf %260, %269 : vector<2x16x128xf32>
    %271 = arith.mulf %270, %270 : vector<2x16x128xf32>
    %cst_160 = arith.constant dense<0.000000e+00> : vector<128xf32>
    %272 = vector.multi_reduction <add>, %271, %cst_160 [0, 1] : vector<2x16x128xf32> to vector<128xf32>
    %273 = vector.shape_cast %272 : vector<128xf32> to vector<1x1x128xf32>
    %cst_161 = arith.constant 3.200000e+01 : f32
    %274 = vector.broadcast %cst_161 : f32 to vector<1x1x128xf32>
    %275 = arith.divf %273, %274 : vector<1x1x128xf32>
    %276 = vector.broadcast %268 : vector<1x1x128xf32> to vector<2x16x128xf32>
    %277 = arith.subf %260, %276 : vector<2x16x128xf32>
    %cst_162 = arith.constant 9.99999974E-6 : f32
    %278 = vector.broadcast %cst_162 : f32 to vector<1x1x128xf32>
    %279 = arith.addf %275, %278 : vector<1x1x128xf32>
    %280 = math.rsqrt %279 : vector<1x1x128xf32>
    %281 = vector.broadcast %280 : vector<1x1x128xf32> to vector<2x16x128xf32>
    %282 = arith.mulf %277, %281 : vector<2x16x128xf32>
    %283 = vector.shape_cast %262 : vector<1x128xf32> to vector<1x1x128xf32>
    %284 = vector.broadcast %283 : vector<1x1x128xf32> to vector<2x16x128xf32>
    %285 = arith.mulf %282, %284 : vector<2x16x128xf32>
    %286 = vector.shape_cast %264 : vector<1x128xf32> to vector<1x1x128xf32>
    %287 = vector.broadcast %286 : vector<1x1x128xf32> to vector<2x16x128xf32>
    %288 = arith.addf %285, %287 : vector<2x16x128xf32>
    %cst_163 = arith.constant 0.000000e+00 : f32
    %289 = vector.broadcast %cst_163 : f32 to vector<2x16x128xf32>
    %290 = arith.cmpf oge, %288, %289 : vector<2x16x128xf32>
    %cst_164 = arith.constant 2.000000e-01 : f32
    %291 = vector.broadcast %cst_164 : f32 to vector<2x16x128xf32>
    %292 = arith.mulf %291, %288 : vector<2x16x128xf32>
    %293 = arith.select %290, %288, %292 : vector<2x16x128xi1>, vector<2x16x128xf32>
    %c0_165 = arith.constant 0 : index
    %c8_166 = arith.constant 8 : index
    %c0_167 = arith.constant 0 : index
    %294 = vector.load %arg20[%c0_165, %c8_166, %c0_167] : memref<2x48x128xf32, #tpu.memory_space<vmem>>, vector<2x16x128xf32>
    tpu.vector_store %arg20[%c0_165, %c8_166, %c0_167], %293 {strides = array<i32>} : memref<2x48x128xf32, #tpu.memory_space<vmem>>, vector<2x16x128xf32>,
    %c0_168 = arith.constant 0 : index
    %c7_169 = arith.constant 7 : index
    %c0_170 = arith.constant 0 : index
    %295 = vector.load %arg20[%c0_168, %c7_169, %c0_170] : memref<2x48x128xf32, #tpu.memory_space<vmem>>, vector<2x16x128xf32>
    %c0_171 = arith.constant 0 : index
    %c9_172 = arith.constant 9 : index
    %c0_173 = arith.constant 0 : index
    %296 = vector.load %arg20[%c0_171, %c9_172, %c0_173] : memref<2x48x128xf32, #tpu.memory_space<vmem>>, vector<2x16x128xf32>
    %c9_174 = arith.constant 9 : index
    %c0_175 = arith.constant 0 : index
    %c0_176 = arith.constant 0 : index
    %297 = vector.load %arg7[%c9_174, %c0_175, %c0_176] : memref<18x128x128xbf16, #tpu.memory_space<vmem>>, vector<1x128x128xbf16>
    %298 = vector.shape_cast %297 : vector<1x128x128xbf16> to vector<128x128xbf16>
    %299 = vector.shape_cast %295 : vector<2x16x128xf32> to vector<32x128xf32>
    %300 = arith.truncf %299 : vector<32x128xf32> to vector<32x128xbf16>
    %cst_177 = arith.constant dense<0.000000e+00> : vector<32x128xf32>
    %301 = tpu.matmul %300, %298, %cst_177 {dimension_numbers = #tpu.dot_dimension_numbers<[1], [0], [0], [1], [0, 0, 1, 1], [], []>} : vector<32x128xbf16>, vector<128x128xbf16>, vector<32x128xf32> -> vector<32x128xf32>
    %302 = vector.shape_cast %301 : vector<32x128xf32> to vector<2x16x128xf32>
    %c10 = arith.constant 10 : index
    %c0_178 = arith.constant 0 : index
    %c0_179 = arith.constant 0 : index
    %303 = vector.load %arg7[%c10, %c0_178, %c0_179] : memref<18x128x128xbf16, #tpu.memory_space<vmem>>, vector<1x128x128xbf16>
    %304 = vector.shape_cast %303 : vector<1x128x128xbf16> to vector<128x128xbf16>
    %305 = vector.shape_cast %293 : vector<2x16x128xf32> to vector<32x128xf32>
    %306 = arith.truncf %305 : vector<32x128xf32> to vector<32x128xbf16>
    %cst_180 = arith.constant dense<0.000000e+00> : vector<32x128xf32>
    %307 = tpu.matmul %306, %304, %cst_180 {dimension_numbers = #tpu.dot_dimension_numbers<[1], [0], [0], [1], [0, 0, 1, 1], [], []>} : vector<32x128xbf16>, vector<128x128xbf16>, vector<32x128xf32> -> vector<32x128xf32>
    %308 = vector.shape_cast %307 : vector<32x128xf32> to vector<2x16x128xf32>
    %309 = arith.addf %302, %308 : vector<2x16x128xf32>
    %c11 = arith.constant 11 : index
    %c0_181 = arith.constant 0 : index
    %c0_182 = arith.constant 0 : index
    %310 = vector.load %arg7[%c11, %c0_181, %c0_182] : memref<18x128x128xbf16, #tpu.memory_space<vmem>>, vector<1x128x128xbf16>
    %311 = vector.shape_cast %310 : vector<1x128x128xbf16> to vector<128x128xbf16>
    %312 = vector.shape_cast %296 : vector<2x16x128xf32> to vector<32x128xf32>
    %313 = arith.truncf %312 : vector<32x128xf32> to vector<32x128xbf16>
    %cst_183 = arith.constant dense<0.000000e+00> : vector<32x128xf32>
    %314 = tpu.matmul %313, %311, %cst_183 {dimension_numbers = #tpu.dot_dimension_numbers<[1], [0], [0], [1], [0, 0, 1, 1], [], []>} : vector<32x128xbf16>, vector<128x128xbf16>, vector<32x128xf32> -> vector<32x128xf32>
    %315 = vector.shape_cast %314 : vector<32x128xf32> to vector<2x16x128xf32>
    %316 = arith.addf %309, %315 : vector<2x16x128xf32>
    %c3_184 = arith.constant 3 : index
    %c0_185 = arith.constant 0 : index
    %c0_186 = arith.constant 0 : index
    %317 = vector.load %arg8[%c3_184, %c0_185, %c0_186] : memref<6x1x128xf32, #tpu.memory_space<vmem>>, vector<1x1x128xf32>
    %318 = vector.shape_cast %317 : vector<1x1x128xf32> to vector<1x128xf32>
    %319 = vector.shape_cast %318 : vector<1x128xf32> to vector<1x1x128xf32>
    %320 = vector.broadcast %319 : vector<1x1x128xf32> to vector<2x16x128xf32>
    %321 = arith.addf %316, %320 : vector<2x16x128xf32>
    %c3_187 = arith.constant 3 : index
    %c0_188 = arith.constant 0 : index
    %c0_189 = arith.constant 0 : index
    %322 = vector.load %arg9[%c3_187, %c0_188, %c0_189] : memref<6x1x128xf32, #tpu.memory_space<vmem>>, vector<1x1x128xf32>
    %323 = vector.shape_cast %322 : vector<1x1x128xf32> to vector<1x128xf32>
    %c3_190 = arith.constant 3 : index
    %c0_191 = arith.constant 0 : index
    %c0_192 = arith.constant 0 : index
    %324 = vector.load %arg10[%c3_190, %c0_191, %c0_192] : memref<6x1x128xf32, #tpu.memory_space<vmem>>, vector<1x1x128xf32>
    %325 = vector.shape_cast %324 : vector<1x1x128xf32> to vector<1x128xf32>
    %cst_193 = arith.constant dense<0.000000e+00> : vector<128xf32>
    %326 = vector.multi_reduction <add>, %321, %cst_193 [0, 1] : vector<2x16x128xf32> to vector<128xf32>
    %327 = vector.shape_cast %326 : vector<128xf32> to vector<1x1x128xf32>
    %cst_194 = arith.constant 3.200000e+01 : f32
    %328 = vector.broadcast %cst_194 : f32 to vector<1x1x128xf32>
    %329 = arith.divf %327, %328 : vector<1x1x128xf32>
    %330 = vector.broadcast %329 : vector<1x1x128xf32> to vector<2x16x128xf32>
    %331 = arith.subf %321, %330 : vector<2x16x128xf32>
    %332 = arith.mulf %331, %331 : vector<2x16x128xf32>
    %cst_195 = arith.constant dense<0.000000e+00> : vector<128xf32>
    %333 = vector.multi_reduction <add>, %332, %cst_195 [0, 1] : vector<2x16x128xf32> to vector<128xf32>
    %334 = vector.shape_cast %333 : vector<128xf32> to vector<1x1x128xf32>
    %cst_196 = arith.constant 3.200000e+01 : f32
    %335 = vector.broadcast %cst_196 : f32 to vector<1x1x128xf32>
    %336 = arith.divf %334, %335 : vector<1x1x128xf32>
    %337 = vector.broadcast %329 : vector<1x1x128xf32> to vector<2x16x128xf32>
    %338 = arith.subf %321, %337 : vector<2x16x128xf32>
    %cst_197 = arith.constant 9.99999974E-6 : f32
    %339 = vector.broadcast %cst_197 : f32 to vector<1x1x128xf32>
    %340 = arith.addf %336, %339 : vector<1x1x128xf32>
    %341 = math.rsqrt %340 : vector<1x1x128xf32>
    %342 = vector.broadcast %341 : vector<1x1x128xf32> to vector<2x16x128xf32>
    %343 = arith.mulf %338, %342 : vector<2x16x128xf32>
    %344 = vector.shape_cast %323 : vector<1x128xf32> to vector<1x1x128xf32>
    %345 = vector.broadcast %344 : vector<1x1x128xf32> to vector<2x16x128xf32>
    %346 = arith.mulf %343, %345 : vector<2x16x128xf32>
    %347 = vector.shape_cast %325 : vector<1x128xf32> to vector<1x1x128xf32>
    %348 = vector.broadcast %347 : vector<1x1x128xf32> to vector<2x16x128xf32>
    %349 = arith.addf %346, %348 : vector<2x16x128xf32>
    %cst_198 = arith.constant 0.000000e+00 : f32
    %350 = vector.broadcast %cst_198 : f32 to vector<2x16x128xf32>
    %351 = arith.cmpf oge, %349, %350 : vector<2x16x128xf32>
    %cst_199 = arith.constant 2.000000e-01 : f32
    %352 = vector.broadcast %cst_199 : f32 to vector<2x16x128xf32>
    %353 = arith.mulf %352, %349 : vector<2x16x128xf32>
    %354 = arith.select %351, %349, %353 : vector<2x16x128xi1>, vector<2x16x128xf32>
    %355 = arith.addf %354, %232 : vector<2x16x128xf32>
    %cst_200 = arith.constant 0.707106769 : f32
    %356 = vector.broadcast %cst_200 : f32 to vector<2x16x128xf32>
    %357 = arith.mulf %355, %356 : vector<2x16x128xf32>
    %358 = vector.extract_strided_slice %357 {offsets = [0, 0, 0], sizes = [2, 1, 128], strides = [1, 1, 1]} : vector<2x16x128xf32> to vector<2x1x128xf32>
    %359 = vector.extract_strided_slice %357 {offsets = [0, 1, 0], sizes = [2, 1, 128], strides = [1, 1, 1]} : vector<2x16x128xf32> to vector<2x1x128xf32>
    %360 = vector.extract_strided_slice %357 {offsets = [0, 2, 0], sizes = [2, 1, 128], strides = [1, 1, 1]} : vector<2x16x128xf32> to vector<2x1x128xf32>
    %361 = vector.extract_strided_slice %357 {offsets = [0, 3, 0], sizes = [2, 1, 128], strides = [1, 1, 1]} : vector<2x16x128xf32> to vector<2x1x128xf32>
    %362 = vector.extract_strided_slice %357 {offsets = [0, 4, 0], sizes = [2, 1, 128], strides = [1, 1, 1]} : vector<2x16x128xf32> to vector<2x1x128xf32>
    %363 = vector.extract_strided_slice %357 {offsets = [0, 5, 0], sizes = [2, 1, 128], strides = [1, 1, 1]} : vector<2x16x128xf32> to vector<2x1x128xf32>
    %364 = vector.extract_strided_slice %357 {offsets = [0, 6, 0], sizes = [2, 1, 128], strides = [1, 1, 1]} : vector<2x16x128xf32> to vector<2x1x128xf32>
    %365 = vector.extract_strided_slice %357 {offsets = [0, 7, 0], sizes = [2, 1, 128], strides = [1, 1, 1]} : vector<2x16x128xf32> to vector<2x1x128xf32>
    %366 = vector.extract_strided_slice %357 {offsets = [0, 8, 0], sizes = [2, 1, 128], strides = [1, 1, 1]} : vector<2x16x128xf32> to vector<2x1x128xf32>
    %367 = vector.extract_strided_slice %357 {offsets = [0, 9, 0], sizes = [2, 1, 128], strides = [1, 1, 1]} : vector<2x16x128xf32> to vector<2x1x128xf32>
    %368 = vector.extract_strided_slice %357 {offsets = [0, 10, 0], sizes = [2, 1, 128], strides = [1, 1, 1]} : vector<2x16x128xf32> to vector<2x1x128xf32>
    %369 = vector.extract_strided_slice %357 {offsets = [0, 11, 0], sizes = [2, 1, 128], strides = [1, 1, 1]} : vector<2x16x128xf32> to vector<2x1x128xf32>
    %370 = vector.extract_strided_slice %357 {offsets = [0, 12, 0], sizes = [2, 1, 128], strides = [1, 1, 1]} : vector<2x16x128xf32> to vector<2x1x128xf32>
    %371 = vector.extract_strided_slice %357 {offsets = [0, 13, 0], sizes = [2, 1, 128], strides = [1, 1, 1]} : vector<2x16x128xf32> to vector<2x1x128xf32>
    %372 = vector.extract_strided_slice %357 {offsets = [0, 14, 0], sizes = [2, 1, 128], strides = [1, 1, 1]} : vector<2x16x128xf32> to vector<2x1x128xf32>
    %373 = vector.extract_strided_slice %357 {offsets = [0, 15, 0], sizes = [2, 1, 128], strides = [1, 1, 1]} : vector<2x16x128xf32> to vector<2x1x128xf32>
    %374 = tpu.concatenate %358, %358, %359, %359, %360, %360, %361, %361, %362, %362, %363, %363, %364, %364, %365, %365 in 1 : vector<2x1x128xf32>, vector<2x1x128xf32>, vector<2x1x128xf32>, vector<2x1x128xf32>, vector<2x1x128xf32>, vector<2x1x128xf32>, vector<2x1x128xf32>, vector<2x1x128xf32>, vector<2x1x128xf32>, vector<2x1x128xf32>, vector<2x1x128xf32>, vector<2x1x128xf32>, vector<2x1x128xf32>, vector<2x1x128xf32>, vector<2x1x128xf32>, vector<2x1x128xf32> -> vector<2x16x128xf32>
    %375 = tpu.concatenate %366, %366, %367, %367, %368, %368, %369, %369, %370, %370, %371, %371, %372, %372, %373, %373 in 1 : vector<2x1x128xf32>, vector<2x1x128xf32>, vector<2x1x128xf32>, vector<2x1x128xf32>, vector<2x1x128xf32>, vector<2x1x128xf32>, vector<2x1x128xf32>, vector<2x1x128xf32>, vector<2x1x128xf32>, vector<2x1x128xf32>, vector<2x1x128xf32>, vector<2x1x128xf32>, vector<2x1x128xf32>, vector<2x1x128xf32>, vector<2x1x128xf32>, vector<2x1x128xf32> -> vector<2x16x128xf32>
    %376 = tpu.concatenate %374, %375 in 1 : vector<2x16x128xf32>, vector<2x16x128xf32> -> vector<2x32x128xf32>
    %c2_201 = arith.constant 2 : index
    %c0_202 = arith.constant 0 : index
    %c0_203 = arith.constant 0 : index
    %377 = vector.load %arg11[%c2_201, %c0_202, %c0_203] : memref<3x128x128xbf16, #tpu.memory_space<vmem>>, vector<1x128x128xbf16>
    %378 = vector.shape_cast %377 : vector<1x128x128xbf16> to vector<128x128xbf16>
    %379 = vector.shape_cast %376 : vector<2x32x128xf32> to vector<64x128xf32>
    %380 = arith.truncf %379 : vector<64x128xf32> to vector<64x128xbf16>
    %cst_204 = arith.constant dense<0.000000e+00> : vector<64x128xf32>
    %381 = tpu.matmul %380, %378, %cst_204 {dimension_numbers = #tpu.dot_dimension_numbers<[1], [0], [0], [1], [0, 0, 1, 1], [], []>} : vector<64x128xbf16>, vector<128x128xbf16>, vector<64x128xf32> -> vector<64x128xf32>
    %382 = vector.shape_cast %381 : vector<64x128xf32> to vector<2x32x128xf32>
    %c2_205 = arith.constant 2 : index
    %c0_206 = arith.constant 0 : index
    %c0_207 = arith.constant 0 : index
    %383 = vector.load %arg12[%c2_205, %c0_206, %c0_207] : memref<3x1x128xf32, #tpu.memory_space<vmem>>, vector<1x1x128xf32>
    %384 = vector.shape_cast %383 : vector<1x1x128xf32> to vector<1x128xf32>
    %385 = vector.shape_cast %384 : vector<1x128xf32> to vector<1x1x128xf32>
    %386 = vector.broadcast %385 : vector<1x1x128xf32> to vector<2x32x128xf32>
    %387 = arith.addf %382, %386 : vector<2x32x128xf32>
    %c0_208 = arith.constant 0 : index
    %c8_209 = arith.constant 8 : index
    %c0_210 = arith.constant 0 : index
    %388 = vector.load %arg20[%c0_208, %c8_209, %c0_210] : memref<2x48x128xf32, #tpu.memory_space<vmem>>, vector<2x32x128xf32>
    tpu.vector_store %arg20[%c0_208, %c8_209, %c0_210], %376 {strides = array<i32>} : memref<2x48x128xf32, #tpu.memory_space<vmem>>, vector<2x32x128xf32>,
    %c0_211 = arith.constant 0 : index
    %c7_212 = arith.constant 7 : index
    %c0_213 = arith.constant 0 : index
    %389 = vector.load %arg20[%c0_211, %c7_212, %c0_213] : memref<2x48x128xf32, #tpu.memory_space<vmem>>, vector<2x32x128xf32>
    %c0_214 = arith.constant 0 : index
    %c9_215 = arith.constant 9 : index
    %c0_216 = arith.constant 0 : index
    %390 = vector.load %arg20[%c0_214, %c9_215, %c0_216] : memref<2x48x128xf32, #tpu.memory_space<vmem>>, vector<2x32x128xf32>
    %c12 = arith.constant 12 : index
    %c0_217 = arith.constant 0 : index
    %c0_218 = arith.constant 0 : index
    %391 = vector.load %arg7[%c12, %c0_217, %c0_218] : memref<18x128x128xbf16, #tpu.memory_space<vmem>>, vector<1x128x128xbf16>
    %392 = vector.shape_cast %391 : vector<1x128x128xbf16> to vector<128x128xbf16>
    %393 = vector.shape_cast %389 : vector<2x32x128xf32> to vector<64x128xf32>
    %394 = arith.truncf %393 : vector<64x128xf32> to vector<64x128xbf16>
    %cst_219 = arith.constant dense<0.000000e+00> : vector<64x128xf32>
    %395 = tpu.matmul %394, %392, %cst_219 {dimension_numbers = #tpu.dot_dimension_numbers<[1], [0], [0], [1], [0, 0, 1, 1], [], []>} : vector<64x128xbf16>, vector<128x128xbf16>, vector<64x128xf32> -> vector<64x128xf32>
    %396 = vector.shape_cast %395 : vector<64x128xf32> to vector<2x32x128xf32>
    %c13 = arith.constant 13 : index
    %c0_220 = arith.constant 0 : index
    %c0_221 = arith.constant 0 : index
    %397 = vector.load %arg7[%c13, %c0_220, %c0_221] : memref<18x128x128xbf16, #tpu.memory_space<vmem>>, vector<1x128x128xbf16>
    %398 = vector.shape_cast %397 : vector<1x128x128xbf16> to vector<128x128xbf16>
    %399 = vector.shape_cast %376 : vector<2x32x128xf32> to vector<64x128xf32>
    %400 = arith.truncf %399 : vector<64x128xf32> to vector<64x128xbf16>
    %cst_222 = arith.constant dense<0.000000e+00> : vector<64x128xf32>
    %401 = tpu.matmul %400, %398, %cst_222 {dimension_numbers = #tpu.dot_dimension_numbers<[1], [0], [0], [1], [0, 0, 1, 1], [], []>} : vector<64x128xbf16>, vector<128x128xbf16>, vector<64x128xf32> -> vector<64x128xf32>
    %402 = vector.shape_cast %401 : vector<64x128xf32> to vector<2x32x128xf32>
    %403 = arith.addf %396, %402 : vector<2x32x128xf32>
    %c14 = arith.constant 14 : index
    %c0_223 = arith.constant 0 : index
    %c0_224 = arith.constant 0 : index
    %404 = vector.load %arg7[%c14, %c0_223, %c0_224] : memref<18x128x128xbf16, #tpu.memory_space<vmem>>, vector<1x128x128xbf16>
    %405 = vector.shape_cast %404 : vector<1x128x128xbf16> to vector<128x128xbf16>
    %406 = vector.shape_cast %390 : vector<2x32x128xf32> to vector<64x128xf32>
    %407 = arith.truncf %406 : vector<64x128xf32> to vector<64x128xbf16>
    %cst_225 = arith.constant dense<0.000000e+00> : vector<64x128xf32>
    %408 = tpu.matmul %407, %405, %cst_225 {dimension_numbers = #tpu.dot_dimension_numbers<[1], [0], [0], [1], [0, 0, 1, 1], [], []>} : vector<64x128xbf16>, vector<128x128xbf16>, vector<64x128xf32> -> vector<64x128xf32>
    %409 = vector.shape_cast %408 : vector<64x128xf32> to vector<2x32x128xf32>
    %410 = arith.addf %403, %409 : vector<2x32x128xf32>
    %c4_226 = arith.constant 4 : index
    %c0_227 = arith.constant 0 : index
    %c0_228 = arith.constant 0 : index
    %411 = vector.load %arg8[%c4_226, %c0_227, %c0_228] : memref<6x1x128xf32, #tpu.memory_space<vmem>>, vector<1x1x128xf32>
    %412 = vector.shape_cast %411 : vector<1x1x128xf32> to vector<1x128xf32>
    %413 = vector.shape_cast %412 : vector<1x128xf32> to vector<1x1x128xf32>
    %414 = vector.broadcast %413 : vector<1x1x128xf32> to vector<2x32x128xf32>
    %415 = arith.addf %410, %414 : vector<2x32x128xf32>
    %c4_229 = arith.constant 4 : index
    %c0_230 = arith.constant 0 : index
    %c0_231 = arith.constant 0 : index
    %416 = vector.load %arg9[%c4_229, %c0_230, %c0_231] : memref<6x1x128xf32, #tpu.memory_space<vmem>>, vector<1x1x128xf32>
    %417 = vector.shape_cast %416 : vector<1x1x128xf32> to vector<1x128xf32>
    %c4_232 = arith.constant 4 : index
    %c0_233 = arith.constant 0 : index
    %c0_234 = arith.constant 0 : index
    %418 = vector.load %arg10[%c4_232, %c0_233, %c0_234] : memref<6x1x128xf32, #tpu.memory_space<vmem>>, vector<1x1x128xf32>
    %419 = vector.shape_cast %418 : vector<1x1x128xf32> to vector<1x128xf32>
    %cst_235 = arith.constant dense<0.000000e+00> : vector<128xf32>
    %420 = vector.multi_reduction <add>, %415, %cst_235 [0, 1] : vector<2x32x128xf32> to vector<128xf32>
    %421 = vector.shape_cast %420 : vector<128xf32> to vector<1x1x128xf32>
    %cst_236 = arith.constant 6.400000e+01 : f32
    %422 = vector.broadcast %cst_236 : f32 to vector<1x1x128xf32>
    %423 = arith.divf %421, %422 : vector<1x1x128xf32>
    %424 = vector.broadcast %423 : vector<1x1x128xf32> to vector<2x32x128xf32>
    %425 = arith.subf %415, %424 : vector<2x32x128xf32>
    %426 = arith.mulf %425, %425 : vector<2x32x128xf32>
    %cst_237 = arith.constant dense<0.000000e+00> : vector<128xf32>
    %427 = vector.multi_reduction <add>, %426, %cst_237 [0, 1] : vector<2x32x128xf32> to vector<128xf32>
    %428 = vector.shape_cast %427 : vector<128xf32> to vector<1x1x128xf32>
    %cst_238 = arith.constant 6.400000e+01 : f32
    %429 = vector.broadcast %cst_238 : f32 to vector<1x1x128xf32>
    %430 = arith.divf %428, %429 : vector<1x1x128xf32>
    %431 = vector.broadcast %423 : vector<1x1x128xf32> to vector<2x32x128xf32>
    %432 = arith.subf %415, %431 : vector<2x32x128xf32>
    %cst_239 = arith.constant 9.99999974E-6 : f32
    %433 = vector.broadcast %cst_239 : f32 to vector<1x1x128xf32>
    %434 = arith.addf %430, %433 : vector<1x1x128xf32>
    %435 = math.rsqrt %434 : vector<1x1x128xf32>
    %436 = vector.broadcast %435 : vector<1x1x128xf32> to vector<2x32x128xf32>
    %437 = arith.mulf %432, %436 : vector<2x32x128xf32>
    %438 = vector.shape_cast %417 : vector<1x128xf32> to vector<1x1x128xf32>
    %439 = vector.broadcast %438 : vector<1x1x128xf32> to vector<2x32x128xf32>
    %440 = arith.mulf %437, %439 : vector<2x32x128xf32>
    %441 = vector.shape_cast %419 : vector<1x128xf32> to vector<1x1x128xf32>
    %442 = vector.broadcast %441 : vector<1x1x128xf32> to vector<2x32x128xf32>
    %443 = arith.addf %440, %442 : vector<2x32x128xf32>
    %cst_240 = arith.constant 0.000000e+00 : f32
    %444 = vector.broadcast %cst_240 : f32 to vector<2x32x128xf32>
    %445 = arith.cmpf oge, %443, %444 : vector<2x32x128xf32>
    %cst_241 = arith.constant 2.000000e-01 : f32
    %446 = vector.broadcast %cst_241 : f32 to vector<2x32x128xf32>
    %447 = arith.mulf %446, %443 : vector<2x32x128xf32>
    %448 = arith.select %445, %443, %447 : vector<2x32x128xi1>, vector<2x32x128xf32>
    %c0_242 = arith.constant 0 : index
    %c8_243 = arith.constant 8 : index
    %c0_244 = arith.constant 0 : index
    %449 = vector.load %arg20[%c0_242, %c8_243, %c0_244] : memref<2x48x128xf32, #tpu.memory_space<vmem>>, vector<2x32x128xf32>
    tpu.vector_store %arg20[%c0_242, %c8_243, %c0_244], %448 {strides = array<i32>} : memref<2x48x128xf32, #tpu.memory_space<vmem>>, vector<2x32x128xf32>,
    %c0_245 = arith.constant 0 : index
    %c7_246 = arith.constant 7 : index
    %c0_247 = arith.constant 0 : index
    %450 = vector.load %arg20[%c0_245, %c7_246, %c0_247] : memref<2x48x128xf32, #tpu.memory_space<vmem>>, vector<2x32x128xf32>
    %c0_248 = arith.constant 0 : index
    %c9_249 = arith.constant 9 : index
    %c0_250 = arith.constant 0 : index
    %451 = vector.load %arg20[%c0_248, %c9_249, %c0_250] : memref<2x48x128xf32, #tpu.memory_space<vmem>>, vector<2x32x128xf32>
    %c15 = arith.constant 15 : index
    %c0_251 = arith.constant 0 : index
    %c0_252 = arith.constant 0 : index
    %452 = vector.load %arg7[%c15, %c0_251, %c0_252] : memref<18x128x128xbf16, #tpu.memory_space<vmem>>, vector<1x128x128xbf16>
    %453 = vector.shape_cast %452 : vector<1x128x128xbf16> to vector<128x128xbf16>
    %454 = vector.shape_cast %450 : vector<2x32x128xf32> to vector<64x128xf32>
    %455 = arith.truncf %454 : vector<64x128xf32> to vector<64x128xbf16>
    %cst_253 = arith.constant dense<0.000000e+00> : vector<64x128xf32>
    %456 = tpu.matmul %455, %453, %cst_253 {dimension_numbers = #tpu.dot_dimension_numbers<[1], [0], [0], [1], [0, 0, 1, 1], [], []>} : vector<64x128xbf16>, vector<128x128xbf16>, vector<64x128xf32> -> vector<64x128xf32>
    %457 = vector.shape_cast %456 : vector<64x128xf32> to vector<2x32x128xf32>
    %c16 = arith.constant 16 : index
    %c0_254 = arith.constant 0 : index
    %c0_255 = arith.constant 0 : index
    %458 = vector.load %arg7[%c16, %c0_254, %c0_255] : memref<18x128x128xbf16, #tpu.memory_space<vmem>>, vector<1x128x128xbf16>
    %459 = vector.shape_cast %458 : vector<1x128x128xbf16> to vector<128x128xbf16>
    %460 = vector.shape_cast %448 : vector<2x32x128xf32> to vector<64x128xf32>
    %461 = arith.truncf %460 : vector<64x128xf32> to vector<64x128xbf16>
    %cst_256 = arith.constant dense<0.000000e+00> : vector<64x128xf32>
    %462 = tpu.matmul %461, %459, %cst_256 {dimension_numbers = #tpu.dot_dimension_numbers<[1], [0], [0], [1], [0, 0, 1, 1], [], []>} : vector<64x128xbf16>, vector<128x128xbf16>, vector<64x128xf32> -> vector<64x128xf32>
    %463 = vector.shape_cast %462 : vector<64x128xf32> to vector<2x32x128xf32>
    %464 = arith.addf %457, %463 : vector<2x32x128xf32>
    %c17 = arith.constant 17 : index
    %c0_257 = arith.constant 0 : index
    %c0_258 = arith.constant 0 : index
    %465 = vector.load %arg7[%c17, %c0_257, %c0_258] : memref<18x128x128xbf16, #tpu.memory_space<vmem>>, vector<1x128x128xbf16>
    %466 = vector.shape_cast %465 : vector<1x128x128xbf16> to vector<128x128xbf16>
    %467 = vector.shape_cast %451 : vector<2x32x128xf32> to vector<64x128xf32>
    %468 = arith.truncf %467 : vector<64x128xf32> to vector<64x128xbf16>
    %cst_259 = arith.constant dense<0.000000e+00> : vector<64x128xf32>
    %469 = tpu.matmul %468, %466, %cst_259 {dimension_numbers = #tpu.dot_dimension_numbers<[1], [0], [0], [1], [0, 0, 1, 1], [], []>} : vector<64x128xbf16>, vector<128x128xbf16>, vector<64x128xf32> -> vector<64x128xf32>
    %470 = vector.shape_cast %469 : vector<64x128xf32> to vector<2x32x128xf32>
    %471 = arith.addf %464, %470 : vector<2x32x128xf32>
    %c5_260 = arith.constant 5 : index
    %c0_261 = arith.constant 0 : index
    %c0_262 = arith.constant 0 : index
    %472 = vector.load %arg8[%c5_260, %c0_261, %c0_262] : memref<6x1x128xf32, #tpu.memory_space<vmem>>, vector<1x1x128xf32>
    %473 = vector.shape_cast %472 : vector<1x1x128xf32> to vector<1x128xf32>
    %474 = vector.shape_cast %473 : vector<1x128xf32> to vector<1x1x128xf32>
    %475 = vector.broadcast %474 : vector<1x1x128xf32> to vector<2x32x128xf32>
    %476 = arith.addf %471, %475 : vector<2x32x128xf32>
    %c5_263 = arith.constant 5 : index
    %c0_264 = arith.constant 0 : index
    %c0_265 = arith.constant 0 : index
    %477 = vector.load %arg9[%c5_263, %c0_264, %c0_265] : memref<6x1x128xf32, #tpu.memory_space<vmem>>, vector<1x1x128xf32>
    %478 = vector.shape_cast %477 : vector<1x1x128xf32> to vector<1x128xf32>
    %c5_266 = arith.constant 5 : index
    %c0_267 = arith.constant 0 : index
    %c0_268 = arith.constant 0 : index
    %479 = vector.load %arg10[%c5_266, %c0_267, %c0_268] : memref<6x1x128xf32, #tpu.memory_space<vmem>>, vector<1x1x128xf32>
    %480 = vector.shape_cast %479 : vector<1x1x128xf32> to vector<1x128xf32>
    %cst_269 = arith.constant dense<0.000000e+00> : vector<128xf32>
    %481 = vector.multi_reduction <add>, %476, %cst_269 [0, 1] : vector<2x32x128xf32> to vector<128xf32>
    %482 = vector.shape_cast %481 : vector<128xf32> to vector<1x1x128xf32>
    %cst_270 = arith.constant 6.400000e+01 : f32
    %483 = vector.broadcast %cst_270 : f32 to vector<1x1x128xf32>
    %484 = arith.divf %482, %483 : vector<1x1x128xf32>
    %485 = vector.broadcast %484 : vector<1x1x128xf32> to vector<2x32x128xf32>
    %486 = arith.subf %476, %485 : vector<2x32x128xf32>
    %487 = arith.mulf %486, %486 : vector<2x32x128xf32>
    %cst_271 = arith.constant dense<0.000000e+00> : vector<128xf32>
    %488 = vector.multi_reduction <add>, %487, %cst_271 [0, 1] : vector<2x32x128xf32> to vector<128xf32>
    %489 = vector.shape_cast %488 : vector<128xf32> to vector<1x1x128xf32>
    %cst_272 = arith.constant 6.400000e+01 : f32
    %490 = vector.broadcast %cst_272 : f32 to vector<1x1x128xf32>
    %491 = arith.divf %489, %490 : vector<1x1x128xf32>
    %492 = vector.broadcast %484 : vector<1x1x128xf32> to vector<2x32x128xf32>
    %493 = arith.subf %476, %492 : vector<2x32x128xf32>
    %cst_273 = arith.constant 9.99999974E-6 : f32
    %494 = vector.broadcast %cst_273 : f32 to vector<1x1x128xf32>
    %495 = arith.addf %491, %494 : vector<1x1x128xf32>
    %496 = math.rsqrt %495 : vector<1x1x128xf32>
    %497 = vector.broadcast %496 : vector<1x1x128xf32> to vector<2x32x128xf32>
    %498 = arith.mulf %493, %497 : vector<2x32x128xf32>
    %499 = vector.shape_cast %478 : vector<1x128xf32> to vector<1x1x128xf32>
    %500 = vector.broadcast %499 : vector<1x1x128xf32> to vector<2x32x128xf32>
    %501 = arith.mulf %498, %500 : vector<2x32x128xf32>
    %502 = vector.shape_cast %480 : vector<1x128xf32> to vector<1x1x128xf32>
    %503 = vector.broadcast %502 : vector<1x1x128xf32> to vector<2x32x128xf32>
    %504 = arith.addf %501, %503 : vector<2x32x128xf32>
    %cst_274 = arith.constant 0.000000e+00 : f32
    %505 = vector.broadcast %cst_274 : f32 to vector<2x32x128xf32>
    %506 = arith.cmpf oge, %504, %505 : vector<2x32x128xf32>
    %cst_275 = arith.constant 2.000000e-01 : f32
    %507 = vector.broadcast %cst_275 : f32 to vector<2x32x128xf32>
    %508 = arith.mulf %507, %504 : vector<2x32x128xf32>
    %509 = arith.select %506, %504, %508 : vector<2x32x128xi1>, vector<2x32x128xf32>
    %510 = arith.addf %509, %387 : vector<2x32x128xf32>
    %cst_276 = arith.constant 0.707106769 : f32
    %511 = vector.broadcast %cst_276 : f32 to vector<2x32x128xf32>
    %512 = arith.mulf %510, %511 : vector<2x32x128xf32>
    %c0_277 = arith.constant 0 : index
    %c8_278 = arith.constant 8 : index
    %c0_279 = arith.constant 0 : index
    %513 = vector.load %arg20[%c0_277, %c8_278, %c0_279] : memref<2x48x128xf32, #tpu.memory_space<vmem>>, vector<2x32x128xf32>
    tpu.vector_store %arg20[%c0_277, %c8_278, %c0_279], %512 {strides = array<i32>} : memref<2x48x128xf32, #tpu.memory_space<vmem>>, vector<2x32x128xf32>,
    %c0_280 = arith.constant 0 : index
    %c7_281 = arith.constant 7 : index
    %c0_282 = arith.constant 0 : index
    %514 = vector.load %arg20[%c0_280, %c7_281, %c0_282] : memref<2x48x128xf32, #tpu.memory_space<vmem>>, vector<2x32x128xf32>
    %c0_283 = arith.constant 0 : index
    %c9_284 = arith.constant 9 : index
    %c0_285 = arith.constant 0 : index
    %515 = vector.load %arg20[%c0_283, %c9_284, %c0_285] : memref<2x48x128xf32, #tpu.memory_space<vmem>>, vector<2x32x128xf32>
    %c0_286 = arith.constant 0 : index
    %c0_287 = arith.constant 0 : index
    %c0_288 = arith.constant 0 : index
    %516 = vector.load %arg13[%c0_286, %c0_287, %c0_288] : memref<12x128x128xbf16, #tpu.memory_space<vmem>>, vector<1x128x128xbf16>
    %517 = vector.shape_cast %516 : vector<1x128x128xbf16> to vector<128x128xbf16>
    %518 = vector.shape_cast %514 : vector<2x32x128xf32> to vector<64x128xf32>
    %519 = arith.truncf %518 : vector<64x128xf32> to vector<64x128xbf16>
    %cst_289 = arith.constant dense<0.000000e+00> : vector<64x128xf32>
    %520 = tpu.matmul %519, %517, %cst_289 {dimension_numbers = #tpu.dot_dimension_numbers<[1], [0], [0], [1], [0, 0, 1, 1], [], []>} : vector<64x128xbf16>, vector<128x128xbf16>, vector<64x128xf32> -> vector<64x128xf32>
    %521 = vector.shape_cast %520 : vector<64x128xf32> to vector<2x32x128xf32>
    %c1_290 = arith.constant 1 : index
    %c0_291 = arith.constant 0 : index
    %c0_292 = arith.constant 0 : index
    %522 = vector.load %arg13[%c1_290, %c0_291, %c0_292] : memref<12x128x128xbf16, #tpu.memory_space<vmem>>, vector<1x128x128xbf16>
    %523 = vector.shape_cast %522 : vector<1x128x128xbf16> to vector<128x128xbf16>
    %524 = vector.shape_cast %512 : vector<2x32x128xf32> to vector<64x128xf32>
    %525 = arith.truncf %524 : vector<64x128xf32> to vector<64x128xbf16>
    %cst_293 = arith.constant dense<0.000000e+00> : vector<64x128xf32>
    %526 = tpu.matmul %525, %523, %cst_293 {dimension_numbers = #tpu.dot_dimension_numbers<[1], [0], [0], [1], [0, 0, 1, 1], [], []>} : vector<64x128xbf16>, vector<128x128xbf16>, vector<64x128xf32> -> vector<64x128xf32>
    %527 = vector.shape_cast %526 : vector<64x128xf32> to vector<2x32x128xf32>
    %528 = arith.addf %521, %527 : vector<2x32x128xf32>
    %c2_294 = arith.constant 2 : index
    %c0_295 = arith.constant 0 : index
    %c0_296 = arith.constant 0 : index
    %529 = vector.load %arg13[%c2_294, %c0_295, %c0_296] : memref<12x128x128xbf16, #tpu.memory_space<vmem>>, vector<1x128x128xbf16>
    %530 = vector.shape_cast %529 : vector<1x128x128xbf16> to vector<128x128xbf16>
    %531 = vector.shape_cast %515 : vector<2x32x128xf32> to vector<64x128xf32>
    %532 = arith.truncf %531 : vector<64x128xf32> to vector<64x128xbf16>
    %cst_297 = arith.constant dense<0.000000e+00> : vector<64x128xf32>
    %533 = tpu.matmul %532, %530, %cst_297 {dimension_numbers = #tpu.dot_dimension_numbers<[1], [0], [0], [1], [0, 0, 1, 1], [], []>} : vector<64x128xbf16>, vector<128x128xbf16>, vector<64x128xf32> -> vector<64x128xf32>
    %534 = vector.shape_cast %533 : vector<64x128xf32> to vector<2x32x128xf32>
    %535 = arith.addf %528, %534 : vector<2x32x128xf32>
    %c0_298 = arith.constant 0 : index
    %c0_299 = arith.constant 0 : index
    %c0_300 = arith.constant 0 : index
    %536 = vector.load %arg14[%c0_298, %c0_299, %c0_300] : memref<4x1x128xf32, #tpu.memory_space<vmem>>, vector<1x1x128xf32>
    %537 = vector.shape_cast %536 : vector<1x1x128xf32> to vector<1x128xf32>
    %538 = vector.shape_cast %537 : vector<1x128xf32> to vector<1x1x128xf32>
    %539 = vector.broadcast %538 : vector<1x1x128xf32> to vector<2x32x128xf32>
    %540 = arith.addf %535, %539 : vector<2x32x128xf32>
    %c0_301 = arith.constant 0 : index
    %c0_302 = arith.constant 0 : index
    %c0_303 = arith.constant 0 : index
    %541 = vector.load %arg15[%c0_301, %c0_302, %c0_303] : memref<4x1x128xf32, #tpu.memory_space<vmem>>, vector<1x1x128xf32>
    %542 = vector.shape_cast %541 : vector<1x1x128xf32> to vector<1x128xf32>
    %c0_304 = arith.constant 0 : index
    %c0_305 = arith.constant 0 : index
    %c0_306 = arith.constant 0 : index
    %543 = vector.load %arg16[%c0_304, %c0_305, %c0_306] : memref<4x1x128xf32, #tpu.memory_space<vmem>>, vector<1x1x128xf32>
    %544 = vector.shape_cast %543 : vector<1x1x128xf32> to vector<1x128xf32>
    %cst_307 = arith.constant dense<0.000000e+00> : vector<128xf32>
    %545 = vector.multi_reduction <add>, %540, %cst_307 [0, 1] : vector<2x32x128xf32> to vector<128xf32>
    %546 = vector.shape_cast %545 : vector<128xf32> to vector<1x1x128xf32>
    %cst_308 = arith.constant 6.400000e+01 : f32
    %547 = vector.broadcast %cst_308 : f32 to vector<1x1x128xf32>
    %548 = arith.divf %546, %547 : vector<1x1x128xf32>
    %549 = vector.broadcast %548 : vector<1x1x128xf32> to vector<2x32x128xf32>
    %550 = arith.subf %540, %549 : vector<2x32x128xf32>
    %551 = arith.mulf %550, %550 : vector<2x32x128xf32>
    %cst_309 = arith.constant dense<0.000000e+00> : vector<128xf32>
    %552 = vector.multi_reduction <add>, %551, %cst_309 [0, 1] : vector<2x32x128xf32> to vector<128xf32>
    %553 = vector.shape_cast %552 : vector<128xf32> to vector<1x1x128xf32>
    %cst_310 = arith.constant 6.400000e+01 : f32
    %554 = vector.broadcast %cst_310 : f32 to vector<1x1x128xf32>
    %555 = arith.divf %553, %554 : vector<1x1x128xf32>
    %556 = vector.broadcast %548 : vector<1x1x128xf32> to vector<2x32x128xf32>
    %557 = arith.subf %540, %556 : vector<2x32x128xf32>
    %cst_311 = arith.constant 9.99999974E-6 : f32
    %558 = vector.broadcast %cst_311 : f32 to vector<1x1x128xf32>
    %559 = arith.addf %555, %558 : vector<1x1x128xf32>
    %560 = math.rsqrt %559 : vector<1x1x128xf32>
    %561 = vector.broadcast %560 : vector<1x1x128xf32> to vector<2x32x128xf32>
    %562 = arith.mulf %557, %561 : vector<2x32x128xf32>
    %563 = vector.shape_cast %542 : vector<1x128xf32> to vector<1x1x128xf32>
    %564 = vector.broadcast %563 : vector<1x1x128xf32> to vector<2x32x128xf32>
    %565 = arith.mulf %562, %564 : vector<2x32x128xf32>
    %566 = vector.shape_cast %544 : vector<1x128xf32> to vector<1x1x128xf32>
    %567 = vector.broadcast %566 : vector<1x1x128xf32> to vector<2x32x128xf32>
    %568 = arith.addf %565, %567 : vector<2x32x128xf32>
    %cst_312 = arith.constant 0.000000e+00 : f32
    %569 = vector.broadcast %cst_312 : f32 to vector<2x32x128xf32>
    %570 = arith.cmpf oge, %568, %569 : vector<2x32x128xf32>
    %cst_313 = arith.constant 2.000000e-01 : f32
    %571 = vector.broadcast %cst_313 : f32 to vector<2x32x128xf32>
    %572 = arith.mulf %571, %568 : vector<2x32x128xf32>
    %573 = arith.select %570, %568, %572 : vector<2x32x128xi1>, vector<2x32x128xf32>
    %c0_314 = arith.constant 0 : index
    %c8_315 = arith.constant 8 : index
    %c0_316 = arith.constant 0 : index
    %574 = vector.load %arg20[%c0_314, %c8_315, %c0_316] : memref<2x48x128xf32, #tpu.memory_space<vmem>>, vector<2x32x128xf32>
    tpu.vector_store %arg20[%c0_314, %c8_315, %c0_316], %573 {strides = array<i32>} : memref<2x48x128xf32, #tpu.memory_space<vmem>>, vector<2x32x128xf32>,
    %c0_317 = arith.constant 0 : index
    %c7_318 = arith.constant 7 : index
    %c0_319 = arith.constant 0 : index
    %575 = vector.load %arg20[%c0_317, %c7_318, %c0_319] : memref<2x48x128xf32, #tpu.memory_space<vmem>>, vector<2x32x128xf32>
    %c0_320 = arith.constant 0 : index
    %c9_321 = arith.constant 9 : index
    %c0_322 = arith.constant 0 : index
    %576 = vector.load %arg20[%c0_320, %c9_321, %c0_322] : memref<2x48x128xf32, #tpu.memory_space<vmem>>, vector<2x32x128xf32>
    %c3_323 = arith.constant 3 : index
    %c0_324 = arith.constant 0 : index
    %c0_325 = arith.constant 0 : index
    %577 = vector.load %arg13[%c3_323, %c0_324, %c0_325] : memref<12x128x128xbf16, #tpu.memory_space<vmem>>, vector<1x128x128xbf16>
    %578 = vector.shape_cast %577 : vector<1x128x128xbf16> to vector<128x128xbf16>
    %579 = vector.shape_cast %575 : vector<2x32x128xf32> to vector<64x128xf32>
    %580 = arith.truncf %579 : vector<64x128xf32> to vector<64x128xbf16>
    %cst_326 = arith.constant dense<0.000000e+00> : vector<64x128xf32>
    %581 = tpu.matmul %580, %578, %cst_326 {dimension_numbers = #tpu.dot_dimension_numbers<[1], [0], [0], [1], [0, 0, 1, 1], [], []>} : vector<64x128xbf16>, vector<128x128xbf16>, vector<64x128xf32> -> vector<64x128xf32>
    %582 = vector.shape_cast %581 : vector<64x128xf32> to vector<2x32x128xf32>
    %c4_327 = arith.constant 4 : index
    %c0_328 = arith.constant 0 : index
    %c0_329 = arith.constant 0 : index
    %583 = vector.load %arg13[%c4_327, %c0_328, %c0_329] : memref<12x128x128xbf16, #tpu.memory_space<vmem>>, vector<1x128x128xbf16>
    %584 = vector.shape_cast %583 : vector<1x128x128xbf16> to vector<128x128xbf16>
    %585 = vector.shape_cast %573 : vector<2x32x128xf32> to vector<64x128xf32>
    %586 = arith.truncf %585 : vector<64x128xf32> to vector<64x128xbf16>
    %cst_330 = arith.constant dense<0.000000e+00> : vector<64x128xf32>
    %587 = tpu.matmul %586, %584, %cst_330 {dimension_numbers = #tpu.dot_dimension_numbers<[1], [0], [0], [1], [0, 0, 1, 1], [], []>} : vector<64x128xbf16>, vector<128x128xbf16>, vector<64x128xf32> -> vector<64x128xf32>
    %588 = vector.shape_cast %587 : vector<64x128xf32> to vector<2x32x128xf32>
    %589 = arith.addf %582, %588 : vector<2x32x128xf32>
    %c5_331 = arith.constant 5 : index
    %c0_332 = arith.constant 0 : index
    %c0_333 = arith.constant 0 : index
    %590 = vector.load %arg13[%c5_331, %c0_332, %c0_333] : memref<12x128x128xbf16, #tpu.memory_space<vmem>>, vector<1x128x128xbf16>
    %591 = vector.shape_cast %590 : vector<1x128x128xbf16> to vector<128x128xbf16>
    %592 = vector.shape_cast %576 : vector<2x32x128xf32> to vector<64x128xf32>
    %593 = arith.truncf %592 : vector<64x128xf32> to vector<64x128xbf16>
    %cst_334 = arith.constant dense<0.000000e+00> : vector<64x128xf32>
    %594 = tpu.matmul %593, %591, %cst_334 {dimension_numbers = #tpu.dot_dimension_numbers<[1], [0], [0], [1], [0, 0, 1, 1], [], []>} : vector<64x128xbf16>, vector<128x128xbf16>, vector<64x128xf32> -> vector<64x128xf32>
    %595 = vector.shape_cast %594 : vector<64x128xf32> to vector<2x32x128xf32>
    %596 = arith.addf %589, %595 : vector<2x32x128xf32>
    %c1_335 = arith.constant 1 : index
    %c0_336 = arith.constant 0 : index
    %c0_337 = arith.constant 0 : index
    %597 = vector.load %arg14[%c1_335, %c0_336, %c0_337] : memref<4x1x128xf32, #tpu.memory_space<vmem>>, vector<1x1x128xf32>
    %598 = vector.shape_cast %597 : vector<1x1x128xf32> to vector<1x128xf32>
    %599 = vector.shape_cast %598 : vector<1x128xf32> to vector<1x1x128xf32>
    %600 = vector.broadcast %599 : vector<1x1x128xf32> to vector<2x32x128xf32>
    %601 = arith.addf %596, %600 : vector<2x32x128xf32>
    %c1_338 = arith.constant 1 : index
    %c0_339 = arith.constant 0 : index
    %c0_340 = arith.constant 0 : index
    %602 = vector.load %arg15[%c1_338, %c0_339, %c0_340] : memref<4x1x128xf32, #tpu.memory_space<vmem>>, vector<1x1x128xf32>
    %603 = vector.shape_cast %602 : vector<1x1x128xf32> to vector<1x128xf32>
    %c1_341 = arith.constant 1 : index
    %c0_342 = arith.constant 0 : index
    %c0_343 = arith.constant 0 : index
    %604 = vector.load %arg16[%c1_341, %c0_342, %c0_343] : memref<4x1x128xf32, #tpu.memory_space<vmem>>, vector<1x1x128xf32>
    %605 = vector.shape_cast %604 : vector<1x1x128xf32> to vector<1x128xf32>
    %cst_344 = arith.constant dense<0.000000e+00> : vector<128xf32>
    %606 = vector.multi_reduction <add>, %601, %cst_344 [0, 1] : vector<2x32x128xf32> to vector<128xf32>
    %607 = vector.shape_cast %606 : vector<128xf32> to vector<1x1x128xf32>
    %cst_345 = arith.constant 6.400000e+01 : f32
    %608 = vector.broadcast %cst_345 : f32 to vector<1x1x128xf32>
    %609 = arith.divf %607, %608 : vector<1x1x128xf32>
    %610 = vector.broadcast %609 : vector<1x1x128xf32> to vector<2x32x128xf32>
    %611 = arith.subf %601, %610 : vector<2x32x128xf32>
    %612 = arith.mulf %611, %611 : vector<2x32x128xf32>
    %cst_346 = arith.constant dense<0.000000e+00> : vector<128xf32>
    %613 = vector.multi_reduction <add>, %612, %cst_346 [0, 1] : vector<2x32x128xf32> to vector<128xf32>
    %614 = vector.shape_cast %613 : vector<128xf32> to vector<1x1x128xf32>
    %cst_347 = arith.constant 6.400000e+01 : f32
    %615 = vector.broadcast %cst_347 : f32 to vector<1x1x128xf32>
    %616 = arith.divf %614, %615 : vector<1x1x128xf32>
    %617 = vector.broadcast %609 : vector<1x1x128xf32> to vector<2x32x128xf32>
    %618 = arith.subf %601, %617 : vector<2x32x128xf32>
    %cst_348 = arith.constant 9.99999974E-6 : f32
    %619 = vector.broadcast %cst_348 : f32 to vector<1x1x128xf32>
    %620 = arith.addf %616, %619 : vector<1x1x128xf32>
    %621 = math.rsqrt %620 : vector<1x1x128xf32>
    %622 = vector.broadcast %621 : vector<1x1x128xf32> to vector<2x32x128xf32>
    %623 = arith.mulf %618, %622 : vector<2x32x128xf32>
    %624 = vector.shape_cast %603 : vector<1x128xf32> to vector<1x1x128xf32>
    %625 = vector.broadcast %624 : vector<1x1x128xf32> to vector<2x32x128xf32>
    %626 = arith.mulf %623, %625 : vector<2x32x128xf32>
    %627 = vector.shape_cast %605 : vector<1x128xf32> to vector<1x1x128xf32>
    %628 = vector.broadcast %627 : vector<1x1x128xf32> to vector<2x32x128xf32>
    %629 = arith.addf %626, %628 : vector<2x32x128xf32>
    %cst_349 = arith.constant 0.000000e+00 : f32
    %630 = vector.broadcast %cst_349 : f32 to vector<2x32x128xf32>
    %631 = arith.cmpf oge, %629, %630 : vector<2x32x128xf32>
    %cst_350 = arith.constant 2.000000e-01 : f32
    %632 = vector.broadcast %cst_350 : f32 to vector<2x32x128xf32>
    %633 = arith.mulf %632, %629 : vector<2x32x128xf32>
    %634 = arith.select %631, %629, %633 : vector<2x32x128xi1>, vector<2x32x128xf32>
    %c0_351 = arith.constant 0 : index
    %c8_352 = arith.constant 8 : index
    %c0_353 = arith.constant 0 : index
    %635 = vector.load %arg20[%c0_351, %c8_352, %c0_353] : memref<2x48x128xf32, #tpu.memory_space<vmem>>, vector<2x32x128xf32>
    tpu.vector_store %arg20[%c0_351, %c8_352, %c0_353], %634 {strides = array<i32>} : memref<2x48x128xf32, #tpu.memory_space<vmem>>, vector<2x32x128xf32>,
    %c0_354 = arith.constant 0 : index
    %c7_355 = arith.constant 7 : index
    %c0_356 = arith.constant 0 : index
    %636 = vector.load %arg20[%c0_354, %c7_355, %c0_356] : memref<2x48x128xf32, #tpu.memory_space<vmem>>, vector<2x32x128xf32>
    %c0_357 = arith.constant 0 : index
    %c9_358 = arith.constant 9 : index
    %c0_359 = arith.constant 0 : index
    %637 = vector.load %arg20[%c0_357, %c9_358, %c0_359] : memref<2x48x128xf32, #tpu.memory_space<vmem>>, vector<2x32x128xf32>
    %c6_360 = arith.constant 6 : index
    %c0_361 = arith.constant 0 : index
    %c0_362 = arith.constant 0 : index
    %638 = vector.load %arg13[%c6_360, %c0_361, %c0_362] : memref<12x128x128xbf16, #tpu.memory_space<vmem>>, vector<1x128x128xbf16>
    %639 = vector.shape_cast %638 : vector<1x128x128xbf16> to vector<128x128xbf16>
    %640 = vector.shape_cast %636 : vector<2x32x128xf32> to vector<64x128xf32>
    %641 = arith.truncf %640 : vector<64x128xf32> to vector<64x128xbf16>
    %cst_363 = arith.constant dense<0.000000e+00> : vector<64x128xf32>
    %642 = tpu.matmul %641, %639, %cst_363 {dimension_numbers = #tpu.dot_dimension_numbers<[1], [0], [0], [1], [0, 0, 1, 1], [], []>} : vector<64x128xbf16>, vector<128x128xbf16>, vector<64x128xf32> -> vector<64x128xf32>
    %643 = vector.shape_cast %642 : vector<64x128xf32> to vector<2x32x128xf32>
    %c7_364 = arith.constant 7 : index
    %c0_365 = arith.constant 0 : index
    %c0_366 = arith.constant 0 : index
    %644 = vector.load %arg13[%c7_364, %c0_365, %c0_366] : memref<12x128x128xbf16, #tpu.memory_space<vmem>>, vector<1x128x128xbf16>
    %645 = vector.shape_cast %644 : vector<1x128x128xbf16> to vector<128x128xbf16>
    %646 = vector.shape_cast %634 : vector<2x32x128xf32> to vector<64x128xf32>
    %647 = arith.truncf %646 : vector<64x128xf32> to vector<64x128xbf16>
    %cst_367 = arith.constant dense<0.000000e+00> : vector<64x128xf32>
    %648 = tpu.matmul %647, %645, %cst_367 {dimension_numbers = #tpu.dot_dimension_numbers<[1], [0], [0], [1], [0, 0, 1, 1], [], []>} : vector<64x128xbf16>, vector<128x128xbf16>, vector<64x128xf32> -> vector<64x128xf32>
    %649 = vector.shape_cast %648 : vector<64x128xf32> to vector<2x32x128xf32>
    %650 = arith.addf %643, %649 : vector<2x32x128xf32>
    %c8_368 = arith.constant 8 : index
    %c0_369 = arith.constant 0 : index
    %c0_370 = arith.constant 0 : index
    %651 = vector.load %arg13[%c8_368, %c0_369, %c0_370] : memref<12x128x128xbf16, #tpu.memory_space<vmem>>, vector<1x128x128xbf16>
    %652 = vector.shape_cast %651 : vector<1x128x128xbf16> to vector<128x128xbf16>
    %653 = vector.shape_cast %637 : vector<2x32x128xf32> to vector<64x128xf32>
    %654 = arith.truncf %653 : vector<64x128xf32> to vector<64x128xbf16>
    %cst_371 = arith.constant dense<0.000000e+00> : vector<64x128xf32>
    %655 = tpu.matmul %654, %652, %cst_371 {dimension_numbers = #tpu.dot_dimension_numbers<[1], [0], [0], [1], [0, 0, 1, 1], [], []>} : vector<64x128xbf16>, vector<128x128xbf16>, vector<64x128xf32> -> vector<64x128xf32>
    %656 = vector.shape_cast %655 : vector<64x128xf32> to vector<2x32x128xf32>
    %657 = arith.addf %650, %656 : vector<2x32x128xf32>
    %c2_372 = arith.constant 2 : index
    %c0_373 = arith.constant 0 : index
    %c0_374 = arith.constant 0 : index
    %658 = vector.load %arg14[%c2_372, %c0_373, %c0_374] : memref<4x1x128xf32, #tpu.memory_space<vmem>>, vector<1x1x128xf32>
    %659 = vector.shape_cast %658 : vector<1x1x128xf32> to vector<1x128xf32>
    %660 = vector.shape_cast %659 : vector<1x128xf32> to vector<1x1x128xf32>
    %661 = vector.broadcast %660 : vector<1x1x128xf32> to vector<2x32x128xf32>
    %662 = arith.addf %657, %661 : vector<2x32x128xf32>
    %c2_375 = arith.constant 2 : index
    %c0_376 = arith.constant 0 : index
    %c0_377 = arith.constant 0 : index
    %663 = vector.load %arg15[%c2_375, %c0_376, %c0_377] : memref<4x1x128xf32, #tpu.memory_space<vmem>>, vector<1x1x128xf32>
    %664 = vector.shape_cast %663 : vector<1x1x128xf32> to vector<1x128xf32>
    %c2_378 = arith.constant 2 : index
    %c0_379 = arith.constant 0 : index
    %c0_380 = arith.constant 0 : index
    %665 = vector.load %arg16[%c2_378, %c0_379, %c0_380] : memref<4x1x128xf32, #tpu.memory_space<vmem>>, vector<1x1x128xf32>
    %666 = vector.shape_cast %665 : vector<1x1x128xf32> to vector<1x128xf32>
    %cst_381 = arith.constant dense<0.000000e+00> : vector<128xf32>
    %667 = vector.multi_reduction <add>, %662, %cst_381 [0, 1] : vector<2x32x128xf32> to vector<128xf32>
    %668 = vector.shape_cast %667 : vector<128xf32> to vector<1x1x128xf32>
    %cst_382 = arith.constant 6.400000e+01 : f32
    %669 = vector.broadcast %cst_382 : f32 to vector<1x1x128xf32>
    %670 = arith.divf %668, %669 : vector<1x1x128xf32>
    %671 = vector.broadcast %670 : vector<1x1x128xf32> to vector<2x32x128xf32>
    %672 = arith.subf %662, %671 : vector<2x32x128xf32>
    %673 = arith.mulf %672, %672 : vector<2x32x128xf32>
    %cst_383 = arith.constant dense<0.000000e+00> : vector<128xf32>
    %674 = vector.multi_reduction <add>, %673, %cst_383 [0, 1] : vector<2x32x128xf32> to vector<128xf32>
    %675 = vector.shape_cast %674 : vector<128xf32> to vector<1x1x128xf32>
    %cst_384 = arith.constant 6.400000e+01 : f32
    %676 = vector.broadcast %cst_384 : f32 to vector<1x1x128xf32>
    %677 = arith.divf %675, %676 : vector<1x1x128xf32>
    %678 = vector.broadcast %670 : vector<1x1x128xf32> to vector<2x32x128xf32>
    %679 = arith.subf %662, %678 : vector<2x32x128xf32>
    %cst_385 = arith.constant 9.99999974E-6 : f32
    %680 = vector.broadcast %cst_385 : f32 to vector<1x1x128xf32>
    %681 = arith.addf %677, %680 : vector<1x1x128xf32>
    %682 = math.rsqrt %681 : vector<1x1x128xf32>
    %683 = vector.broadcast %682 : vector<1x1x128xf32> to vector<2x32x128xf32>
    %684 = arith.mulf %679, %683 : vector<2x32x128xf32>
    %685 = vector.shape_cast %664 : vector<1x128xf32> to vector<1x1x128xf32>
    %686 = vector.broadcast %685 : vector<1x1x128xf32> to vector<2x32x128xf32>
    %687 = arith.mulf %684, %686 : vector<2x32x128xf32>
    %688 = vector.shape_cast %666 : vector<1x128xf32> to vector<1x1x128xf32>
    %689 = vector.broadcast %688 : vector<1x1x128xf32> to vector<2x32x128xf32>
    %690 = arith.addf %687, %689 : vector<2x32x128xf32>
    %cst_386 = arith.constant 0.000000e+00 : f32
    %691 = vector.broadcast %cst_386 : f32 to vector<2x32x128xf32>
    %692 = arith.cmpf oge, %690, %691 : vector<2x32x128xf32>
    %cst_387 = arith.constant 2.000000e-01 : f32
    %693 = vector.broadcast %cst_387 : f32 to vector<2x32x128xf32>
    %694 = arith.mulf %693, %690 : vector<2x32x128xf32>
    %695 = arith.select %692, %690, %694 : vector<2x32x128xi1>, vector<2x32x128xf32>
    %c0_388 = arith.constant 0 : index
    %c8_389 = arith.constant 8 : index
    %c0_390 = arith.constant 0 : index
    %696 = vector.load %arg20[%c0_388, %c8_389, %c0_390] : memref<2x48x128xf32, #tpu.memory_space<vmem>>, vector<2x32x128xf32>
    tpu.vector_store %arg20[%c0_388, %c8_389, %c0_390], %695 {strides = array<i32>} : memref<2x48x128xf32, #tpu.memory_space<vmem>>, vector<2x32x128xf32>,
    %c0_391 = arith.constant 0 : index
    %c7_392 = arith.constant 7 : index
    %c0_393 = arith.constant 0 : index
    %697 = vector.load %arg20[%c0_391, %c7_392, %c0_393] : memref<2x48x128xf32, #tpu.memory_space<vmem>>, vector<2x32x128xf32>
    %c0_394 = arith.constant 0 : index
    %c9_395 = arith.constant 9 : index
    %c0_396 = arith.constant 0 : index
    %698 = vector.load %arg20[%c0_394, %c9_395, %c0_396] : memref<2x48x128xf32, #tpu.memory_space<vmem>>, vector<2x32x128xf32>
    %c9_397 = arith.constant 9 : index
    %c0_398 = arith.constant 0 : index
    %c0_399 = arith.constant 0 : index
    %699 = vector.load %arg13[%c9_397, %c0_398, %c0_399] : memref<12x128x128xbf16, #tpu.memory_space<vmem>>, vector<1x128x128xbf16>
    %700 = vector.shape_cast %699 : vector<1x128x128xbf16> to vector<128x128xbf16>
    %701 = vector.shape_cast %697 : vector<2x32x128xf32> to vector<64x128xf32>
    %702 = arith.truncf %701 : vector<64x128xf32> to vector<64x128xbf16>
    %cst_400 = arith.constant dense<0.000000e+00> : vector<64x128xf32>
    %703 = tpu.matmul %702, %700, %cst_400 {dimension_numbers = #tpu.dot_dimension_numbers<[1], [0], [0], [1], [0, 0, 1, 1], [], []>} : vector<64x128xbf16>, vector<128x128xbf16>, vector<64x128xf32> -> vector<64x128xf32>
    %704 = vector.shape_cast %703 : vector<64x128xf32> to vector<2x32x128xf32>
    %c10_401 = arith.constant 10 : index
    %c0_402 = arith.constant 0 : index
    %c0_403 = arith.constant 0 : index
    %705 = vector.load %arg13[%c10_401, %c0_402, %c0_403] : memref<12x128x128xbf16, #tpu.memory_space<vmem>>, vector<1x128x128xbf16>
    %706 = vector.shape_cast %705 : vector<1x128x128xbf16> to vector<128x128xbf16>
    %707 = vector.shape_cast %695 : vector<2x32x128xf32> to vector<64x128xf32>
    %708 = arith.truncf %707 : vector<64x128xf32> to vector<64x128xbf16>
    %cst_404 = arith.constant dense<0.000000e+00> : vector<64x128xf32>
    %709 = tpu.matmul %708, %706, %cst_404 {dimension_numbers = #tpu.dot_dimension_numbers<[1], [0], [0], [1], [0, 0, 1, 1], [], []>} : vector<64x128xbf16>, vector<128x128xbf16>, vector<64x128xf32> -> vector<64x128xf32>
    %710 = vector.shape_cast %709 : vector<64x128xf32> to vector<2x32x128xf32>
    %711 = arith.addf %704, %710 : vector<2x32x128xf32>
    %c11_405 = arith.constant 11 : index
    %c0_406 = arith.constant 0 : index
    %c0_407 = arith.constant 0 : index
    %712 = vector.load %arg13[%c11_405, %c0_406, %c0_407] : memref<12x128x128xbf16, #tpu.memory_space<vmem>>, vector<1x128x128xbf16>
    %713 = vector.shape_cast %712 : vector<1x128x128xbf16> to vector<128x128xbf16>
    %714 = vector.shape_cast %698 : vector<2x32x128xf32> to vector<64x128xf32>
    %715 = arith.truncf %714 : vector<64x128xf32> to vector<64x128xbf16>
    %cst_408 = arith.constant dense<0.000000e+00> : vector<64x128xf32>
    %716 = tpu.matmul %715, %713, %cst_408 {dimension_numbers = #tpu.dot_dimension_numbers<[1], [0], [0], [1], [0, 0, 1, 1], [], []>} : vector<64x128xbf16>, vector<128x128xbf16>, vector<64x128xf32> -> vector<64x128xf32>
    %717 = vector.shape_cast %716 : vector<64x128xf32> to vector<2x32x128xf32>
    %718 = arith.addf %711, %717 : vector<2x32x128xf32>
    %c3_409 = arith.constant 3 : index
    %c0_410 = arith.constant 0 : index
    %c0_411 = arith.constant 0 : index
    %719 = vector.load %arg14[%c3_409, %c0_410, %c0_411] : memref<4x1x128xf32, #tpu.memory_space<vmem>>, vector<1x1x128xf32>
    %720 = vector.shape_cast %719 : vector<1x1x128xf32> to vector<1x128xf32>
    %721 = vector.shape_cast %720 : vector<1x128xf32> to vector<1x1x128xf32>
    %722 = vector.broadcast %721 : vector<1x1x128xf32> to vector<2x32x128xf32>
    %723 = arith.addf %718, %722 : vector<2x32x128xf32>
    %c3_412 = arith.constant 3 : index
    %c0_413 = arith.constant 0 : index
    %c0_414 = arith.constant 0 : index
    %724 = vector.load %arg15[%c3_412, %c0_413, %c0_414] : memref<4x1x128xf32, #tpu.memory_space<vmem>>, vector<1x1x128xf32>
    %725 = vector.shape_cast %724 : vector<1x1x128xf32> to vector<1x128xf32>
    %c3_415 = arith.constant 3 : index
    %c0_416 = arith.constant 0 : index
    %c0_417 = arith.constant 0 : index
    %726 = vector.load %arg16[%c3_415, %c0_416, %c0_417] : memref<4x1x128xf32, #tpu.memory_space<vmem>>, vector<1x1x128xf32>
    %727 = vector.shape_cast %726 : vector<1x1x128xf32> to vector<1x128xf32>
    %cst_418 = arith.constant dense<0.000000e+00> : vector<128xf32>
    %728 = vector.multi_reduction <add>, %723, %cst_418 [0, 1] : vector<2x32x128xf32> to vector<128xf32>
    %729 = vector.shape_cast %728 : vector<128xf32> to vector<1x1x128xf32>
    %cst_419 = arith.constant 6.400000e+01 : f32
    %730 = vector.broadcast %cst_419 : f32 to vector<1x1x128xf32>
    %731 = arith.divf %729, %730 : vector<1x1x128xf32>
    %732 = vector.broadcast %731 : vector<1x1x128xf32> to vector<2x32x128xf32>
    %733 = arith.subf %723, %732 : vector<2x32x128xf32>
    %734 = arith.mulf %733, %733 : vector<2x32x128xf32>
    %cst_420 = arith.constant dense<0.000000e+00> : vector<128xf32>
    %735 = vector.multi_reduction <add>, %734, %cst_420 [0, 1] : vector<2x32x128xf32> to vector<128xf32>
    %736 = vector.shape_cast %735 : vector<128xf32> to vector<1x1x128xf32>
    %cst_421 = arith.constant 6.400000e+01 : f32
    %737 = vector.broadcast %cst_421 : f32 to vector<1x1x128xf32>
    %738 = arith.divf %736, %737 : vector<1x1x128xf32>
    %739 = vector.broadcast %731 : vector<1x1x128xf32> to vector<2x32x128xf32>
    %740 = arith.subf %723, %739 : vector<2x32x128xf32>
    %cst_422 = arith.constant 9.99999974E-6 : f32
    %741 = vector.broadcast %cst_422 : f32 to vector<1x1x128xf32>
    %742 = arith.addf %738, %741 : vector<1x1x128xf32>
    %743 = math.rsqrt %742 : vector<1x1x128xf32>
    %744 = vector.broadcast %743 : vector<1x1x128xf32> to vector<2x32x128xf32>
    %745 = arith.mulf %740, %744 : vector<2x32x128xf32>
    %746 = vector.shape_cast %725 : vector<1x128xf32> to vector<1x1x128xf32>
    %747 = vector.broadcast %746 : vector<1x1x128xf32> to vector<2x32x128xf32>
    %748 = arith.mulf %745, %747 : vector<2x32x128xf32>
    %749 = vector.shape_cast %727 : vector<1x128xf32> to vector<1x1x128xf32>
    %750 = vector.broadcast %749 : vector<1x1x128xf32> to vector<2x32x128xf32>
    %751 = arith.addf %748, %750 : vector<2x32x128xf32>
    %cst_423 = arith.constant 0.000000e+00 : f32
    %752 = vector.broadcast %cst_423 : f32 to vector<2x32x128xf32>
    %753 = arith.cmpf oge, %751, %752 : vector<2x32x128xf32>
    %cst_424 = arith.constant 2.000000e-01 : f32
    %754 = vector.broadcast %cst_424 : f32 to vector<2x32x128xf32>
    %755 = arith.mulf %754, %751 : vector<2x32x128xf32>
    %756 = arith.select %753, %751, %755 : vector<2x32x128xi1>, vector<2x32x128xf32>
    %c0_425 = arith.constant 0 : index
    %c0_426 = arith.constant 0 : index
    %757 = vector.load %arg17[%c0_425, %c0_426] : memref<128x128xbf16, #tpu.memory_space<vmem>>, vector<128x128xbf16>
    %758 = vector.shape_cast %756 : vector<2x32x128xf32> to vector<64x128xf32>
    %759 = arith.truncf %758 : vector<64x128xf32> to vector<64x128xbf16>
    %cst_427 = arith.constant dense<0.000000e+00> : vector<64x128xf32>
    %760 = tpu.matmul %759, %757, %cst_427 {dimension_numbers = #tpu.dot_dimension_numbers<[1], [0], [0], [1], [0, 0, 1, 1], [], []>} : vector<64x128xbf16>, vector<128x128xbf16>, vector<64x128xf32> -> vector<64x128xf32>
    %761 = vector.shape_cast %760 : vector<64x128xf32> to vector<2x32x128xf32>
    %c0_428 = arith.constant 0 : index
    %c0_429 = arith.constant 0 : index
    %762 = vector.load %arg18[%c0_428, %c0_429] : memref<1x128xf32, #tpu.memory_space<vmem>>, vector<1x128xf32>
    %763 = vector.shape_cast %762 : vector<1x128xf32> to vector<1x1x128xf32>
    %764 = vector.broadcast %763 : vector<1x1x128xf32> to vector<2x32x128xf32>
    %765 = arith.addf %761, %764 : vector<2x32x128xf32>
    %c0_430 = arith.constant 0 : index
    %c0_431 = arith.constant 0 : index
    %c0_432 = arith.constant 0 : index
    %766 = vector.load %arg19[%c0_430, %c0_431, %c0_432] : memref<2x32x128xf32, #tpu.memory_space<vmem>>, vector<2x32x128xf32>
    tpu.vector_store %arg19[%c0_430, %c0_431, %c0_432], %765 {strides = array<i32>} : memref<2x32x128xf32, #tpu.memory_space<vmem>>, vector<2x32x128xf32>,
    return
  }
}

</mosaic_0001>

<bundles_post_ra>
// kernel: tpu_custom_call.1
= control target key start
LH: loop header
LB: loop body
LE: loop exit
PB: predicated region body
PF: predicated region fallthrough
CT: control target
= control target key end

     0   :  { %s9331_s0 = inlined_call_operand.hbm [shape: f32[2,16], index: 0, kind: input, shape index: {}]   ;;  %s9332_s1 = inlined_call_operand.hbm [shape: bf16[16,16], index: 1, kind: input, shape index: {}]   ;;  %s9333_s2 = inlined_call_operand.hbm [shape: f32[1,16], index: 2, kind: input, shape index: {}]   ;;  %s9334_s3 = inlined_call_operand.hbm [shape: f32[1,16], index: 3, kind: input, shape index: {}]   ;;  %s9335_s4 = inlined_call_operand.hbm [shape: f32[1,16], index: 4, kind: input, shape index: {}]   ;;  %s9336_s5 = inlined_call_operand.hbm [shape: bf16[4,16,128], index: 5, kind: input, shape index: {}]   ;;  %s9337_s6 = inlined_call_operand.hbm [shape: f32[4,1,128], index: 6, kind: input, shape index: {}]   ;;  %s9338_s7 = inlined_call_operand.hbm [shape: bf16[18,128,128], index: 7, kind: input, shape index: {}]   ;;  %s9339_s8 = inlined_call_operand.vmem [shape: f32[6,1,128], index: 8, kind: input, shape index: {}]   ;;  %s9340_s9 = inlined_call_operand.vmem [shape: f32[6,1,128], index: 9, kind: input, shape index: {}]   ;;  %s9341_s10 = inlined_call_operand.vmem [shape: f32[6,1,128], index: 10, kind: input, shape index: {}]   ;;  %s9342_s11 = inlined_call_operand.hbm [shape: bf16[3,128,128], index: 11, kind: input, shape index: {}]   ;;  %s9343_s12 = inlined_call_operand.hbm [shape: f32[3,1,128], index: 12, kind: input, shape index: {}]   ;;  %s9344_s13 = inlined_call_operand.hbm [shape: bf16[12,128,128], index: 13, kind: input, shape index: {}]   ;;  %s9345_s14 = inlined_call_operand.vmem [shape: f32[4,1,128], index: 14, kind: input, shape index: {}]   ;;  %s9346_s15 = inlined_call_operand.vmem [shape: f32[4,1,128], index: 15, kind: input, shape index: {}]   ;;  %s9347_s16 = inlined_call_operand.hbm [shape: f32[4,1,128], index: 16, kind: input, shape index: {}]   ;;  %s9348_s17 = inlined_call_operand.hbm [shape: bf16[128,128], index: 17, kind: input, shape index: {}]   ;;  %s9349_s18 = inlined_call_operand.vmem [shape: f32[1,128], index: 18, kind: input, shape index: {}]   ;;  %s9350_s19 = inlined_call_operand.hbm [shape: f32[2,32,128], index: 19, kind: output, shape index: {}]  }
   0x1   :  { %9351 = sst [smem:[#allocation33_spill]] %s9331_s0 }
   0x2   :  { %9352 = sst [smem:[#allocation34_spill]] %s9332_s1 }
   0x3   :  { %9353 = sst [smem:[#allocation35_spill]] %s9333_s2 }
   0x4   :  { %9354 = sst [smem:[#allocation36_spill]] %s9334_s3 }
   0x5   :  { %24 = vsyncpa [#allocation4], 0 }
   0x6   :  { %25 = vsyncpa [#allocation7], 0 }
   0x7   :  { %26 = vsyncpa [#allocation10], 0 }
   0x8   :  { %27 = vsyncpa [#allocation13], 0 }
   0x9   :  { %28 = vsyncpa [#allocation16], 0 }
   0xa   :  { %29 = vsyncpa [#allocation19], 0 }
   0xb   :  { %30 = vsyncpa [#allocation22], 0 }
   0xc   :  { %31 = vsyncpa [#allocation5], 0  ;;  %s8734_s0 = smov [#allocation6]  }
   0xd   :  { %s47_s30 = sshll.u32 %s8734_s0, 4  ;;  %s48_s30 = int_to_ptr.vmem [resolvable:$true] %s47_s30 }
   0xe   :  { %s8446_s20 = scalar_lea.vmem %s48_s30, 128  ;;  %p8451_p1 = scmp.lt.s32.totalorder %s48_s30, %s48_s30 }
   0xf   :  { %p8447_p0 = scmp.ne.s32.totalorder %s48_s30, %s8446_s20  ;;  %p8452_p2 = scmp.lt.s32.totalorder %s8446_s20, %s8446_s20 }
  0x11   :  { %p8453_p3 = por %p8452_p2, %p8451_p1 }
  0x13   :  { %p8454_p4 = pnand %p8453_p3, %p8447_p0 }
  0x15   :  { %8457 = shalt.err (!%p8454_p4)
}
  0x16   :  { %s8735_s21 = smov 64   ;;  %s8736_s1 = smov 4  }
  0x17   :  { %s9355_s23 = sld [smem:[#allocation34_spill]]  ;;  %s8737_s24 = smov [#allocation9]  }
  0x18   :  { %s70_s25 = sshll.u32 %s8737_s24, 4  ;;  %s8738_s3 = smov [#allocation12]   ;;  %s71_s25 = int_to_ptr.vmem [resolvable:$true] %s70_s25 }
  0x19   :  { %s89_s26 = sshll.u32 %s8738_s3, 4  ;;  %s8466_s27 = scalar_lea.vmem %s71_s25, 16  ;;  %s90_s26 = int_to_ptr.vmem [resolvable:$true] %s89_s26 }
  0x1a   :  { %p8467_p5 = scmp.ne.s32.totalorder %s71_s25, %s8466_s27  ;;  %s8470_s28 = scalar_lea.vmem %s71_s25, 32 }
  0x1b   :  { %p8471_p6 = scmp.lt.s32.totalorder %s71_s25, %s71_s25  ;;  %p8472_p7 = scmp.lt.s32.totalorder %s8470_s28, %s8466_s27 }
  0x1d   :  { %53 = dma.hbm_to_vmem [thread:$0]  %s9355_s23, 128, %s48_s30, [#allocation7], %s8735_s21, %s8735_s21, %s8736_s1  }
  0x1e   :  { %p8473_p8 = por %p8472_p7, %p8471_p6 }
  0x20   :  { %p8474_p9 = pnand %p8473_p8, %p8467_p5 }
  0x22   :  { %8477 = shalt.err (!%p8474_p9)
}
  0x23   :  { %s9356_s20 = sld [smem:[#allocation36_spill]]  ;;  %s8486_s22 = scalar_lea.vmem %s90_s26, 512 }
  0x24   :  { %p8487_p10 = scmp.ne.s32.totalorder %s90_s26, %s8486_s22  ;;  %p8491_p11 = scmp.lt.s32.totalorder %s90_s26, %s90_s26 }
  0x25   :  { %p8492_p12 = scmp.lt.s32.totalorder %s8486_s22, %s8486_s22 }
  0x27   :  { %p8493_p13 = por %p8492_p12, %p8491_p11 }
  0x29   :  { %73 = dma.hbm_to_vmem [thread:$0]  %s9356_s20, 16, %s71_s25, [#allocation10]  }
  0x2a   :  { %p8494_p0 = pnand %p8493_p13, %p8487_p10 }
  0x2c   :  { %8497 = shalt.err (!%p8494_p0)
}
  0x2d   :  { %95 = dma.hbm_to_vmem [thread:$0]  %s9336_s5, 512, %s90_s26, [#allocation13], %s8735_s21, %s8735_s21, %s8736_s1  }
  0x2e   :  { %s8739_s23 = smov [#allocation15]  }
  0x2f   :  { %s113_s24 = sshll.u32 %s8739_s23, 4  ;;  %s114_s24 = int_to_ptr.vmem [resolvable:$true] %s113_s24 }
  0x30   :  { %s8506_s3 = scalar_lea.vmem %s114_s24, 18432  ;;  %p8511_p2 = scmp.lt.s32.totalorder %s114_s24, %s114_s24 }
  0x31   :  { %p8507_p1 = scmp.ne.s32.totalorder %s114_s24, %s8506_s3  ;;  %p8512_p3 = scmp.lt.s32.totalorder %s8506_s3, %s8506_s3 }
  0x33   :  { %p8513_p4 = por %p8512_p3, %p8511_p2 }
  0x35   :  { %p8514_p5 = pnand %p8513_p4, %p8507_p1 }
  0x37   :  { %8517 = shalt.err (!%p8514_p5)
}
  0x38   :  { %119 = dma.hbm_to_vmem [thread:$0]  %s9338_s7, 18432, %s114_s24, [#allocation16], %s8735_s21, %s8735_s21, %s8736_s1  }
  0x39   :  { %s8740_s28 = smov [#allocation18]   ;;  %s8741_s5 = smov [#allocation21]  }
  0x3a   :  { %s143_s29 = sshll.u32 %s8740_s28, 4  ;;  %s171_s26 = sshll.u32 %s8741_s5, 4  ;;  %s144_s29 = int_to_ptr.vmem [resolvable:$true] %s143_s29  ;;  %s172_s26 = int_to_ptr.vmem [resolvable:$true] %s171_s26 }
  0x3b   :  { %s8526_s0 = scalar_lea.vmem %s144_s29, 48  ;;  %s8530_s20 = scalar_lea.vmem %s144_s29, 64 }
  0x3c   :  { %p8527_p6 = scmp.ne.s32.totalorder %s144_s29, %s8526_s0  ;;  %p8531_p7 = scmp.lt.s32.totalorder %s144_s29, %s144_s29 }
  0x3d   :  { %p8532_p8 = scmp.lt.s32.totalorder %s8530_s20, %s8526_s0 }
  0x3f   :  { %p8533_p9 = por %p8532_p8, %p8531_p7 }
  0x41   :  { %p8534_p10 = pnand %p8533_p9, %p8527_p6 }
  0x43   :  { %8537 = shalt.err (!%p8534_p10)
}
  0x44   :  { %s8742_s22 = smov 16   ;;  %s8743_s30 = smov 1  }
  0x45   :  { %149 = dma.hbm_to_vmem [thread:$0]  %s9343_s12, 48, %s144_s29, [#allocation19], %s8742_s22, %s8742_s22, %s8743_s30  }
  0x46   :  { %s8546_s23 = scalar_lea.vmem %s172_s26, 64  ;;  %p8551_p12 = scmp.lt.s32.totalorder %s172_s26, %s172_s26 }
  0x47   :  { %p8547_p11 = scmp.ne.s32.totalorder %s172_s26, %s8546_s23  ;;  %p8552_p13 = scmp.lt.s32.totalorder %s8546_s23, %s8546_s23 }
  0x49   :  { %p8553_p0 = por %p8552_p13, %p8551_p12 }
  0x4b   :  { %p8554_p1 = pnand %p8553_p0, %p8547_p11 }
  0x4d   :  { %8557 = shalt.err (!%p8554_p1)
}
  0x4e   :  { %177 = dma.hbm_to_vmem [thread:$0]  %s9347_s16, 64, %s172_s26, [#allocation22], %s8742_s22, %s8742_s22, %s8743_s30  }
  0x4f   :  { %s8744_s25 = smov [#allocation3]   ;;  %s8745_s28 = smov [#allocation8]  }
  0x50   :  { %s38_s27 = sshll.u32 %s8744_s25, 4  ;;  %s60_s5 = sshll.u32 %s8745_s28, 4  ;;  %s39_s27 = int_to_ptr.vmem [resolvable:$true] %s38_s27  ;;  %s61_s5 = int_to_ptr.vmem [resolvable:$true] %s60_s5 }
  0x51   :  { %s8566_s12 = scalar_lea.vmem %s39_s27, 32  ;;  %p8571_p3 = scmp.lt.s32.totalorder %s39_s27, %s39_s27 }
  0x52   :  { %p8567_p2 = scmp.ne.s32.totalorder %s39_s27, %s8566_s12  ;;  %p8572_p4 = scmp.lt.s32.totalorder %s8566_s12, %s8566_s12 }
  0x54   :  { %p8573_p5 = por %p8572_p4, %p8571_p3 }
  0x56   :  { %p8574_p6 = pnand %p8573_p5, %p8567_p2 }
  0x58   :  { %8577 = shalt.err (!%p8574_p6)
}
  0x59   :  { %s9357_s20 = sld [smem:[#allocation33_spill]]  ;;  %s8586_s7 = scalar_lea.vmem %s61_s5, 16 }
  0x5a   :  { %p8587_p7 = scmp.ne.s32.totalorder %s61_s5, %s8586_s7  ;;  %s8590_s16 = scalar_lea.vmem %s61_s5, 32 }
  0x5b   :  { %p8591_p8 = scmp.lt.s32.totalorder %s61_s5, %s61_s5  ;;  %p8592_p9 = scmp.lt.s32.totalorder %s8590_s16, %s8586_s7 }
  0x5d   :  { %p8593_p10 = por %p8592_p9, %p8591_p8 }
  0x5f   :  { %41 = dma.hbm_to_vmem [thread:$0]  %s9357_s20, 32, %s39_s27, [#allocation4]  }
  0x60   :  { %p8594_p11 = pnand %p8593_p10, %p8587_p7 }
  0x62   :  { %8597 = shalt.err (!%p8594_p11)
}
  0x63   :  { %s9358_s23 = sld [smem:[#allocation35_spill]]  ;;  %s8746_s24 = smov [#allocation11]  }
  0x64   :  { %s80_s3 = sshll.u32 %s8746_s24, 4  ;;  %s8747_s25 = smov [#allocation14]   ;;  %s81_s3 = int_to_ptr.vmem [resolvable:$true] %s80_s3 }
  0x65   :  { %s101_s28 = sshll.u32 %s8747_s25, 4  ;;  %s8606_s12 = scalar_lea.vmem %s81_s3, 16  ;;  %s102_s28 = int_to_ptr.vmem [resolvable:$true] %s101_s28 }
  0x66   :  { %p8607_p12 = scmp.ne.s32.totalorder %s81_s3, %s8606_s12  ;;  %s8610_s27 = scalar_lea.vmem %s81_s3, 32 }
  0x67   :  { %p8611_p13 = scmp.lt.s32.totalorder %s81_s3, %s81_s3  ;;  %p8612_p0 = scmp.lt.s32.totalorder %s8610_s27, %s8606_s12 }
  0x69   :  { %63 = dma.hbm_to_vmem [thread:$0]  %s9358_s23, 16, %s61_s5, [#allocation7]  }
  0x6a   :  { %p8613_p1 = por %p8612_p0, %p8611_p13 }
  0x6c   :  { %p8614_p2 = pnand %p8613_p1, %p8607_p12 }
  0x6e   :  { %8617 = shalt.err (!%p8614_p2)
}
  0x6f   :  { %83 = dma.hbm_to_vmem [thread:$0]  %s9335_s4, 16, %s81_s3, [#allocation10]  }
  0x70   :  { %s8626_s20 = scalar_lea.vmem %s102_s28, 64  ;;  %p8631_p4 = scmp.lt.s32.totalorder %s102_s28, %s102_s28 }
  0x71   :  { %p8627_p3 = scmp.ne.s32.totalorder %s102_s28, %s8626_s20  ;;  %p8632_p5 = scmp.lt.s32.totalorder %s8626_s20, %s8626_s20 }
  0x73   :  { %p8633_p6 = por %p8632_p5, %p8631_p4 }
  0x75   :  { %p8634_p7 = pnand %p8633_p6, %p8627_p3 }
  0x77   :  { %8637 = shalt.err (!%p8634_p7)
}
  0x78   :  { %107 = dma.hbm_to_vmem [thread:$0]  %s9337_s6, 64, %s102_s28, [#allocation13], %s8742_s22, %s8742_s22, %s8743_s30  }
  0x79   :  { %s8748_s16 = smov [#allocation17]   ;;  %s8749_s2 = smov [#allocation20]  }
  0x7a   :  { %s131_s26 = sshll.u32 %s8748_s16, 4  ;;  %s155_s23 = sshll.u32 %s8749_s2, 4  ;;  %s132_s26 = int_to_ptr.vmem [resolvable:$true] %s131_s26  ;;  %s156_s23 = int_to_ptr.vmem [resolvable:$true] %s155_s23 }
  0x7b   :  { %s8646_s4 = scalar_lea.vmem %s132_s26, 3072  ;;  %p8651_p9 = scmp.lt.s32.totalorder %s132_s26, %s132_s26 }
  0x7c   :  { %p8647_p8 = scmp.ne.s32.totalorder %s132_s26, %s8646_s4  ;;  %p8652_p10 = scmp.lt.s32.totalorder %s8646_s4, %s8646_s4 }
  0x7e   :  { %p8653_p11 = por %p8652_p10, %p8651_p9 }
  0x80   :  { %p8654_p12 = pnand %p8653_p11, %p8647_p8 }
  0x82   :  { %8657 = shalt.err (!%p8654_p12)
}
  0x83   :  { %137 = dma.hbm_to_vmem [thread:$0]  %s9342_s11, 3072, %s132_s26, [#allocation16], %s8735_s21, %s8735_s21, %s8736_s1  }
  0x84   :  { %s8666_s6 = scalar_lea.vmem %s156_s23, 12288  ;;  %p8671_p0 = scmp.lt.s32.totalorder %s156_s23, %s156_s23 }
  0x85   :  { %p8667_p13 = scmp.ne.s32.totalorder %s156_s23, %s8666_s6  ;;  %p8672_p1 = scmp.lt.s32.totalorder %s8666_s6, %s8666_s6 }
  0x87   :  { %p8673_p2 = por %p8672_p1, %p8671_p0 }
  0x89   :  { %p8674_p3 = pnand %p8673_p2, %p8667_p13 }
  0x8b   :  { %8677 = shalt.err (!%p8674_p3)
}
  0x8c   :  { %161 = dma.hbm_to_vmem [thread:$0]  %s9344_s13, 12288, %s156_s23, [#allocation19], %s8735_s21, %s8735_s21, %s8736_s1  }
  0x8d   :  { %s8750_s25 = smov [#allocation23]  }
  0x8e   :  { %s183_s28 = sshll.u32 %s8750_s25, 4  ;;  %s184_s28 = int_to_ptr.vmem [resolvable:$true] %s183_s28 }
  0x8f   :  { %s8686_s12 = scalar_lea.vmem %s184_s28, 1024  ;;  %p8691_p5 = scmp.lt.s32.totalorder %s184_s28, %s184_s28 }
  0x90   :  { %p8687_p4 = scmp.ne.s32.totalorder %s184_s28, %s8686_s12  ;;  %p8692_p6 = scmp.lt.s32.totalorder %s8686_s12, %s8686_s12 }
  0x92   :  { %p8693_p7 = por %p8692_p6, %p8691_p5 }
  0x94   :  { %p8694_p8 = pnand %p8693_p7, %p8687_p4 }
  0x96   :  { %8697 = shalt.err (!%p8694_p8)
}
  0x97   :  { %189 = dma.hbm_to_vmem [thread:$0]  %s9348_s17, 1024, %s184_s28, [#allocation22], %s8735_s21, %s8735_s21, %s8736_s1  }
  0x98   :  { %8718 = dma.done.wait [#allocation4], 32  }
  0x99   :  { %8719 = vsyncadd [#allocation4], 4294967264 }
  0x9a   :  { %8720 = dma.done.wait [#allocation7], 144  }
  0x9b   :  { %8721 = vsyncadd [#allocation7], 4294967152 }
  0x9c   :  { %8722 = dma.done.wait [#allocation10], 32  }
  0x9d   :  { %8723 = vsyncadd [#allocation10], 4294967264 }
  0x9e   :  { %8724 = dma.done.wait [#allocation13], 576  }
  0x9f   :  { %8725 = vsyncadd [#allocation13], 4294966720 }
  0xa0   :  { %8726 = dma.done.wait [#allocation16], 21504  }
  0xa1   :  { %8727 = vsyncadd [#allocation16], 4294945792 }
  0xa2   :  { %8728 = dma.done.wait [#allocation19], 12336  }
  0xa3   :  { %8729 = vsyncadd [#allocation19], 4294954960 }
  0xa4   :  { %8730 = dma.done.wait [#allocation22], 1088  }
  0xa5   :  { %8731 = vsyncadd [#allocation22], 4294966208  ;;  %v8751_v0 = vmov 0.0   ;;  %vm8752_vm0 = vmmov 0   ;;  %v8138_v1 = vld [vmem:[#allocation6] sm:$0xff]   ;;  %vm261_vm1 = vcmask 130048   ;;  %v410_v61 = vlaneseq }
  0xa6   :  { %7325 = vmatprep.subr.bf16.mxu0 %v8751_v0  ;;  %232 = vst [vmem:[#allocation2] sm:$0xff] %v8751_v0  ;;  %234 = vst [vmem:[#allocation2 + $0x10] sm:$0xff] %v8751_v0  ;;  %7327 = vmatprep.mubr.msk.bf16.mxu0 %vm8752_vm0, %v8751_v0  ;;  %v244_v2 = vld [vmem:[#allocation3] sm:$0x3]  ;;  %v8139_v4 = vld [vmem:[#allocation12 + $0x8] sm:$0xff]   ;;  %vm307_vm2 = vcmask 123904  }
  0xa7   :  { %235 = vst [vmem:[#allocation2 + $0x18] sm:$0xff] %v8751_v0  ;;  %237 = vst [vmem:[#allocation2 + $0x28] sm:$0xff] %v8751_v0  ;;  %7331 = vmatprep.subr.bf16.mxu1 %v8751_v0  ;;  %7333 = vmatprep.mubr.msk.bf16.mxu1 %vm8752_vm0, %v8751_v0  ;;  %v245_v3 = vpack.c.bf16 %v244_v2, %v244_v2  ;;  %v8140_v5 = vld [vmem:[#allocation12] sm:$0xff]   ;;  %v6598_v6 = vld [vmem:[#allocation8] ss:$0 sm:$0xff]  ;;  %v411_v63 = vshrl.u32 %v410_v61, 7 }
  0xa8   :  { %238 = vst [vmem:[#allocation2 + $0x30] sm:$0xff] %v8751_v0  ;;  %240 = vst [vmem:[#allocation2 + $0x40] sm:$0xff] %v8751_v0  ;;  %7326 = vmatpush3.bf16.msra.mxu0 %v8138_v1  ;;  %7332 = vmatpush3.bf16.msra.mxu1 %v8140_v5  ;;  %v6601_v32 = vld [vmem:[#allocation9] ss:$0 sm:$0xff]  ;;  %v6602_v34 = vld [vmem:[#allocation11] ss:$0 sm:$0xff] }
  0xa9   :  { %241 = vst [vmem:[#allocation2 + $0x48] sm:$0xff] %v8751_v0  ;;  %243 = vst [vmem:[#allocation2 + $0x58] sm:$0xff] %v8751_v0  ;;  %7337 = vmatprep.subr.bf16.mxu0 %v8751_v0  ;;  %7343 = vmatprep.subr.bf16.mxu1 %v8751_v0  ;;  %v8141_v39 = vld [vmem:[#allocation12 + $0x10] sm:$0xff]   ;;  %v8142_v40 = vld [vmem:[#allocation12 + $0x18] sm:$0xff]   ;;  %v8753_v59 = vmov 1966171168  }
  0xaa   :  { %v8143_v43 = vld [vmem:[#allocation17 + $0x38] sm:$0xff]   ;;  %v8144_v44 = vld [vmem:[#allocation17 + $0x30] sm:$0xff]   ;;  %v8145_v45 = vld [vmem:[#allocation17 + $0x28] sm:$0xff]   ;;  %v408_v60 = vunpack.c.l.s4 %v8753_v59  ;;  %vm701_vm4 = vcmask 1040384   ;;  %vm704_vm5 = vcmask 1041408   ;;  %vm707_vm6 = vcmask 1042432  }
  0xab   :  { %7328 = vmatmul.mubr.msk.bf16.vlgmr.msra.gmra.mxu0 %vm261_vm1, %v245_v3  ;;  %v8146_v46 = vld [vmem:[#allocation15 + $0x38] sm:$0xff]   ;;  %v8147_v47 = vld [vmem:[#allocation17 + $0x20] sm:$0xff]   ;;  %v8148_v48 = vld [vmem:[#allocation15 + $0x30] sm:$0xff]   ;;  %vm734_vm7 = vcmask 1043456   ;;  %vm737_vm8 = vcmask 1044480   ;;  %vm740_vm9 = vcmask 1045504  }
  0xac   :  { %7339 = vmatprep.mubr.msk.bf16.mxu0 %vm8752_vm0, %v8751_v0  ;;  %7338 = vmatpush3.bf16.msra.mxu0 %v8139_v4  ;;  %v8149_v49 = vld [vmem:[#allocation17 + $0x18] sm:$0xff]   ;;  %v8150_v50 = vld [vmem:[#allocation15 + $0x28] sm:$0xff]   ;;  %v8151_v51 = vld [vmem:[#allocation17 + $0x10] sm:$0xff]   ;;  %v409_v62 = vunpack.c.0.s8 %v408_v60  ;;  %vm743_vm10 = vcmask 1046528   ;;  %s8754_s17 = smov [#allocation24]  }
  0xad   :  { %7349 = vmatprep.subr.bf16.mxu0 %v8751_v0  ;;  %v8929_v42 = vld [vmem:[#allocation2] sm:$0xff]  ;;  %v8152_v52 = vld [vmem:[#allocation15 + $0x20] sm:$0xff]   ;;  %v8154_v54 = vld [vmem:[#allocation15 + $0x18] sm:$0xff]  }
  0xae   :  { %v8153_v53 = vld [vmem:[#allocation17 + $0x8] sm:$0xff]   ;;  %v8155_v55 = vld [vmem:[#allocation17] sm:$0xff]   ;;  %v8156_v56 = vld [vmem:[#allocation15 + $0x10] sm:$0xff]   ;;  %v412_v1 = vsub.s32 %v409_v62, %v411_v63 }
  0xaf   :  { %v8157_v57 = vld [vmem:[#allocation15 + $0x8] sm:$0xff]   ;;  %v8159_v58 = vld [vmem:[#allocation15] sm:$0xff]   ;;  %v6606_v0 = vld [vmem:[#allocation14 + $0x1] ss:$0 sm:$0xff] }
  0xb0   :  { %v6603_v4 = vld [vmem:[#allocation14] ss:$0 sm:$0xff] }
 0x16b   :  { %v299_v7 = vpop.f32.mrf.mxu0 }
 0x16c   :  { %v300_v8 = vadd.f32 %v6598_v6, %v299_v7 }
 0x16d   :  { %v7329_v9 = vpop.f32.mrf.mxu0 }
 0x16e   :  { %v308_v10 = vsel %vm307_vm2, %v300_v8, 0.0 }
 0x16f   :  { %v309_v11 = vrot.slane %v308_v10, 4  ;;  %v302_v12 = vpop.f32.mrf.mxu0 }
 0x171   :  { %v310_v13 = vadd.f32 %v309_v11, %v308_v10  ;;  %v7330_v14 = vpop.f32.mrf.mxu0 }
 0x173   :  { %v311_v15 = vrot.slane %v310_v13, 2 }
 0x175   :  { %v312_v16 = vadd.f32 %v311_v15, %v310_v13  ;;  %v6609_v15 = vld [vmem:[#allocation14 + $0x2] ss:$0 sm:$0xff] }
 0x177   :  { %v313_v17 = vrot.slane %v312_v16, 1 }
 0x179   :  { %v314_v18 = vadd.f32 %v313_v17, %v312_v16  ;;  %v6612_v16 = vld [vmem:[#allocation14 + $0x3] ss:$0 sm:$0xff] }
 0x17b   :  { %v316_v19 = vmul.f32 0.5, %v314_v18 }
 0x17d   :  { %v317_v20 = vsub.f32 %v300_v8, %v316_v19  ;;  %v673_v19 = vsub.s32 0, %v411_v63 }
 0x17f   :  { %v318_v21 = vmul.f32 %v317_v20, %v317_v20 }
 0x181   :  { %v319_v22 = vsel %vm307_vm2, %v318_v21, 0.0 }
 0x182   :  { %v320_v23 = vrot.slane %v319_v22, 4 }
 0x184   :  { %v321_v24 = vadd.f32 %v320_v23, %v319_v22 }
 0x186   :  { %v322_v25 = vrot.slane %v321_v24, 2 }
 0x188   :  { %v323_v26 = vadd.f32 %v322_v25, %v321_v24 }
 0x18a   :  { %v324_v27 = vrot.slane %v323_v26, 1 }
 0x18c   :  { %v325_v28 = vadd.f32 %v324_v27, %v323_v26 }
 0x18e   :  { %v326_v29 = vmul.f32 0.5, %v325_v28 }
 0x190   :  { %v327_v30 = vadd.f32 1e-05, %v326_v29 }
 0x192   :  { %8415 = vrsqrt.f32 %v327_v30 }
 0x19f   :  { %v8416_v31 = vpop.eup %8415 }
 0x1a0   :  { %v329_v33 = vmul.f32 %v8416_v31, %v317_v20 }
 0x1a2   :  { %v336_v35 = vmul.f32 %v6601_v32, %v329_v33 }
 0x1a4   :  { %v343_v36 = vadd.f32 %v6602_v34, %v336_v35 }
 0x1a6   :  { %vm344_vm3 = vcmp.ge.f32.partialorder %v343_v36, 0.0  ;;  %v345_v37 = vmul.f32 0.2, %v343_v36 }
 0x1a8   :  { %v346_v38 = vsel %vm344_vm3, %v343_v36, %v345_v37 }
 0x1a9   :  { %v347_v41 = vpack.c.bf16 %v346_v38, %v346_v38 }
 0x1ab   :  { %7334 = vmatmul.mubr.msk.bf16.vlgmr.msra.gmra.mxu1 %vm261_vm1, %v347_v41  ;;  %7340 = vmatmul.mubr.msk.bf16.vlgmr.msra.gmra.mxu0 %vm261_vm1, %v347_v41 }
 0x1ac   :  { %7344 = vmatpush3.bf16.msra.mxu1 %v8141_v39  ;;  %7350 = vmatpush3.bf16.msra.mxu0 %v8142_v40 }
 0x1ad   :  { %7345 = vmatprep.mubr.msk.bf16.mxu1 %vm8752_vm0, %v8929_v42  ;;  %7351 = vmatprep.mubr.msk.bf16.mxu0 %vm8752_vm0, %v8929_v42 }
 0x1ae   :  { %7355 = vmatprep.subr.bf16.mxu1 %v8929_v42  ;;  %7375 = vmatprep.subr.bf16.mxu0 %v8929_v42 }
 0x1b3   :  { %7346 = vmatmul.mubr.msk.bf16.vlgmr.msra.gmra.mxu1 %vm261_vm1, %v347_v41  ;;  %7352 = vmatmul.mubr.msk.bf16.vlgmr.msra.gmra.mxu0 %vm261_vm1, %v347_v41 }
 0x1b4   :  { %7371 = vmatprep.mubr.msk.bf16.mxu1 %vm8752_vm0, %v8929_v42  ;;  %7391 = vmatprep.mubr.msk.bf16.mxu0 %vm8752_vm0, %v8929_v42 }
 0x1b5   :  { %7356 = vmatpush3.bf16.msra.mxu1 %v8143_v43  ;;  %7376 = vmatpush3.bf16.msra.mxu0 %v8146_v46 }
 0x1b6   :  { %7357 = vmatprep.subr.bf16.mxu1 %v8929_v42  ;;  %7377 = vmatprep.subr.bf16.mxu0 %v8929_v42 }
 0x1b9   :  { %7358 = vmatpush3.bf16.msra.mxu1 %v8144_v44  ;;  %7378 = vmatpush3.bf16.msra.mxu0 %v8148_v48 }
 0x1ba   :  { %7359 = vmatprep.subr.bf16.mxu1 %v8929_v42  ;;  %7379 = vmatprep.subr.bf16.mxu0 %v8929_v42 }
 0x1bd   :  { %7360 = vmatpush3.bf16.msra.mxu1 %v8145_v45  ;;  %7380 = vmatpush3.bf16.msra.mxu0 %v8150_v50 }
 0x1be   :  { %7361 = vmatprep.subr.bf16.mxu1 %v8929_v42  ;;  %7381 = vmatprep.subr.bf16.mxu0 %v8929_v42 }
 0x1c1   :  { %7362 = vmatpush3.bf16.msra.mxu1 %v8147_v47  ;;  %7382 = vmatpush3.bf16.msra.mxu0 %v8152_v52 }
 0x1c2   :  { %7363 = vmatprep.subr.bf16.mxu1 %v8929_v42  ;;  %7383 = vmatprep.subr.bf16.mxu0 %v8929_v42 }
 0x1c5   :  { %7364 = vmatpush3.bf16.msra.mxu1 %v8149_v49  ;;  %7384 = vmatpush3.bf16.msra.mxu0 %v8154_v54 }
 0x1c6   :  { %7365 = vmatprep.subr.bf16.mxu1 %v8929_v42  ;;  %7385 = vmatprep.subr.bf16.mxu0 %v8929_v42 }
 0x1c9   :  { %7366 = vmatpush3.bf16.msra.mxu1 %v8151_v51  ;;  %7386 = vmatpush3.bf16.msra.mxu0 %v8156_v56 }
 0x1ca   :  { %7367 = vmatprep.subr.bf16.mxu1 %v8929_v42  ;;  %7387 = vmatprep.subr.bf16.mxu0 %v8929_v42 }
 0x1cd   :  { %7368 = vmatpush3.bf16.msra.mxu1 %v8153_v53  ;;  %7388 = vmatpush3.bf16.msra.mxu0 %v8157_v57 }
 0x1ce   :  { %7369 = vmatprep.subr.bf16.mxu1 %v8929_v42  ;;  %7389 = vmatprep.subr.bf16.mxu0 %v8929_v42 }
 0x1d1   :  { %7370 = vmatpush3.bf16.msra.mxu1 %v8155_v55  ;;  %7390 = vmatpush3.bf16.msra.mxu0 %v8159_v58 }
 0x1d2   :  { %7395 = vmatprep.subr.bf16.mxu1 %v8929_v42  ;;  %7415 = vmatprep.subr.bf16.mxu0 %v8929_v42 }
 0x26b   :  { %v400_v2 = vpop.f32.mrf.mxu1  ;;  %v482_v3 = vpop.f32.mrf.mxu0 }
 0x26c   :  { %v483_v5 = vadd.f32 %v6606_v0, %v482_v3  ;;  %v401_v9 = vadd.f32 %v6603_v4, %v400_v2 }
 0x26d   :  { %v7335_v6 = vpop.f32.mrf.mxu1  ;;  %v7341_v7 = vpop.f32.mrf.mxu0 }
 0x26e   :  { %v495_v8 = vrot.slane %v483_v5, %v412_v1  ;;  %v413_v17 = vrot.slane %v401_v9, %v412_v1 }
 0x26f   :  { %v403_v10 = vpop.f32.mrf.mxu1  ;;  %v485_v11 = vpop.f32.mrf.mxu0 }
 0x270   :  { %v496_v12 = vcombine.high %v495_v8, %v495_v8  ;;  %v503_v18 = vrot.slane %v495_v8, %v412_v1  ;;  %v414_v29 = vcombine.high %v413_v17, %v413_v17  ;;  %v421_v37 = vrot.slane %v413_v17, %v412_v1 }
 0x271   :  { %v7336_v13 = vpop.f32.mrf.mxu1  ;;  %v7342_v14 = vpop.f32.mrf.mxu0 }
 0x272   :  { %v510_v24 = vrot.slane %v496_v12, %v412_v1  ;;  %v674_v30 = vrot.slane %v503_v18, %v673_v19  ;;  %v428_v46 = vrot.slane %v414_v29, %v412_v1  ;;  %v8158_v13 = vld [vmem:[#allocation15 + $0x78] sm:$0xff]   ;;  %v8171_v29 = vld [vmem:[#allocation15 + $0x40] sm:$0xff]  }
 0x273   :  { %v562_v20 = vpop.f32.mrf.mxu1  ;;  %v642_v21 = vpop.f32.mrf.mxu0 }
 0x274   :  { %v563_v22 = vadd.f32 %v6609_v15, %v562_v20  ;;  %v643_v23 = vadd.f32 %v6612_v16, %v642_v21  ;;  %v678_v38 = vrot.slane %v510_v24, %v673_v19  ;;  %v702_v47 = vsel %vm701_vm4, %v421_v37, %v674_v30  ;;  %v8160_v15 = vld [vmem:[#allocation15 + $0x70] sm:$0xff]   ;;  %v8161_v16 = vld [vmem:[#allocation15 + $0x68] sm:$0xff]   ;;  %v8163_v21 = vld [vmem:[#allocation15 + $0x60] sm:$0xff]  }
 0x275   :  { %v7347_v25 = vpop.f32.mrf.mxu1  ;;  %v7353_v26 = vpop.f32.mrf.mxu0  ;;  %v8166_v24 = vld [vmem:[#allocation15 + $0xa8] sm:$0xff]   ;;  %v8172_v30 = vld [vmem:[#allocation15 + $0x90] sm:$0xff]  }
 0x276   :  { %v575_v27 = vrot.slane %v563_v22, %v412_v1  ;;  %v655_v28 = vrot.slane %v643_v23, %v412_v1  ;;  %v703_v51 = vsel %vm701_vm4, %v428_v46, %v678_v38  ;;  %v8164_v22 = vld [vmem:[#allocation15 + $0xb0] sm:$0xff]   ;;  %v8165_v23 = vld [vmem:[#allocation15 + $0x58] sm:$0xff]   ;;  %v8168_v26 = vld [vmem:[#allocation15 + $0xa0] sm:$0xff]  }
 0x277   :  { %v565_v31 = vpop.f32.mrf.mxu1  ;;  %v645_v32 = vpop.f32.mrf.mxu0  ;;  %v8167_v25 = vld [vmem:[#allocation15 + $0x50] sm:$0xff]   ;;  %v8177_v38 = vld [vmem:[#allocation15 + $0xf8] sm:$0xff]  }
 0x278   :  { %v576_v33 = vcombine.high %v575_v27, %v575_v27  ;;  %v583_v34 = vrot.slane %v575_v27, %v412_v1  ;;  %v656_v35 = vcombine.high %v655_v28, %v655_v28  ;;  %v663_v36 = vrot.slane %v655_v28, %v412_v1  ;;  %v8169_v27 = vld [vmem:[#allocation15 + $0x48] sm:$0xff]   ;;  %v8170_v28 = vld [vmem:[#allocation15 + $0x98] sm:$0xff]   ;;  %v8174_v32 = vld [vmem:[#allocation15 + $0x80] sm:$0xff]  }
 0x279   :  { %v7348_v39 = vpop.f32.mrf.mxu1  ;;  %v7354_v40 = vpop.f32.mrf.mxu0  ;;  %v8173_v31 = vld [vmem:[#allocation15 + $0x88] sm:$0xff]   ;;  %v8176_v37 = vld [vmem:[#allocation15 + $0x130] sm:$0xff]  }
 0x27a   :  { %v590_v41 = vrot.slane %v576_v33, %v412_v1  ;;  %v684_v43 = vrot.slane %v583_v34, %v673_v19  ;;  %v670_v44 = vrot.slane %v656_v35, %v412_v1  ;;  %v694_v45 = vrot.slane %v663_v36, %v673_v19  ;;  %v8175_v36 = vld [vmem:[#allocation15 + $0x138] sm:$0xff]   ;;  %v8178_v39 = vld [vmem:[#allocation15 + $0x128] sm:$0xff]   ;;  %v8179_v40 = vld [vmem:[#allocation15 + $0xf0] sm:$0xff]  }
 0x27b   :  { %v8184_v46 = vld [vmem:[#allocation15 + $0x110] sm:$0xff]  }
 0x27c   :  { %v688_v48 = vrot.slane %v590_v41, %v673_v19  ;;  %v705_v49 = vsel %vm704_vm5, %v702_v47, %v684_v43  ;;  %v698_v50 = vrot.slane %v670_v44, %v673_v19  ;;  %v8162_v19 = vld [vmem:[#allocation15 + $0xb8] sm:$0xff]   ;;  %v8180_v41 = vld [vmem:[#allocation15 + $0x120] sm:$0xff]   ;;  %v8181_v43 = vld [vmem:[#allocation15 + $0xe8] sm:$0xff]  }
 0x27d   :  { %v708_v52 = vsel %vm707_vm6, %v705_v49, %v694_v45  ;;  %v8182_v44 = vld [vmem:[#allocation15 + $0x118] sm:$0xff]   ;;  %v8183_v45 = vld [vmem:[#allocation15 + $0xe0] sm:$0xff]   ;;  %v8187_v49 = vld [vmem:[#allocation15 + $0xd0] sm:$0xff]  }
 0x27e   :  { %v706_v53 = vsel %vm704_vm5, %v703_v51, %v688_v48  ;;  %v712_v54 = vrot.slane %v708_v52, 7  ;;  %v716_v57 = vrot.slane %v708_v52, 6  ;;  %v720_v62 = vrot.slane %v708_v52, 5  ;;  %v8185_v47 = vld [vmem:[#allocation15 + $0xd8] sm:$0xff]   ;;  %v8186_v48 = vld [vmem:[#allocation15 + $0x108] sm:$0xff]  }
 0x27f   :  { %v709_v55 = vsel %vm707_vm6, %v706_v53, %v698_v50  ;;  %v724_v3 = vrot.slane %v708_v52, 4  ;;  %v8188_v50 = vld [vmem:[#allocation15 + $0x100] sm:$0xff]   ;;  %v8189_v51 = vld [vmem:[#allocation15 + $0xc8] sm:$0xff]  }
 0x280   :  { %v713_v56 = vrot.slane %v709_v55, 7  ;;  %v728_v58 = vsel %vm701_vm4, %v708_v52, %v712_v54  ;;  %v717_v60 = vrot.slane %v709_v55, 6  ;;  %v721_v2 = vrot.slane %v709_v55, 5  ;;  %v8190_v52 = vld [vmem:[#allocation15 + $0xc0] sm:$0xff]  }
 0x281   :  { %v730_v59 = vsel %vm704_vm5, %v728_v58, %v712_v54  ;;  %v725_v8 = vrot.slane %v709_v55, 4 }
 0x282   :  { %v729_v61 = vsel %vm701_vm4, %v709_v55, %v713_v56  ;;  %v732_v63 = vsel %vm707_vm6, %v730_v59, %v716_v57 }
 0x283   :  { %v731_v0 = vsel %vm704_vm5, %v729_v61, %v713_v56  ;;  %v735_v1 = vsel %vm734_vm7, %v732_v63, %v716_v57 }
 0x284   :  { %v733_v4 = vsel %vm707_vm6, %v731_v0, %v717_v60  ;;  %v738_v5 = vsel %vm737_vm8, %v735_v1, %v720_v62 }
 0x285   :  { %v736_v6 = vsel %vm734_vm7, %v733_v4, %v717_v60  ;;  %v741_v7 = vsel %vm740_vm9, %v738_v5, %v720_v62 }
 0x286   :  { %v739_v9 = vsel %vm737_vm8, %v736_v6, %v721_v2  ;;  %v744_v10 = vsel %vm743_vm10, %v741_v7, %v724_v3  ;;  %v6648_v6 = vld [vmem:[%s9339_s8] ss:$0 sm:$0xff] }
 0x287   :  { %v742_v11 = vsel %vm740_vm9, %v739_v9, %v721_v2  ;;  %861 = vst [vmem:[#allocation2 + $0x8] sm:$0xff] %v744_v10 }
 0x288   :  { %v745_v12 = vsel %vm743_vm10, %v742_v11, %v725_v8 }
 0x289   :  { %v762_v14 = vpack.c.bf16 %v745_v12, %v744_v10  ;;  %862 = vst [vmem:[#allocation2 + $0x38] sm:$0xff] %v745_v12 }
 0x28b   :  { %7372 = vmatmul.mubr.bf16.vlgmr.msra.gmra.mxu1 %v762_v14 }
 0x28c   :  { %7396 = vmatpush3.bf16.msra.mxu1 %v8158_v13  ;;  %7411 = vmatprep.mubr.msk.bf16.mxu1 %vm8752_vm0, %v8929_v42 }
 0x28d   :  { %7397 = vmatprep.subr.bf16.mxu1 %v8929_v42 }
 0x28e   :  { %v863_v17 = vld [vmem:[#allocation2 + $0x7] sm:$0xff] }
 0x28f   :  { %v865_v34 = vld [vmem:[#allocation2 + $0x9] sm:$0xff] }
 0x290   :  { %7398 = vmatpush3.bf16.msra.mxu1 %v8160_v15  ;;  %v864_v18 = vld [vmem:[#allocation2 + $0x37] sm:$0xff] }
 0x291   :  { %7399 = vmatprep.subr.bf16.mxu1 %v8929_v42  ;;  %v883_v20 = vpack.c.bf16 %v864_v18, %v863_v17  ;;  %v866_v33 = vld [vmem:[#allocation2 + $0x39] sm:$0xff] }
 0x292   :  { %v1098_v35 = vpack.c.bf16 %v866_v33, %v865_v34  ;;  %v6649_v34 = vld [vmem:[%s9340_s9] ss:$0 sm:$0xff] }
 0x293   :  { %7392 = vmatmul.mubr.bf16.vlgmr.msra.gmra.mxu0 %v883_v20 }
 0x294   :  { %7400 = vmatpush3.bf16.msra.mxu1 %v8161_v16  ;;  %7416 = vmatpush3.bf16.msra.mxu0 %v8162_v19 }
 0x295   :  { %7401 = vmatprep.subr.bf16.mxu1 %v8929_v42  ;;  %7417 = vmatprep.subr.bf16.mxu0 %v8929_v42 }
 0x296   :  { %7431 = vmatprep.mubr.msk.bf16.mxu0 %vm8752_vm0, %v8929_v42 }
 0x298   :  { %7402 = vmatpush3.bf16.msra.mxu1 %v8163_v21  ;;  %7418 = vmatpush3.bf16.msra.mxu0 %v8164_v22 }
 0x299   :  { %7403 = vmatprep.subr.bf16.mxu1 %v8929_v42  ;;  %7419 = vmatprep.subr.bf16.mxu0 %v8929_v42 }
 0x29c   :  { %7404 = vmatpush3.bf16.msra.mxu1 %v8165_v23  ;;  %7420 = vmatpush3.bf16.msra.mxu0 %v8166_v24 }
 0x29d   :  { %7405 = vmatprep.subr.bf16.mxu1 %v8929_v42  ;;  %7421 = vmatprep.subr.bf16.mxu0 %v8929_v42 }
 0x2a0   :  { %7406 = vmatpush3.bf16.msra.mxu1 %v8167_v25  ;;  %7422 = vmatpush3.bf16.msra.mxu0 %v8168_v26 }
 0x2a1   :  { %7407 = vmatprep.subr.bf16.mxu1 %v8929_v42  ;;  %7423 = vmatprep.subr.bf16.mxu0 %v8929_v42 }
 0x2a4   :  { %7408 = vmatpush3.bf16.msra.mxu1 %v8169_v27  ;;  %7424 = vmatpush3.bf16.msra.mxu0 %v8170_v28 }
 0x2a5   :  { %7409 = vmatprep.subr.bf16.mxu1 %v8929_v42  ;;  %7425 = vmatprep.subr.bf16.mxu0 %v8929_v42 }
 0x2a8   :  { %7410 = vmatpush3.bf16.msra.mxu1 %v8171_v29  ;;  %7426 = vmatpush3.bf16.msra.mxu0 %v8172_v30 }
 0x2a9   :  { %7427 = vmatprep.subr.bf16.mxu0 %v8929_v42  ;;  %7435 = vmatprep.subr.bf16.mxu1 %v8929_v42 }
 0x2ab   :  { %7412 = vmatmul.mubr.bf16.vlgmr.msra.gmra.mxu1 %v762_v14 }
 0x2ac   :  { %7428 = vmatpush3.bf16.msra.mxu0 %v8173_v31  ;;  %7451 = vmatprep.mubr.msk.bf16.mxu1 %vm8752_vm0, %v8929_v42 }
 0x2ad   :  { %7429 = vmatprep.subr.bf16.mxu0 %v8929_v42  ;;  %7436 = vmatpush3.bf16.msra.mxu1 %v8177_v38 }
 0x2ae   :  { %7437 = vmatprep.subr.bf16.mxu1 %v8929_v42 }
 0x2b0   :  { %7430 = vmatpush3.bf16.msra.mxu0 %v8174_v32 }
 0x2b1   :  { %7455 = vmatprep.subr.bf16.mxu0 %v8929_v42  ;;  %7438 = vmatpush3.bf16.msra.mxu1 %v8179_v40 }
 0x2b2   :  { %7439 = vmatprep.subr.bf16.mxu1 %v8929_v42 }
 0x2b3   :  { %7432 = vmatmul.mubr.bf16.vlgmr.msra.gmra.mxu0 %v1098_v35 }
 0x2b4   :  { %7471 = vmatprep.mubr.msk.bf16.mxu0 %vm8752_vm0, %v8929_v42  ;;  %7456 = vmatpush3.bf16.msra.mxu0 %v8175_v36 }
 0x2b5   :  { %7457 = vmatprep.subr.bf16.mxu0 %v8929_v42  ;;  %7440 = vmatpush3.bf16.msra.mxu1 %v8181_v43 }
 0x2b6   :  { %7441 = vmatprep.subr.bf16.mxu1 %v8929_v42 }
 0x2b8   :  { %7458 = vmatpush3.bf16.msra.mxu0 %v8176_v37  ;;  %v6650_v37 = vld [vmem:[%s9341_s10] ss:$0 sm:$0xff] }
 0x2b9   :  { %7459 = vmatprep.subr.bf16.mxu0 %v8929_v42  ;;  %7442 = vmatpush3.bf16.msra.mxu1 %v8183_v45 }
 0x2ba   :  { %7443 = vmatprep.subr.bf16.mxu1 %v8929_v42 }
 0x2bc   :  { %7460 = vmatpush3.bf16.msra.mxu0 %v8178_v39 }
 0x2bd   :  { %7461 = vmatprep.subr.bf16.mxu0 %v8929_v42  ;;  %7444 = vmatpush3.bf16.msra.mxu1 %v8185_v47 }
 0x2be   :  { %7445 = vmatprep.subr.bf16.mxu1 %v8929_v42 }
 0x2c0   :  { %7462 = vmatpush3.bf16.msra.mxu0 %v8180_v41 }
 0x2c1   :  { %7463 = vmatprep.subr.bf16.mxu0 %v8929_v42  ;;  %7446 = vmatpush3.bf16.msra.mxu1 %v8187_v49 }
 0x2c2   :  { %7447 = vmatprep.subr.bf16.mxu1 %v8929_v42 }
 0x2c4   :  { %7464 = vmatpush3.bf16.msra.mxu0 %v8182_v44 }
 0x2c5   :  { %7465 = vmatprep.subr.bf16.mxu0 %v8929_v42  ;;  %7448 = vmatpush3.bf16.msra.mxu1 %v8189_v51 }
 0x2c6   :  { %7449 = vmatprep.subr.bf16.mxu1 %v8929_v42 }
 0x2c8   :  { %7466 = vmatpush3.bf16.msra.mxu0 %v8184_v46 }
 0x2c9   :  { %7467 = vmatprep.subr.bf16.mxu0 %v8929_v42  ;;  %7450 = vmatpush3.bf16.msra.mxu1 %v8190_v52  ;;  %v8192_v52 = vld [vmem:[#allocation15 + $0x170] sm:$0xff]  }
 0x2ca   :  { %7475 = vmatprep.subr.bf16.mxu1 %v8929_v42 }
 0x2cc   :  { %7468 = vmatpush3.bf16.msra.mxu0 %v8186_v48 }
 0x2cd   :  { %7469 = vmatprep.subr.bf16.mxu0 %v8929_v42 }
 0x2d0   :  { %7470 = vmatpush3.bf16.msra.mxu0 %v8188_v50  ;;  %v8191_v50 = vld [vmem:[#allocation15 + $0x178] sm:$0xff]  }
 0x34b   :  { %v9018_v53 = vpop.f32.mrf.mxu1 }
 0x34d   :  { %v7373_v54 = vpop.f32.mrf.mxu1 }
 0x34e   :  { %v8193_v54 = vld [vmem:[#allocation15 + $0x168] sm:$0xff]  }
 0x34f   :  { %v9020_v55 = vpop.f32.mrf.mxu1 }
 0x351   :  { %v7374_v56 = vpop.f32.mrf.mxu1 }
 0x352   :  { %v8194_v56 = vld [vmem:[#allocation15 + $0x160] sm:$0xff]  }
 0x353   :  { %v966_v57 = vpop.f32.mrf.mxu0 }
 0x355   :  { %v7393_v58 = vpop.f32.mrf.mxu0 }
 0x356   :  { %v8196_v58 = vld [vmem:[#allocation15 + $0x150] sm:$0xff]  }
 0x357   :  { %v969_v59 = vpop.f32.mrf.mxu0 }
 0x359   :  { %v7394_v60 = vpop.f32.mrf.mxu0 }
 0x35a   :  { %v8198_v60 = vld [vmem:[#allocation15 + $0x140] sm:$0xff]  }
 0x36b   :  { %v1072_v61 = vpop.f32.mrf.mxu1 }
 0x36c   :  { %v1079_v2 = vadd.f32 %v1072_v61, %v966_v57  ;;  %v8195_v57 = vld [vmem:[#allocation15 + $0x158] sm:$0xff]  }
 0x36d   :  { %v7413_v62 = vpop.f32.mrf.mxu1 }
 0x36f   :  { %v1075_v63 = vpop.f32.mrf.mxu1 }
 0x370   :  { %v1080_v4 = vadd.f32 %v1075_v63, %v969_v59  ;;  %v8197_v59 = vld [vmem:[#allocation15 + $0x148] sm:$0xff]  }
 0x371   :  { %v7414_v0 = vpop.f32.mrf.mxu1 }
 0x372   :  { %v8199_v0 = vld [vmem:[#allocation17 + $0x78] sm:$0xff]  }
 0x373   :  { %v1181_v1 = vpop.f32.mrf.mxu0  ;;  %7495 = vmatprep.subr.bf16.mxu0 %v8199_v0 }
 0x374   :  { %v1188_v5 = vadd.f32 %v1181_v1, %v1079_v2  ;;  %v8200_v1 = vld [vmem:[#allocation17 + $0x70] sm:$0xff]   ;;  %v8201_v2 = vld [vmem:[#allocation17 + $0x68] sm:$0xff]  }
 0x375   :  { %v7433_v3 = vpop.f32.mrf.mxu0 }
 0x376   :  { %v1197_v10 = vadd.f32 %v6648_v6, %v1188_v5  ;;  %v8202_v3 = vld [vmem:[#allocation15 + $0x1b8] sm:$0xff]   ;;  %v8204_v5 = vld [vmem:[#allocation15 + $0x1b0] sm:$0xff]  }
 0x377   :  { %v1184_v7 = vpop.f32.mrf.mxu0 }
 0x378   :  { %v1189_v8 = vadd.f32 %v1184_v7, %v1080_v4  ;;  %v8203_v4 = vld [vmem:[#allocation17 + $0x60] sm:$0xff]   ;;  %v8207_v7 = vld [vmem:[#allocation17 + $0x50] sm:$0xff]  }
 0x379   :  { %v7434_v9 = vpop.f32.mrf.mxu0 }
 0x37a   :  { %v1198_v11 = vadd.f32 %v6648_v6, %v1189_v8  ;;  %v8206_v6 = vld [vmem:[#allocation15 + $0x1a8] sm:$0xff]   ;;  %v8208_v8 = vld [vmem:[#allocation15 + $0x1a0] sm:$0xff]  }
 0x37b   :  { %v8209_v9 = vld [vmem:[#allocation17 + $0x48] sm:$0xff]  }
 0x37c   :  { %v1201_v12 = vadd.f32 %v1198_v11, %v1197_v10 }
 0x37e   :  { %v1202_v13 = vrot.slane %v1201_v12, 4 }
 0x380   :  { %v1203_v14 = vadd.f32 %v1202_v13, %v1201_v12  ;;  %v8212_v12 = vld [vmem:[#allocation15 + $0x190] sm:$0xff]   ;;  %v8213_v13 = vld [vmem:[#allocation15 + $0x188] sm:$0xff]  }
 0x382   :  { %v1204_v15 = vrot.slane %v1203_v14, 2 }
 0x384   :  { %v1205_v16 = vadd.f32 %v1204_v15, %v1203_v14  ;;  %v9040_v14 = vld [vmem:[#allocation15 + $0x1f8] sm:$0xff]  }
 0x386   :  { %v1206_v17 = vrot.slane %v1205_v16, 1 }
 0x388   :  { %v1207_v18 = vadd.f32 %v1206_v17, %v1205_v16 }
 0x38a   :  { %v1209_v19 = vmul.f32 0.0625, %v1207_v18  ;;  %v8215_v18 = vld [vmem:[#allocation15 + $0x180] sm:$0xff]  }
 0x38c   :  { %v1210_v20 = vsub.f32 %v1197_v10, %v1209_v19  ;;  %v1211_v21 = vsub.f32 %v1198_v11, %v1209_v19  ;;  %v8210_v10 = vld [vmem:[#allocation15 + $0x198] sm:$0xff]   ;;  %v8211_v11 = vld [vmem:[#allocation17 + $0x40] sm:$0xff]  }
 0x38e   :  { %v1212_v22 = vmul.f32 %v1210_v20, %v1210_v20  ;;  %v1213_v23 = vmul.f32 %v1211_v21, %v1211_v21 }
 0x390   :  { %v1214_v24 = vadd.f32 %v1213_v23, %v1212_v22 }
 0x392   :  { %v1215_v25 = vrot.slane %v1214_v24, 4 }
 0x394   :  { %v1216_v26 = vadd.f32 %v1215_v25, %v1214_v24 }
 0x396   :  { %v1217_v27 = vrot.slane %v1216_v26, 2 }
 0x398   :  { %v1218_v28 = vadd.f32 %v1217_v27, %v1216_v26 }
 0x39a   :  { %v1219_v29 = vrot.slane %v1218_v28, 1 }
 0x39c   :  { %v1220_v30 = vadd.f32 %v1219_v29, %v1218_v28 }
 0x39e   :  { %v1221_v31 = vmul.f32 0.0625, %v1220_v30  ;;  %v6676_v30 = vld [vmem:[%s9339_s8 + $0x1] ss:$0 sm:$0xff] }
 0x3a0   :  { %v1222_v32 = vadd.f32 1e-05, %v1221_v31 }
 0x3a2   :  { %8417 = vrsqrt.f32 %v1222_v32 }
 0x3af   :  { %v8418_v33 = vpop.eup %8417 }
 0x3b0   :  { %v1224_v35 = vmul.f32 %v8418_v33, %v1210_v20  ;;  %v1225_v36 = vmul.f32 %v8418_v33, %v1211_v21  ;;  %v9043_v20 = vld [vmem:[#allocation15 + $0x238] sm:$0xff]  }
 0x3b2   :  { %v1232_v38 = vmul.f32 %v6649_v34, %v1224_v35  ;;  %v1233_v39 = vmul.f32 %v6649_v34, %v1225_v36 }
 0x3b4   :  { %v1240_v40 = vadd.f32 %v6650_v37, %v1232_v38  ;;  %v1241_v41 = vadd.f32 %v6650_v37, %v1233_v39 }
 0x3b6   :  { %vm1242_vm11 = vcmp.ge.f32.partialorder %v1240_v40, 0.0  ;;  %vm1243_vm12 = vcmp.ge.f32.partialorder %v1241_v41, 0.0  ;;  %v1244_v43 = vmul.f32 0.2, %v1240_v40  ;;  %v1245_v44 = vmul.f32 0.2, %v1241_v41 }
 0x3b8   :  { %v1246_v45 = vsel %vm1242_vm11, %v1240_v40, %v1244_v43  ;;  %v1247_v46 = vsel %vm1243_vm12, %v1241_v41, %v1245_v44 }
 0x3b9   :  { %1248 = vst [vmem:[#allocation2 + $0x8] sm:$0xff] %v1246_v45  ;;  %1249 = vst [vmem:[#allocation2 + $0x38] sm:$0xff] %v1247_v46  ;;  %v1378_v47 = vpack.c.bf16 %v1247_v46, %v1246_v45 }
 0x3bb   :  { %7472 = vmatmul.mubr.bf16.vlgmr.msra.gmra.mxu0 %v1378_v47 }
 0x3bc   :  { %7496 = vmatpush3.bf16.msra.mxu0 %v8199_v0  ;;  %v6680_v0 = vld [vmem:[%s9341_s10 + $0x1] ss:$0 sm:$0xff] }
 0x3bd   :  { %7497 = vmatprep.subr.bf16.mxu0 %v8200_v1 }
 0x3c0   :  { %v1250_v48 = vld [vmem:[#allocation2 + $0x7] sm:$0xff]  ;;  %v1251_v49 = vld [vmem:[#allocation2 + $0x37] sm:$0xff]  ;;  %7498 = vmatpush3.bf16.msra.mxu0 %v8200_v1 }
 0x3c1   :  { %v1271_v51 = vpack.c.bf16 %v1251_v49, %v1250_v48  ;;  %v1252_v61 = vld [vmem:[#allocation2 + $0x9] sm:$0xff]  ;;  %v1253_v62 = vld [vmem:[#allocation2 + $0x39] sm:$0xff]  ;;  %7499 = vmatprep.subr.bf16.mxu0 %v8201_v2 }
 0x3c2   :  { %v1487_v63 = vpack.c.bf16 %v1253_v62, %v1252_v61  ;;  %v6679_v61 = vld [vmem:[%s9340_s9 + $0x1] ss:$0 sm:$0xff] }
 0x3c3   :  { %7452 = vmatmul.mubr.bf16.vlgmr.msra.gmra.mxu1 %v1271_v51 }
 0x3c4   :  { %7476 = vmatpush3.bf16.msra.mxu1 %v8191_v50  ;;  %7491 = vmatprep.mubr.msk.bf16.mxu1 %vm8752_vm0, %v8929_v42 }
 0x3c5   :  { %7477 = vmatprep.subr.bf16.mxu1 %v8929_v42  ;;  %7500 = vmatpush3.bf16.msra.mxu0 %v8201_v2 }
 0x3c6   :  { %7501 = vmatprep.subr.bf16.mxu0 %v8203_v4 }
 0x3c8   :  { %7478 = vmatpush3.bf16.msra.mxu1 %v8192_v52 }
 0x3c9   :  { %7479 = vmatprep.subr.bf16.mxu1 %v8929_v42  ;;  %7502 = vmatpush3.bf16.msra.mxu0 %v8203_v4 }
 0x3cc   :  { %7480 = vmatpush3.bf16.msra.mxu1 %v8193_v54 }
 0x3cd   :  { %7481 = vmatprep.subr.bf16.mxu1 %v8929_v42 }
 0x3d0   :  { %7482 = vmatpush3.bf16.msra.mxu1 %v8194_v56 }
 0x3d1   :  { %7483 = vmatprep.subr.bf16.mxu1 %v8929_v42 }
 0x3d4   :  { %7484 = vmatpush3.bf16.msra.mxu1 %v8195_v57 }
 0x3d5   :  { %7485 = vmatprep.subr.bf16.mxu1 %v8929_v42 }
 0x3d8   :  { %7486 = vmatpush3.bf16.msra.mxu1 %v8196_v58 }
 0x3d9   :  { %7487 = vmatprep.subr.bf16.mxu1 %v8929_v42 }
 0x3dc   :  { %7488 = vmatpush3.bf16.msra.mxu1 %v8197_v59 }
 0x3dd   :  { %7489 = vmatprep.subr.bf16.mxu1 %v8929_v42  ;;  %v8205_v42 = vld [vmem:[#allocation17 + $0x58] sm:$0xff]  }
 0x3de   :  { %7503 = vmatprep.subr.bf16.mxu0 %v8205_v42 }
 0x3df   :  { %7504 = vmatpush3.bf16.msra.mxu0 %v8205_v42 }
 0x3e0   :  { %7490 = vmatpush3.bf16.msra.mxu1 %v8198_v60  ;;  %7505 = vmatprep.subr.bf16.mxu0 %v8207_v7 }
 0x3e1   :  { %7515 = vmatprep.subr.bf16.mxu1 %v8202_v3 }
 0x3e3   :  { %7492 = vmatmul.mubr.bf16.vlgmr.msra.gmra.mxu1 %v1487_v63  ;;  %7506 = vmatpush3.bf16.msra.mxu0 %v8207_v7 }
 0x3e4   :  { %7516 = vmatpush3.bf16.msra.mxu1 %v8202_v3  ;;  %7507 = vmatprep.subr.bf16.mxu0 %v8209_v9  ;;  %v6623_v3 = vld [vmem:[#allocation18] ss:$0 sm:$0xff] }
 0x3e5   :  { %7517 = vmatprep.subr.bf16.mxu1 %v8204_v5  ;;  %v859_v7 = vadd.f32 %v6623_v3, %v9018_v53 }
 0x3e7   :  { %7508 = vmatpush3.bf16.msra.mxu0 %v8209_v9 }
 0x3e8   :  { %7518 = vmatpush3.bf16.msra.mxu1 %v8204_v5  ;;  %7509 = vmatprep.subr.bf16.mxu0 %v8211_v11 }
 0x3e9   :  { %7519 = vmatprep.subr.bf16.mxu1 %v8206_v6 }
 0x3eb   :  { %7510 = vmatpush3.bf16.msra.mxu0 %v8211_v11 }
 0x3ec   :  { %7520 = vmatpush3.bf16.msra.mxu1 %v8206_v6  ;;  %7535 = vmatprep.subr.bf16.mxu0 %v9040_v14 }
 0x3ed   :  { %7521 = vmatprep.subr.bf16.mxu1 %v8208_v8 }
 0x3f0   :  { %7522 = vmatpush3.bf16.msra.mxu1 %v8208_v8  ;;  %v860_v8 = vadd.f32 %v6623_v3, %v9020_v55 }
 0x3f1   :  { %7523 = vmatprep.subr.bf16.mxu1 %v8210_v10 }
 0x3f4   :  { %7524 = vmatpush3.bf16.msra.mxu1 %v8210_v10 }
 0x3f5   :  { %7525 = vmatprep.subr.bf16.mxu1 %v8212_v12 }
 0x3f8   :  { %7526 = vmatpush3.bf16.msra.mxu1 %v8212_v12 }
 0x3f9   :  { %7527 = vmatprep.subr.bf16.mxu1 %v8213_v13 }
 0x3fc   :  { %7528 = vmatpush3.bf16.msra.mxu1 %v8213_v13 }
 0x3fd   :  { %7529 = vmatprep.subr.bf16.mxu1 %v8215_v18 }
 0x400   :  { %7530 = vmatpush3.bf16.msra.mxu1 %v8215_v18 }
 0x401   :  { %7555 = vmatprep.subr.bf16.mxu1 %v9043_v20 }
 0x47b   :  { %v1461_v15 = vpop.f32.mrf.mxu0 }
 0x47d   :  { %v7473_v16 = vpop.f32.mrf.mxu0 }
 0x47f   :  { %v1464_v17 = vpop.f32.mrf.mxu0 }
 0x481   :  { %v7474_v19 = vpop.f32.mrf.mxu0 }
 0x483   :  { %v1354_v21 = vpop.f32.mrf.mxu1 }
 0x484   :  { %v1468_v26 = vadd.f32 %v1461_v15, %v1354_v21 }
 0x485   :  { %v7453_v22 = vpop.f32.mrf.mxu1 }
 0x487   :  { %v1357_v23 = vpop.f32.mrf.mxu1 }
 0x488   :  { %v1469_v28 = vadd.f32 %v1464_v17, %v1357_v23 }
 0x489   :  { %v7454_v24 = vpop.f32.mrf.mxu1 }
 0x4a3   :  { %v1570_v25 = vpop.f32.mrf.mxu1 }
 0x4a4   :  { %v1577_v29 = vadd.f32 %v1570_v25, %v1468_v26 }
 0x4a5   :  { %v7493_v27 = vpop.f32.mrf.mxu1 }
 0x4a6   :  { %v1587_v34 = vadd.f32 %v6676_v30, %v1577_v29 }
 0x4a7   :  { %v1573_v31 = vpop.f32.mrf.mxu1 }
 0x4a8   :  { %v1578_v32 = vadd.f32 %v1573_v31, %v1469_v28 }
 0x4a9   :  { %v7494_v33 = vpop.f32.mrf.mxu1 }
 0x4aa   :  { %v1588_v35 = vadd.f32 %v6676_v30, %v1578_v32 }
 0x4ac   :  { %v1593_v36 = vadd.f32 %v1588_v35, %v1587_v34 }
 0x4ae   :  { %v1594_v37 = vrot.slane %v1593_v36, 4 }
 0x4b0   :  { %v1595_v38 = vadd.f32 %v1594_v37, %v1593_v36 }
 0x4b2   :  { %v1596_v39 = vrot.slane %v1595_v38, 2 }
 0x4b4   :  { %v1597_v40 = vadd.f32 %v1596_v39, %v1595_v38 }
 0x4b6   :  { %v1598_v41 = vrot.slane %v1597_v40, 1 }
 0x4b8   :  { %v1599_v43 = vadd.f32 %v1598_v41, %v1597_v40 }
 0x4ba   :  { %v1600_v44 = vmul.f32 0.0625, %v1599_v43 }
 0x4bc   :  { %v1601_v45 = vsub.f32 %v1587_v34, %v1600_v44  ;;  %v1602_v46 = vsub.f32 %v1588_v35, %v1600_v44 }
 0x4be   :  { %v1603_v47 = vmul.f32 %v1601_v45, %v1601_v45  ;;  %v1604_v48 = vmul.f32 %v1602_v46, %v1602_v46 }
 0x4c0   :  { %v1605_v49 = vadd.f32 %v1604_v48, %v1603_v47 }
 0x4c2   :  { %v1606_v50 = vrot.slane %v1605_v49, 4 }
 0x4c4   :  { %v1607_v51 = vadd.f32 %v1606_v50, %v1605_v49 }
 0x4c6   :  { %v1608_v52 = vrot.slane %v1607_v51, 2 }
 0x4c8   :  { %v1609_v54 = vadd.f32 %v1608_v52, %v1607_v51 }
 0x4ca   :  { %v1610_v56 = vrot.slane %v1609_v54, 1 }
 0x4cc   :  { %v1611_v57 = vadd.f32 %v1610_v56, %v1609_v54 }
 0x4ce   :  { %v1612_v58 = vmul.f32 0.0625, %v1611_v57 }
 0x4d0   :  { %v1613_v59 = vadd.f32 1e-05, %v1612_v58 }
 0x4d2   :  { %8419 = vrsqrt.f32 %v1613_v59 }
 0x4df   :  { %v8420_v60 = vpop.eup %8419 }
 0x4e0   :  { %v1615_v62 = vmul.f32 %v8420_v60, %v1601_v45  ;;  %v1616_v63 = vmul.f32 %v8420_v60, %v1602_v46 }
 0x4e2   :  { %v1623_v1 = vmul.f32 %v6679_v61, %v1615_v62  ;;  %v1624_v2 = vmul.f32 %v6679_v61, %v1616_v63  ;;  %v8216_v62 = vld [vmem:[#allocation15 + $0x1f0] sm:$0xff]  }
 0x4e4   :  { %v1631_v4 = vadd.f32 %v6680_v0, %v1623_v1  ;;  %v1632_v5 = vadd.f32 %v6680_v0, %v1624_v2  ;;  %v8217_v0 = vld [vmem:[#allocation15 + $0x1e8] sm:$0xff]  }
 0x4e6   :  { %vm1633_vm13 = vcmp.ge.f32.partialorder %v1631_v4, 0.0  ;;  %vm1634_vm14 = vcmp.ge.f32.partialorder %v1632_v5, 0.0  ;;  %v1635_v42 = vmul.f32 0.2, %v1631_v4  ;;  %v1636_v6 = vmul.f32 0.2, %v1632_v5 }
 0x4e8   :  { %v1637_v9 = vsel %vm1633_vm13, %v1631_v4, %v1635_v42  ;;  %v1638_v10 = vsel %vm1634_vm14, %v1632_v5, %v1636_v6 }
 0x4e9   :  { %v1639_v11 = vadd.f32 %v1637_v9, %v859_v7  ;;  %v1640_v12 = vadd.f32 %v1638_v10, %v860_v8  ;;  %v8219_v7 = vld [vmem:[#allocation15 + $0x1e0] sm:$0xff]   ;;  %v8220_v8 = vld [vmem:[#allocation15 + $0x230] sm:$0xff]   ;;  %v8222_v10 = vld [vmem:[#allocation15 + $0x228] sm:$0xff]  }
 0x4eb   :  { %v1641_v13 = vmul.f32 0.70710677, %v1639_v11  ;;  %v1642_v15 = vmul.f32 0.70710677, %v1640_v12  ;;  %v8223_v11 = vld [vmem:[#allocation15 + $0x1d0] sm:$0xff]   ;;  %v8224_v12 = vld [vmem:[#allocation15 + $0x220] sm:$0xff]  }
 0x4ed   :  { %v1645_v16 = vrot.slane %v1641_v13, 7  ;;  %v1649_v17 = vrot.slane %v1641_v13, 6  ;;  %v1653_v18 = vrot.slane %v1641_v13, 5  ;;  %v1657_v19 = vrot.slane %v1641_v13, 4 }
 0x4ee   :  { %v1661_v21 = vrot.slane %v1641_v13, 3  ;;  %v1665_v22 = vrot.slane %v1641_v13, 2  ;;  %v1669_v23 = vrot.slane %v1641_v13, 1  ;;  %v1646_v24 = vrot.slane %v1642_v15, 7 }
 0x4ef   :  { %v1673_v25 = vsel %vm701_vm4, %v1641_v13, %v1645_v16  ;;  %v1650_v26 = vrot.slane %v1642_v15, 6  ;;  %v1654_v53 = vrot.slane %v1642_v15, 5  ;;  %v1658_v27 = vrot.slane %v1642_v15, 4 }
 0x4f0   :  { %v1675_v55 = vsel %vm704_vm5, %v1673_v25, %v1645_v16  ;;  %v1687_v28 = vsel %vm701_vm4, %v1657_v19, %v1661_v21  ;;  %v1662_v29 = vrot.slane %v1642_v15, 3  ;;  %v1666_v30 = vrot.slane %v1642_v15, 2  ;;  %v8228_v16 = vld [vmem:[#allocation15 + $0x210] sm:$0xff]   ;;  %v8233_v25 = vld [vmem:[#allocation15 + $0x278] sm:$0xff]  }
 0x4f1   :  { %v1677_v31 = vsel %vm707_vm6, %v1675_v55, %v1649_v17  ;;  %v1689_v32 = vsel %vm704_vm5, %v1687_v28, %v1661_v21  ;;  %v1670_v33 = vrot.slane %v1642_v15, 1  ;;  %v1674_v34 = vsel %vm701_vm4, %v1642_v15, %v1646_v24  ;;  %v8237_v55 = vld [vmem:[#allocation15 + $0x268] sm:$0xff]   ;;  %v8238_v28 = vld [vmem:[#allocation15 + $0x298] sm:$0xff]  }
 0x4f2   :  { %v1679_v35 = vsel %vm734_vm7, %v1677_v31, %v1649_v17  ;;  %v1691_v36 = vsel %vm707_vm6, %v1689_v32, %v1665_v22  ;;  %v1676_v37 = vsel %vm704_vm5, %v1674_v34, %v1646_v24  ;;  %v1688_v38 = vsel %vm701_vm4, %v1658_v27, %v1662_v29  ;;  %v8229_v17 = vld [vmem:[#allocation15 + $0x208] sm:$0xff]   ;;  %v8232_v24 = vld [vmem:[#allocation15 + $0x2b0] sm:$0xff]   ;;  %v8241_v31 = vld [vmem:[#allocation15 + $0x258] sm:$0xff]  }
 0x4f3   :  { %v1681_v39 = vsel %vm737_vm8, %v1679_v35, %v1653_v18  ;;  %v1693_v40 = vsel %vm734_vm7, %v1691_v36, %v1665_v22  ;;  %v1678_v41 = vsel %vm707_vm6, %v1676_v37, %v1650_v26  ;;  %v1690_v43 = vsel %vm704_vm5, %v1688_v38, %v1662_v29  ;;  %v8239_v29 = vld [vmem:[#allocation15 + $0x260] sm:$0xff]   ;;  %v8242_v32 = vld [vmem:[#allocation15 + $0x288] sm:$0xff]   ;;  %v9087_v37 = vld [vmem:[#allocation15 + $0x2f8] sm:$0xff]  }
 0x4f4   :  { %v1683_v44 = vsel %vm740_vm9, %v1681_v39, %v1653_v18  ;;  %v1695_v45 = vsel %vm737_vm8, %v1693_v40, %v1669_v23  ;;  %v1680_v46 = vsel %vm734_vm7, %v1678_v41, %v1650_v26  ;;  %v1692_v47 = vsel %vm707_vm6, %v1690_v43, %v1666_v30  ;;  %v8230_v18 = vld [vmem:[#allocation15 + $0x200] sm:$0xff]   ;;  %v8234_v26 = vld [vmem:[#allocation15 + $0x2a8] sm:$0xff]  }
 0x4f5   :  { %v1685_v48 = vsel %vm743_vm10, %v1683_v44, %v1657_v19  ;;  %v1697_v49 = vsel %vm740_vm9, %v1695_v45, %v1669_v23  ;;  %v1682_v50 = vsel %vm737_vm8, %v1680_v46, %v1654_v53  ;;  %v1694_v51 = vsel %vm734_vm7, %v1692_v47, %v1666_v30  ;;  %v8231_v23 = vld [vmem:[#allocation15 + $0x2b8] sm:$0xff]   ;;  %v8240_v30 = vld [vmem:[#allocation15 + $0x290] sm:$0xff]   ;;  %v8244_v34 = vld [vmem:[#allocation15 + $0x280] sm:$0xff]  }
 0x4f6   :  { %v1699_v52 = vsel %vm743_vm10, %v1697_v49, %v1641_v13  ;;  %1829 = vst [vmem:[#allocation2 + $0x8] sm:$0xff] %v1685_v48  ;;  %v1684_v54 = vsel %vm740_vm9, %v1682_v50, %v1654_v53  ;;  %v1696_v56 = vsel %vm737_vm8, %v1694_v51, %v1670_v33  ;;  %v8225_v13 = vld [vmem:[#allocation15 + $0x1c8] sm:$0xff]   ;;  %v8235_v53 = vld [vmem:[#allocation15 + $0x270] sm:$0xff]   ;;  %v8246_v36 = vld [vmem:[#allocation15 + $0x240] sm:$0xff]  }
 0x4f7   :  { %v1718_v57 = vpack.c.bf16 %v1699_v52, %v1685_v48  ;;  %1830 = vst [vmem:[#allocation2 + $0x10] sm:$0xff] %v1699_v52  ;;  %v1686_v58 = vsel %vm743_vm10, %v1684_v54, %v1658_v27  ;;  %v1698_v59 = vsel %vm740_vm9, %v1696_v56, %v1670_v33  ;;  %v8236_v27 = vld [vmem:[#allocation15 + $0x2a0] sm:$0xff]   ;;  %v8243_v33 = vld [vmem:[#allocation15 + $0x250] sm:$0xff]   ;;  %v8245_v35 = vld [vmem:[#allocation15 + $0x248] sm:$0xff]  }
 0x4f8   :  { %v1700_v60 = vsel %vm743_vm10, %v1698_v59, %v1642_v15  ;;  %1831 = vst [vmem:[#allocation2 + $0x38] sm:$0xff] %v1686_v58  ;;  %v8226_v15 = vld [vmem:[#allocation15 + $0x218] sm:$0xff]  }
 0x4f9   :  { %7511 = vmatprep.mubr.bf16.mxu0 %v1718_v57  ;;  %v1719_v61 = vpack.c.bf16 %v1700_v60, %v1686_v58  ;;  %1832 = vst [vmem:[#allocation2 + $0x40] sm:$0xff] %v1700_v60 }
 0x4fb   :  { %7512 = vmatmul.mubr.bf16.vlgmr.msra.gmra.mxu0 %v1719_v61 }
 0x4fc   :  { %7536 = vmatpush3.bf16.msra.mxu0 %v9040_v14  ;;  %7551 = vmatprep.mubr.bf16.mxu0 %v1718_v57  ;;  %v8221_v14 = vld [vmem:[#allocation15 + $0x1d8] sm:$0xff]  }
 0x4fd   :  { %7537 = vmatprep.subr.bf16.mxu0 %v8216_v62  ;;  %v1833_v63 = vld [vmem:[#allocation2 + $0x7] sm:$0xff] }
 0x4fe   :  { %v1834_v1 = vld [vmem:[#allocation2 + $0xf] sm:$0xff] }
 0x4ff   :  { %v1858_v2 = vpack.c.bf16 %v1834_v1, %v1833_v63  ;;  %v1835_v3 = vld [vmem:[#allocation2 + $0x37] sm:$0xff]  ;;  %v1837_v4 = vld [vmem:[#allocation2 + $0x9] sm:$0xff] }
 0x500   :  { %v1838_v5 = vld [vmem:[#allocation2 + $0x11] sm:$0xff]  ;;  %v1836_v42 = vld [vmem:[#allocation2 + $0x3f] sm:$0xff]  ;;  %7538 = vmatpush3.bf16.msra.mxu0 %v8216_v62 }
 0x501   :  { %7531 = vmatprep.mubr.bf16.mxu1 %v1858_v2  ;;  %7539 = vmatprep.subr.bf16.mxu0 %v8217_v0  ;;  %v1859_v6 = vpack.c.bf16 %v1836_v42, %v1835_v3  ;;  %v2092_v9 = vpack.c.bf16 %v1838_v5, %v1837_v4  ;;  %v1839_v19 = vld [vmem:[#allocation2 + $0x39] sm:$0xff]  ;;  %v1840_v21 = vld [vmem:[#allocation2 + $0x41] sm:$0xff] }
 0x502   :  { %v2093_v22 = vpack.c.bf16 %v1840_v21, %v1839_v19 }
 0x503   :  { %7532 = vmatmul.mubr.bf16.vlgmr.msra.gmra.mxu1 %v1859_v6 }
 0x504   :  { %7540 = vmatpush3.bf16.msra.mxu0 %v8217_v0  ;;  %7556 = vmatpush3.bf16.msra.mxu1 %v9043_v20  ;;  %v8227_v20 = vld [vmem:[#allocation15 + $0x1c0] sm:$0xff]   ;;  %v6715_v0 = vld [vmem:[%s9339_s8 + $0x2] ss:$0 sm:$0xff] }
 0x505   :  { %7571 = vmatprep.mubr.bf16.mxu1 %v2092_v9  ;;  %7541 = vmatprep.subr.bf16.mxu0 %v8219_v7 }
 0x506   :  { %7557 = vmatprep.subr.bf16.mxu1 %v8220_v8 }
 0x508   :  { %7542 = vmatpush3.bf16.msra.mxu0 %v8219_v7  ;;  %7558 = vmatpush3.bf16.msra.mxu1 %v8220_v8 }
 0x509   :  { %7543 = vmatprep.subr.bf16.mxu0 %v8221_v14  ;;  %7559 = vmatprep.subr.bf16.mxu1 %v8222_v10 }
 0x50c   :  { %7544 = vmatpush3.bf16.msra.mxu0 %v8221_v14  ;;  %7560 = vmatpush3.bf16.msra.mxu1 %v8222_v10 }
 0x50d   :  { %7545 = vmatprep.subr.bf16.mxu0 %v8223_v11  ;;  %7561 = vmatprep.subr.bf16.mxu1 %v8224_v12 }
 0x510   :  { %7546 = vmatpush3.bf16.msra.mxu0 %v8223_v11  ;;  %7562 = vmatpush3.bf16.msra.mxu1 %v8224_v12 }
 0x511   :  { %7547 = vmatprep.subr.bf16.mxu0 %v8225_v13  ;;  %7563 = vmatprep.subr.bf16.mxu1 %v8226_v15 }
 0x514   :  { %7548 = vmatpush3.bf16.msra.mxu0 %v8225_v13  ;;  %7564 = vmatpush3.bf16.msra.mxu1 %v8226_v15 }
 0x515   :  { %7549 = vmatprep.subr.bf16.mxu0 %v8227_v20  ;;  %7565 = vmatprep.subr.bf16.mxu1 %v8228_v16 }
 0x518   :  { %7550 = vmatpush3.bf16.msra.mxu0 %v8227_v20  ;;  %7566 = vmatpush3.bf16.msra.mxu1 %v8228_v16 }
 0x519   :  { %7567 = vmatprep.subr.bf16.mxu1 %v8229_v17  ;;  %7575 = vmatprep.subr.bf16.mxu0 %v8233_v25 }
 0x51b   :  { %7552 = vmatmul.mubr.bf16.vlgmr.msra.gmra.mxu0 %v1719_v61 }
 0x51c   :  { %7568 = vmatpush3.bf16.msra.mxu1 %v8229_v17  ;;  %7576 = vmatpush3.bf16.msra.mxu0 %v8233_v25 }
 0x51d   :  { %7569 = vmatprep.subr.bf16.mxu1 %v8230_v18  ;;  %7577 = vmatprep.subr.bf16.mxu0 %v8235_v53 }
 0x520   :  { %7570 = vmatpush3.bf16.msra.mxu1 %v8230_v18  ;;  %7578 = vmatpush3.bf16.msra.mxu0 %v8235_v53 }
 0x521   :  { %7595 = vmatprep.subr.bf16.mxu1 %v8231_v23  ;;  %7579 = vmatprep.subr.bf16.mxu0 %v8237_v55 }
 0x523   :  { %7572 = vmatmul.mubr.bf16.vlgmr.msra.gmra.mxu1 %v2093_v22 }
 0x524   :  { %7596 = vmatpush3.bf16.msra.mxu1 %v8231_v23  ;;  %7580 = vmatpush3.bf16.msra.mxu0 %v8237_v55 }
 0x525   :  { %7597 = vmatprep.subr.bf16.mxu1 %v8232_v24  ;;  %7581 = vmatprep.subr.bf16.mxu0 %v8239_v29 }
 0x528   :  { %7598 = vmatpush3.bf16.msra.mxu1 %v8232_v24  ;;  %7582 = vmatpush3.bf16.msra.mxu0 %v8239_v29 }
 0x529   :  { %7599 = vmatprep.subr.bf16.mxu1 %v8234_v26  ;;  %7583 = vmatprep.subr.bf16.mxu0 %v8241_v31 }
 0x52c   :  { %7600 = vmatpush3.bf16.msra.mxu1 %v8234_v26  ;;  %7584 = vmatpush3.bf16.msra.mxu0 %v8241_v31 }
 0x52d   :  { %7601 = vmatprep.subr.bf16.mxu1 %v8236_v27  ;;  %7585 = vmatprep.subr.bf16.mxu0 %v8243_v33 }
 0x530   :  { %7602 = vmatpush3.bf16.msra.mxu1 %v8236_v27  ;;  %7586 = vmatpush3.bf16.msra.mxu0 %v8243_v33  ;;  %v6718_v33 = vld [vmem:[%s9340_s9 + $0x2] ss:$0 sm:$0xff] }
 0x531   :  { %7603 = vmatprep.subr.bf16.mxu1 %v8238_v28  ;;  %7587 = vmatprep.subr.bf16.mxu0 %v8245_v35 }
 0x534   :  { %7604 = vmatpush3.bf16.msra.mxu1 %v8238_v28  ;;  %7588 = vmatpush3.bf16.msra.mxu0 %v8245_v35 }
 0x535   :  { %7605 = vmatprep.subr.bf16.mxu1 %v8240_v30  ;;  %7589 = vmatprep.subr.bf16.mxu0 %v8246_v36 }
 0x538   :  { %7606 = vmatpush3.bf16.msra.mxu1 %v8240_v30  ;;  %7590 = vmatpush3.bf16.msra.mxu0 %v8246_v36 }
 0x539   :  { %7607 = vmatprep.subr.bf16.mxu1 %v8242_v32  ;;  %7615 = vmatprep.subr.bf16.mxu0 %v9087_v37 }
 0x53c   :  { %7608 = vmatpush3.bf16.msra.mxu1 %v8242_v32 }
 0x53d   :  { %7609 = vmatprep.subr.bf16.mxu1 %v8244_v34 }
 0x540   :  { %7610 = vmatpush3.bf16.msra.mxu1 %v8244_v34 }
 0x5bb   :  { %v9090_v38 = vpop.f32.mrf.mxu0 }
 0x5bd   :  { %v9092_v39 = vpop.f32.mrf.mxu0 }
 0x5bf   :  { %v9094_v40 = vpop.f32.mrf.mxu0 }
 0x5c1   :  { %v9096_v43 = vpop.f32.mrf.mxu0 }
 0x5c3   :  { %v7533_v41 = vpop.f32.mrf.mxu1 }
 0x5c5   :  { %v1942_v44 = vpop.f32.mrf.mxu1 }
 0x5c7   :  { %v7534_v46 = vpop.f32.mrf.mxu1 }
 0x5c9   :  { %v1945_v48 = vpop.f32.mrf.mxu1 }
 0x5db   :  { %v7553_v45 = vpop.f32.mrf.mxu0 }
 0x5dc   :  { %v2073_v57 = vadd.f32 %v7553_v45, %v7533_v41 }
 0x5dd   :  { %v2056_v47 = vpop.f32.mrf.mxu0 }
 0x5de   :  { %v2071_v54 = vadd.f32 %v2056_v47, %v1942_v44  ;;  %v6719_v44 = vld [vmem:[%s9341_s10 + $0x2] ss:$0 sm:$0xff] }
 0x5df   :  { %v7554_v49 = vpop.f32.mrf.mxu0 }
 0x5e0   :  { %v2074_v61 = vadd.f32 %v7554_v49, %v7534_v46 }
 0x5e1   :  { %v2059_v51 = vpop.f32.mrf.mxu0 }
 0x5e2   :  { %v2072_v58 = vadd.f32 %v2059_v51, %v1945_v48 }
 0x5e3   :  { %v7573_v50 = vpop.f32.mrf.mxu1 }
 0x5e4   :  { %v2193_v62 = vadd.f32 %v7573_v50, %v2073_v57 }
 0x5e5   :  { %v2176_v52 = vpop.f32.mrf.mxu1 }
 0x5e6   :  { %v2191_v59 = vadd.f32 %v2176_v52, %v2071_v54  ;;  %v2205_v4 = vadd.f32 %v6715_v0, %v2193_v62 }
 0x5e7   :  { %v7574_v56 = vpop.f32.mrf.mxu1 }
 0x5e8   :  { %v2203_v1 = vadd.f32 %v6715_v0, %v2191_v59  ;;  %v2194_v2 = vadd.f32 %v7574_v56, %v2074_v61 }
 0x5e9   :  { %v2179_v60 = vpop.f32.mrf.mxu1 }
 0x5ea   :  { %v2192_v63 = vadd.f32 %v2179_v60, %v2072_v58  ;;  %v2206_v42 = vadd.f32 %v6715_v0, %v2194_v2 }
 0x5ec   :  { %v2204_v3 = vadd.f32 %v6715_v0, %v2192_v63 }
 0x5ee   :  { %v2211_v5 = vadd.f32 %v2204_v3, %v2203_v1 }
 0x5f0   :  { %v2212_v6 = vadd.f32 %v2211_v5, %v2205_v4 }
 0x5f2   :  { %v2213_v7 = vadd.f32 %v2212_v6, %v2206_v42 }
 0x5f4   :  { %v2214_v8 = vrot.slane %v2213_v7, 4 }
 0x5f6   :  { %v2215_v9 = vadd.f32 %v2214_v8, %v2213_v7  ;;  %v8248_v8 = vld [vmem:[#allocation15 + $0x2f0] sm:$0xff]  }
 0x5f8   :  { %v2216_v14 = vrot.slane %v2215_v9, 2 }
 0x5fa   :  { %v2217_v10 = vadd.f32 %v2216_v14, %v2215_v9  ;;  %v8249_v14 = vld [vmem:[#allocation15 + $0x2e8] sm:$0xff]  }
 0x5fc   :  { %v2218_v11 = vrot.slane %v2217_v10, 1 }
 0x5fe   :  { %v2219_v12 = vadd.f32 %v2218_v11, %v2217_v10  ;;  %v8250_v10 = vld [vmem:[#allocation15 + $0x2e0] sm:$0xff]   ;;  %v8251_v11 = vld [vmem:[#allocation15 + $0x2d8] sm:$0xff]  }
 0x600   :  { %v2221_v13 = vmul.f32 0.03125, %v2219_v12  ;;  %v8252_v12 = vld [vmem:[#allocation15 + $0x2d0] sm:$0xff]  }
 0x602   :  { %v2222_v15 = vsub.f32 %v2203_v1, %v2221_v13  ;;  %v2223_v20 = vsub.f32 %v2204_v3, %v2221_v13  ;;  %v2224_v16 = vsub.f32 %v2205_v4, %v2221_v13  ;;  %v2225_v17 = vsub.f32 %v2206_v42, %v2221_v13  ;;  %v8253_v13 = vld [vmem:[#allocation15 + $0x2c8] sm:$0xff]  }
 0x604   :  { %v2226_v18 = vmul.f32 %v2222_v15, %v2222_v15  ;;  %v2227_v19 = vmul.f32 %v2223_v20, %v2223_v20  ;;  %v2228_v21 = vmul.f32 %v2224_v16, %v2224_v16  ;;  %v2229_v23 = vmul.f32 %v2225_v17, %v2225_v17 }
 0x606   :  { %v2230_v22 = vadd.f32 %v2227_v19, %v2226_v18  ;;  %v8256_v18 = vld [vmem:[#allocation17 + $0xb0] sm:$0xff]   ;;  %v8257_v19 = vld [vmem:[#allocation17 + $0xa8] sm:$0xff]  }
 0x608   :  { %v2231_v24 = vadd.f32 %v2230_v22, %v2228_v21  ;;  %v8258_v21 = vld [vmem:[#allocation15 + $0x338] sm:$0xff]   ;;  %v8259_v22 = vld [vmem:[#allocation17 + $0xa0] sm:$0xff]  }
 0x60a   :  { %v2232_v25 = vadd.f32 %v2231_v24, %v2229_v23  ;;  %v8260_v23 = vld [vmem:[#allocation15 + $0x330] sm:$0xff]   ;;  %v8261_v24 = vld [vmem:[#allocation17 + $0x98] sm:$0xff]  }
 0x60c   :  { %v2233_v26 = vrot.slane %v2232_v25, 4 }
 0x60e   :  { %v2234_v53 = vadd.f32 %v2233_v26, %v2232_v25  ;;  %v8262_v25 = vld [vmem:[#allocation15 + $0x328] sm:$0xff]   ;;  %v8263_v26 = vld [vmem:[#allocation17 + $0x90] sm:$0xff]  }
 0x610   :  { %v2235_v27 = vrot.slane %v2234_v53, 2 }
 0x612   :  { %v2236_v55 = vadd.f32 %v2235_v27, %v2234_v53  ;;  %v8264_v53 = vld [vmem:[#allocation15 + $0x320] sm:$0xff]   ;;  %v8265_v27 = vld [vmem:[#allocation17 + $0x88] sm:$0xff]  }
 0x614   :  { %v2237_v28 = vrot.slane %v2236_v55, 1 }
 0x616   :  { %v2238_v29 = vadd.f32 %v2237_v28, %v2236_v55  ;;  %v8266_v55 = vld [vmem:[#allocation15 + $0x318] sm:$0xff]   ;;  %v8267_v28 = vld [vmem:[#allocation17 + $0x80] sm:$0xff]  }
 0x618   :  { %v2239_v30 = vmul.f32 0.03125, %v2238_v29  ;;  %v8268_v29 = vld [vmem:[#allocation15 + $0x310] sm:$0xff]  }
 0x61a   :  { %v2240_v31 = vadd.f32 1e-05, %v2239_v30  ;;  %v8269_v30 = vld [vmem:[#allocation15 + $0x308] sm:$0xff]  }
 0x61c   :  { %8421 = vrsqrt.f32 %v2240_v31  ;;  %v9108_v31 = vld [vmem:[#allocation15 + $0x378] sm:$0xff]  }
 0x629   :  { %v8422_v32 = vpop.eup %8421 }
 0x62a   :  { %v2243_v34 = vmul.f32 %v8422_v32, %v2223_v20  ;;  %v2244_v35 = vmul.f32 %v8422_v32, %v2224_v16  ;;  %v2242_v36 = vmul.f32 %v8422_v32, %v2222_v15  ;;  %v2245_v41 = vmul.f32 %v8422_v32, %v2225_v17  ;;  %v8254_v15 = vld [vmem:[#allocation15 + $0x2c0] sm:$0xff]   ;;  %v8255_v17 = vld [vmem:[#allocation17 + $0xb8] sm:$0xff]  }
 0x62b   :  { %7635 = vmatprep.subr.bf16.mxu1 %v8255_v17  ;;  %v8271_v32 = vld [vmem:[#allocation15 + $0x300] sm:$0xff]  }
 0x62c   :  { %v2253_v45 = vmul.f32 %v6718_v33, %v2243_v34  ;;  %v2252_v46 = vmul.f32 %v6718_v33, %v2242_v36  ;;  %v2254_v47 = vmul.f32 %v6718_v33, %v2244_v35  ;;  %v2255_v48 = vmul.f32 %v6718_v33, %v2245_v41  ;;  %v9111_v33 = vld [vmem:[#allocation15 + $0x3b8] sm:$0xff]  }
 0x62e   :  { %v2262_v49 = vadd.f32 %v6719_v44, %v2252_v46  ;;  %v2263_v50 = vadd.f32 %v6719_v44, %v2253_v45  ;;  %v2264_v51 = vadd.f32 %v6719_v44, %v2254_v47  ;;  %v2265_v52 = vadd.f32 %v6719_v44, %v2255_v48 }
 0x630   :  { %vm2266_vm15 = vcmp.ge.f32.partialorder %v2262_v49, 0.0  ;;  %vm2267_vm0 = vcmp.ge.f32.partialorder %v2263_v50, 0.0  ;;  %v2270_v54 = vmul.f32 0.2, %v2262_v49  ;;  %v2271_v56 = vmul.f32 0.2, %v2263_v50 }
 0x631   :  { %vm2268_vm1 = vcmp.ge.f32.partialorder %v2264_v51, 0.0  ;;  %vm2269_vm2 = vcmp.ge.f32.partialorder %v2265_v52, 0.0  ;;  %v2272_v57 = vmul.f32 0.2, %v2264_v51  ;;  %v2273_v58 = vmul.f32 0.2, %v2265_v52 }
 0x632   :  { %v2274_v59 = vsel %vm2266_vm15, %v2262_v49, %v2270_v54  ;;  %v2275_v60 = vsel %vm2267_vm0, %v2263_v50, %v2271_v56 }
 0x633   :  { %2278 = vst [vmem:[#allocation2 + $0x8] sm:$0xff] %v2274_v59  ;;  %2279 = vst [vmem:[#allocation2 + $0x10] sm:$0xff] %v2275_v60  ;;  %v2423_v61 = vpack.c.bf16 %v2275_v60, %v2274_v59  ;;  %v2276_v62 = vsel %vm2268_vm1, %v2264_v51, %v2272_v57  ;;  %v2277_v63 = vsel %vm2269_vm2, %v2265_v52, %v2273_v58 }
 0x634   :  { %2280 = vst [vmem:[#allocation2 + $0x38] sm:$0xff] %v2276_v62  ;;  %2281 = vst [vmem:[#allocation2 + $0x40] sm:$0xff] %v2277_v63  ;;  %v2424_v0 = vpack.c.bf16 %v2277_v63, %v2276_v62 }
 0x635   :  { %7611 = vmatprep.mubr.bf16.mxu1 %v2423_v61  ;;  %v6745_v61 = vld [vmem:[%s9339_s8 + $0x3] ss:$0 sm:$0xff] }
 0x636   :  { %7612 = vmatmul.mubr.bf16.vlgmr.msra.gmra.mxu1 %v2424_v0 }
 0x637   :  { %7636 = vmatpush3.bf16.msra.mxu1 %v8255_v17 }
 0x638   :  { %7637 = vmatprep.subr.bf16.mxu1 %v8256_v18 }
 0x63a   :  { %v2282_v1 = vld [vmem:[#allocation2 + $0x7] sm:$0xff]  ;;  %v2283_v2 = vld [vmem:[#allocation2 + $0xf] sm:$0xff] }
 0x63b   :  { %v2286_v3 = vld [vmem:[#allocation2 + $0x9] sm:$0xff]  ;;  %v2307_v4 = vpack.c.bf16 %v2283_v2, %v2282_v1  ;;  %v2284_v5 = vld [vmem:[#allocation2 + $0x37] sm:$0xff]  ;;  %v2285_v42 = vld [vmem:[#allocation2 + $0x3f] sm:$0xff]  ;;  %7638 = vmatpush3.bf16.msra.mxu1 %v8256_v18 }
 0x63c   :  { %v2287_v6 = vld [vmem:[#allocation2 + $0x11] sm:$0xff]  ;;  %v2308_v7 = vpack.c.bf16 %v2285_v42, %v2284_v5  ;;  %v2289_v20 = vld [vmem:[#allocation2 + $0x41] sm:$0xff]  ;;  %7639 = vmatprep.subr.bf16.mxu1 %v8257_v19 }
 0x63d   :  { %7591 = vmatprep.mubr.bf16.mxu0 %v2307_v4  ;;  %v2543_v9 = vpack.c.bf16 %v2287_v6, %v2286_v3 }
 0x63e   :  { %7592 = vmatmul.mubr.bf16.vlgmr.msra.gmra.mxu0 %v2308_v7 }
 0x63f   :  { %7616 = vmatpush3.bf16.msra.mxu0 %v9087_v37  ;;  %7631 = vmatprep.mubr.bf16.mxu0 %v2543_v9  ;;  %v2288_v37 = vld [vmem:[#allocation2 + $0x39] sm:$0xff] }
 0x640   :  { %7617 = vmatprep.subr.bf16.mxu0 %v8248_v8  ;;  %v2544_v16 = vpack.c.bf16 %v2289_v20, %v2288_v37  ;;  %7640 = vmatpush3.bf16.msra.mxu1 %v8257_v19 }
 0x641   :  { %7641 = vmatprep.subr.bf16.mxu1 %v8259_v22 }
 0x643   :  { %7618 = vmatpush3.bf16.msra.mxu0 %v8248_v8 }
 0x644   :  { %7619 = vmatprep.subr.bf16.mxu0 %v8249_v14  ;;  %7642 = vmatpush3.bf16.msra.mxu1 %v8259_v22 }
 0x645   :  { %7643 = vmatprep.subr.bf16.mxu1 %v8261_v24 }
 0x647   :  { %7620 = vmatpush3.bf16.msra.mxu0 %v8249_v14 }
 0x648   :  { %7621 = vmatprep.subr.bf16.mxu0 %v8250_v10  ;;  %7644 = vmatpush3.bf16.msra.mxu1 %v8261_v24 }
 0x649   :  { %7645 = vmatprep.subr.bf16.mxu1 %v8263_v26 }
 0x64b   :  { %7622 = vmatpush3.bf16.msra.mxu0 %v8250_v10 }
 0x64c   :  { %7623 = vmatprep.subr.bf16.mxu0 %v8251_v11  ;;  %7646 = vmatpush3.bf16.msra.mxu1 %v8263_v26 }
 0x64d   :  { %7647 = vmatprep.subr.bf16.mxu1 %v8265_v27 }
 0x64f   :  { %7624 = vmatpush3.bf16.msra.mxu0 %v8251_v11 }
 0x650   :  { %7625 = vmatprep.subr.bf16.mxu0 %v8252_v12  ;;  %7648 = vmatpush3.bf16.msra.mxu1 %v8265_v27 }
 0x651   :  { %7649 = vmatprep.subr.bf16.mxu1 %v8267_v28 }
 0x653   :  { %7626 = vmatpush3.bf16.msra.mxu0 %v8252_v12 }
 0x654   :  { %7627 = vmatprep.subr.bf16.mxu0 %v8253_v13  ;;  %7650 = vmatpush3.bf16.msra.mxu1 %v8267_v28 }
 0x655   :  { %7683 = vmatprep.subr.bf16.mxu1 %v9108_v31 }
 0x657   :  { %7628 = vmatpush3.bf16.msra.mxu0 %v8253_v13 }
 0x658   :  { %7629 = vmatprep.subr.bf16.mxu0 %v8254_v15 }
 0x65b   :  { %7630 = vmatpush3.bf16.msra.mxu0 %v8254_v15 }
 0x65c   :  { %7659 = vmatprep.subr.bf16.mxu0 %v8258_v21 }
 0x65e   :  { %7632 = vmatmul.mubr.bf16.vlgmr.msra.gmra.mxu0 %v2544_v16 }
 0x65f   :  { %7660 = vmatpush3.bf16.msra.mxu0 %v8258_v21 }
 0x660   :  { %7661 = vmatprep.subr.bf16.mxu0 %v8260_v23 }
 0x663   :  { %7662 = vmatpush3.bf16.msra.mxu0 %v8260_v23 }
 0x664   :  { %7663 = vmatprep.subr.bf16.mxu0 %v8262_v25 }
 0x667   :  { %7664 = vmatpush3.bf16.msra.mxu0 %v8262_v25 }
 0x668   :  { %7665 = vmatprep.subr.bf16.mxu0 %v8264_v53 }
 0x66b   :  { %7666 = vmatpush3.bf16.msra.mxu0 %v8264_v53 }
 0x66c   :  { %7667 = vmatprep.subr.bf16.mxu0 %v8266_v55 }
 0x66f   :  { %7668 = vmatpush3.bf16.msra.mxu0 %v8266_v55 }
 0x670   :  { %7669 = vmatprep.subr.bf16.mxu0 %v8268_v29 }
 0x673   :  { %7670 = vmatpush3.bf16.msra.mxu0 %v8268_v29  ;;  %v6748_v29 = vld [vmem:[%s9340_s9 + $0x3] ss:$0 sm:$0xff] }
 0x674   :  { %7671 = vmatprep.subr.bf16.mxu0 %v8269_v30 }
 0x677   :  { %7672 = vmatpush3.bf16.msra.mxu0 %v8269_v30 }
 0x678   :  { %7673 = vmatprep.subr.bf16.mxu0 %v8271_v32 }
 0x67b   :  { %7674 = vmatpush3.bf16.msra.mxu0 %v8271_v32 }
 0x67c   :  { %7707 = vmatprep.subr.bf16.mxu0 %v9111_v33 }
 0x6f6   :  { %v7613_v36 = vpop.f32.mrf.mxu1 }
 0x6f8   :  { %v2507_v44 = vpop.f32.mrf.mxu1 }
 0x6fa   :  { %v7614_v46 = vpop.f32.mrf.mxu1 }
 0x6fc   :  { %v2510_v50 = vpop.f32.mrf.mxu1 }
 0x6fe   :  { %v7593_v34 = vpop.f32.mrf.mxu0 }
 0x6ff   :  { %v2524_v52 = vadd.f32 %v7613_v36, %v7593_v34  ;;  %v6749_v36 = vld [vmem:[%s9341_s10 + $0x3] ss:$0 sm:$0xff] }
 0x700   :  { %v2391_v35 = vpop.f32.mrf.mxu0 }
 0x701   :  { %v2522_v49 = vadd.f32 %v2507_v44, %v2391_v35 }
 0x702   :  { %v7594_v41 = vpop.f32.mrf.mxu0 }
 0x703   :  { %v2525_v58 = vadd.f32 %v7614_v46, %v7594_v41 }
 0x704   :  { %v2394_v45 = vpop.f32.mrf.mxu0 }
 0x705   :  { %v2523_v54 = vadd.f32 %v2510_v50, %v2394_v45 }
 0x71e   :  { %v7633_v47 = vpop.f32.mrf.mxu0 }
 0x71f   :  { %v2644_v59 = vadd.f32 %v7633_v47, %v2524_v52 }
 0x720   :  { %v2627_v48 = vpop.f32.mrf.mxu0 }
 0x721   :  { %v2642_v56 = vadd.f32 %v2627_v48, %v2522_v49  ;;  %v2656_v1 = vadd.f32 %v6745_v61, %v2644_v59 }
 0x722   :  { %v7634_v51 = vpop.f32.mrf.mxu0 }
 0x723   :  { %v2654_v62 = vadd.f32 %v6745_v61, %v2642_v56  ;;  %v2645_v63 = vadd.f32 %v7634_v51, %v2525_v58  ;;  %v6689_v51 = vld [vmem:[#allocation18 + $0x1] ss:$0 sm:$0xff] }
 0x724   :  { %v2630_v57 = vpop.f32.mrf.mxu0  ;;  %v1825_v58 = vadd.f32 %v6689_v51, %v9092_v39  ;;  %v1826_v59 = vadd.f32 %v6689_v51, %v9096_v43 }
 0x725   :  { %v2643_v60 = vadd.f32 %v2630_v57, %v2523_v54  ;;  %v2657_v3 = vadd.f32 %v6745_v61, %v2645_v63  ;;  %v1827_v57 = vadd.f32 %v9090_v38, %v6689_v51 }
 0x727   :  { %v2655_v0 = vadd.f32 %v6745_v61, %v2643_v60  ;;  %v1828_v61 = vadd.f32 %v9094_v40, %v6689_v51 }
 0x729   :  { %v2662_v2 = vadd.f32 %v2655_v0, %v2654_v62 }
 0x72b   :  { %v2663_v4 = vadd.f32 %v2662_v2, %v2656_v1 }
 0x72d   :  { %v2664_v5 = vadd.f32 %v2663_v4, %v2657_v3 }
 0x72f   :  { %v2665_v42 = vrot.slane %v2664_v5, 4 }
 0x731   :  { %v2666_v6 = vadd.f32 %v2665_v42, %v2664_v5 }
 0x733   :  { %v2667_v7 = vrot.slane %v2666_v6, 2 }
 0x735   :  { %v2668_v8 = vadd.f32 %v2667_v7, %v2666_v6 }
 0x737   :  { %v2669_v9 = vrot.slane %v2668_v8, 1 }
 0x739   :  { %v2670_v14 = vadd.f32 %v2669_v9, %v2668_v8 }
 0x73b   :  { %v2671_v10 = vmul.f32 0.03125, %v2670_v14 }
 0x73d   :  { %v2672_v11 = vsub.f32 %v2654_v62, %v2671_v10  ;;  %v2673_v12 = vsub.f32 %v2655_v0, %v2671_v10  ;;  %v2674_v13 = vsub.f32 %v2656_v1, %v2671_v10  ;;  %v2675_v15 = vsub.f32 %v2657_v3, %v2671_v10 }
 0x73f   :  { %v2676_v37 = vmul.f32 %v2672_v11, %v2672_v11  ;;  %v2677_v20 = vmul.f32 %v2673_v12, %v2673_v12  ;;  %v2678_v16 = vmul.f32 %v2674_v13, %v2674_v13  ;;  %v2679_v18 = vmul.f32 %v2675_v15, %v2675_v15 }
 0x741   :  { %v2680_v17 = vadd.f32 %v2677_v20, %v2676_v37 }
 0x743   :  { %v2681_v19 = vadd.f32 %v2680_v17, %v2678_v16 }
 0x745   :  { %v2682_v21 = vadd.f32 %v2681_v19, %v2679_v18 }
 0x747   :  { %v2683_v22 = vrot.slane %v2682_v21, 4 }
 0x749   :  { %v2684_v23 = vadd.f32 %v2683_v22, %v2682_v21 }
 0x74b   :  { %v2685_v24 = vrot.slane %v2684_v23, 2 }
 0x74d   :  { %v2686_v25 = vadd.f32 %v2685_v24, %v2684_v23 }
 0x74f   :  { %v2687_v26 = vrot.slane %v2686_v25, 1 }
 0x751   :  { %v2688_v53 = vadd.f32 %v2687_v26, %v2686_v25 }
 0x753   :  { %v2689_v27 = vmul.f32 0.03125, %v2688_v53 }
 0x755   :  { %v2690_v55 = vadd.f32 1e-05, %v2689_v27 }
 0x757   :  { %8423 = vrsqrt.f32 %v2690_v55 }
 0x764   :  { %v8424_v28 = vpop.eup %8423 }
 0x765   :  { %v2692_v30 = vmul.f32 %v8424_v28, %v2672_v11  ;;  %v2693_v32 = vmul.f32 %v8424_v28, %v2673_v12  ;;  %v2694_v34 = vmul.f32 %v8424_v28, %v2674_v13  ;;  %v2695_v35 = vmul.f32 %v8424_v28, %v2675_v15 }
 0x767   :  { %v2702_v41 = vmul.f32 %v6748_v29, %v2692_v30  ;;  %v2703_v44 = vmul.f32 %v6748_v29, %v2693_v32  ;;  %v2704_v45 = vmul.f32 %v6748_v29, %v2694_v34  ;;  %v2705_v46 = vmul.f32 %v6748_v29, %v2695_v35 }
 0x769   :  { %v2712_v47 = vadd.f32 %v6749_v36, %v2702_v41  ;;  %v2713_v48 = vadd.f32 %v6749_v36, %v2703_v44  ;;  %v2714_v49 = vadd.f32 %v6749_v36, %v2704_v45  ;;  %v2715_v50 = vadd.f32 %v6749_v36, %v2705_v46 }
 0x76b   :  { %vm2716_vm3 = vcmp.ge.f32.partialorder %v2712_v47, 0.0  ;;  %vm2717_vm11 = vcmp.ge.f32.partialorder %v2713_v48, 0.0  ;;  %vm2718_vm12 = vcmp.ge.f32.partialorder %v2714_v49, 0.0  ;;  %vm2719_vm13 = vcmp.ge.f32.partialorder %v2715_v50, 0.0 }
 0x76c   :  { %v2720_v52 = vmul.f32 0.2, %v2712_v47  ;;  %v2721_v54 = vmul.f32 0.2, %v2713_v48  ;;  %v2722_v56 = vmul.f32 0.2, %v2714_v49 }
 0x76d   :  { %v2723_v60 = vmul.f32 0.2, %v2715_v50 }
 0x76e   :  { %v2724_v62 = vsel %vm2716_vm3, %v2712_v47, %v2720_v52  ;;  %v2725_v63 = vsel %vm2717_vm11, %v2713_v48, %v2721_v54  ;;  %v2726_v0 = vsel %vm2718_vm12, %v2714_v49, %v2722_v56 }
 0x76f   :  { %v2727_v1 = vsel %vm2719_vm13, %v2715_v50, %v2723_v60  ;;  %v2728_v2 = vadd.f32 %v2724_v62, %v1825_v58  ;;  %v2729_v3 = vadd.f32 %v2725_v63, %v1826_v59  ;;  %v2730_v4 = vadd.f32 %v2726_v0, %v1827_v57  ;;  %v8272_v63 = vld [vmem:[#allocation15 + $0x370] sm:$0xff]  }
 0x770   :  { %v2731_v5 = vadd.f32 %v2727_v1, %v1828_v61 }
 0x771   :  { %v2732_v42 = vmul.f32 0.70710677, %v2728_v2  ;;  %v2733_v6 = vmul.f32 0.70710677, %v2729_v3  ;;  %v9127_v7 = vmul.f32 0.70710677, %v2730_v4 }
 0x772   :  { %v9129_v38 = vmul.f32 0.70710677, %v2731_v5 }
 0x773   :  { %v2738_v39 = vrot.slane %v2732_v42, 7  ;;  %v2742_v8 = vrot.slane %v2732_v42, 6  ;;  %v2746_v43 = vrot.slane %v2732_v42, 5  ;;  %v2750_v9 = vrot.slane %v2732_v42, 4 }
 0x774   :  { %v2754_v14 = vrot.slane %v2732_v42, 3  ;;  %v2758_v40 = vrot.slane %v2732_v42, 2  ;;  %v2762_v10 = vrot.slane %v2732_v42, 1  ;;  %v2796_v11 = vrot.slane %v2733_v6, 7 }
 0x775   :  { %v2766_v12 = vsel %vm701_vm4, %v2732_v42, %v2738_v39  ;;  %v2800_v13 = vrot.slane %v2733_v6, 6  ;;  %v2804_v15 = vrot.slane %v2733_v6, 5  ;;  %v2808_v37 = vrot.slane %v2733_v6, 4 }
 0x776   :  { %v2768_v20 = vsel %vm704_vm5, %v2766_v12, %v2738_v39  ;;  %v2780_v16 = vsel %vm701_vm4, %v2750_v9, %v2754_v14  ;;  %v2812_v17 = vrot.slane %v2733_v6, 3  ;;  %v2816_v18 = vrot.slane %v2733_v6, 2 }
 0x777   :  { %v2770_v19 = vsel %vm707_vm6, %v2768_v20, %v2742_v8  ;;  %v2782_v21 = vsel %vm704_vm5, %v2780_v16, %v2754_v14  ;;  %v2820_v22 = vrot.slane %v2733_v6, 1  ;;  %v2824_v23 = vsel %vm701_vm4, %v2733_v6, %v2796_v11 }
 0x778   :  { %v2772_v24 = vsel %vm734_vm7, %v2770_v19, %v2742_v8  ;;  %v2784_v25 = vsel %vm707_vm6, %v2782_v21, %v2758_v40  ;;  %v2826_v26 = vsel %vm704_vm5, %v2824_v23, %v2796_v11  ;;  %v2838_v53 = vsel %vm701_vm4, %v2808_v37, %v2812_v17  ;;  %v8273_v11 = vld [vmem:[#allocation15 + $0x368] sm:$0xff]  }
 0x779   :  { %v2774_v27 = vsel %vm737_vm8, %v2772_v24, %v2746_v43  ;;  %v2786_v55 = vsel %vm734_vm7, %v2784_v25, %v2758_v40  ;;  %v2828_v28 = vsel %vm707_vm6, %v2826_v26, %v2800_v13  ;;  %v2840_v29 = vsel %vm704_vm5, %v2838_v53, %v2812_v17 }
 0x77a   :  { %v2776_v30 = vsel %vm740_vm9, %v2774_v27, %v2746_v43  ;;  %v2788_v32 = vsel %vm737_vm8, %v2786_v55, %v2762_v10  ;;  %v2830_v34 = vsel %vm734_vm7, %v2828_v28, %v2800_v13  ;;  %v2842_v35 = vsel %vm707_vm6, %v2840_v29, %v2816_v18  ;;  %v8275_v29 = vld [vmem:[#allocation15 + $0x360] sm:$0xff]  }
 0x77b   :  { %v2778_v36 = vsel %vm743_vm10, %v2776_v30, %v2750_v9  ;;  %v2790_v41 = vsel %vm740_vm9, %v2788_v32, %v2762_v10  ;;  %v2832_v44 = vsel %vm737_vm8, %v2830_v34, %v2804_v15  ;;  %v2844_v45 = vsel %vm734_vm7, %v2842_v35, %v2816_v18  ;;  %v8276_v34 = vld [vmem:[#allocation15 + $0x3b0] sm:$0xff]  }
 0x77c   :  { %v2792_v46 = vsel %vm743_vm10, %v2790_v41, %v2732_v42  ;;  %3002 = vst [vmem:[#allocation2 + $0x8] sm:$0xff] %v2778_v36  ;;  %v2834_v47 = vsel %vm740_vm9, %v2832_v44, %v2804_v15  ;;  %v2846_v48 = vsel %vm737_vm8, %v2844_v45, %v2820_v22  ;;  %v2739_v49 = vrot.slane %v9127_v7, 7 }
 0x77d   :  { %v9157_v50 = vpack.c.bf16 %v2792_v46, %v2778_v36  ;;  %3003 = vst [vmem:[#allocation2 + $0x10] sm:$0xff] %v2792_v46  ;;  %v2836_v51 = vsel %vm743_vm10, %v2834_v47, %v2808_v37  ;;  %v2848_v52 = vsel %vm740_vm9, %v2846_v48, %v2820_v22  ;;  %v2743_v56 = vrot.slane %v9127_v7, 6  ;;  %v8277_v46 = vld [vmem:[#allocation15 + $0x358] sm:$0xff]   ;;  %v8278_v48 = vld [vmem:[#allocation15 + $0x3a8] sm:$0xff]  }
 0x77e   :  { %v2850_v54 = vsel %vm743_vm10, %v2848_v52, %v2733_v6  ;;  %3004 = vst [vmem:[#allocation2 + $0x18] sm:$0xff] %v2836_v51  ;;  %v2751_v57 = vrot.slane %v9127_v7, 4  ;;  %v2755_v58 = vrot.slane %v9127_v7, 3  ;;  %v2747_v60 = vrot.slane %v9127_v7, 5  ;;  %v8279_v52 = vld [vmem:[#allocation15 + $0x350] sm:$0xff]  }
 0x77f   :  { %7651 = vmatprep.mubr.bf16.mxu1 %v9157_v50  ;;  %v9166_v59 = vpack.c.bf16 %v2850_v54, %v2836_v51  ;;  %3005 = vst [vmem:[#allocation2 + $0x20] sm:$0xff] %v2850_v54  ;;  %v2759_v61 = vrot.slane %v9127_v7, 2  ;;  %v2767_v62 = vsel %vm701_vm4, %v9127_v7, %v2739_v49  ;;  %v2763_v0 = vrot.slane %v9127_v7, 1 }
 0x780   :  { %v2769_v1 = vsel %vm704_vm5, %v2767_v62, %v2739_v49  ;;  %v2781_v2 = vsel %vm701_vm4, %v2751_v57, %v2755_v58  ;;  %v2797_v3 = vrot.slane %v9129_v38, 7  ;;  %v2801_v42 = vrot.slane %v9129_v38, 6  ;;  %v8282_v62 = vld [vmem:[#allocation15 + $0x398] sm:$0xff]  }
 0x781   :  { %7652 = vmatmul.mubr.bf16.vlgmr.msra.gmra.mxu1 %v9166_v59  ;;  %v2771_v4 = vsel %vm707_vm6, %v2769_v1, %v2743_v56  ;;  %v2783_v5 = vsel %vm704_vm5, %v2781_v2, %v2755_v58  ;;  %v2809_v6 = vrot.slane %v9129_v38, 4  ;;  %v2805_v43 = vrot.slane %v9129_v38, 5  ;;  %v8286_v1 = vld [vmem:[#allocation15 + $0x380] sm:$0xff]  }
 0x782   :  { %7684 = vmatpush3.bf16.msra.mxu1 %v9108_v31  ;;  %v2773_v39 = vsel %vm734_vm7, %v2771_v4, %v2743_v56  ;;  %v2785_v8 = vsel %vm707_vm6, %v2783_v5, %v2759_v61  ;;  %v2813_v9 = vrot.slane %v9129_v38, 3  ;;  %v2817_v12 = vrot.slane %v9129_v38, 2 }
 0x783   :  { %v2775_v14 = vsel %vm737_vm8, %v2773_v39, %v2747_v60  ;;  %v2787_v40 = vsel %vm734_vm7, %v2785_v8, %v2759_v61  ;;  %7685 = vmatprep.subr.bf16.mxu1 %v8272_v63  ;;  %v3010_v10 = vld [vmem:[#allocation2 + $0x7] sm:$0xff]  ;;  %v2825_v31 = vsel %vm701_vm4, %v9129_v38, %v2797_v3  ;;  %v2821_v27 = vrot.slane %v9129_v38, 1 }
 0x784   :  { %v2777_v13 = vsel %vm740_vm9, %v2775_v14, %v2747_v60  ;;  %v2789_v15 = vsel %vm737_vm8, %v2787_v40, %v2763_v0  ;;  %v3011_v37 = vld [vmem:[#allocation2 + $0xf] sm:$0xff]  ;;  %v2827_v20 = vsel %vm704_vm5, %v2825_v31, %v2797_v3  ;;  %v2839_v16 = vsel %vm701_vm4, %v2809_v6, %v2813_v9  ;;  %v8281_v60 = vld [vmem:[#allocation15 + $0x348] sm:$0xff]  }
 0x785   :  { %v2779_v17 = vsel %vm743_vm10, %v2777_v13, %v2751_v57  ;;  %v2791_v18 = vsel %vm740_vm9, %v2789_v15, %v2763_v0  ;;  %v3043_v19 = vpack.c.bf16 %v3011_v37, %v3010_v10  ;;  %v2829_v21 = vsel %vm707_vm6, %v2827_v20, %v2801_v42  ;;  %v3012_v22 = vld [vmem:[#allocation2 + $0x17] sm:$0xff]  ;;  %v3018_v54 = vld [vmem:[#allocation2 + $0x9] sm:$0xff] }
 0x786   :  { %v2793_v23 = vsel %vm743_vm10, %v2791_v18, %v9127_v7  ;;  %3006 = vst [vmem:[#allocation2 + $0x38] sm:$0xff] %v2779_v17  ;;  %7686 = vmatpush3.bf16.msra.mxu1 %v8272_v63  ;;  %v2831_v24 = vsel %vm734_vm7, %v2829_v21, %v2801_v42  ;;  %v2841_v25 = vsel %vm704_vm5, %v2839_v16, %v2813_v9  ;;  %v3013_v26 = vld [vmem:[#allocation2 + $0x1f] sm:$0xff]  ;;  %v3019_v56 = vld [vmem:[#allocation2 + $0x11] sm:$0xff] }
 0x787   :  { %v9202_v53 = vpack.c.bf16 %v2793_v23, %v2779_v17  ;;  %3007 = vst [vmem:[#allocation2 + $0x40] sm:$0xff] %v2793_v23  ;;  %7675 = vmatprep.mubr.bf16.mxu0 %v3043_v19  ;;  %7687 = vmatprep.subr.bf16.mxu1 %v8273_v11  ;;  %v2833_v55 = vsel %vm737_vm8, %v2831_v24, %v2805_v43  ;;  %v8284_v63 = vld [vmem:[#allocation15 + $0x390] sm:$0xff]   ;;  %v8285_v0 = vld [vmem:[#allocation15 + $0x388] sm:$0xff]   ;;  %v8287_v9 = vld [vmem:[#allocation15 + $0x438] sm:$0xff]  }
 0x788   :  { %v2843_v28 = vsel %vm707_vm6, %v2841_v25, %v2817_v12  ;;  %v2835_v7 = vsel %vm740_vm9, %v2833_v55, %v2805_v43  ;;  %v3044_v32 = vpack.c.bf16 %v3013_v26, %v3012_v22  ;;  %v3315_v61 = vpack.c.bf16 %v3019_v56, %v3018_v54  ;;  %v3020_v2 = vld [vmem:[#allocation2 + $0x19] sm:$0xff]  ;;  %v3021_v3 = vld [vmem:[#allocation2 + $0x21] sm:$0xff]  ;;  %v8289_v14 = vld [vmem:[#allocation15 + $0x3f8] sm:$0xff]  }
 0x789   :  { %v2845_v30 = vsel %vm734_vm7, %v2843_v28, %v2817_v12  ;;  %7655 = vmatprep.mubr.bf16.mxu1 %v9202_v53  ;;  %v2837_v35 = vsel %vm743_vm10, %v2835_v7, %v2809_v6  ;;  %v3316_v42 = vpack.c.bf16 %v3021_v3, %v3020_v2  ;;  %v8290_v40 = vld [vmem:[#allocation15 + $0x428] sm:$0xff]   ;;  %v8291_v10 = vld [vmem:[#allocation15 + $0x3f0] sm:$0xff]   ;;  %v8294_v13 = vld [vmem:[#allocation15 + $0x418] sm:$0xff]  }
 0x78a   :  { %v2847_v36 = vsel %vm737_vm8, %v2845_v30, %v2821_v27  ;;  %3008 = vst [vmem:[#allocation2 + $0x48] sm:$0xff] %v2837_v35  ;;  %7676 = vmatmul.mubr.bf16.vlgmr.msra.gmra.mxu0 %v3044_v32  ;;  %7688 = vmatpush3.bf16.msra.mxu1 %v8273_v11  ;;  %v8292_v11 = vld [vmem:[#allocation15 + $0x420] sm:$0xff]   ;;  %v8293_v31 = vld [vmem:[#allocation15 + $0x3e8] sm:$0xff]   ;;  %v8296_v37 = vld [vmem:[#allocation15 + $0x410] sm:$0xff]  }
 0x78b   :  { %v2849_v41 = vsel %vm740_vm9, %v2847_v36, %v2821_v27  ;;  %7708 = vmatpush3.bf16.msra.mxu0 %v9111_v33  ;;  %7689 = vmatprep.subr.bf16.mxu1 %v8275_v29  ;;  %v8280_v33 = vld [vmem:[#allocation15 + $0x3a0] sm:$0xff]   ;;  %v8297_v16 = vld [vmem:[#allocation15 + $0x3d8] sm:$0xff]   ;;  %v8298_v17 = vld [vmem:[#allocation15 + $0x408] sm:$0xff]  }
 0x78c   :  { %v2851_v44 = vsel %vm743_vm10, %v2849_v41, %v9129_v38  ;;  %7709 = vmatprep.subr.bf16.mxu0 %v8276_v34  ;;  %v8295_v15 = vld [vmem:[#allocation15 + $0x3e0] sm:$0xff]   ;;  %v8299_v21 = vld [vmem:[#allocation15 + $0x3d0] sm:$0xff]   ;;  %v8301_v25 = vld [vmem:[#allocation15 + $0x3c8] sm:$0xff]  }
 0x78d   :  { %v2872_v45 = vpack.c.bf16 %v2851_v44, %v2837_v35  ;;  %3009 = vst [vmem:[#allocation2 + $0x50] sm:$0xff] %v2851_v44  ;;  %v3014_v47 = vld [vmem:[#allocation2 + $0x37] sm:$0xff] }
 0x78e   :  { %v3015_v49 = vld [vmem:[#allocation2 + $0x3f] sm:$0xff]  ;;  %7690 = vmatpush3.bf16.msra.mxu1 %v8275_v29  ;;  %v8300_v22 = vld [vmem:[#allocation15 + $0x400] sm:$0xff]   ;;  %v9231_v29 = vld [vmem:[#allocation15 + $0x478] sm:$0xff]  }
 0x78f   :  { %7656 = vmatmul.mubr.bf16.gmra.mxu1 %v2872_v45  ;;  %v3045_v51 = vpack.c.bf16 %v3015_v49, %v3014_v47  ;;  %7710 = vmatpush3.bf16.msra.mxu0 %v8276_v34  ;;  %v3022_v4 = vld [vmem:[#allocation2 + $0x39] sm:$0xff] }
 0x790   :  { %7699 = vmatprep.mubr.bf16.mxu1 %v9157_v50  ;;  %7691 = vmatprep.subr.bf16.mxu1 %v8277_v46  ;;  %v8283_v50 = vld [vmem:[#allocation15 + $0x340] sm:$0xff]  }
 0x791   :  { %7679 = vmatprep.mubr.bf16.mxu0 %v3045_v51  ;;  %7711 = vmatprep.subr.bf16.mxu0 %v8278_v48  ;;  %v3016_v38 = vld [vmem:[#allocation2 + $0x47] sm:$0xff]  ;;  %v8302_v27 = vld [vmem:[#allocation15 + $0x3c0] sm:$0xff]  }
 0x792   :  { %7692 = vmatpush3.bf16.msra.mxu1 %v8277_v46  ;;  %v3023_v5 = vld [vmem:[#allocation2 + $0x41] sm:$0xff] }
 0x793   :  { %7712 = vmatpush3.bf16.msra.mxu0 %v8278_v48  ;;  %7693 = vmatprep.subr.bf16.mxu1 %v8279_v52  ;;  %v3317_v6 = vpack.c.bf16 %v3023_v5, %v3022_v4 }
 0x794   :  { %v3017_v57 = vld [vmem:[#allocation2 + $0x4f] sm:$0xff]  ;;  %7713 = vmatprep.subr.bf16.mxu0 %v8280_v33 }
 0x795   :  { %v3046_v58 = vpack.c.bf16 %v3017_v57, %v3016_v38  ;;  %v3024_v39 = vld [vmem:[#allocation2 + $0x49] sm:$0xff]  ;;  %v3025_v8 = vld [vmem:[#allocation2 + $0x51] sm:$0xff] }
 0x796   :  { %7694 = vmatpush3.bf16.msra.mxu1 %v8279_v52  ;;  %v3318_v43 = vpack.c.bf16 %v3025_v8, %v3024_v39 }
 0x797   :  { %7680 = vmatmul.mubr.bf16.gmra.mxu0 %v3046_v58  ;;  %7695 = vmatprep.subr.bf16.mxu1 %v8281_v60 }
 0x798   :  { %7723 = vmatprep.mubr.bf16.mxu0 %v3315_v61  ;;  %7714 = vmatpush3.bf16.msra.mxu0 %v8280_v33 }
 0x799   :  { %7715 = vmatprep.subr.bf16.mxu0 %v8282_v62 }
 0x79a   :  { %7696 = vmatpush3.bf16.msra.mxu1 %v8281_v60 }
 0x79b   :  { %7697 = vmatprep.subr.bf16.mxu1 %v8283_v50 }
 0x79c   :  { %7716 = vmatpush3.bf16.msra.mxu0 %v8282_v62 }
 0x79d   :  { %7717 = vmatprep.subr.bf16.mxu0 %v8284_v63 }
 0x79e   :  { %7698 = vmatpush3.bf16.msra.mxu1 %v8283_v50  ;;  %v6784_v50 = vld [vmem:[%s9339_s8 + $0x4] ss:$0 sm:$0xff] }
 0x79f   :  { %7731 = vmatprep.subr.bf16.mxu1 %v8289_v14 }
 0x7a0   :  { %7718 = vmatpush3.bf16.msra.mxu0 %v8284_v63 }
 0x7a1   :  { %7719 = vmatprep.subr.bf16.mxu0 %v8285_v0  ;;  %7700 = vmatmul.mubr.bf16.vlgmr.msra.gmra.mxu1 %v9166_v59  ;;  %v8288_v59 = vld [vmem:[#allocation15 + $0x430] sm:$0xff]  }
 0x7a2   :  { %7703 = vmatprep.mubr.bf16.mxu1 %v9202_v53  ;;  %7732 = vmatpush3.bf16.msra.mxu1 %v8289_v14 }
 0x7a3   :  { %7733 = vmatprep.subr.bf16.mxu1 %v8291_v10 }
 0x7a4   :  { %7720 = vmatpush3.bf16.msra.mxu0 %v8285_v0 }
 0x7a5   :  { %7721 = vmatprep.subr.bf16.mxu0 %v8286_v1 }
 0x7a6   :  { %7734 = vmatpush3.bf16.msra.mxu1 %v8291_v10 }
 0x7a7   :  { %7735 = vmatprep.subr.bf16.mxu1 %v8293_v31 }
 0x7a8   :  { %7722 = vmatpush3.bf16.msra.mxu0 %v8286_v1 }
 0x7a9   :  { %7704 = vmatmul.mubr.bf16.gmra.mxu1 %v2872_v45  ;;  %7755 = vmatprep.subr.bf16.mxu0 %v8287_v9 }
 0x7aa   :  { %7736 = vmatpush3.bf16.msra.mxu1 %v8293_v31 }
 0x7ab   :  { %7724 = vmatmul.mubr.bf16.vlgmr.msra.gmra.mxu0 %v3316_v42  ;;  %7737 = vmatprep.subr.bf16.mxu1 %v8295_v15 }
 0x7ac   :  { %7727 = vmatprep.mubr.bf16.mxu0 %v3317_v6  ;;  %7756 = vmatpush3.bf16.msra.mxu0 %v8287_v9 }
 0x7ad   :  { %7757 = vmatprep.subr.bf16.mxu0 %v8288_v59 }
 0x7ae   :  { %7738 = vmatpush3.bf16.msra.mxu1 %v8295_v15 }
 0x7af   :  { %7739 = vmatprep.subr.bf16.mxu1 %v8297_v16 }
 0x7b0   :  { %7758 = vmatpush3.bf16.msra.mxu0 %v8288_v59 }
 0x7b1   :  { %7759 = vmatprep.subr.bf16.mxu0 %v8290_v40 }
 0x7b2   :  { %7740 = vmatpush3.bf16.msra.mxu1 %v8297_v16 }
 0x7b3   :  { %7728 = vmatmul.mubr.bf16.gmra.mxu0 %v3318_v43  ;;  %7741 = vmatprep.subr.bf16.mxu1 %v8299_v21 }
 0x7b4   :  { %7760 = vmatpush3.bf16.msra.mxu0 %v8290_v40 }
 0x7b5   :  { %7761 = vmatprep.subr.bf16.mxu0 %v8292_v11 }
 0x7b6   :  { %7742 = vmatpush3.bf16.msra.mxu1 %v8299_v21 }
 0x7b7   :  { %7743 = vmatprep.subr.bf16.mxu1 %v8301_v25 }
 0x7b8   :  { %7762 = vmatpush3.bf16.msra.mxu0 %v8292_v11 }
 0x7b9   :  { %7763 = vmatprep.subr.bf16.mxu0 %v8294_v13 }
 0x7ba   :  { %7744 = vmatpush3.bf16.msra.mxu1 %v8301_v25 }
 0x7bb   :  { %7745 = vmatprep.subr.bf16.mxu1 %v8302_v27 }
 0x7bc   :  { %7764 = vmatpush3.bf16.msra.mxu0 %v8294_v13 }
 0x7bd   :  { %7765 = vmatprep.subr.bf16.mxu0 %v8296_v37 }
 0x7be   :  { %7746 = vmatpush3.bf16.msra.mxu1 %v8302_v27 }
 0x7bf   :  { %7779 = vmatprep.subr.bf16.mxu1 %v9231_v29 }
 0x7c0   :  { %7766 = vmatpush3.bf16.msra.mxu0 %v8296_v37 }
 0x7c1   :  { %7767 = vmatprep.subr.bf16.mxu0 %v8298_v17 }
 0x7c4   :  { %7768 = vmatpush3.bf16.msra.mxu0 %v8298_v17 }
 0x7c5   :  { %7769 = vmatprep.subr.bf16.mxu0 %v8300_v22 }
 0x7c8   :  { %7770 = vmatpush3.bf16.msra.mxu0 %v8300_v22 }
 0x841   :  { %v9219_v12 = vpop.f32.mrf.mxu1 }
 0x843   :  { %v9221_v20 = vpop.f32.mrf.mxu1 }
 0x845   :  { %v9223_v18 = vpop.f32.mrf.mxu1 }
 0x847   :  { %v9225_v23 = vpop.f32.mrf.mxu1 }
 0x84a   :  { %v7677_v19 = vpop.f32.mrf.mxu0 }
 0x84c   :  { %v3129_v24 = vpop.f32.mrf.mxu0 }
 0x84e   :  { %v7678_v53 = vpop.f32.mrf.mxu0 }
 0x84f   :  { %v9227_v26 = vpop.f32.mrf.mxu1 }
 0x850   :  { %v3132_v28 = vpop.f32.mrf.mxu0 }
 0x851   :  { %v9229_v55 = vpop.f32.mrf.mxu1 }
 0x853   :  { %v9233_v7 = vpop.f32.mrf.mxu1 }
 0x855   :  { %v9236_v32 = vpop.f32.mrf.mxu1 }
 0x857   :  { %v7681_v30 = vpop.f32.mrf.mxu0 }
 0x859   :  { %v3145_v34 = vpop.f32.mrf.mxu0 }
 0x85b   :  { %v7682_v41 = vpop.f32.mrf.mxu0 }
 0x85d   :  { %v3148_v46 = vpop.f32.mrf.mxu0 }
 0x861   :  { %v7701_v35 = vpop.f32.mrf.mxu1 }
 0x862   :  { %v3292_v33 = vadd.f32 %v7701_v35, %v7677_v19 }
 0x863   :  { %v3259_v36 = vpop.f32.mrf.mxu1 }
 0x864   :  { %v3290_v52 = vadd.f32 %v3259_v36, %v3129_v24 }
 0x865   :  { %v7702_v44 = vpop.f32.mrf.mxu1 }
 0x866   :  { %v3293_v60 = vadd.f32 %v7702_v44, %v7678_v53 }
 0x867   :  { %v3262_v45 = vpop.f32.mrf.mxu1 }
 0x868   :  { %v3291_v54 = vadd.f32 %v3262_v45, %v3132_v28 }
 0x869   :  { %v7705_v47 = vpop.f32.mrf.mxu1 }
 0x86a   :  { %v3296_v43 = vadd.f32 %v7705_v47, %v7681_v30 }
 0x86b   :  { %v7725_v48 = vpop.f32.mrf.mxu0  ;;  %v3275_v49 = vpop.f32.mrf.mxu1 }
 0x86c   :  { %v3434_v61 = vadd.f32 %v7725_v48, %v3292_v33  ;;  %v3294_v0 = vadd.f32 %v3275_v49, %v3145_v34 }
 0x86d   :  { %v3401_v51 = vpop.f32.mrf.mxu0  ;;  %v7706_v57 = vpop.f32.mrf.mxu1 }
 0x86e   :  { %v3432_v56 = vadd.f32 %v3401_v51, %v3290_v52  ;;  %v3450_v42 = vadd.f32 %v6784_v50, %v3434_v61  ;;  %v3297_v40 = vadd.f32 %v7706_v57, %v7682_v41 }
 0x86f   :  { %v7726_v38 = vpop.f32.mrf.mxu0  ;;  %v3278_v4 = vpop.f32.mrf.mxu1 }
 0x870   :  { %v3448_v1 = vadd.f32 %v6784_v50, %v3432_v56  ;;  %v3435_v2 = vadd.f32 %v7726_v38, %v3293_v60  ;;  %v3295_v59 = vadd.f32 %v3278_v4, %v3148_v46 }
 0x871   :  { %v3404_v58 = vpop.f32.mrf.mxu0 }
 0x872   :  { %v3433_v62 = vadd.f32 %v3404_v58, %v3291_v54  ;;  %v3451_v9 = vadd.f32 %v6784_v50, %v3435_v2 }
 0x873   :  { %v7729_v63 = vpop.f32.mrf.mxu0 }
 0x874   :  { %v3449_v3 = vadd.f32 %v6784_v50, %v3433_v62  ;;  %v3438_v11 = vadd.f32 %v7729_v63, %v3296_v43 }
 0x875   :  { %v3417_v5 = vpop.f32.mrf.mxu0 }
 0x876   :  { %v3460_v6 = vadd.f32 %v3449_v3, %v3448_v1  ;;  %v3436_v39 = vadd.f32 %v3417_v5, %v3294_v0  ;;  %v3454_v19 = vadd.f32 %v6784_v50, %v3438_v11 }
 0x877   :  { %v7730_v8 = vpop.f32.mrf.mxu0 }
 0x878   :  { %v3461_v14 = vadd.f32 %v3460_v6, %v3450_v42  ;;  %v3452_v31 = vadd.f32 %v6784_v50, %v3436_v39  ;;  %v3439_v16 = vadd.f32 %v7730_v8, %v3297_v40 }
 0x879   :  { %v3420_v10 = vpop.f32.mrf.mxu0 }
 0x87a   :  { %v3462_v13 = vadd.f32 %v3461_v14, %v3451_v9  ;;  %v3437_v15 = vadd.f32 %v3420_v10, %v3295_v59  ;;  %v3455_v22 = vadd.f32 %v6784_v50, %v3439_v16  ;;  %v6787_v59 = vld [vmem:[%s9340_s9 + $0x4] ss:$0 sm:$0xff] }
 0x87c   :  { %v3463_v37 = vadd.f32 %v3462_v13, %v3452_v31  ;;  %v3453_v17 = vadd.f32 %v6784_v50, %v3437_v15 }
 0x87e   :  { %v3464_v21 = vadd.f32 %v3463_v37, %v3453_v17 }
 0x880   :  { %v3465_v24 = vadd.f32 %v3464_v21, %v3454_v19 }
 0x882   :  { %v3466_v25 = vadd.f32 %v3465_v24, %v3455_v22 }
 0x884   :  { %v3467_v53 = vrot.slane %v3466_v25, 4 }
 0x886   :  { %v3468_v27 = vadd.f32 %v3467_v53, %v3466_v25 }
 0x888   :  { %v3469_v28 = vrot.slane %v3468_v27, 2 }
 0x88a   :  { %v3470_v30 = vadd.f32 %v3469_v28, %v3468_v27 }
 0x88c   :  { %v3471_v34 = vrot.slane %v3470_v30, 1 }
 0x88e   :  { %v3472_v35 = vadd.f32 %v3471_v34, %v3470_v30 }
 0x890   :  { %v3474_v36 = vmul.f32 0.015625, %v3472_v35 }
 0x892   :  { %v3475_v41 = vsub.f32 %v3448_v1, %v3474_v36  ;;  %v3476_v44 = vsub.f32 %v3449_v3, %v3474_v36  ;;  %v3477_v45 = vsub.f32 %v3450_v42, %v3474_v36  ;;  %v3478_v46 = vsub.f32 %v3451_v9, %v3474_v36 }
 0x893   :  { %v3479_v49 = vsub.f32 %v3452_v31, %v3474_v36  ;;  %v3480_v38 = vsub.f32 %v3453_v17, %v3474_v36  ;;  %v3481_v56 = vsub.f32 %v3454_v19, %v3474_v36  ;;  %v3482_v60 = vsub.f32 %v3455_v22, %v3474_v36  ;;  %v6788_v31 = vld [vmem:[%s9341_s10 + $0x4] ss:$0 sm:$0xff] }
 0x894   :  { %v3483_v47 = vmul.f32 %v3475_v41, %v3475_v41  ;;  %v3484_v48 = vmul.f32 %v3476_v44, %v3476_v44  ;;  %v3485_v51 = vmul.f32 %v3477_v45, %v3477_v45  ;;  %v3486_v33 = vmul.f32 %v3478_v46, %v3478_v46 }
 0x895   :  { %v3487_v57 = vmul.f32 %v3479_v49, %v3479_v49  ;;  %v3488_v61 = vmul.f32 %v3480_v38, %v3480_v38  ;;  %v3489_v50 = vmul.f32 %v3481_v56, %v3481_v56  ;;  %v3490_v0 = vmul.f32 %v3482_v60, %v3482_v60 }
 0x896   :  { %v3491_v52 = vadd.f32 %v3484_v48, %v3483_v47 }
 0x898   :  { %v3492_v54 = vadd.f32 %v3491_v52, %v3485_v51 }
 0x89a   :  { %v3493_v58 = vadd.f32 %v3492_v54, %v3486_v33 }
 0x89c   :  { %v3494_v62 = vadd.f32 %v3493_v58, %v3487_v57 }
 0x89e   :  { %v3495_v63 = vadd.f32 %v3494_v62, %v3488_v61 }
 0x8a0   :  { %v3496_v1 = vadd.f32 %v3495_v63, %v3489_v50 }
 0x8a2   :  { %v3497_v2 = vadd.f32 %v3496_v1, %v3490_v0 }
 0x8a4   :  { %v3498_v3 = vrot.slane %v3497_v2, 4 }
 0x8a6   :  { %v3499_v4 = vadd.f32 %v3498_v3, %v3497_v2 }
 0x8a8   :  { %v3500_v5 = vrot.slane %v3499_v4, 2 }
 0x8aa   :  { %v3501_v42 = vadd.f32 %v3500_v5, %v3499_v4 }
 0x8ac   :  { %v3502_v6 = vrot.slane %v3501_v42, 1 }
 0x8ae   :  { %v3503_v39 = vadd.f32 %v3502_v6, %v3501_v42 }
 0x8b0   :  { %v3504_v8 = vmul.f32 0.015625, %v3503_v39 }
 0x8b2   :  { %v3505_v43 = vadd.f32 1e-05, %v3504_v8 }
 0x8b4   :  { %8425 = vrsqrt.f32 %v3505_v43 }
 0x8c1   :  { %v8426_v9 = vpop.eup %8425 }
 0x8c2   :  { %v3509_v14 = vmul.f32 %v8426_v9, %v3477_v45  ;;  %v3510_v40 = vmul.f32 %v8426_v9, %v3478_v46  ;;  %v3512_v10 = vmul.f32 %v8426_v9, %v3480_v38  ;;  %v3507_v11 = vmul.f32 %v8426_v9, %v3475_v41 }
 0x8c3   :  { %v3508_v13 = vmul.f32 %v8426_v9, %v3476_v44  ;;  %v3511_v15 = vmul.f32 %v8426_v9, %v3479_v49  ;;  %v3513_v37 = vmul.f32 %v8426_v9, %v3481_v56  ;;  %v3514_v16 = vmul.f32 %v8426_v9, %v3482_v60  ;;  %v8304_v9 = vld [vmem:[#allocation15 + $0x470] sm:$0xff]  }
 0x8c4   :  { %v3526_v17 = vmul.f32 %v6787_v59, %v3512_v10  ;;  %v3521_v19 = vmul.f32 %v6787_v59, %v3507_v11  ;;  %v3523_v21 = vmul.f32 %v6787_v59, %v3509_v14  ;;  %v3524_v22 = vmul.f32 %v6787_v59, %v3510_v40  ;;  %v8305_v14 = vld [vmem:[#allocation15 + $0x468] sm:$0xff]  }
 0x8c5   :  { %v3522_v24 = vmul.f32 %v6787_v59, %v3508_v13  ;;  %v3525_v25 = vmul.f32 %v6787_v59, %v3511_v15  ;;  %v3527_v53 = vmul.f32 %v6787_v59, %v3513_v37  ;;  %v3528_v27 = vmul.f32 %v6787_v59, %v3514_v16  ;;  %v8306_v15 = vld [vmem:[#allocation15 + $0x460] sm:$0xff]   ;;  %v8307_v16 = vld [vmem:[#allocation15 + $0x458] sm:$0xff]  }
 0x8c6   :  { %v3535_v28 = vadd.f32 %v6788_v31, %v3521_v19  ;;  %v3537_v30 = vadd.f32 %v6788_v31, %v3523_v21  ;;  %v3538_v34 = vadd.f32 %v6788_v31, %v3524_v22  ;;  %v3540_v35 = vadd.f32 %v6788_v31, %v3526_v17  ;;  %v8309_v17 = vld [vmem:[#allocation15 + $0x448] sm:$0xff]   ;;  %v8310_v19 = vld [vmem:[#allocation15 + $0x440] sm:$0xff]  }
 0x8c7   :  { %v3536_v36 = vadd.f32 %v6788_v31, %v3522_v24  ;;  %v3539_v41 = vadd.f32 %v6788_v31, %v3525_v25  ;;  %v3541_v45 = vadd.f32 %v6788_v31, %v3527_v53  ;;  %v3542_v46 = vadd.f32 %v6788_v31, %v3528_v27 }
 0x8c8   :  { %vm3543_vm4 = vcmp.ge.f32.partialorder %v3535_v28, 0.0  ;;  %v3551_v44 = vmul.f32 0.2, %v3535_v28  ;;  %vm3545_vm5 = vcmp.ge.f32.partialorder %v3537_v30, 0.0  ;;  %vm3546_vm6 = vcmp.ge.f32.partialorder %v3538_v34, 0.0 }
 0x8c9   :  { %vm3544_vm7 = vcmp.ge.f32.partialorder %v3536_v36, 0.0  ;;  %v3552_v47 = vmul.f32 0.2, %v3536_v36  ;;  %v3553_v48 = vmul.f32 0.2, %v3537_v30  ;;  %vm3547_vm8 = vcmp.ge.f32.partialorder %v3539_v41, 0.0 }
 0x8ca   :  { %v3559_v49 = vsel %vm3543_vm4, %v3535_v28, %v3551_v44  ;;  %v3554_v51 = vmul.f32 0.2, %v3538_v34  ;;  %vm3548_vm9 = vcmp.ge.f32.partialorder %v3540_v35, 0.0  ;;  %v3555_v52 = vmul.f32 0.2, %v3539_v41  ;;  %v8316_v44 = vld [vmem:[#allocation20 + $0x60] sm:$0xff]  }
 0x8cb   :  { %v3560_v38 = vsel %vm3544_vm7, %v3536_v36, %v3552_v47  ;;  %3567 = vst [vmem:[#allocation2 + $0x8] sm:$0xff] %v3559_v49  ;;  %v3561_v33 = vsel %vm3545_vm5, %v3537_v30, %v3553_v48  ;;  %v3556_v54 = vmul.f32 0.2, %v3540_v35  ;;  %vm3549_vm10 = vcmp.ge.f32.partialorder %v3541_v45, 0.0  ;;  %v8312_v36 = vld [vmem:[#allocation20 + $0x70] sm:$0xff]   ;;  %v8317_v47 = vld [vmem:[#allocation20 + $0x28] sm:$0xff]  }
 0x8cc   :  { %v3742_v56 = vpack.c.bf16 %v3560_v38, %v3559_v49  ;;  %3568 = vst [vmem:[#allocation2 + $0x10] sm:$0xff] %v3560_v38  ;;  %v3562_v57 = vsel %vm3546_vm6, %v3538_v34, %v3554_v51  ;;  %3569 = vst [vmem:[#allocation2 + $0x18] sm:$0xff] %v3561_v33  ;;  %v3563_v58 = vsel %vm3547_vm8, %v3539_v41, %v3555_v52  ;;  %vm3550_vm14 = vcmp.ge.f32.partialorder %v3542_v46, 0.0  ;;  %v8313_v41 = vld [vmem:[#allocation20 + $0x38] sm:$0xff]   ;;  %v8319_v49 = vld [vmem:[#allocation20 + $0x20] sm:$0xff]  }
 0x8cd   :  { %3570 = vst [vmem:[#allocation2 + $0x20] sm:$0xff] %v3562_v57  ;;  %v3743_v60 = vpack.c.bf16 %v3562_v57, %v3561_v33  ;;  %v3564_v61 = vsel %vm3548_vm9, %v3540_v35, %v3556_v54  ;;  %3571 = vst [vmem:[#allocation2 + $0x38] sm:$0xff] %v3563_v58  ;;  %v3557_v62 = vmul.f32 0.2, %v3541_v45  ;;  %v3558_v50 = vmul.f32 0.2, %v3542_v46  ;;  %7803 = vmatprep.subr.bf16.mxu0 %v8313_v41 }
 0x8ce   :  { %7771 = vmatprep.mubr.bf16.mxu0 %v3742_v56  ;;  %v3744_v63 = vpack.c.bf16 %v3564_v61, %v3563_v58  ;;  %3572 = vst [vmem:[#allocation2 + $0x40] sm:$0xff] %v3564_v61  ;;  %v8311_v35 = vld [vmem:[#allocation20 + $0x78] sm:$0xff]   ;;  %v8320_v51 = vld [vmem:[#allocation20 + $0x50] sm:$0xff]   ;;  %v8322_v33 = vld [vmem:[#allocation20 + $0x48] sm:$0xff]  }
 0x8cf   :  { %7772 = vmatmul.mubr.bf16.vlgmr.msra.gmra.mxu0 %v3743_v60  ;;  %v3565_v0 = vsel %vm3549_vm10, %v3541_v45, %v3557_v62  ;;  %v3566_v1 = vsel %vm3550_vm14, %v3542_v46, %v3558_v50  ;;  %v8314_v45 = vld [vmem:[#allocation20 + $0x68] sm:$0xff]   ;;  %v8315_v46 = vld [vmem:[#allocation20 + $0x30] sm:$0xff]   ;;  %v8318_v48 = vld [vmem:[#allocation20 + $0x58] sm:$0xff]  }
 0x8d0   :  { %7775 = vmatprep.mubr.bf16.mxu0 %v3744_v63  ;;  %3573 = vst [vmem:[#allocation2 + $0x48] sm:$0xff] %v3565_v0  ;;  %3574 = vst [vmem:[#allocation2 + $0x50] sm:$0xff] %v3566_v1  ;;  %v3745_v8 = vpack.c.bf16 %v3566_v1, %v3565_v0  ;;  %7804 = vmatpush3.bf16.msra.mxu0 %v8313_v41  ;;  %v8321_v52 = vld [vmem:[#allocation20 + $0x18] sm:$0xff]   ;;  %v8323_v54 = vld [vmem:[#allocation20 + $0x10] sm:$0xff]  }
 0x8d1   :  { %7805 = vmatprep.subr.bf16.mxu0 %v8315_v46  ;;  %v8324_v57 = vld [vmem:[#allocation20 + $0x40] sm:$0xff]   ;;  %v8325_v58 = vld [vmem:[#allocation20 + $0x8] sm:$0xff]   ;;  %v9250_v63 = vld [vmem:[#allocation20 + $0xb8] sm:$0xff]  }
 0x8d2   :  { %v3575_v2 = vld [vmem:[#allocation2 + $0x7] sm:$0xff]  ;;  %v8326_v61 = vld [vmem:[#allocation20] sm:$0xff]  }
 0x8d3   :  { %v3576_v3 = vld [vmem:[#allocation2 + $0xf] sm:$0xff]  ;;  %v3577_v4 = vld [vmem:[#allocation2 + $0x17] sm:$0xff] }
 0x8d4   :  { %v3608_v5 = vpack.c.bf16 %v3576_v3, %v3575_v2  ;;  %v3578_v42 = vld [vmem:[#allocation2 + $0x1f] sm:$0xff]  ;;  %v3579_v6 = vld [vmem:[#allocation2 + $0x37] sm:$0xff]  ;;  %v3583_v11 = vld [vmem:[#allocation2 + $0x9] sm:$0xff]  ;;  %7806 = vmatpush3.bf16.msra.mxu0 %v8315_v46 }
 0x8d5   :  { %v3609_v39 = vpack.c.bf16 %v3578_v42, %v3577_v4  ;;  %v3580_v43 = vld [vmem:[#allocation2 + $0x3f] sm:$0xff]  ;;  %v3584_v31 = vld [vmem:[#allocation2 + $0x11] sm:$0xff]  ;;  %7807 = vmatprep.subr.bf16.mxu0 %v8317_v47 }
 0x8d6   :  { %7747 = vmatprep.mubr.bf16.mxu1 %v3608_v5  ;;  %v3610_v59 = vpack.c.bf16 %v3580_v43, %v3579_v6  ;;  %v3884_v37 = vpack.c.bf16 %v3584_v31, %v3583_v11  ;;  %v3585_v21 = vld [vmem:[#allocation2 + $0x19] sm:$0xff]  ;;  %v3586_v22 = vld [vmem:[#allocation2 + $0x21] sm:$0xff] }
 0x8d7   :  { %7748 = vmatmul.mubr.bf16.vlgmr.msra.gmra.mxu1 %v3609_v39  ;;  %7776 = vmatmul.mubr.bf16.gmra.mxu0 %v3745_v8  ;;  %v3581_v40 = vld [vmem:[#allocation2 + $0x47] sm:$0xff]  ;;  %v3582_v10 = vld [vmem:[#allocation2 + $0x4f] sm:$0xff]  ;;  %v3587_v24 = vld [vmem:[#allocation2 + $0x39] sm:$0xff]  ;;  %v3885_v53 = vpack.c.bf16 %v3586_v22, %v3585_v21 }
 0x8d8   :  { %7780 = vmatpush3.bf16.msra.mxu1 %v9231_v29  ;;  %7751 = vmatprep.mubr.bf16.mxu1 %v3610_v59  ;;  %v3611_v13 = vpack.c.bf16 %v3582_v10, %v3581_v40  ;;  %v8308_v29 = vld [vmem:[#allocation15 + $0x450] sm:$0xff]   ;;  %v3590_v30 = vld [vmem:[#allocation2 + $0x51] sm:$0xff] }
 0x8d9   :  { %7781 = vmatprep.subr.bf16.mxu1 %v8304_v9  ;;  %v3588_v25 = vld [vmem:[#allocation2 + $0x41] sm:$0xff]  ;;  %v3589_v28 = vld [vmem:[#allocation2 + $0x49] sm:$0xff]  ;;  %7808 = vmatpush3.bf16.msra.mxu0 %v8317_v47 }
 0x8da   :  { %v3886_v27 = vpack.c.bf16 %v3588_v25, %v3587_v24  ;;  %v3887_v34 = vpack.c.bf16 %v3590_v30, %v3589_v28  ;;  %7809 = vmatprep.subr.bf16.mxu0 %v8319_v49 }
 0x8dc   :  { %7782 = vmatpush3.bf16.msra.mxu1 %v8304_v9 }
 0x8dd   :  { %7783 = vmatprep.subr.bf16.mxu1 %v8305_v14  ;;  %7810 = vmatpush3.bf16.msra.mxu0 %v8319_v49 }
 0x8de   :  { %7811 = vmatprep.subr.bf16.mxu0 %v8321_v52 }
 0x8df   :  { %7752 = vmatmul.mubr.bf16.gmra.mxu1 %v3611_v13 }
 0x8e0   :  { %7784 = vmatpush3.bf16.msra.mxu1 %v8305_v14  ;;  %7795 = vmatprep.mubr.bf16.mxu1 %v3884_v37 }
 0x8e1   :  { %7785 = vmatprep.subr.bf16.mxu1 %v8306_v15  ;;  %7812 = vmatpush3.bf16.msra.mxu0 %v8321_v52 }
 0x8e2   :  { %7813 = vmatprep.subr.bf16.mxu0 %v8323_v54 }
 0x8e4   :  { %7786 = vmatpush3.bf16.msra.mxu1 %v8306_v15 }
 0x8e5   :  { %7787 = vmatprep.subr.bf16.mxu1 %v8307_v16  ;;  %7814 = vmatpush3.bf16.msra.mxu0 %v8323_v54 }
 0x8e6   :  { %7815 = vmatprep.subr.bf16.mxu0 %v8325_v58 }
 0x8e8   :  { %7788 = vmatpush3.bf16.msra.mxu1 %v8307_v16  ;;  %v6814_v16 = vld [vmem:[%s9339_s8 + $0x5] ss:$0 sm:$0xff] }
 0x8e9   :  { %7789 = vmatprep.subr.bf16.mxu1 %v8308_v29  ;;  %7816 = vmatpush3.bf16.msra.mxu0 %v8325_v58 }
 0x8ea   :  { %7817 = vmatprep.subr.bf16.mxu0 %v8326_v61 }
 0x8ec   :  { %7790 = vmatpush3.bf16.msra.mxu1 %v8308_v29 }
 0x8ed   :  { %7791 = vmatprep.subr.bf16.mxu1 %v8309_v17  ;;  %7818 = vmatpush3.bf16.msra.mxu0 %v8326_v61 }
 0x8ee   :  { %7851 = vmatprep.subr.bf16.mxu0 %v9250_v63 }
 0x8f0   :  { %7792 = vmatpush3.bf16.msra.mxu1 %v8309_v17 }
 0x8f1   :  { %7793 = vmatprep.subr.bf16.mxu1 %v8310_v19 }
 0x8f4   :  { %7794 = vmatpush3.bf16.msra.mxu1 %v8310_v19 }
 0x8f5   :  { %7827 = vmatprep.subr.bf16.mxu1 %v8311_v35 }
 0x8f7   :  { %7796 = vmatmul.mubr.bf16.vlgmr.msra.gmra.mxu1 %v3885_v53 }
 0x8f8   :  { %7799 = vmatprep.mubr.bf16.mxu1 %v3886_v27  ;;  %7828 = vmatpush3.bf16.msra.mxu1 %v8311_v35 }
 0x8f9   :  { %7829 = vmatprep.subr.bf16.mxu1 %v8312_v36 }
 0x8fc   :  { %7830 = vmatpush3.bf16.msra.mxu1 %v8312_v36 }
 0x8fd   :  { %7831 = vmatprep.subr.bf16.mxu1 %v8314_v45 }
 0x8ff   :  { %7800 = vmatmul.mubr.bf16.gmra.mxu1 %v3887_v34 }
 0x900   :  { %7832 = vmatpush3.bf16.msra.mxu1 %v8314_v45 }
 0x901   :  { %7833 = vmatprep.subr.bf16.mxu1 %v8316_v44 }
 0x904   :  { %7834 = vmatpush3.bf16.msra.mxu1 %v8316_v44 }
 0x905   :  { %7835 = vmatprep.subr.bf16.mxu1 %v8318_v48 }
 0x908   :  { %7836 = vmatpush3.bf16.msra.mxu1 %v8318_v48 }
 0x909   :  { %7837 = vmatprep.subr.bf16.mxu1 %v8320_v51 }
 0x90c   :  { %7838 = vmatpush3.bf16.msra.mxu1 %v8320_v51 }
 0x90d   :  { %7839 = vmatprep.subr.bf16.mxu1 %v8322_v33 }
 0x910   :  { %7840 = vmatpush3.bf16.msra.mxu1 %v8322_v33 }
 0x911   :  { %7841 = vmatprep.subr.bf16.mxu1 %v8324_v57 }
 0x914   :  { %7842 = vmatpush3.bf16.msra.mxu1 %v8324_v57 }
 0x98f   :  { %v7773_v50 = vpop.f32.mrf.mxu0 }
 0x991   :  { %v3828_v1 = vpop.f32.mrf.mxu0 }
 0x993   :  { %v7774_v3 = vpop.f32.mrf.mxu0 }
 0x995   :  { %v3831_v5 = vpop.f32.mrf.mxu0 }
 0x997   :  { %v7749_v38 = vpop.f32.mrf.mxu1  ;;  %v7777_v6 = vpop.f32.mrf.mxu0 }
 0x998   :  { %v3861_v14 = vadd.f32 %v7773_v50, %v7749_v38 }
 0x999   :  { %v3694_v56 = vpop.f32.mrf.mxu1  ;;  %v3844_v9 = vpop.f32.mrf.mxu0 }
 0x99a   :  { %v3859_v43 = vadd.f32 %v3828_v1, %v3694_v56 }
 0x99b   :  { %v7750_v60 = vpop.f32.mrf.mxu1  ;;  %v7778_v37 = vpop.f32.mrf.mxu0 }
 0x99c   :  { %v3862_v31 = vadd.f32 %v7774_v3, %v7750_v60 }
 0x99d   :  { %v3697_v62 = vpop.f32.mrf.mxu1  ;;  %v3847_v28 = vpop.f32.mrf.mxu0 }
 0x99e   :  { %v3860_v40 = vadd.f32 %v3831_v5, %v3697_v62 }
 0x99f   :  { %v7753_v0 = vpop.f32.mrf.mxu1 }
 0x9a0   :  { %v3865_v34 = vadd.f32 %v7777_v6, %v7753_v0 }
 0x9a1   :  { %v3710_v2 = vpop.f32.mrf.mxu1 }
 0x9a2   :  { %v3863_v17 = vadd.f32 %v3844_v9, %v3710_v2 }
 0x9a3   :  { %v7754_v4 = vpop.f32.mrf.mxu1 }
 0x9a4   :  { %v3866_v45 = vadd.f32 %v7778_v37, %v7754_v4 }
 0x9a5   :  { %v3713_v42 = vpop.f32.mrf.mxu1 }
 0x9a6   :  { %v3864_v35 = vadd.f32 %v3847_v28, %v3713_v42 }
 0x9b7   :  { %v7797_v39 = vpop.f32.mrf.mxu1 }
 0x9b8   :  { %v4003_v13 = vadd.f32 %v7797_v39, %v3861_v14 }
 0x9b9   :  { %v3970_v8 = vpop.f32.mrf.mxu1 }
 0x9ba   :  { %v4001_v10 = vadd.f32 %v3970_v8, %v3859_v43  ;;  %v4019_v25 = vadd.f32 %v6814_v16, %v4003_v13 }
 0x9bb   :  { %v7798_v59 = vpop.f32.mrf.mxu1 }
 0x9bc   :  { %v4017_v19 = vadd.f32 %v6814_v16, %v4001_v10  ;;  %v4004_v21 = vadd.f32 %v7798_v59, %v3862_v31 }
 0x9bd   :  { %v3973_v11 = vpop.f32.mrf.mxu1 }
 0x9be   :  { %v4002_v15 = vadd.f32 %v3973_v11, %v3860_v40  ;;  %v4020_v36 = vadd.f32 %v6814_v16, %v4004_v21 }
 0x9bf   :  { %v7801_v29 = vpop.f32.mrf.mxu1 }
 0x9c0   :  { %v4018_v22 = vadd.f32 %v6814_v16, %v4002_v15  ;;  %v4007_v44 = vadd.f32 %v7801_v29, %v3865_v34 }
 0x9c1   :  { %v3986_v24 = vpop.f32.mrf.mxu1 }
 0x9c2   :  { %v4029_v53 = vadd.f32 %v4018_v22, %v4017_v19  ;;  %v4005_v27 = vadd.f32 %v3986_v24, %v3863_v17  ;;  %v4023_v33 = vadd.f32 %v6814_v16, %v4007_v44 }
 0x9c3   :  { %v7802_v30 = vpop.f32.mrf.mxu1 }
 0x9c4   :  { %v4030_v41 = vadd.f32 %v4029_v53, %v4019_v25  ;;  %v4021_v47 = vadd.f32 %v6814_v16, %v4005_v27  ;;  %v4008_v52 = vadd.f32 %v7802_v30, %v3866_v45 }
 0x9c5   :  { %v3989_v46 = vpop.f32.mrf.mxu1 }
 0x9c6   :  { %v4031_v48 = vadd.f32 %v4030_v41, %v4020_v36  ;;  %v4006_v49 = vadd.f32 %v3989_v46, %v3864_v35  ;;  %v4024_v56 = vadd.f32 %v6814_v16, %v4008_v52  ;;  %v9256_v35 = vld [vmem:[#allocation18 + $0x2] ss:$0 sm:$0xff] }
 0x9c7   :  { %v2994_v41 = vadd.f32 %v9256_v35, %v9221_v20  ;;  %v2997_v46 = vadd.f32 %v9223_v18, %v9256_v35  ;;  %v2995_v44 = vadd.f32 %v9256_v35, %v9225_v23  ;;  %v6818_v18 = vld [vmem:[%s9341_s10 + $0x5] ss:$0 sm:$0xff] }
 0x9c8   :  { %v4032_v51 = vadd.f32 %v4031_v48, %v4021_v47  ;;  %v4022_v38 = vadd.f32 %v6814_v16, %v4006_v49  ;;  %v2999_v48 = vadd.f32 %v9256_v35, %v9236_v32 }
 0x9ca   :  { %v4033_v54 = vadd.f32 %v4032_v51, %v4022_v38 }
 0x9cc   :  { %v4034_v57 = vadd.f32 %v4033_v54, %v4023_v33 }
 0x9ce   :  { %v4035_v58 = vadd.f32 %v4034_v57, %v4024_v56 }
 0x9d0   :  { %v4036_v60 = vrot.slane %v4035_v58, 4 }
 0x9d2   :  { %v4037_v61 = vadd.f32 %v4036_v60, %v4035_v58 }
 0x9d4   :  { %v4038_v62 = vrot.slane %v4037_v61, 2 }
 0x9d6   :  { %v4039_v50 = vadd.f32 %v4038_v62, %v4037_v61 }
 0x9d8   :  { %v4040_v0 = vrot.slane %v4039_v50, 1 }
 0x9da   :  { %v4041_v1 = vadd.f32 %v4040_v0, %v4039_v50 }
 0x9dc   :  { %v4042_v2 = vmul.f32 0.015625, %v4041_v1 }
 0x9de   :  { %v4043_v3 = vsub.f32 %v4017_v19, %v4042_v2  ;;  %v4044_v4 = vsub.f32 %v4018_v22, %v4042_v2  ;;  %v4045_v5 = vsub.f32 %v4019_v25, %v4042_v2  ;;  %v4046_v42 = vsub.f32 %v4020_v36, %v4042_v2 }
 0x9df   :  { %v4047_v8 = vsub.f32 %v4021_v47, %v4042_v2  ;;  %v4048_v59 = vsub.f32 %v4022_v38, %v4042_v2  ;;  %v4049_v10 = vsub.f32 %v4023_v33, %v4042_v2  ;;  %v4050_v13 = vsub.f32 %v4024_v56, %v4042_v2 }
 0x9e0   :  { %v4051_v6 = vmul.f32 %v4043_v3, %v4043_v3  ;;  %v4052_v39 = vmul.f32 %v4044_v4, %v4044_v4  ;;  %v4053_v43 = vmul.f32 %v4045_v5, %v4045_v5  ;;  %v4054_v14 = vmul.f32 %v4046_v42, %v4046_v42 }
 0x9e1   :  { %v4055_v11 = vmul.f32 %v4047_v8, %v4047_v8  ;;  %v4056_v15 = vmul.f32 %v4048_v59, %v4048_v59  ;;  %v4057_v16 = vmul.f32 %v4049_v10, %v4049_v10  ;;  %v4058_v17 = vmul.f32 %v4050_v13, %v4050_v13 }
 0x9e2   :  { %v4059_v9 = vadd.f32 %v4052_v39, %v4051_v6  ;;  %v2996_v36 = vadd.f32 %v9219_v12, %v9256_v35  ;;  %v2998_v47 = vadd.f32 %v9256_v35, %v9229_v55  ;;  %v6817_v12 = vld [vmem:[%s9340_s9 + $0x5] ss:$0 sm:$0xff] }
 0x9e4   :  { %v4060_v40 = vadd.f32 %v4059_v9, %v4053_v43 }
 0x9e6   :  { %v4061_v31 = vadd.f32 %v4060_v40, %v4054_v14 }
 0x9e8   :  { %v4062_v37 = vadd.f32 %v4061_v31, %v4055_v11 }
 0x9ea   :  { %v4063_v29 = vadd.f32 %v4062_v37, %v4056_v15 }
 0x9ec   :  { %v4064_v19 = vadd.f32 %v4063_v29, %v4057_v16 }
 0x9ee   :  { %v4065_v21 = vadd.f32 %v4064_v19, %v4058_v17 }
 0x9f0   :  { %v4066_v22 = vrot.slane %v4065_v21, 4 }
 0x9f2   :  { %v4067_v24 = vadd.f32 %v4066_v22, %v4065_v21 }
 0x9f4   :  { %v4068_v25 = vrot.slane %v4067_v24, 2 }
 0x9f6   :  { %v4069_v53 = vadd.f32 %v4068_v25, %v4067_v24 }
 0x9f8   :  { %v4070_v27 = vrot.slane %v4069_v53, 1 }
 0x9fa   :  { %v4071_v28 = vadd.f32 %v4070_v27, %v4069_v53 }
 0x9fc   :  { %v4072_v30 = vmul.f32 0.015625, %v4071_v28 }
 0x9fe   :  { %v4073_v34 = vadd.f32 1e-05, %v4072_v30 }
 0xa00   :  { %8427 = vrsqrt.f32 %v4073_v34 }
 0xa0d   :  { %v8428_v45 = vpop.eup %8427 }
 0xa0e   :  { %v4077_v49 = vmul.f32 %v8428_v45, %v4045_v5  ;;  %v4078_v51 = vmul.f32 %v8428_v45, %v4046_v42  ;;  %v4080_v20 = vmul.f32 %v8428_v45, %v4048_v59  ;;  %v4075_v52 = vmul.f32 %v8428_v45, %v4043_v3 }
 0xa0f   :  { %v4076_v38 = vmul.f32 %v8428_v45, %v4044_v4  ;;  %v4079_v23 = vmul.f32 %v8428_v45, %v4047_v8  ;;  %v4081_v33 = vmul.f32 %v8428_v45, %v4049_v10  ;;  %v4082_v54 = vmul.f32 %v8428_v45, %v4050_v13 }
 0xa10   :  { %v4092_v55 = vmul.f32 %v6817_v12, %v4078_v51  ;;  %v4094_v56 = vmul.f32 %v6817_v12, %v4080_v20  ;;  %v4089_v57 = vmul.f32 %v6817_v12, %v4075_v52  ;;  %v4091_v32 = vmul.f32 %v6817_v12, %v4077_v49 }
 0xa11   :  { %v4090_v58 = vmul.f32 %v6817_v12, %v4076_v38  ;;  %v4093_v60 = vmul.f32 %v6817_v12, %v4079_v23  ;;  %v4095_v61 = vmul.f32 %v6817_v12, %v4081_v33  ;;  %v4096_v62 = vmul.f32 %v6817_v12, %v4082_v54  ;;  %v8328_v54 = vld [vmem:[#allocation20 + $0xb0] sm:$0xff]  }
 0xa12   :  { %v4108_v50 = vadd.f32 %v6818_v18, %v4094_v56  ;;  %v4103_v0 = vadd.f32 %v6818_v18, %v4089_v57  ;;  %v4105_v1 = vadd.f32 %v6818_v18, %v4091_v32  ;;  %v4106_v2 = vadd.f32 %v6818_v18, %v4092_v55  ;;  %v8329_v56 = vld [vmem:[#allocation20 + $0xa8] sm:$0xff]  }
 0xa13   :  { %v4104_v3 = vadd.f32 %v6818_v18, %v4090_v58  ;;  %v4107_v5 = vadd.f32 %v6818_v18, %v4093_v60  ;;  %v4109_v42 = vadd.f32 %v6818_v18, %v4095_v61  ;;  %v4110_v6 = vadd.f32 %v6818_v18, %v4096_v62  ;;  %v8330_v62 = vld [vmem:[#allocation20 + $0xa0] sm:$0xff]  }
 0xa14   :  { %vm4111_vm15 = vcmp.ge.f32.partialorder %v4103_v0, 0.0  ;;  %v4119_v4 = vmul.f32 0.2, %v4103_v0  ;;  %vm4113_vm0 = vcmp.ge.f32.partialorder %v4105_v1, 0.0  ;;  %vm4114_vm1 = vcmp.ge.f32.partialorder %v4106_v2, 0.0 }
 0xa15   :  { %vm4112_vm2 = vcmp.ge.f32.partialorder %v4104_v3, 0.0  ;;  %v4120_v39 = vmul.f32 0.2, %v4104_v3  ;;  %v4121_v8 = vmul.f32 0.2, %v4105_v1  ;;  %vm4115_vm3 = vcmp.ge.f32.partialorder %v4107_v5, 0.0 }
 0xa16   :  { %v4127_v43 = vsel %vm4111_vm15, %v4103_v0, %v4119_v4  ;;  %v4122_v9 = vmul.f32 0.2, %v4106_v2  ;;  %vm4116_vm11 = vcmp.ge.f32.partialorder %v4108_v50, 0.0  ;;  %v4123_v59 = vmul.f32 0.2, %v4107_v5  ;;  %v8331_v0 = vld [vmem:[#allocation20 + $0x98] sm:$0xff]  }
 0xa17   :  { %v4128_v14 = vsel %vm4112_vm2, %v4104_v3, %v4120_v39  ;;  %v4135_v40 = vadd.f32 %v4127_v43, %v2994_v41  ;;  %v4129_v10 = vsel %vm4113_vm0, %v4105_v1, %v4121_v8  ;;  %v4124_v11 = vmul.f32 0.2, %v4108_v50  ;;  %v8333_v1 = vld [vmem:[#allocation20 + $0x88] sm:$0xff]  }
 0xa18   :  { %v4136_v31 = vadd.f32 %v4128_v14, %v2995_v44  ;;  %v4130_v13 = vsel %vm4114_vm1, %v4106_v2, %v4122_v9  ;;  %v4137_v15 = vadd.f32 %v4129_v10, %v2996_v36  ;;  %v4131_v37 = vsel %vm4115_vm3, %v4107_v5, %v4123_v59  ;;  %v8334_v2 = vld [vmem:[#allocation20 + $0x80] sm:$0xff]   ;;  %v8335_v59 = vld [vmem:[#allocation20 + $0x138] sm:$0xff]   ;;  %v8336_v14 = vld [vmem:[#allocation20 + $0x130] sm:$0xff]  }
 0xa19   :  { %v4143_v16 = vmul.f32 0.70710677, %v4135_v40  ;;  %v4138_v29 = vadd.f32 %v4130_v13, %v2997_v46  ;;  %v4132_v17 = vsel %vm4116_vm11, %v4108_v50, %v4124_v11  ;;  %v4139_v19 = vadd.f32 %v4131_v37, %v2998_v47  ;;  %v8337_v40 = vld [vmem:[#allocation20 + $0xf8] sm:$0xff]   ;;  %v8338_v10 = vld [vmem:[#allocation20 + $0x128] sm:$0xff]   ;;  %v8339_v11 = vld [vmem:[#allocation20 + $0xf0] sm:$0xff]  }
 0xa1a   :  { %v4144_v21 = vmul.f32 0.70710677, %v4136_v31  ;;  %v4145_v22 = vmul.f32 0.70710677, %v4137_v15  ;;  %v4140_v24 = vadd.f32 %v4132_v17, %v2999_v48  ;;  %vm4117_vm12 = vcmp.ge.f32.partialorder %v4109_v42, 0.0  ;;  %7875 = vmatprep.subr.bf16.mxu1 %v8337_v40  ;;  %v8340_v31 = vld [vmem:[#allocation20 + $0x120] sm:$0xff]  }
 0xa1b   :  { %4151 = vst [vmem:[#allocation2 + $0x8] sm:$0xff] %v4143_v16  ;;  %v4146_v25 = vmul.f32 0.70710677, %v4138_v29  ;;  %v4147_v53 = vmul.f32 0.70710677, %v4139_v19  ;;  %vm4118_vm13 = vcmp.ge.f32.partialorder %v4110_v6, 0.0  ;;  %v3000_v36 = vadd.f32 %v9227_v26, %v9256_v35 }
 0xa1c   :  { %v4325_v27 = vpack.c.bf16 %v4144_v21, %v4143_v16  ;;  %4152 = vst [vmem:[#allocation2 + $0x10] sm:$0xff] %v4144_v21  ;;  %4153 = vst [vmem:[#allocation2 + $0x18] sm:$0xff] %v4145_v22  ;;  %v4148_v28 = vmul.f32 0.70710677, %v4140_v24  ;;  %v4125_v30 = vmul.f32 0.2, %v4109_v42  ;;  %v3001_v41 = vadd.f32 %v9233_v7, %v9256_v35 }
 0xa1d   :  { %v4126_v34 = vmul.f32 0.2, %v4110_v6  ;;  %4154 = vst [vmem:[#allocation2 + $0x20] sm:$0xff] %v4146_v25  ;;  %v4326_v45 = vpack.c.bf16 %v4146_v25, %v4145_v22  ;;  %4155 = vst [vmem:[#allocation2 + $0x38] sm:$0xff] %v4147_v53  ;;  %v8341_v13 = vld [vmem:[#allocation20 + $0xe8] sm:$0xff]   ;;  %v8342_v15 = vld [vmem:[#allocation20 + $0x118] sm:$0xff]  }
 0xa1e   :  { %7843 = vmatprep.mubr.bf16.mxu1 %v4325_v27  ;;  %v4327_v46 = vpack.c.bf16 %v4148_v28, %v4147_v53  ;;  %4156 = vst [vmem:[#allocation2 + $0x40] sm:$0xff] %v4148_v28  ;;  %v4133_v44 = vsel %vm4117_vm12, %v4109_v42, %v4125_v30  ;;  %v8343_v37 = vld [vmem:[#allocation20 + $0xe0] sm:$0xff]   ;;  %v8344_v16 = vld [vmem:[#allocation20 + $0x110] sm:$0xff]   ;;  %v8345_v29 = vld [vmem:[#allocation20 + $0xd8] sm:$0xff]  }
 0xa1f   :  { %v4134_v47 = vsel %vm4118_vm13, %v4110_v6, %v4126_v34  ;;  %7844 = vmatmul.mubr.bf16.vlgmr.msra.gmra.mxu1 %v4326_v45  ;;  %v4141_v48 = vadd.f32 %v4133_v44, %v3000_v36  ;;  %v8346_v17 = vld [vmem:[#allocation20 + $0x108] sm:$0xff]   ;;  %v8347_v19 = vld [vmem:[#allocation20 + $0xd0] sm:$0xff]   ;;  %v8348_v21 = vld [vmem:[#allocation20 + $0x100] sm:$0xff]  }
 0xa20   :  { %v4142_v12 = vadd.f32 %v4134_v47, %v3001_v41  ;;  %7847 = vmatprep.mubr.bf16.mxu1 %v4327_v46  ;;  %7876 = vmatpush3.bf16.msra.mxu1 %v8337_v40  ;;  %v8349_v24 = vld [vmem:[#allocation20 + $0xc8] sm:$0xff]   ;;  %v8350_v53 = vld [vmem:[#allocation20 + $0xc0] sm:$0xff]   ;;  %v9283_v28 = vld [vmem:[#allocation20 + $0x178] sm:$0xff]  }
 0xa21   :  { %v4149_v49 = vmul.f32 0.70710677, %v4141_v48  ;;  %7877 = vmatprep.subr.bf16.mxu1 %v8339_v11 }
 0xa22   :  { %v4150_v51 = vmul.f32 0.70710677, %v4142_v12  ;;  %v4159_v26 = vld [vmem:[#allocation2 + $0x7] sm:$0xff] }
 0xa23   :  { %v4160_v20 = vld [vmem:[#allocation2 + $0xf] sm:$0xff]  ;;  %v4161_v52 = vld [vmem:[#allocation2 + $0x17] sm:$0xff]  ;;  %4157 = vst [vmem:[#allocation2 + $0x48] sm:$0xff] %v4149_v49 }
 0xa24   :  { %4158 = vst [vmem:[#allocation2 + $0x50] sm:$0xff] %v4150_v51  ;;  %v4328_v7 = vpack.c.bf16 %v4150_v51, %v4149_v49  ;;  %v4191_v35 = vpack.c.bf16 %v4160_v20, %v4159_v26  ;;  %v4162_v18 = vld [vmem:[#allocation2 + $0x1f] sm:$0xff]  ;;  %v4163_v38 = vld [vmem:[#allocation2 + $0x37] sm:$0xff]  ;;  %v4167_v58 = vld [vmem:[#allocation2 + $0x9] sm:$0xff]  ;;  %7878 = vmatpush3.bf16.msra.mxu1 %v8339_v11 }
 0xa25   :  { %v4192_v23 = vpack.c.bf16 %v4162_v18, %v4161_v52  ;;  %v4164_v33 = vld [vmem:[#allocation2 + $0x3f] sm:$0xff]  ;;  %v4168_v60 = vld [vmem:[#allocation2 + $0x11] sm:$0xff]  ;;  %7879 = vmatprep.subr.bf16.mxu1 %v8341_v13 }
 0xa26   :  { %7819 = vmatprep.mubr.bf16.mxu0 %v4191_v35  ;;  %v4193_v55 = vpack.c.bf16 %v4164_v33, %v4163_v38  ;;  %v4467_v50 = vpack.c.bf16 %v4168_v60, %v4167_v58  ;;  %v4169_v3 = vld [vmem:[#allocation2 + $0x19] sm:$0xff]  ;;  %v4170_v5 = vld [vmem:[#allocation2 + $0x21] sm:$0xff] }
 0xa27   :  { %7820 = vmatmul.mubr.bf16.vlgmr.msra.gmra.mxu0 %v4192_v23  ;;  %7848 = vmatmul.mubr.bf16.gmra.mxu1 %v4328_v7  ;;  %v4171_v42 = vld [vmem:[#allocation2 + $0x39] sm:$0xff]  ;;  %v4468_v4 = vpack.c.bf16 %v4170_v5, %v4169_v3 }
 0xa28   :  { %7852 = vmatpush3.bf16.msra.mxu0 %v9250_v63  ;;  %7823 = vmatprep.mubr.bf16.mxu0 %v4193_v55  ;;  %v8332_v63 = vld [vmem:[#allocation20 + $0x90] sm:$0xff]  }
 0xa29   :  { %7853 = vmatprep.subr.bf16.mxu0 %v8328_v54  ;;  %7880 = vmatpush3.bf16.msra.mxu1 %v8341_v13 }
 0xa2a   :  { %v4165_v57 = vld [vmem:[#allocation2 + $0x47] sm:$0xff]  ;;  %7881 = vmatprep.subr.bf16.mxu1 %v8343_v37 }
 0xa2b   :  { %v4166_v32 = vld [vmem:[#allocation2 + $0x4f] sm:$0xff]  ;;  %v4172_v6 = vld [vmem:[#allocation2 + $0x41] sm:$0xff] }
 0xa2c   :  { %7854 = vmatpush3.bf16.msra.mxu0 %v8328_v54  ;;  %v4194_v61 = vpack.c.bf16 %v4166_v32, %v4165_v57  ;;  %v4469_v39 = vpack.c.bf16 %v4172_v6, %v4171_v42  ;;  %v4173_v8 = vld [vmem:[#allocation2 + $0x49] sm:$0xff]  ;;  %v4174_v43 = vld [vmem:[#allocation2 + $0x51] sm:$0xff] }
 0xa2d   :  { %7855 = vmatprep.subr.bf16.mxu0 %v8329_v56  ;;  %v4470_v9 = vpack.c.bf16 %v4174_v43, %v4173_v8  ;;  %7882 = vmatpush3.bf16.msra.mxu1 %v8343_v37 }
 0xa2e   :  { %7883 = vmatprep.subr.bf16.mxu1 %v8345_v29 }
 0xa2f   :  { %7824 = vmatmul.mubr.bf16.gmra.mxu0 %v4194_v61 }
 0xa30   :  { %7856 = vmatpush3.bf16.msra.mxu0 %v8329_v56  ;;  %7867 = vmatprep.mubr.bf16.mxu0 %v4467_v50  ;;  %v6843_v56 = vld [vmem:[%s9345_s14] ss:$0 sm:$0xff] }
 0xa31   :  { %7857 = vmatprep.subr.bf16.mxu0 %v8330_v62  ;;  %7884 = vmatpush3.bf16.msra.mxu1 %v8345_v29 }
 0xa32   :  { %7885 = vmatprep.subr.bf16.mxu1 %v8347_v19 }
 0xa34   :  { %7858 = vmatpush3.bf16.msra.mxu0 %v8330_v62 }
 0xa35   :  { %7859 = vmatprep.subr.bf16.mxu0 %v8331_v0  ;;  %7886 = vmatpush3.bf16.msra.mxu1 %v8347_v19 }
 0xa36   :  { %7887 = vmatprep.subr.bf16.mxu1 %v8349_v24 }
 0xa38   :  { %7860 = vmatpush3.bf16.msra.mxu0 %v8331_v0 }
 0xa39   :  { %7861 = vmatprep.subr.bf16.mxu0 %v8332_v63  ;;  %7888 = vmatpush3.bf16.msra.mxu1 %v8349_v24 }
 0xa3a   :  { %7889 = vmatprep.subr.bf16.mxu1 %v8350_v53 }
 0xa3c   :  { %7862 = vmatpush3.bf16.msra.mxu0 %v8332_v63 }
 0xa3d   :  { %7863 = vmatprep.subr.bf16.mxu0 %v8333_v1  ;;  %7890 = vmatpush3.bf16.msra.mxu1 %v8350_v53 }
 0xa3e   :  { %7923 = vmatprep.subr.bf16.mxu1 %v9283_v28 }
 0xa40   :  { %7864 = vmatpush3.bf16.msra.mxu0 %v8333_v1 }
 0xa41   :  { %7865 = vmatprep.subr.bf16.mxu0 %v8334_v2 }
 0xa44   :  { %7866 = vmatpush3.bf16.msra.mxu0 %v8334_v2 }
 0xa45   :  { %7899 = vmatprep.subr.bf16.mxu0 %v8335_v59 }
 0xa47   :  { %7868 = vmatmul.mubr.bf16.vlgmr.msra.gmra.mxu0 %v4468_v4 }
 0xa48   :  { %7871 = vmatprep.mubr.bf16.mxu0 %v4469_v39  ;;  %7900 = vmatpush3.bf16.msra.mxu0 %v8335_v59 }
 0xa49   :  { %7901 = vmatprep.subr.bf16.mxu0 %v8336_v14 }
 0xa4c   :  { %7902 = vmatpush3.bf16.msra.mxu0 %v8336_v14 }
 0xa4d   :  { %7903 = vmatprep.subr.bf16.mxu0 %v8338_v10 }
 0xa4f   :  { %7872 = vmatmul.mubr.bf16.gmra.mxu0 %v4470_v9 }
 0xa50   :  { %7904 = vmatpush3.bf16.msra.mxu0 %v8338_v10 }
 0xa51   :  { %7905 = vmatprep.subr.bf16.mxu0 %v8340_v31 }
 0xa54   :  { %7906 = vmatpush3.bf16.msra.mxu0 %v8340_v31 }
 0xa55   :  { %7907 = vmatprep.subr.bf16.mxu0 %v8342_v15 }
 0xa58   :  { %7908 = vmatpush3.bf16.msra.mxu0 %v8342_v15 }
 0xa59   :  { %7909 = vmatprep.subr.bf16.mxu0 %v8344_v16 }
 0xa5c   :  { %7910 = vmatpush3.bf16.msra.mxu0 %v8344_v16 }
 0xa5d   :  { %7911 = vmatprep.subr.bf16.mxu0 %v8346_v17 }
 0xa60   :  { %7912 = vmatpush3.bf16.msra.mxu0 %v8346_v17 }
 0xa61   :  { %7913 = vmatprep.subr.bf16.mxu0 %v8348_v21 }
 0xa64   :  { %7914 = vmatpush3.bf16.msra.mxu0 %v8348_v21 }
 0xadf   :  { %v7845_v34 = vpop.f32.mrf.mxu1 }
 0xae1   :  { %v4411_v41 = vpop.f32.mrf.mxu1 }
 0xae3   :  { %v7846_v46 = vpop.f32.mrf.mxu1 }
 0xae5   :  { %v4414_v47 = vpop.f32.mrf.mxu1 }
 0xae7   :  { %v7821_v22 = vpop.f32.mrf.mxu0  ;;  %v7849_v12 = vpop.f32.mrf.mxu1 }
 0xae8   :  { %v4444_v7 = vadd.f32 %v7845_v34, %v7821_v22 }
 0xae9   :  { %v4277_v25 = vpop.f32.mrf.mxu0  ;;  %v4427_v20 = vpop.f32.mrf.mxu1 }
 0xaea   :  { %v4442_v26 = vadd.f32 %v4411_v41, %v4277_v25 }
 0xaeb   :  { %v7822_v27 = vpop.f32.mrf.mxu0  ;;  %v7850_v55 = vpop.f32.mrf.mxu1 }
 0xaec   :  { %v4445_v23 = vadd.f32 %v7846_v46, %v7822_v27 }
 0xaed   :  { %v4280_v30 = vpop.f32.mrf.mxu0  ;;  %v4430_v1 = vpop.f32.mrf.mxu1 }
 0xaee   :  { %v4443_v35 = vadd.f32 %v4414_v47, %v4280_v30 }
 0xaef   :  { %v7825_v36 = vpop.f32.mrf.mxu0 }
 0xaf0   :  { %v4448_v3 = vadd.f32 %v7849_v12, %v7825_v36 }
 0xaf1   :  { %v4293_v45 = vpop.f32.mrf.mxu0 }
 0xaf2   :  { %v4446_v32 = vadd.f32 %v4427_v20, %v4293_v45 }
 0xaf3   :  { %v7826_v44 = vpop.f32.mrf.mxu0 }
 0xaf4   :  { %v4449_v4 = vadd.f32 %v7850_v55, %v7826_v44 }
 0xaf5   :  { %v4296_v48 = vpop.f32.mrf.mxu0 }
 0xaf6   :  { %v4447_v5 = vadd.f32 %v4430_v1, %v4296_v48 }
 0xb07   :  { %v7869_v49 = vpop.f32.mrf.mxu0 }
 0xb08   :  { %v4586_v33 = vadd.f32 %v7869_v49, %v4444_v7 }
 0xb09   :  { %v4553_v51 = vpop.f32.mrf.mxu0 }
 0xb0a   :  { %v4584_v18 = vadd.f32 %v4553_v51, %v4442_v26  ;;  %v4601_v50 = vadd.f32 %v6843_v56, %v4586_v33 }
 0xb0b   :  { %v7870_v52 = vpop.f32.mrf.mxu0 }
 0xb0c   :  { %v4599_v58 = vadd.f32 %v6843_v56, %v4584_v18  ;;  %v4587_v60 = vadd.f32 %v7870_v52, %v4445_v23 }
 0xb0d   :  { %v4556_v38 = vpop.f32.mrf.mxu0 }
 0xb0e   :  { %v4585_v54 = vadd.f32 %v4556_v38, %v4443_v35  ;;  %v4602_v42 = vadd.f32 %v6843_v56, %v4587_v60 }
 0xb0f   :  { %v7873_v57 = vpop.f32.mrf.mxu0 }
 0xb10   :  { %v4600_v61 = vadd.f32 %v6843_v56, %v4585_v54  ;;  %v4590_v8 = vadd.f32 %v7873_v57, %v4448_v3 }
 0xb11   :  { %v4569_v62 = vpop.f32.mrf.mxu0 }
 0xb12   :  { %v4609_v0 = vadd.f32 %v4600_v61, %v4599_v58  ;;  %v4588_v63 = vadd.f32 %v4569_v62, %v4446_v32  ;;  %v4605_v11 = vadd.f32 %v6843_v56, %v4590_v8  ;;  %v6844_v62 = vld [vmem:[%s9346_s15] ss:$0 sm:$0xff] }
 0xb13   :  { %v7874_v2 = vpop.f32.mrf.mxu0 }
 0xb14   :  { %v4610_v6 = vadd.f32 %v4609_v0, %v4601_v50  ;;  %v4603_v43 = vadd.f32 %v6843_v56, %v4588_v63  ;;  %v4591_v40 = vadd.f32 %v7874_v2, %v4449_v4  ;;  %v6845_v2 = vld [vmem:[#allocation21] ss:$0 sm:$0xff] }
 0xb15   :  { %v4572_v39 = vpop.f32.mrf.mxu0 }
 0xb16   :  { %v4611_v9 = vadd.f32 %v4610_v6, %v4602_v42  ;;  %v4589_v59 = vadd.f32 %v4572_v39, %v4447_v5  ;;  %v4606_v13 = vadd.f32 %v6843_v56, %v4591_v40 }
 0xb18   :  { %v4612_v14 = vadd.f32 %v4611_v9, %v4603_v43  ;;  %v4604_v10 = vadd.f32 %v6843_v56, %v4589_v59 }
 0xb1a   :  { %v4613_v31 = vadd.f32 %v4612_v14, %v4604_v10 }
 0xb1c   :  { %v4614_v15 = vadd.f32 %v4613_v31, %v4605_v11 }
 0xb1e   :  { %v4615_v37 = vadd.f32 %v4614_v15, %v4606_v13 }
 0xb20   :  { %v4616_v16 = vrot.slane %v4615_v37, 4 }
 0xb22   :  { %v4617_v29 = vadd.f32 %v4616_v16, %v4615_v37 }
 0xb24   :  { %v4618_v17 = vrot.slane %v4617_v29, 2 }
 0xb26   :  { %v4619_v19 = vadd.f32 %v4618_v17, %v4617_v29 }
 0xb28   :  { %v4620_v21 = vrot.slane %v4619_v19, 1 }
 0xb2a   :  { %v4621_v22 = vadd.f32 %v4620_v21, %v4619_v19 }
 0xb2c   :  { %v4622_v24 = vmul.f32 0.015625, %v4621_v22 }
 0xb2e   :  { %v4623_v25 = vsub.f32 %v4599_v58, %v4622_v24  ;;  %v4624_v53 = vsub.f32 %v4600_v61, %v4622_v24  ;;  %v4625_v27 = vsub.f32 %v4601_v50, %v4622_v24  ;;  %v4626_v30 = vsub.f32 %v4602_v42, %v4622_v24 }
 0xb2f   :  { %v4627_v41 = vsub.f32 %v4603_v43, %v4622_v24  ;;  %v4628_v44 = vsub.f32 %v4604_v10, %v4622_v24  ;;  %v4629_v12 = vsub.f32 %v4605_v11, %v4622_v24  ;;  %v4630_v26 = vsub.f32 %v4606_v13, %v4622_v24 }
 0xb30   :  { %v4631_v34 = vmul.f32 %v4623_v25, %v4623_v25  ;;  %v4632_v36 = vmul.f32 %v4624_v53, %v4624_v53  ;;  %v4633_v45 = vmul.f32 %v4625_v27, %v4625_v27  ;;  %v4634_v47 = vmul.f32 %v4626_v30, %v4626_v30 }
 0xb31   :  { %v4635_v49 = vmul.f32 %v4627_v41, %v4627_v41  ;;  %v4636_v20 = vmul.f32 %v4628_v44, %v4628_v44  ;;  %v4637_v7 = vmul.f32 %v4629_v12, %v4629_v12  ;;  %v4638_v18 = vmul.f32 %v4630_v26, %v4630_v26 }
 0xb32   :  { %v4639_v46 = vadd.f32 %v4632_v36, %v4631_v34 }
 0xb34   :  { %v4640_v48 = vadd.f32 %v4639_v46, %v4633_v45 }
 0xb36   :  { %v4641_v51 = vadd.f32 %v4640_v48, %v4634_v47 }
 0xb38   :  { %v4642_v52 = vadd.f32 %v4641_v51, %v4635_v49 }
 0xb3a   :  { %v4643_v35 = vadd.f32 %v4642_v52, %v4636_v20 }
 0xb3c   :  { %v4644_v38 = vadd.f32 %v4643_v35, %v4637_v7 }
 0xb3e   :  { %v4645_v23 = vadd.f32 %v4644_v38, %v4638_v18 }
 0xb40   :  { %v4646_v33 = vrot.slane %v4645_v23, 4 }
 0xb42   :  { %v4647_v54 = vadd.f32 %v4646_v33, %v4645_v23  ;;  %v8352_v33 = vld [vmem:[#allocation20 + $0x170] sm:$0xff]  }
 0xb44   :  { %v4648_v55 = vrot.slane %v4647_v54, 2 }
 0xb46   :  { %v4649_v56 = vadd.f32 %v4648_v55, %v4647_v54  ;;  %v8353_v55 = vld [vmem:[#allocation20 + $0x168] sm:$0xff]  }
 0xb48   :  { %v4650_v57 = vrot.slane %v4649_v56, 1 }
 0xb4a   :  { %v4651_v32 = vadd.f32 %v4650_v57, %v4649_v56 }
 0xb4c   :  { %v4652_v58 = vmul.f32 0.015625, %v4651_v32 }
 0xb4e   :  { %v4653_v60 = vadd.f32 1e-05, %v4652_v58 }
 0xb50   :  { %8429 = vrsqrt.f32 %v4653_v60 }
 0xb5d   :  { %v8430_v61 = vpop.eup %8429 }
 0xb5e   :  { %v4657_v50 = vmul.f32 %v8430_v61, %v4625_v27  ;;  %v4658_v0 = vmul.f32 %v8430_v61, %v4626_v30  ;;  %v4660_v63 = vmul.f32 %v8430_v61, %v4628_v44  ;;  %v4655_v1 = vmul.f32 %v8430_v61, %v4623_v25 }
 0xb5f   :  { %v4656_v3 = vmul.f32 %v8430_v61, %v4624_v53  ;;  %v4659_v5 = vmul.f32 %v8430_v61, %v4627_v41  ;;  %v4661_v42 = vmul.f32 %v8430_v61, %v4629_v12  ;;  %v4662_v6 = vmul.f32 %v8430_v61, %v4630_v26  ;;  %v8354_v61 = vld [vmem:[#allocation20 + $0x160] sm:$0xff]  }
 0xb60   :  { %v4674_v4 = vmul.f32 %v6844_v62, %v4660_v63  ;;  %v4669_v39 = vmul.f32 %v6844_v62, %v4655_v1  ;;  %v4671_v8 = vmul.f32 %v6844_v62, %v4657_v50  ;;  %v4672_v43 = vmul.f32 %v6844_v62, %v4658_v0  ;;  %v8355_v50 = vld [vmem:[#allocation20 + $0x158] sm:$0xff]   ;;  %v8357_v0 = vld [vmem:[#allocation20 + $0x148] sm:$0xff]   ;;  %v8358_v63 = vld [vmem:[#allocation20 + $0x140] sm:$0xff]  }
 0xb61   :  { %v4670_v9 = vmul.f32 %v6844_v62, %v4656_v3  ;;  %v4673_v59 = vmul.f32 %v6844_v62, %v4659_v5  ;;  %v4675_v14 = vmul.f32 %v6844_v62, %v4661_v42  ;;  %v4676_v40 = vmul.f32 %v6844_v62, %v4662_v6 }
 0xb62   :  { %v4683_v10 = vadd.f32 %v6845_v2, %v4669_v39  ;;  %v4685_v11 = vadd.f32 %v6845_v2, %v4671_v8  ;;  %v4686_v31 = vadd.f32 %v6845_v2, %v4672_v43  ;;  %v4688_v13 = vadd.f32 %v6845_v2, %v4674_v4  ;;  %v8359_v43 = vld [vmem:[#allocation20 + $0x1f8] sm:$0xff]  }
 0xb63   :  { %v4684_v15 = vadd.f32 %v6845_v2, %v4670_v9  ;;  %v4687_v37 = vadd.f32 %v6845_v2, %v4673_v59  ;;  %v4689_v16 = vadd.f32 %v6845_v2, %v4675_v14  ;;  %v4690_v29 = vadd.f32 %v6845_v2, %v4676_v40  ;;  %v8360_v9 = vld [vmem:[#allocation20 + $0x1f0] sm:$0xff]   ;;  %v8361_v59 = vld [vmem:[#allocation20 + $0x1b8] sm:$0xff]   ;;  %v8362_v14 = vld [vmem:[#allocation20 + $0x1e8] sm:$0xff]  }
 0xb64   :  { %vm4691_vm4 = vcmp.ge.f32.partialorder %v4683_v10, 0.0  ;;  %v4699_v17 = vmul.f32 0.2, %v4683_v10  ;;  %vm4693_vm5 = vcmp.ge.f32.partialorder %v4685_v11, 0.0  ;;  %vm4694_vm6 = vcmp.ge.f32.partialorder %v4686_v31, 0.0  ;;  %7947 = vmatprep.subr.bf16.mxu0 %v8361_v59  ;;  %v8363_v40 = vld [vmem:[#allocation20 + $0x1b0] sm:$0xff]  }
 0xb65   :  { %vm4692_vm7 = vcmp.ge.f32.partialorder %v4684_v15, 0.0  ;;  %v4700_v19 = vmul.f32 0.2, %v4684_v15  ;;  %v4701_v21 = vmul.f32 0.2, %v4685_v11  ;;  %vm4695_vm8 = vcmp.ge.f32.partialorder %v4687_v37, 0.0 }
 0xb66   :  { %v4707_v22 = vsel %vm4691_vm4, %v4683_v10, %v4699_v17  ;;  %v4702_v24 = vmul.f32 0.2, %v4686_v31  ;;  %vm4696_vm9 = vcmp.ge.f32.partialorder %v4688_v13, 0.0  ;;  %v4703_v25 = vmul.f32 0.2, %v4687_v37  ;;  %v8364_v10 = vld [vmem:[#allocation20 + $0x1e0] sm:$0xff]  }
 0xb67   :  { %v4708_v53 = vsel %vm4692_vm7, %v4684_v15, %v4700_v19  ;;  %4715 = vst [vmem:[#allocation2 + $0x8] sm:$0xff] %v4707_v22  ;;  %v4709_v27 = vsel %vm4693_vm5, %v4685_v11, %v4701_v21  ;;  %v4704_v30 = vmul.f32 0.2, %v4688_v13  ;;  %vm4697_vm10 = vcmp.ge.f32.partialorder %v4689_v16, 0.0  ;;  %v8365_v11 = vld [vmem:[#allocation20 + $0x1a8] sm:$0xff]   ;;  %v8368_v15 = vld [vmem:[#allocation20 + $0x1d0] sm:$0xff]  }
 0xb68   :  { %v4890_v34 = vpack.c.bf16 %v4708_v53, %v4707_v22  ;;  %4716 = vst [vmem:[#allocation2 + $0x10] sm:$0xff] %v4708_v53  ;;  %v4710_v36 = vsel %vm4694_vm6, %v4686_v31, %v4702_v24  ;;  %4717 = vst [vmem:[#allocation2 + $0x18] sm:$0xff] %v4709_v27  ;;  %v4711_v41 = vsel %vm4695_vm8, %v4687_v37, %v4703_v25  ;;  %vm4698_vm14 = vcmp.ge.f32.partialorder %v4690_v29, 0.0  ;;  %v8366_v31 = vld [vmem:[#allocation20 + $0x1d8] sm:$0xff]   ;;  %v8372_v17 = vld [vmem:[#allocation20 + $0x1c0] sm:$0xff]  }
 0xb69   :  { %4718 = vst [vmem:[#allocation2 + $0x20] sm:$0xff] %v4710_v36  ;;  %v4891_v45 = vpack.c.bf16 %v4710_v36, %v4709_v27  ;;  %v4712_v46 = vsel %vm4696_vm9, %v4688_v13, %v4704_v30  ;;  %4719 = vst [vmem:[#allocation2 + $0x38] sm:$0xff] %v4711_v41  ;;  %v4705_v44 = vmul.f32 0.2, %v4689_v16  ;;  %v4706_v47 = vmul.f32 0.2, %v4690_v29 }
 0xb6a   :  { %7915 = vmatprep.mubr.bf16.mxu0 %v4890_v34  ;;  %v4892_v48 = vpack.c.bf16 %v4712_v46, %v4711_v41  ;;  %4720 = vst [vmem:[#allocation2 + $0x40] sm:$0xff] %v4712_v46  ;;  %v8367_v13 = vld [vmem:[#allocation20 + $0x1a0] sm:$0xff]   ;;  %v8369_v37 = vld [vmem:[#allocation20 + $0x198] sm:$0xff]   ;;  %v8373_v19 = vld [vmem:[#allocation20 + $0x188] sm:$0xff]  }
 0xb6b   :  { %7916 = vmatmul.mubr.bf16.vlgmr.msra.gmra.mxu0 %v4891_v45  ;;  %v4713_v12 = vsel %vm4697_vm10, %v4689_v16, %v4705_v44  ;;  %v4714_v49 = vsel %vm4698_vm14, %v4690_v29, %v4706_v47  ;;  %v8370_v16 = vld [vmem:[#allocation20 + $0x1c8] sm:$0xff]   ;;  %v8371_v29 = vld [vmem:[#allocation20 + $0x190] sm:$0xff]   ;;  %v8374_v22 = vld [vmem:[#allocation20 + $0x180] sm:$0xff]  }
 0xb6c   :  { %7919 = vmatprep.mubr.bf16.mxu0 %v4892_v48  ;;  %4722 = vst [vmem:[#allocation2 + $0x50] sm:$0xff] %v4714_v49  ;;  %4721 = vst [vmem:[#allocation2 + $0x48] sm:$0xff] %v4713_v12  ;;  %v4893_v38 = vpack.c.bf16 %v4714_v49, %v4713_v12  ;;  %7948 = vmatpush3.bf16.msra.mxu0 %v8361_v59  ;;  %v9295_v53 = vld [vmem:[#allocation20 + $0x238] sm:$0xff]  }
 0xb6d   :  { %7949 = vmatprep.subr.bf16.mxu0 %v8363_v40 }
 0xb6e   :  { %v4723_v51 = vld [vmem:[#allocation2 + $0x7] sm:$0xff] }
 0xb6f   :  { %v4724_v26 = vld [vmem:[#allocation2 + $0xf] sm:$0xff]  ;;  %v4725_v20 = vld [vmem:[#allocation2 + $0x17] sm:$0xff] }
 0xb70   :  { %v4756_v52 = vpack.c.bf16 %v4724_v26, %v4723_v51  ;;  %v4726_v7 = vld [vmem:[#allocation2 + $0x1f] sm:$0xff]  ;;  %v4727_v35 = vld [vmem:[#allocation2 + $0x37] sm:$0xff]  ;;  %v4731_v32 = vld [vmem:[#allocation2 + $0x9] sm:$0xff]  ;;  %7950 = vmatpush3.bf16.msra.mxu0 %v8363_v40 }
 0xb71   :  { %v4757_v18 = vpack.c.bf16 %v4726_v7, %v4725_v20  ;;  %v4728_v23 = vld [vmem:[#allocation2 + $0x3f] sm:$0xff]  ;;  %v4732_v58 = vld [vmem:[#allocation2 + $0x11] sm:$0xff]  ;;  %7951 = vmatprep.subr.bf16.mxu0 %v8365_v11 }
 0xb72   :  { %7891 = vmatprep.mubr.bf16.mxu1 %v4756_v52  ;;  %v4758_v54 = vpack.c.bf16 %v4728_v23, %v4727_v35  ;;  %v5032_v62 = vpack.c.bf16 %v4732_v58, %v4731_v32  ;;  %v4733_v1 = vld [vmem:[#allocation2 + $0x19] sm:$0xff]  ;;  %v4734_v2 = vld [vmem:[#allocation2 + $0x21] sm:$0xff] }
 0xb73   :  { %7892 = vmatmul.mubr.bf16.vlgmr.msra.gmra.mxu1 %v4757_v18  ;;  %7920 = vmatmul.mubr.bf16.gmra.mxu0 %v4893_v38  ;;  %v4729_v56 = vld [vmem:[#allocation2 + $0x47] sm:$0xff]  ;;  %v4730_v57 = vld [vmem:[#allocation2 + $0x4f] sm:$0xff]  ;;  %v4735_v3 = vld [vmem:[#allocation2 + $0x39] sm:$0xff]  ;;  %v5033_v42 = vpack.c.bf16 %v4734_v2, %v4733_v1 }
 0xb74   :  { %7924 = vmatpush3.bf16.msra.mxu1 %v9283_v28  ;;  %7895 = vmatprep.mubr.bf16.mxu1 %v4758_v54  ;;  %v4759_v60 = vpack.c.bf16 %v4730_v57, %v4729_v56  ;;  %v8356_v28 = vld [vmem:[#allocation20 + $0x150] sm:$0xff]   ;;  %v4738_v39 = vld [vmem:[#allocation2 + $0x51] sm:$0xff] }
 0xb75   :  { %7925 = vmatprep.subr.bf16.mxu1 %v8352_v33  ;;  %v4736_v5 = vld [vmem:[#allocation2 + $0x41] sm:$0xff]  ;;  %v4737_v4 = vld [vmem:[#allocation2 + $0x49] sm:$0xff]  ;;  %7952 = vmatpush3.bf16.msra.mxu0 %v8365_v11 }
 0xb76   :  { %v5034_v6 = vpack.c.bf16 %v4736_v5, %v4735_v3  ;;  %v5035_v8 = vpack.c.bf16 %v4738_v39, %v4737_v4  ;;  %7953 = vmatprep.subr.bf16.mxu0 %v8367_v13 }
 0xb78   :  { %7926 = vmatpush3.bf16.msra.mxu1 %v8352_v33 }
 0xb79   :  { %7927 = vmatprep.subr.bf16.mxu1 %v8353_v55  ;;  %7954 = vmatpush3.bf16.msra.mxu0 %v8367_v13 }
 0xb7a   :  { %7955 = vmatprep.subr.bf16.mxu0 %v8369_v37 }
 0xb7b   :  { %7896 = vmatmul.mubr.bf16.gmra.mxu1 %v4759_v60 }
 0xb7c   :  { %7928 = vmatpush3.bf16.msra.mxu1 %v8353_v55  ;;  %7939 = vmatprep.mubr.bf16.mxu1 %v5032_v62  ;;  %v6871_v55 = vld [vmem:[%s9345_s14 + $0x1] ss:$0 sm:$0xff] }
 0xb7d   :  { %7929 = vmatprep.subr.bf16.mxu1 %v8354_v61  ;;  %7956 = vmatpush3.bf16.msra.mxu0 %v8369_v37 }
 0xb7e   :  { %7957 = vmatprep.subr.bf16.mxu0 %v8371_v29 }
 0xb80   :  { %7930 = vmatpush3.bf16.msra.mxu1 %v8354_v61 }
 0xb81   :  { %7931 = vmatprep.subr.bf16.mxu1 %v8355_v50  ;;  %7958 = vmatpush3.bf16.msra.mxu0 %v8371_v29 }
 0xb82   :  { %7959 = vmatprep.subr.bf16.mxu0 %v8373_v19 }
 0xb84   :  { %7932 = vmatpush3.bf16.msra.mxu1 %v8355_v50 }
 0xb85   :  { %7933 = vmatprep.subr.bf16.mxu1 %v8356_v28  ;;  %7960 = vmatpush3.bf16.msra.mxu0 %v8373_v19 }
 0xb86   :  { %7961 = vmatprep.subr.bf16.mxu0 %v8374_v22 }
 0xb88   :  { %7934 = vmatpush3.bf16.msra.mxu1 %v8356_v28 }
 0xb89   :  { %7935 = vmatprep.subr.bf16.mxu1 %v8357_v0  ;;  %7962 = vmatpush3.bf16.msra.mxu0 %v8374_v22 }
 0xb8a   :  { %7995 = vmatprep.subr.bf16.mxu0 %v9295_v53 }
 0xb8c   :  { %7936 = vmatpush3.bf16.msra.mxu1 %v8357_v0 }
 0xb8d   :  { %7937 = vmatprep.subr.bf16.mxu1 %v8358_v63 }
 0xb90   :  { %7938 = vmatpush3.bf16.msra.mxu1 %v8358_v63 }
 0xb91   :  { %7971 = vmatprep.subr.bf16.mxu1 %v8359_v43 }
 0xb93   :  { %7940 = vmatmul.mubr.bf16.vlgmr.msra.gmra.mxu1 %v5033_v42 }
 0xb94   :  { %7943 = vmatprep.mubr.bf16.mxu1 %v5034_v6  ;;  %7972 = vmatpush3.bf16.msra.mxu1 %v8359_v43 }
 0xb95   :  { %7973 = vmatprep.subr.bf16.mxu1 %v8360_v9 }
 0xb98   :  { %7974 = vmatpush3.bf16.msra.mxu1 %v8360_v9 }
 0xb99   :  { %7975 = vmatprep.subr.bf16.mxu1 %v8362_v14 }
 0xb9b   :  { %7944 = vmatmul.mubr.bf16.gmra.mxu1 %v5035_v8 }
 0xb9c   :  { %7976 = vmatpush3.bf16.msra.mxu1 %v8362_v14 }
 0xb9d   :  { %7977 = vmatprep.subr.bf16.mxu1 %v8364_v10 }
 0xba0   :  { %7978 = vmatpush3.bf16.msra.mxu1 %v8364_v10 }
 0xba1   :  { %7979 = vmatprep.subr.bf16.mxu1 %v8366_v31 }
 0xba4   :  { %7980 = vmatpush3.bf16.msra.mxu1 %v8366_v31 }
 0xba5   :  { %7981 = vmatprep.subr.bf16.mxu1 %v8368_v15 }
 0xba8   :  { %7982 = vmatpush3.bf16.msra.mxu1 %v8368_v15 }
 0xba9   :  { %7983 = vmatprep.subr.bf16.mxu1 %v8370_v16 }
 0xbac   :  { %7984 = vmatpush3.bf16.msra.mxu1 %v8370_v16 }
 0xbad   :  { %7985 = vmatprep.subr.bf16.mxu1 %v8372_v17 }
 0xbb0   :  { %7986 = vmatpush3.bf16.msra.mxu1 %v8372_v17 }
 0xc2b   :  { %v7917_v30 = vpop.f32.mrf.mxu0 }
 0xc2d   :  { %v4976_v36 = vpop.f32.mrf.mxu0 }
 0xc2f   :  { %v7918_v45 = vpop.f32.mrf.mxu0 }
 0xc31   :  { %v4979_v44 = vpop.f32.mrf.mxu0 }
 0xc33   :  { %v7893_v21 = vpop.f32.mrf.mxu1  ;;  %v7921_v48 = vpop.f32.mrf.mxu0 }
 0xc34   :  { %v5009_v52 = vadd.f32 %v7917_v30, %v7893_v21 }
 0xc35   :  { %v4842_v24 = vpop.f32.mrf.mxu1  ;;  %v4992_v26 = vpop.f32.mrf.mxu0 }
 0xc36   :  { %v5007_v51 = vadd.f32 %v4976_v36, %v4842_v24 }
 0xc37   :  { %v7894_v25 = vpop.f32.mrf.mxu1  ;;  %v7922_v54 = vpop.f32.mrf.mxu0 }
 0xc38   :  { %v5010_v38 = vadd.f32 %v7918_v45, %v7894_v25 }
 0xc39   :  { %v4845_v27 = vpop.f32.mrf.mxu1  ;;  %v4995_v0 = vpop.f32.mrf.mxu0 }
 0xc3a   :  { %v5008_v7 = vadd.f32 %v4979_v44, %v4845_v27 }
 0xc3b   :  { %v7897_v34 = vpop.f32.mrf.mxu1 }
 0xc3c   :  { %v5013_v1 = vadd.f32 %v7921_v48, %v7897_v34 }
 0xc3d   :  { %v4858_v41 = vpop.f32.mrf.mxu1 }
 0xc3e   :  { %v5011_v57 = vadd.f32 %v4992_v26, %v4858_v41 }
 0xc3f   :  { %v7898_v46 = vpop.f32.mrf.mxu1 }
 0xc40   :  { %v5014_v42 = vadd.f32 %v7922_v54, %v7898_v46 }
 0xc41   :  { %v4861_v47 = vpop.f32.mrf.mxu1 }
 0xc42   :  { %v5012_v2 = vadd.f32 %v4995_v0, %v4861_v47 }
 0xc53   :  { %v7941_v12 = vpop.f32.mrf.mxu1 }
 0xc54   :  { %v5151_v23 = vadd.f32 %v7941_v12, %v5009_v52 }
 0xc55   :  { %v5118_v49 = vpop.f32.mrf.mxu1 }
 0xc56   :  { %v5149_v35 = vadd.f32 %v5118_v49, %v5007_v51  ;;  %v5167_v62 = vadd.f32 %v6871_v55, %v5151_v23 }
 0xc57   :  { %v7942_v20 = vpop.f32.mrf.mxu1 }
 0xc58   :  { %v5165_v32 = vadd.f32 %v6871_v55, %v5149_v35  ;;  %v5152_v58 = vadd.f32 %v7942_v20, %v5010_v38 }
 0xc59   :  { %v5121_v18 = vpop.f32.mrf.mxu1 }
 0xc5a   :  { %v5150_v33 = vadd.f32 %v5121_v18, %v5008_v7  ;;  %v5168_v3 = vadd.f32 %v6871_v55, %v5152_v58 }
 0xc5b   :  { %v7945_v56 = vpop.f32.mrf.mxu1 }
 0xc5c   :  { %v5166_v60 = vadd.f32 %v6871_v55, %v5150_v33  ;;  %v5155_v4 = vadd.f32 %v7945_v56, %v5013_v1 }
 0xc5d   :  { %v5134_v61 = vpop.f32.mrf.mxu1 }
 0xc5e   :  { %v5177_v50 = vadd.f32 %v5166_v60, %v5165_v32  ;;  %v5153_v28 = vadd.f32 %v5134_v61, %v5011_v57  ;;  %v5171_v40 = vadd.f32 %v6871_v55, %v5155_v4  ;;  %v6873_v61 = vld [vmem:[%s9346_s15 + $0x1] ss:$0 sm:$0xff] }
 0xc5f   :  { %v7946_v63 = vpop.f32.mrf.mxu1 }
 0xc60   :  { %v5178_v5 = vadd.f32 %v5177_v50, %v5167_v62  ;;  %v5169_v39 = vadd.f32 %v6871_v55, %v5153_v28  ;;  %v5156_v59 = vadd.f32 %v7946_v63, %v5014_v42  ;;  %v6874_v63 = vld [vmem:[#allocation21 + $0x1] ss:$0 sm:$0xff] }
 0xc61   :  { %v5137_v6 = vpop.f32.mrf.mxu1 }
 0xc62   :  { %v5179_v8 = vadd.f32 %v5178_v5, %v5168_v3  ;;  %v5154_v43 = vadd.f32 %v5137_v6, %v5012_v2  ;;  %v5172_v11 = vadd.f32 %v6871_v55, %v5156_v59 }
 0xc64   :  { %v5180_v9 = vadd.f32 %v5179_v8, %v5169_v39  ;;  %v5170_v14 = vadd.f32 %v6871_v55, %v5154_v43 }
 0xc66   :  { %v5181_v10 = vadd.f32 %v5180_v9, %v5170_v14 }
 0xc68   :  { %v5182_v31 = vadd.f32 %v5181_v10, %v5171_v40 }
 0xc6a   :  { %v5183_v13 = vadd.f32 %v5182_v31, %v5172_v11 }
 0xc6c   :  { %v5184_v15 = vrot.slane %v5183_v13, 4 }
 0xc6e   :  { %v5185_v37 = vadd.f32 %v5184_v15, %v5183_v13 }
 0xc70   :  { %v5186_v16 = vrot.slane %v5185_v37, 2 }
 0xc72   :  { %v5187_v29 = vadd.f32 %v5186_v16, %v5185_v37 }
 0xc74   :  { %v5188_v17 = vrot.slane %v5187_v29, 1 }
 0xc76   :  { %v5189_v19 = vadd.f32 %v5188_v17, %v5187_v29 }
 0xc78   :  { %v5190_v21 = vmul.f32 0.015625, %v5189_v19 }
 0xc7a   :  { %v5191_v22 = vsub.f32 %v5165_v32, %v5190_v21  ;;  %v5192_v24 = vsub.f32 %v5166_v60, %v5190_v21  ;;  %v5193_v25 = vsub.f32 %v5167_v62, %v5190_v21  ;;  %v5194_v27 = vsub.f32 %v5168_v3, %v5190_v21 }
 0xc7b   :  { %v5195_v36 = vsub.f32 %v5169_v39, %v5190_v21  ;;  %v5196_v46 = vsub.f32 %v5170_v14, %v5190_v21  ;;  %v5197_v48 = vsub.f32 %v5171_v40, %v5190_v21  ;;  %v5198_v51 = vsub.f32 %v5172_v11, %v5190_v21 }
 0xc7c   :  { %v5199_v30 = vmul.f32 %v5191_v22, %v5191_v22  ;;  %v5200_v34 = vmul.f32 %v5192_v24, %v5192_v24  ;;  %v5201_v41 = vmul.f32 %v5193_v25, %v5193_v25  ;;  %v5202_v44 = vmul.f32 %v5194_v27, %v5194_v27 }
 0xc7d   :  { %v5203_v12 = vmul.f32 %v5195_v36, %v5195_v36  ;;  %v5204_v26 = vmul.f32 %v5196_v46, %v5196_v46  ;;  %v5205_v52 = vmul.f32 %v5197_v48, %v5197_v48  ;;  %v5206_v35 = vmul.f32 %v5198_v51, %v5198_v51 }
 0xc7e   :  { %v5207_v45 = vadd.f32 %v5200_v34, %v5199_v30 }
 0xc80   :  { %v5208_v47 = vadd.f32 %v5207_v45, %v5201_v41 }
 0xc82   :  { %v5209_v49 = vadd.f32 %v5208_v47, %v5202_v44 }
 0xc84   :  { %v5210_v20 = vadd.f32 %v5209_v49, %v5203_v12 }
 0xc86   :  { %v5211_v7 = vadd.f32 %v5210_v20, %v5204_v26 }
 0xc88   :  { %v5212_v18 = vadd.f32 %v5211_v7, %v5205_v52 }
 0xc8a   :  { %v5213_v38 = vadd.f32 %v5212_v18, %v5206_v35 }
 0xc8c   :  { %v5214_v23 = vrot.slane %v5213_v38, 4 }
 0xc8e   :  { %v5215_v33 = vadd.f32 %v5214_v23, %v5213_v38  ;;  %v8376_v23 = vld [vmem:[#allocation20 + $0x230] sm:$0xff]  }
 0xc90   :  { %v5216_v54 = vrot.slane %v5215_v33, 2 }
 0xc92   :  { %v5217_v55 = vadd.f32 %v5216_v54, %v5215_v33  ;;  %v8377_v54 = vld [vmem:[#allocation20 + $0x228] sm:$0xff]  }
 0xc94   :  { %v5218_v56 = vrot.slane %v5217_v55, 1 }
 0xc96   :  { %v5219_v57 = vadd.f32 %v5218_v56, %v5217_v55 }
 0xc98   :  { %v5220_v32 = vmul.f32 0.015625, %v5219_v57 }
 0xc9a   :  { %v5221_v58 = vadd.f32 1e-05, %v5220_v32 }
 0xc9c   :  { %8431 = vrsqrt.f32 %v5221_v58 }
 0xca9   :  { %v8432_v60 = vpop.eup %8431 }
 0xcaa   :  { %v5225_v62 = vmul.f32 %v8432_v60, %v5193_v25  ;;  %v5226_v50 = vmul.f32 %v8432_v60, %v5194_v27  ;;  %v5228_v28 = vmul.f32 %v8432_v60, %v5196_v46  ;;  %v5223_v0 = vmul.f32 %v8432_v60, %v5191_v22 }
 0xcab   :  { %v5224_v1 = vmul.f32 %v8432_v60, %v5192_v24  ;;  %v5227_v2 = vmul.f32 %v8432_v60, %v5195_v36  ;;  %v5229_v3 = vmul.f32 %v8432_v60, %v5197_v48  ;;  %v5230_v5 = vmul.f32 %v8432_v60, %v5198_v51  ;;  %v8378_v60 = vld [vmem:[#allocation20 + $0x220] sm:$0xff]  }
 0xcac   :  { %v5242_v42 = vmul.f32 %v6873_v61, %v5228_v28  ;;  %v5237_v6 = vmul.f32 %v6873_v61, %v5223_v0  ;;  %v5239_v4 = vmul.f32 %v6873_v61, %v5225_v62  ;;  %v5240_v39 = vmul.f32 %v6873_v61, %v5226_v50  ;;  %v8379_v62 = vld [vmem:[#allocation20 + $0x218] sm:$0xff]   ;;  %v8381_v50 = vld [vmem:[#allocation20 + $0x208] sm:$0xff]   ;;  %v8382_v28 = vld [vmem:[#allocation20 + $0x200] sm:$0xff]  }
 0xcad   :  { %v5238_v8 = vmul.f32 %v6873_v61, %v5224_v1  ;;  %v5241_v43 = vmul.f32 %v6873_v61, %v5227_v2  ;;  %v5243_v9 = vmul.f32 %v6873_v61, %v5229_v3  ;;  %v5244_v59 = vmul.f32 %v6873_v61, %v5230_v5 }
 0xcae   :  { %v5251_v14 = vadd.f32 %v6874_v63, %v5237_v6  ;;  %v5253_v40 = vadd.f32 %v6874_v63, %v5239_v4  ;;  %v5254_v10 = vadd.f32 %v6874_v63, %v5240_v39  ;;  %v5256_v11 = vadd.f32 %v6874_v63, %v5242_v42  ;;  %v8383_v39 = vld [vmem:[#allocation20 + $0x2b8] sm:$0xff]  }
 0xcaf   :  { %v5252_v31 = vadd.f32 %v6874_v63, %v5238_v8  ;;  %v5255_v13 = vadd.f32 %v6874_v63, %v5241_v43  ;;  %v5257_v15 = vadd.f32 %v6874_v63, %v5243_v9  ;;  %v5258_v37 = vadd.f32 %v6874_v63, %v5244_v59  ;;  %v8384_v8 = vld [vmem:[#allocation20 + $0x2b0] sm:$0xff]   ;;  %v8385_v43 = vld [vmem:[#allocation20 + $0x278] sm:$0xff]   ;;  %v8386_v9 = vld [vmem:[#allocation20 + $0x2a8] sm:$0xff]  }
 0xcb0   :  { %vm5259_vm15 = vcmp.ge.f32.partialorder %v5251_v14, 0.0  ;;  %v5267_v16 = vmul.f32 0.2, %v5251_v14  ;;  %vm5261_vm0 = vcmp.ge.f32.partialorder %v5253_v40, 0.0  ;;  %vm5262_vm1 = vcmp.ge.f32.partialorder %v5254_v10, 0.0  ;;  %8019 = vmatprep.subr.bf16.mxu1 %v8385_v43  ;;  %v8387_v59 = vld [vmem:[#allocation20 + $0x270] sm:$0xff]  }
 0xcb1   :  { %vm5260_vm2 = vcmp.ge.f32.partialorder %v5252_v31, 0.0  ;;  %v5268_v29 = vmul.f32 0.2, %v5252_v31  ;;  %v5269_v17 = vmul.f32 0.2, %v5253_v40  ;;  %vm5263_vm3 = vcmp.ge.f32.partialorder %v5255_v13, 0.0 }
 0xcb2   :  { %v5275_v19 = vsel %vm5259_vm15, %v5251_v14, %v5267_v16  ;;  %v5270_v21 = vmul.f32 0.2, %v5254_v10  ;;  %vm5264_vm11 = vcmp.ge.f32.partialorder %v5256_v11, 0.0  ;;  %v5271_v22 = vmul.f32 0.2, %v5255_v13  ;;  %v8388_v14 = vld [vmem:[#allocation20 + $0x2a0] sm:$0xff]  }
 0xcb3   :  { %v5276_v24 = vsel %vm5260_vm2, %v5252_v31, %v5268_v29  ;;  %5283 = vst [vmem:[#allocation2 + $0x8] sm:$0xff] %v5275_v19  ;;  %v5277_v25 = vsel %vm5261_vm0, %v5253_v40, %v5269_v17  ;;  %v5272_v27 = vmul.f32 0.2, %v5256_v11  ;;  %vm5265_vm12 = vcmp.ge.f32.partialorder %v5257_v15, 0.0  ;;  %v8389_v40 = vld [vmem:[#allocation20 + $0x268] sm:$0xff]   ;;  %v8392_v31 = vld [vmem:[#allocation20 + $0x290] sm:$0xff]  }
 0xcb4   :  { %v5458_v30 = vpack.c.bf16 %v5276_v24, %v5275_v19  ;;  %5284 = vst [vmem:[#allocation2 + $0x10] sm:$0xff] %v5276_v24  ;;  %v5278_v34 = vsel %vm5262_vm1, %v5254_v10, %v5270_v21  ;;  %5285 = vst [vmem:[#allocation2 + $0x18] sm:$0xff] %v5277_v25  ;;  %v5279_v36 = vsel %vm5263_vm3, %v5255_v13, %v5271_v22  ;;  %vm5266_vm13 = vcmp.ge.f32.partialorder %v5258_v37, 0.0  ;;  %v8390_v10 = vld [vmem:[#allocation20 + $0x298] sm:$0xff]   ;;  %v8396_v16 = vld [vmem:[#allocation20 + $0x280] sm:$0xff]  }
 0xcb5   :  { %v5459_v41 = vpack.c.bf16 %v5278_v34, %v5277_v25  ;;  %5286 = vst [vmem:[#allocation2 + $0x20] sm:$0xff] %v5278_v34  ;;  %v5280_v45 = vsel %vm5264_vm11, %v5256_v11, %v5272_v27  ;;  %5287 = vst [vmem:[#allocation2 + $0x38] sm:$0xff] %v5279_v36  ;;  %v5273_v46 = vmul.f32 0.2, %v5257_v15  ;;  %v5274_v44 = vmul.f32 0.2, %v5258_v37 }
 0xcb6   :  { %7987 = vmatprep.mubr.bf16.mxu1 %v5458_v30  ;;  %v5460_v47 = vpack.c.bf16 %v5280_v45, %v5279_v36  ;;  %5288 = vst [vmem:[#allocation2 + $0x40] sm:$0xff] %v5280_v45  ;;  %v8391_v11 = vld [vmem:[#allocation20 + $0x260] sm:$0xff]   ;;  %v8393_v13 = vld [vmem:[#allocation20 + $0x258] sm:$0xff]   ;;  %v8397_v29 = vld [vmem:[#allocation20 + $0x248] sm:$0xff]  }
 0xcb7   :  { %7988 = vmatmul.mubr.bf16.vlgmr.msra.gmra.mxu1 %v5459_v41  ;;  %v5281_v48 = vsel %vm5265_vm12, %v5257_v15, %v5273_v46  ;;  %v5282_v12 = vsel %vm5266_vm13, %v5258_v37, %v5274_v44  ;;  %v8394_v15 = vld [vmem:[#allocation20 + $0x288] sm:$0xff]   ;;  %v8395_v37 = vld [vmem:[#allocation20 + $0x250] sm:$0xff]   ;;  %v8398_v19 = vld [vmem:[#allocation20 + $0x240] sm:$0xff]  }
 0xcb8   :  { %7991 = vmatprep.mubr.bf16.mxu1 %v5460_v47  ;;  %5289 = vst [vmem:[#allocation2 + $0x48] sm:$0xff] %v5281_v48  ;;  %5290 = vst [vmem:[#allocation2 + $0x50] sm:$0xff] %v5282_v12  ;;  %v5461_v18 = vpack.c.bf16 %v5282_v12, %v5281_v48  ;;  %8020 = vmatpush3.bf16.msra.mxu1 %v8385_v43  ;;  %v9307_v24 = vld [vmem:[#allocation20 + $0x2f8] sm:$0xff]  }
 0xcb9   :  { %8021 = vmatprep.subr.bf16.mxu1 %v8387_v59 }
 0xcba   :  { %v5291_v49 = vld [vmem:[#allocation2 + $0x7] sm:$0xff] }
 0xcbb   :  { %v5292_v51 = vld [vmem:[#allocation2 + $0xf] sm:$0xff]  ;;  %v5293_v26 = vld [vmem:[#allocation2 + $0x17] sm:$0xff] }
 0xcbc   :  { %v5324_v20 = vpack.c.bf16 %v5292_v51, %v5291_v49  ;;  %v5294_v52 = vld [vmem:[#allocation2 + $0x1f] sm:$0xff]  ;;  %v5295_v7 = vld [vmem:[#allocation2 + $0x37] sm:$0xff]  ;;  %v5299_v57 = vld [vmem:[#allocation2 + $0x9] sm:$0xff]  ;;  %8022 = vmatpush3.bf16.msra.mxu1 %v8387_v59 }
 0xcbd   :  { %v5325_v35 = vpack.c.bf16 %v5294_v52, %v5293_v26  ;;  %v5296_v38 = vld [vmem:[#allocation2 + $0x3f] sm:$0xff]  ;;  %v5300_v32 = vld [vmem:[#allocation2 + $0x11] sm:$0xff]  ;;  %8023 = vmatprep.subr.bf16.mxu1 %v8389_v40 }
 0xcbe   :  { %7963 = vmatprep.mubr.bf16.mxu0 %v5324_v20  ;;  %v5326_v33 = vpack.c.bf16 %v5296_v38, %v5295_v7  ;;  %v5600_v61 = vpack.c.bf16 %v5300_v32, %v5299_v57  ;;  %v5301_v0 = vld [vmem:[#allocation2 + $0x19] sm:$0xff]  ;;  %v5302_v63 = vld [vmem:[#allocation2 + $0x21] sm:$0xff] }
 0xcbf   :  { %7964 = vmatmul.mubr.bf16.vlgmr.msra.gmra.mxu0 %v5325_v35  ;;  %7992 = vmatmul.mubr.bf16.gmra.mxu1 %v5461_v18  ;;  %v5297_v55 = vld [vmem:[#allocation2 + $0x47] sm:$0xff]  ;;  %v5298_v56 = vld [vmem:[#allocation2 + $0x4f] sm:$0xff]  ;;  %v5303_v1 = vld [vmem:[#allocation2 + $0x39] sm:$0xff]  ;;  %v5601_v3 = vpack.c.bf16 %v5302_v63, %v5301_v0 }
 0xcc0   :  { %7996 = vmatpush3.bf16.msra.mxu0 %v9295_v53  ;;  %7967 = vmatprep.mubr.bf16.mxu0 %v5326_v33  ;;  %v5327_v58 = vpack.c.bf16 %v5298_v56, %v5297_v55  ;;  %v8380_v53 = vld [vmem:[#allocation20 + $0x210] sm:$0xff]   ;;  %v5306_v6 = vld [vmem:[#allocation2 + $0x51] sm:$0xff] }
 0xcc1   :  { %7997 = vmatprep.subr.bf16.mxu0 %v8376_v23  ;;  %v5304_v2 = vld [vmem:[#allocation2 + $0x41] sm:$0xff]  ;;  %v5305_v42 = vld [vmem:[#allocation2 + $0x49] sm:$0xff]  ;;  %8024 = vmatpush3.bf16.msra.mxu1 %v8389_v40 }
 0xcc2   :  { %v5602_v5 = vpack.c.bf16 %v5304_v2, %v5303_v1  ;;  %v5603_v4 = vpack.c.bf16 %v5306_v6, %v5305_v42  ;;  %8025 = vmatprep.subr.bf16.mxu1 %v8391_v11 }
 0xcc4   :  { %7998 = vmatpush3.bf16.msra.mxu0 %v8376_v23 }
 0xcc5   :  { %7999 = vmatprep.subr.bf16.mxu0 %v8377_v54  ;;  %8026 = vmatpush3.bf16.msra.mxu1 %v8391_v11 }
 0xcc6   :  { %8027 = vmatprep.subr.bf16.mxu1 %v8393_v13 }
 0xcc7   :  { %7968 = vmatmul.mubr.bf16.gmra.mxu0 %v5327_v58 }
 0xcc8   :  { %8000 = vmatpush3.bf16.msra.mxu0 %v8377_v54  ;;  %8011 = vmatprep.mubr.bf16.mxu0 %v5600_v61  ;;  %v6900_v54 = vld [vmem:[%s9345_s14 + $0x2] ss:$0 sm:$0xff] }
 0xcc9   :  { %8001 = vmatprep.subr.bf16.mxu0 %v8378_v60  ;;  %8028 = vmatpush3.bf16.msra.mxu1 %v8393_v13 }
 0xcca   :  { %8029 = vmatprep.subr.bf16.mxu1 %v8395_v37 }
 0xccc   :  { %8002 = vmatpush3.bf16.msra.mxu0 %v8378_v60 }
 0xccd   :  { %8003 = vmatprep.subr.bf16.mxu0 %v8379_v62  ;;  %8030 = vmatpush3.bf16.msra.mxu1 %v8395_v37 }
 0xcce   :  { %8031 = vmatprep.subr.bf16.mxu1 %v8397_v29 }
 0xcd0   :  { %8004 = vmatpush3.bf16.msra.mxu0 %v8379_v62 }
 0xcd1   :  { %8005 = vmatprep.subr.bf16.mxu0 %v8380_v53  ;;  %8032 = vmatpush3.bf16.msra.mxu1 %v8397_v29 }
 0xcd2   :  { %8033 = vmatprep.subr.bf16.mxu1 %v8398_v19 }
 0xcd4   :  { %8006 = vmatpush3.bf16.msra.mxu0 %v8380_v53 }
 0xcd5   :  { %8007 = vmatprep.subr.bf16.mxu0 %v8381_v50  ;;  %8034 = vmatpush3.bf16.msra.mxu1 %v8398_v19 }
 0xcd6   :  { %8067 = vmatprep.subr.bf16.mxu1 %v9307_v24 }
 0xcd8   :  { %8008 = vmatpush3.bf16.msra.mxu0 %v8381_v50 }
 0xcd9   :  { %8009 = vmatprep.subr.bf16.mxu0 %v8382_v28 }
 0xcdc   :  { %8010 = vmatpush3.bf16.msra.mxu0 %v8382_v28 }
 0xcdd   :  { %8043 = vmatprep.subr.bf16.mxu0 %v8383_v39 }
 0xcdf   :  { %8012 = vmatmul.mubr.bf16.vlgmr.msra.gmra.mxu0 %v5601_v3 }
 0xce0   :  { %8015 = vmatprep.mubr.bf16.mxu0 %v5602_v5  ;;  %8044 = vmatpush3.bf16.msra.mxu0 %v8383_v39 }
 0xce1   :  { %8045 = vmatprep.subr.bf16.mxu0 %v8384_v8 }
 0xce4   :  { %8046 = vmatpush3.bf16.msra.mxu0 %v8384_v8 }
 0xce5   :  { %8047 = vmatprep.subr.bf16.mxu0 %v8386_v9 }
 0xce7   :  { %8016 = vmatmul.mubr.bf16.gmra.mxu0 %v5603_v4 }
 0xce8   :  { %8048 = vmatpush3.bf16.msra.mxu0 %v8386_v9 }
 0xce9   :  { %8049 = vmatprep.subr.bf16.mxu0 %v8388_v14 }
 0xcec   :  { %8050 = vmatpush3.bf16.msra.mxu0 %v8388_v14 }
 0xced   :  { %8051 = vmatprep.subr.bf16.mxu0 %v8390_v10 }
 0xcf0   :  { %8052 = vmatpush3.bf16.msra.mxu0 %v8390_v10 }
 0xcf1   :  { %8053 = vmatprep.subr.bf16.mxu0 %v8392_v31 }
 0xcf4   :  { %8054 = vmatpush3.bf16.msra.mxu0 %v8392_v31 }
 0xcf5   :  { %8055 = vmatprep.subr.bf16.mxu0 %v8394_v15 }
 0xcf8   :  { %8056 = vmatpush3.bf16.msra.mxu0 %v8394_v15 }
 0xcf9   :  { %8057 = vmatprep.subr.bf16.mxu0 %v8396_v16 }
 0xcfc   :  { %8058 = vmatpush3.bf16.msra.mxu0 %v8396_v16 }
 0xd77   :  { %v7989_v27 = vpop.f32.mrf.mxu1 }
 0xd79   :  { %v5544_v34 = vpop.f32.mrf.mxu1 }
 0xd7b   :  { %v7990_v41 = vpop.f32.mrf.mxu1 }
 0xd7d   :  { %v5547_v46 = vpop.f32.mrf.mxu1 }
 0xd7f   :  { %v7965_v17 = vpop.f32.mrf.mxu0  ;;  %v7993_v47 = vpop.f32.mrf.mxu1 }
 0xd80   :  { %v5577_v20 = vadd.f32 %v7989_v27, %v7965_v17 }
 0xd81   :  { %v5410_v21 = vpop.f32.mrf.mxu0  ;;  %v5560_v51 = vpop.f32.mrf.mxu1 }
 0xd82   :  { %v5575_v49 = vadd.f32 %v5544_v34, %v5410_v21 }
 0xd83   :  { %v7966_v22 = vpop.f32.mrf.mxu0  ;;  %v7994_v33 = vpop.f32.mrf.mxu1 }
 0xd84   :  { %v5578_v18 = vadd.f32 %v7990_v41, %v7966_v22 }
 0xd85   :  { %v5413_v25 = vpop.f32.mrf.mxu0  ;;  %v5563_v50 = vpop.f32.mrf.mxu1 }
 0xd86   :  { %v5576_v52 = vadd.f32 %v5547_v46, %v5413_v25 }
 0xd87   :  { %v7969_v30 = vpop.f32.mrf.mxu0 }
 0xd88   :  { %v5581_v0 = vadd.f32 %v7993_v47, %v7969_v30 }
 0xd89   :  { %v5426_v36 = vpop.f32.mrf.mxu0 }
 0xd8a   :  { %v5579_v56 = vadd.f32 %v5560_v51, %v5426_v36 }
 0xd8b   :  { %v7970_v45 = vpop.f32.mrf.mxu0 }
 0xd8c   :  { %v5582_v3 = vadd.f32 %v7994_v33, %v7970_v45 }
 0xd8d   :  { %v5429_v44 = vpop.f32.mrf.mxu0 }
 0xd8e   :  { %v5580_v63 = vadd.f32 %v5563_v50, %v5429_v44 }
 0xd9f   :  { %v8013_v48 = vpop.f32.mrf.mxu0 }
 0xda0   :  { %v5719_v38 = vadd.f32 %v8013_v48, %v5577_v20 }
 0xda1   :  { %v5686_v12 = vpop.f32.mrf.mxu0 }
 0xda2   :  { %v5717_v7 = vadd.f32 %v5686_v12, %v5575_v49  ;;  %v5735_v61 = vadd.f32 %v6900_v54, %v5719_v38 }
 0xda3   :  { %v8014_v26 = vpop.f32.mrf.mxu0 }
 0xda4   :  { %v5733_v57 = vadd.f32 %v6900_v54, %v5717_v7  ;;  %v5720_v32 = vadd.f32 %v8014_v26, %v5578_v18 }
 0xda5   :  { %v5689_v35 = vpop.f32.mrf.mxu0 }
 0xda6   :  { %v5718_v23 = vadd.f32 %v5689_v35, %v5576_v52  ;;  %v5736_v1 = vadd.f32 %v6900_v54, %v5720_v32 }
 0xda7   :  { %v8017_v55 = vpop.f32.mrf.mxu0 }
 0xda8   :  { %v5734_v58 = vadd.f32 %v6900_v54, %v5718_v23  ;;  %v5723_v42 = vadd.f32 %v8017_v55, %v5581_v0 }
 0xda9   :  { %v5702_v60 = vpop.f32.mrf.mxu0 }
 0xdaa   :  { %v5745_v62 = vadd.f32 %v5734_v58, %v5733_v57  ;;  %v5721_v53 = vadd.f32 %v5702_v60, %v5579_v56  ;;  %v5739_v59 = vadd.f32 %v6900_v54, %v5723_v42  ;;  %v6902_v60 = vld [vmem:[%s9346_s15 + $0x2] ss:$0 sm:$0xff] }
 0xdab   :  { %v8018_v28 = vpop.f32.mrf.mxu0 }
 0xdac   :  { %v5746_v2 = vadd.f32 %v5745_v62, %v5735_v61  ;;  %v5737_v6 = vadd.f32 %v6900_v54, %v5721_v53  ;;  %v5724_v43 = vadd.f32 %v8018_v28, %v5582_v3  ;;  %v6903_v28 = vld [vmem:[#allocation21 + $0x2] ss:$0 sm:$0xff] }
 0xdad   :  { %v5705_v5 = vpop.f32.mrf.mxu0 }
 0xdae   :  { %v5747_v4 = vadd.f32 %v5746_v2, %v5736_v1  ;;  %v5722_v39 = vadd.f32 %v5705_v5, %v5580_v63  ;;  %v5740_v40 = vadd.f32 %v6900_v54, %v5724_v43 }
 0xdb0   :  { %v5748_v8 = vadd.f32 %v5747_v4, %v5737_v6  ;;  %v5738_v9 = vadd.f32 %v6900_v54, %v5722_v39 }
 0xdb2   :  { %v5749_v14 = vadd.f32 %v5748_v8, %v5738_v9 }
 0xdb4   :  { %v5750_v10 = vadd.f32 %v5749_v14, %v5739_v59 }
 0xdb6   :  { %v5751_v11 = vadd.f32 %v5750_v10, %v5740_v40 }
 0xdb8   :  { %v5752_v31 = vrot.slane %v5751_v11, 4 }
 0xdba   :  { %v5753_v13 = vadd.f32 %v5752_v31, %v5751_v11 }
 0xdbc   :  { %v5754_v15 = vrot.slane %v5753_v13, 2 }
 0xdbe   :  { %v5755_v37 = vadd.f32 %v5754_v15, %v5753_v13 }
 0xdc0   :  { %v5756_v16 = vrot.slane %v5755_v37, 1 }
 0xdc2   :  { %v5757_v29 = vadd.f32 %v5756_v16, %v5755_v37 }
 0xdc4   :  { %v5758_v17 = vmul.f32 0.015625, %v5757_v29 }
 0xdc6   :  { %v5759_v19 = vsub.f32 %v5733_v57, %v5758_v17  ;;  %v5760_v21 = vsub.f32 %v5734_v58, %v5758_v17  ;;  %v5761_v22 = vsub.f32 %v5735_v61, %v5758_v17  ;;  %v5762_v25 = vsub.f32 %v5736_v1, %v5758_v17 }
 0xdc7   :  { %v5763_v34 = vsub.f32 %v5737_v6, %v5758_v17  ;;  %v5764_v45 = vsub.f32 %v5738_v9, %v5758_v17  ;;  %v5765_v47 = vsub.f32 %v5739_v59, %v5758_v17  ;;  %v5766_v49 = vsub.f32 %v5740_v40, %v5758_v17 }
 0xdc8   :  { %v5767_v27 = vmul.f32 %v5759_v19, %v5759_v19  ;;  %v5768_v30 = vmul.f32 %v5760_v21, %v5760_v21  ;;  %v5769_v36 = vmul.f32 %v5761_v22, %v5761_v22  ;;  %v5770_v46 = vmul.f32 %v5762_v25, %v5762_v25 }
 0xdc9   :  { %v5771_v48 = vmul.f32 %v5763_v34, %v5763_v34  ;;  %v5772_v51 = vmul.f32 %v5764_v45, %v5764_v45  ;;  %v5773_v20 = vmul.f32 %v5765_v47, %v5765_v47  ;;  %v5774_v7 = vmul.f32 %v5766_v49, %v5766_v49 }
 0xdca   :  { %v5775_v41 = vadd.f32 %v5768_v30, %v5767_v27 }
 0xdcc   :  { %v5776_v44 = vadd.f32 %v5775_v41, %v5769_v36 }
 0xdce   :  { %v5777_v12 = vadd.f32 %v5776_v44, %v5770_v46 }
 0xdd0   :  { %v5778_v26 = vadd.f32 %v5777_v12, %v5771_v48 }
 0xdd2   :  { %v5779_v52 = vadd.f32 %v5778_v26, %v5772_v51 }
 0xdd4   :  { %v5780_v35 = vadd.f32 %v5779_v52, %v5773_v20 }
 0xdd6   :  { %v5781_v18 = vadd.f32 %v5780_v35, %v5774_v7 }
 0xdd8   :  { %v5782_v38 = vrot.slane %v5781_v18, 4 }
 0xdda   :  { %v5783_v23 = vadd.f32 %v5782_v38, %v5781_v18  ;;  %v8400_v38 = vld [vmem:[#allocation20 + $0x2f0] sm:$0xff]  }
 0xddc   :  { %v5784_v33 = vrot.slane %v5783_v23, 2 }
 0xdde   :  { %v5785_v54 = vadd.f32 %v5784_v33, %v5783_v23  ;;  %v8401_v33 = vld [vmem:[#allocation20 + $0x2e8] sm:$0xff]  }
 0xde0   :  { %v5786_v55 = vrot.slane %v5785_v54, 1 }
 0xde2   :  { %v5787_v56 = vadd.f32 %v5786_v55, %v5785_v54 }
 0xde4   :  { %v5788_v57 = vmul.f32 0.015625, %v5787_v56 }
 0xde6   :  { %v5789_v32 = vadd.f32 1e-05, %v5788_v57 }
 0xde8   :  { %8433 = vrsqrt.f32 %v5789_v32 }
 0xdf5   :  { %v8434_v58 = vpop.eup %8433 }
 0xdf6   :  { %v5793_v61 = vmul.f32 %v8434_v58, %v5761_v22  ;;  %v5794_v62 = vmul.f32 %v8434_v58, %v5762_v25  ;;  %v5796_v53 = vmul.f32 %v8434_v58, %v5764_v45  ;;  %v5791_v50 = vmul.f32 %v8434_v58, %v5759_v19 }
 0xdf7   :  { %v5792_v0 = vmul.f32 %v8434_v58, %v5760_v21  ;;  %v5795_v63 = vmul.f32 %v8434_v58, %v5763_v34  ;;  %v5797_v1 = vmul.f32 %v8434_v58, %v5765_v47  ;;  %v5798_v2 = vmul.f32 %v8434_v58, %v5766_v49  ;;  %v8402_v58 = vld [vmem:[#allocation20 + $0x2e0] sm:$0xff]  }
 0xdf8   :  { %v5810_v3 = vmul.f32 %v6902_v60, %v5796_v53  ;;  %v5805_v5 = vmul.f32 %v6902_v60, %v5791_v50  ;;  %v5807_v42 = vmul.f32 %v6902_v60, %v5793_v61  ;;  %v5808_v6 = vmul.f32 %v6902_v60, %v5794_v62  ;;  %v8403_v61 = vld [vmem:[#allocation20 + $0x2d8] sm:$0xff]   ;;  %v8405_v62 = vld [vmem:[#allocation20 + $0x2c8] sm:$0xff]   ;;  %v8406_v53 = vld [vmem:[#allocation20 + $0x2c0] sm:$0xff]  }
 0xdf9   :  { %v5806_v4 = vmul.f32 %v6902_v60, %v5792_v0  ;;  %v5809_v39 = vmul.f32 %v6902_v60, %v5795_v63  ;;  %v5811_v8 = vmul.f32 %v6902_v60, %v5797_v1  ;;  %v5812_v43 = vmul.f32 %v6902_v60, %v5798_v2 }
 0xdfa   :  { %v5819_v9 = vadd.f32 %v6903_v28, %v5805_v5  ;;  %v5821_v59 = vadd.f32 %v6903_v28, %v5807_v42  ;;  %v5822_v14 = vadd.f32 %v6903_v28, %v5808_v6  ;;  %v5824_v40 = vadd.f32 %v6903_v28, %v5810_v3  ;;  %v8407_v6 = vld [vmem:[#allocation23 + $0x38] sm:$0xff]  }
 0xdfb   :  { %v5820_v10 = vadd.f32 %v6903_v28, %v5806_v4  ;;  %v5823_v11 = vadd.f32 %v6903_v28, %v5809_v39  ;;  %v5825_v31 = vadd.f32 %v6903_v28, %v5811_v8  ;;  %v5826_v13 = vadd.f32 %v6903_v28, %v5812_v43  ;;  %8091 = vmatprep.subr.bf16.mxu0 %v8407_v6  ;;  %v8408_v4 = vld [vmem:[#allocation23 + $0x30] sm:$0xff]   ;;  %v8409_v39 = vld [vmem:[#allocation23 + $0x28] sm:$0xff]   ;;  %v8410_v8 = vld [vmem:[#allocation23 + $0x20] sm:$0xff]  }
 0xdfc   :  { %vm5827_vm4 = vcmp.ge.f32.partialorder %v5819_v9, 0.0  ;;  %v5835_v15 = vmul.f32 0.2, %v5819_v9  ;;  %vm5829_vm5 = vcmp.ge.f32.partialorder %v5821_v59, 0.0  ;;  %vm5830_vm6 = vcmp.ge.f32.partialorder %v5822_v14, 0.0  ;;  %v8411_v43 = vld [vmem:[#allocation23 + $0x18] sm:$0xff]  }
 0xdfd   :  { %vm5828_vm7 = vcmp.ge.f32.partialorder %v5820_v10, 0.0  ;;  %v5836_v37 = vmul.f32 0.2, %v5820_v10  ;;  %v5837_v16 = vmul.f32 0.2, %v5821_v59  ;;  %vm5831_vm8 = vcmp.ge.f32.partialorder %v5823_v11, 0.0 }
 0xdfe   :  { %v5843_v29 = vsel %vm5827_vm4, %v5819_v9, %v5835_v15  ;;  %v5838_v17 = vmul.f32 0.2, %v5822_v14  ;;  %vm5832_vm9 = vcmp.ge.f32.partialorder %v5824_v40, 0.0  ;;  %v5839_v19 = vmul.f32 0.2, %v5823_v11  ;;  %v8412_v9 = vld [vmem:[#allocation23 + $0x10] sm:$0xff]  }
 0xdff   :  { %v5844_v21 = vsel %vm5828_vm7, %v5820_v10, %v5836_v37  ;;  %5851 = vst [vmem:[#allocation2 + $0x8] sm:$0xff] %v5843_v29  ;;  %v5845_v22 = vsel %vm5829_vm5, %v5821_v59, %v5837_v16  ;;  %v5840_v25 = vmul.f32 0.2, %v5824_v40  ;;  %vm5833_vm10 = vcmp.ge.f32.partialorder %v5825_v31, 0.0  ;;  %v8413_v59 = vld [vmem:[#allocation23 + $0x8] sm:$0xff]  }
 0xe00   :  { %v6026_v27 = vpack.c.bf16 %v5844_v21, %v5843_v29  ;;  %5852 = vst [vmem:[#allocation2 + $0x10] sm:$0xff] %v5844_v21  ;;  %v5846_v30 = vsel %vm5830_vm6, %v5822_v14, %v5838_v17  ;;  %5853 = vst [vmem:[#allocation2 + $0x18] sm:$0xff] %v5845_v22  ;;  %v5847_v34 = vsel %vm5831_vm8, %v5823_v11, %v5839_v19  ;;  %vm5834_vm14 = vcmp.ge.f32.partialorder %v5826_v13, 0.0  ;;  %v8414_v14 = vld [vmem:[#allocation23] sm:$0xff]  }
 0xe01   :  { %v6027_v36 = vpack.c.bf16 %v5846_v30, %v5845_v22  ;;  %5854 = vst [vmem:[#allocation2 + $0x20] sm:$0xff] %v5846_v30  ;;  %v5848_v41 = vsel %vm5832_vm9, %v5824_v40, %v5840_v25  ;;  %5855 = vst [vmem:[#allocation2 + $0x38] sm:$0xff] %v5847_v34  ;;  %v5841_v45 = vmul.f32 0.2, %v5825_v31  ;;  %v5842_v46 = vmul.f32 0.2, %v5826_v13 }
 0xe02   :  { %8059 = vmatprep.mubr.bf16.mxu0 %v6026_v27  ;;  %v6028_v44 = vpack.c.bf16 %v5848_v41, %v5847_v34  ;;  %5856 = vst [vmem:[#allocation2 + $0x40] sm:$0xff] %v5848_v41 }
 0xe03   :  { %8060 = vmatmul.mubr.bf16.vlgmr.msra.gmra.mxu0 %v6027_v36  ;;  %v5849_v47 = vsel %vm5833_vm10, %v5825_v31, %v5841_v45  ;;  %v5850_v48 = vsel %vm5834_vm14, %v5826_v13, %v5842_v46 }
 0xe04   :  { %8063 = vmatprep.mubr.bf16.mxu0 %v6028_v44  ;;  %5857 = vst [vmem:[#allocation2 + $0x48] sm:$0xff] %v5849_v47  ;;  %5858 = vst [vmem:[#allocation2 + $0x50] sm:$0xff] %v5850_v48  ;;  %v6029_v35 = vpack.c.bf16 %v5850_v48, %v5849_v47  ;;  %8092 = vmatpush3.bf16.msra.mxu0 %v8407_v6 }
 0xe05   :  { %8093 = vmatprep.subr.bf16.mxu0 %v8408_v4 }
 0xe06   :  { %v5859_v12 = vld [vmem:[#allocation2 + $0x7] sm:$0xff] }
 0xe07   :  { %v5860_v49 = vld [vmem:[#allocation2 + $0xf] sm:$0xff]  ;;  %v5861_v51 = vld [vmem:[#allocation2 + $0x17] sm:$0xff] }
 0xe08   :  { %v5892_v26 = vpack.c.bf16 %v5860_v49, %v5859_v12  ;;  %v5862_v20 = vld [vmem:[#allocation2 + $0x1f] sm:$0xff]  ;;  %v5863_v52 = vld [vmem:[#allocation2 + $0x37] sm:$0xff]  ;;  %v5867_v56 = vld [vmem:[#allocation2 + $0x9] sm:$0xff]  ;;  %8094 = vmatpush3.bf16.msra.mxu0 %v8408_v4 }
 0xe09   :  { %v5893_v7 = vpack.c.bf16 %v5862_v20, %v5861_v51  ;;  %v5864_v18 = vld [vmem:[#allocation2 + $0x3f] sm:$0xff]  ;;  %v5868_v57 = vld [vmem:[#allocation2 + $0x11] sm:$0xff]  ;;  %8095 = vmatprep.subr.bf16.mxu0 %v8409_v39  ;;  %v6929_v51 = vld [vmem:[%s9345_s14 + $0x3] ss:$0 sm:$0xff] }
 0xe0a   :  { %8035 = vmatprep.mubr.bf16.mxu1 %v5892_v26  ;;  %v5894_v23 = vpack.c.bf16 %v5864_v18, %v5863_v52  ;;  %v6168_v60 = vpack.c.bf16 %v5868_v57, %v5867_v56  ;;  %v5869_v50 = vld [vmem:[#allocation2 + $0x19] sm:$0xff]  ;;  %v5870_v28 = vld [vmem:[#allocation2 + $0x21] sm:$0xff] }
 0xe0b   :  { %8036 = vmatmul.mubr.bf16.vlgmr.msra.gmra.mxu1 %v5893_v7  ;;  %8064 = vmatmul.mubr.bf16.gmra.mxu0 %v6029_v35  ;;  %v5865_v54 = vld [vmem:[#allocation2 + $0x47] sm:$0xff]  ;;  %v5866_v55 = vld [vmem:[#allocation2 + $0x4f] sm:$0xff]  ;;  %v5871_v0 = vld [vmem:[#allocation2 + $0x39] sm:$0xff]  ;;  %v6169_v1 = vpack.c.bf16 %v5870_v28, %v5869_v50 }
 0xe0c   :  { %8068 = vmatpush3.bf16.msra.mxu1 %v9307_v24  ;;  %8039 = vmatprep.mubr.bf16.mxu1 %v5894_v23  ;;  %v5895_v32 = vpack.c.bf16 %v5866_v55, %v5865_v54  ;;  %v8404_v24 = vld [vmem:[#allocation20 + $0x2d0] sm:$0xff]   ;;  %v5874_v5 = vld [vmem:[#allocation2 + $0x51] sm:$0xff] }
 0xe0d   :  { %8069 = vmatprep.subr.bf16.mxu1 %v8400_v38  ;;  %v5872_v63 = vld [vmem:[#allocation2 + $0x41] sm:$0xff]  ;;  %v5873_v3 = vld [vmem:[#allocation2 + $0x49] sm:$0xff]  ;;  %8096 = vmatpush3.bf16.msra.mxu0 %v8409_v39 }
 0xe0e   :  { %v6170_v2 = vpack.c.bf16 %v5872_v63, %v5871_v0  ;;  %v6171_v42 = vpack.c.bf16 %v5874_v5, %v5873_v3  ;;  %8097 = vmatprep.subr.bf16.mxu0 %v8410_v8 }
 0xe10   :  { %8070 = vmatpush3.bf16.msra.mxu1 %v8400_v38 }
 0xe11   :  { %8071 = vmatprep.subr.bf16.mxu1 %v8401_v33  ;;  %8098 = vmatpush3.bf16.msra.mxu0 %v8410_v8 }
 0xe12   :  { %8099 = vmatprep.subr.bf16.mxu0 %v8411_v43 }
 0xe13   :  { %8040 = vmatmul.mubr.bf16.gmra.mxu1 %v5895_v32 }
 0xe14   :  { %8072 = vmatpush3.bf16.msra.mxu1 %v8401_v33  ;;  %8083 = vmatprep.mubr.bf16.mxu1 %v6168_v60 }
 0xe15   :  { %8073 = vmatprep.subr.bf16.mxu1 %v8402_v58  ;;  %8100 = vmatpush3.bf16.msra.mxu0 %v8411_v43 }
 0xe16   :  { %8101 = vmatprep.subr.bf16.mxu0 %v8412_v9 }
 0xe18   :  { %8074 = vmatpush3.bf16.msra.mxu1 %v8402_v58 }
 0xe19   :  { %8075 = vmatprep.subr.bf16.mxu1 %v8403_v61  ;;  %8102 = vmatpush3.bf16.msra.mxu0 %v8412_v9 }
 0xe1a   :  { %8103 = vmatprep.subr.bf16.mxu0 %v8413_v59 }
 0xe1c   :  { %8076 = vmatpush3.bf16.msra.mxu1 %v8403_v61 }
 0xe1d   :  { %8077 = vmatprep.subr.bf16.mxu1 %v8404_v24  ;;  %8104 = vmatpush3.bf16.msra.mxu0 %v8413_v59 }
 0xe1e   :  { %8105 = vmatprep.subr.bf16.mxu0 %v8414_v14 }
 0xe20   :  { %8078 = vmatpush3.bf16.msra.mxu1 %v8404_v24 }
 0xe21   :  { %8079 = vmatprep.subr.bf16.mxu1 %v8405_v62  ;;  %8106 = vmatpush3.bf16.msra.mxu0 %v8414_v14 }
 0xe24   :  { %8080 = vmatpush3.bf16.msra.mxu1 %v8405_v62 }
 0xe25   :  { %8081 = vmatprep.subr.bf16.mxu1 %v8406_v53 }
 0xe28   :  { %8082 = vmatpush3.bf16.msra.mxu1 %v8406_v53 }
 0xe2b   :  { %8084 = vmatmul.mubr.bf16.vlgmr.msra.gmra.mxu1 %v6169_v1 }
 0xe2c   :  { %8087 = vmatprep.mubr.bf16.mxu1 %v6170_v2 }
 0xe33   :  { %8088 = vmatmul.mubr.bf16.gmra.mxu1 %v6171_v42 }
 0xec3   :  { %v8061_v13 = vpop.f32.mrf.mxu0 }
 0xec5   :  { %v6112_v37 = vpop.f32.mrf.mxu0 }
 0xec7   :  { %v8062_v29 = vpop.f32.mrf.mxu0 }
 0xec9   :  { %v6115_v19 = vpop.f32.mrf.mxu0 }
 0xecb   :  { %v8037_v40 = vpop.f32.mrf.mxu1  ;;  %v8065_v22 = vpop.f32.mrf.mxu0 }
 0xecc   :  { %v6145_v41 = vadd.f32 %v8061_v13, %v8037_v40 }
 0xecd   :  { %v5978_v10 = vpop.f32.mrf.mxu1  ;;  %v6128_v34 = vpop.f32.mrf.mxu0 }
 0xece   :  { %v6143_v30 = vadd.f32 %v6112_v37, %v5978_v10 }
 0xecf   :  { %v8038_v11 = vpop.f32.mrf.mxu1  ;;  %v8066_v49 = vpop.f32.mrf.mxu0 }
 0xed0   :  { %v6146_v47 = vadd.f32 %v8062_v29, %v8038_v11 }
 0xed1   :  { %v5981_v31 = vpop.f32.mrf.mxu1  ;;  %v6131_v54 = vpop.f32.mrf.mxu0 }
 0xed2   :  { %v6144_v45 = vadd.f32 %v6115_v19, %v5981_v31 }
 0xed3   :  { %v8041_v15 = vpop.f32.mrf.mxu1 }
 0xed4   :  { %v6149_v56 = vadd.f32 %v8065_v22, %v8041_v15 }
 0xed5   :  { %v5994_v16 = vpop.f32.mrf.mxu1 }
 0xed6   :  { %v6147_v20 = vadd.f32 %v6128_v34, %v5994_v16 }
 0xed7   :  { %v8042_v17 = vpop.f32.mrf.mxu1 }
 0xed8   :  { %v6150_v60 = vadd.f32 %v8066_v49, %v8042_v17 }
 0xed9   :  { %v5997_v21 = vpop.f32.mrf.mxu1 }
 0xeda   :  { %v6148_v57 = vadd.f32 %v6131_v54, %v5997_v21  ;;  %v6932_v54 = vld [vmem:[#allocation21 + $0x3] ss:$0 sm:$0xff] }
 0xeeb   :  { %v8085_v25 = vpop.f32.mrf.mxu1 }
 0xeec   :  { %v6287_v48 = vadd.f32 %v8085_v25, %v6145_v41 }
 0xeed   :  { %v6254_v27 = vpop.f32.mrf.mxu1 }
 0xeee   :  { %v6285_v46 = vadd.f32 %v6254_v27, %v6143_v30  ;;  %v6303_v38 = vadd.f32 %v6929_v51, %v6287_v48 }
 0xeef   :  { %v8086_v36 = vpop.f32.mrf.mxu1 }
 0xef0   :  { %v6301_v52 = vadd.f32 %v6929_v51, %v6285_v46  ;;  %v6288_v7 = vadd.f32 %v8086_v36, %v6146_v47 }
 0xef1   :  { %v6257_v44 = vpop.f32.mrf.mxu1 }
 0xef2   :  { %v6286_v12 = vadd.f32 %v6257_v44, %v6144_v45  ;;  %v6304_v32 = vadd.f32 %v6929_v51, %v6288_v7 }
 0xef3   :  { %v8089_v26 = vpop.f32.mrf.mxu1 }
 0xef4   :  { %v6302_v35 = vadd.f32 %v6929_v51, %v6286_v12  ;;  %v6291_v24 = vadd.f32 %v8089_v26, %v6149_v56 }
 0xef5   :  { %v6270_v18 = vpop.f32.mrf.mxu1 }
 0xef6   :  { %v6313_v23 = vadd.f32 %v6302_v35, %v6301_v52  ;;  %v6289_v33 = vadd.f32 %v6270_v18, %v6147_v20  ;;  %v6307_v1 = vadd.f32 %v6929_v51, %v6291_v24 }
 0xef7   :  { %v8090_v55 = vpop.f32.mrf.mxu1 }
 0xef8   :  { %v6314_v58 = vadd.f32 %v6313_v23, %v6303_v38  ;;  %v6305_v62 = vadd.f32 %v6929_v51, %v6289_v33  ;;  %v6292_v0 = vadd.f32 %v8090_v55, %v6150_v60 }
 0xef9   :  { %v6273_v61 = vpop.f32.mrf.mxu1 }
 0xefa   :  { %v6315_v53 = vadd.f32 %v6314_v58, %v6304_v32  ;;  %v6290_v50 = vadd.f32 %v6273_v61, %v6148_v57  ;;  %v6308_v3 = vadd.f32 %v6929_v51, %v6292_v0 }
 0xefc   :  { %v6316_v28 = vadd.f32 %v6315_v53, %v6305_v62  ;;  %v6306_v63 = vadd.f32 %v6929_v51, %v6290_v50 }
 0xefe   :  { %v6317_v2 = vadd.f32 %v6316_v28, %v6306_v63 }
 0xf00   :  { %v6318_v5 = vadd.f32 %v6317_v2, %v6307_v1 }
 0xf02   :  { %v6319_v42 = vadd.f32 %v6318_v5, %v6308_v3 }
 0xf04   :  { %v6320_v6 = vrot.slane %v6319_v42, 4 }
 0xf06   :  { %v6321_v4 = vadd.f32 %v6320_v6, %v6319_v42 }
 0xf08   :  { %v6322_v39 = vrot.slane %v6321_v4, 2 }
 0xf0a   :  { %v6323_v8 = vadd.f32 %v6322_v39, %v6321_v4 }
 0xf0c   :  { %v6324_v43 = vrot.slane %v6323_v8, 1 }
 0xf0e   :  { %v6325_v9 = vadd.f32 %v6324_v43, %v6323_v8 }
 0xf10   :  { %v6326_v59 = vmul.f32 0.015625, %v6325_v9 }
 0xf12   :  { %v6327_v14 = vsub.f32 %v6301_v52, %v6326_v59  ;;  %v6328_v40 = vsub.f32 %v6302_v35, %v6326_v59  ;;  %v6329_v10 = vsub.f32 %v6303_v38, %v6326_v59  ;;  %v6330_v11 = vsub.f32 %v6304_v32, %v6326_v59  ;;  %v6931_v35 = vld [vmem:[%s9346_s15 + $0x3] ss:$0 sm:$0xff] }
 0xf13   :  { %v6331_v15 = vsub.f32 %v6305_v62, %v6326_v59  ;;  %v6332_v29 = vsub.f32 %v6306_v63, %v6326_v59  ;;  %v6333_v21 = vsub.f32 %v6307_v1, %v6326_v59  ;;  %v6334_v27 = vsub.f32 %v6308_v3, %v6326_v59 }
 0xf14   :  { %v6335_v31 = vmul.f32 %v6327_v14, %v6327_v14  ;;  %v6336_v13 = vmul.f32 %v6328_v40, %v6328_v40  ;;  %v6337_v37 = vmul.f32 %v6329_v10, %v6329_v10  ;;  %v6338_v17 = vmul.f32 %v6330_v11, %v6330_v11 }
 0xf15   :  { %v6339_v22 = vmul.f32 %v6331_v15, %v6331_v15  ;;  %v6340_v30 = vmul.f32 %v6332_v29, %v6332_v29  ;;  %v6341_v36 = vmul.f32 %v6333_v21, %v6333_v21  ;;  %v6342_v45 = vmul.f32 %v6334_v27, %v6334_v27 }
 0xf16   :  { %v6343_v16 = vadd.f32 %v6336_v13, %v6335_v31 }
 0xf18   :  { %v6344_v19 = vadd.f32 %v6343_v16, %v6337_v37 }
 0xf1a   :  { %v6345_v25 = vadd.f32 %v6344_v19, %v6338_v17 }
 0xf1c   :  { %v6346_v34 = vadd.f32 %v6345_v25, %v6339_v22  ;;  %v6941_v25 = vld [vmem:[%s9349_s18] ss:$0 sm:$0xff]  ;;  %s6580_s18 = sshll.u32 %s8754_s17, 4  ;;  %s6581_s18 = int_to_ptr.vmem [resolvable:$true] %s6580_s18 }
 0xf1d   :  { %s8698_s21 = scalar_lea.vmem %s6581_s18, 1024  ;;  %p8703_p10 = scmp.lt.s32.totalorder %s6581_s18, %s6581_s18 }
 0xf1e   :  { %v6347_v41 = vadd.f32 %v6346_v34, %v6340_v30  ;;  %p8699_p9 = scmp.ne.s32.totalorder %s6581_s18, %s8698_s21  ;;  %p8704_p11 = scmp.lt.s32.totalorder %s8698_s21, %s8698_s21 }
 0xf20   :  { %v6348_v46 = vadd.f32 %v6347_v41, %v6341_v36  ;;  %p8705_p12 = por %p8704_p11, %p8703_p10 }
 0xf22   :  { %v6349_v44 = vadd.f32 %v6348_v46, %v6342_v45  ;;  %p8706_p13 = pnand %p8705_p12, %p8699_p9 }
 0xf24   :  { %v6350_v47 = vrot.slane %v6349_v44, 4 }
 0xf26   :  { %v6351_v48 = vadd.f32 %v6350_v47, %v6349_v44 }
 0xf28   :  { %v6352_v12 = vrot.slane %v6351_v48, 2 }
 0xf2a   :  { %v6353_v49 = vadd.f32 %v6352_v12, %v6351_v48 }
 0xf2c   :  { %v6354_v51 = vrot.slane %v6353_v49, 1 }
 0xf2e   :  { %v6355_v26 = vadd.f32 %v6354_v51, %v6353_v49 }
 0xf30   :  { %v6356_v20 = vmul.f32 0.015625, %v6355_v26 }
 0xf32   :  { %v6357_v52 = vadd.f32 1e-05, %v6356_v20 }
 0xf34   :  { %8435 = vrsqrt.f32 %v6357_v52 }
 0xf41   :  { %v8436_v7 = vpop.eup %8435 }
 0xf42   :  { %v6361_v18 = vmul.f32 %v8436_v7, %v6329_v10  ;;  %v6362_v38 = vmul.f32 %v8436_v7, %v6330_v11  ;;  %v6364_v23 = vmul.f32 %v8436_v7, %v6332_v29  ;;  %v6365_v33 = vmul.f32 %v8436_v7, %v6333_v21 }
 0xf43   :  { %v6359_v55 = vmul.f32 %v8436_v7, %v6327_v14  ;;  %v6360_v56 = vmul.f32 %v8436_v7, %v6328_v40  ;;  %v6363_v57 = vmul.f32 %v8436_v7, %v6331_v15  ;;  %v6366_v32 = vmul.f32 %v8436_v7, %v6334_v27 }
 0xf44   :  { %v6375_v58 = vmul.f32 %v6931_v35, %v6361_v18  ;;  %v6376_v60 = vmul.f32 %v6931_v35, %v6362_v38  ;;  %v6378_v61 = vmul.f32 %v6931_v35, %v6364_v23  ;;  %v6379_v24 = vmul.f32 %v6931_v35, %v6365_v33 }
 0xf45   :  { %v6373_v62 = vmul.f32 %v6931_v35, %v6359_v55  ;;  %v6374_v53 = vmul.f32 %v6931_v35, %v6360_v56  ;;  %v6377_v50 = vmul.f32 %v6931_v35, %v6363_v57  ;;  %v6380_v28 = vmul.f32 %v6931_v35, %v6366_v32 }
 0xf46   :  { %v6390_v0 = vadd.f32 %v6932_v54, %v6376_v60  ;;  %v6389_v63 = vadd.f32 %v6932_v54, %v6375_v58  ;;  %v6392_v1 = vadd.f32 %v6932_v54, %v6378_v61  ;;  %v6393_v2 = vadd.f32 %v6932_v54, %v6379_v24 }
 0xf47   :  { %v6387_v3 = vadd.f32 %v6932_v54, %v6373_v62  ;;  %v6388_v5 = vadd.f32 %v6932_v54, %v6374_v53  ;;  %v6391_v42 = vadd.f32 %v6932_v54, %v6377_v50  ;;  %v6394_v6 = vadd.f32 %v6932_v54, %v6380_v28 }
 0xf48   :  { %vm6397_vm15 = vcmp.ge.f32.partialorder %v6389_v63, 0.0  ;;  %vm6398_vm0 = vcmp.ge.f32.partialorder %v6390_v0, 0.0  ;;  %v6405_v4 = vmul.f32 0.2, %v6389_v63  ;;  %v6406_v39 = vmul.f32 0.2, %v6390_v0 }
 0xf49   :  { %vm6395_vm1 = vcmp.ge.f32.partialorder %v6387_v3, 0.0  ;;  %vm6396_vm2 = vcmp.ge.f32.partialorder %v6388_v5, 0.0  ;;  %v6403_v8 = vmul.f32 0.2, %v6387_v3  ;;  %v6404_v43 = vmul.f32 0.2, %v6388_v5 }
 0xf4a   :  { %v6413_v9 = vsel %vm6397_vm15, %v6389_v63, %v6405_v4  ;;  %v6414_v59 = vsel %vm6398_vm0, %v6390_v0, %v6406_v39  ;;  %vm6399_vm3 = vcmp.ge.f32.partialorder %v6391_v42, 0.0  ;;  %vm6400_vm11 = vcmp.ge.f32.partialorder %v6392_v1, 0.0 }
 0xf4b   :  { %v6411_v14 = vsel %vm6395_vm1, %v6387_v3, %v6403_v8  ;;  %v6412_v40 = vsel %vm6396_vm2, %v6388_v5, %v6404_v43  ;;  %v6436_v10 = vpack.c.bf16 %v6414_v59, %v6413_v9  ;;  %v6407_v11 = vmul.f32 0.2, %v6391_v42 }
 0xf4c   :  { %v6435_v31 = vpack.c.bf16 %v6412_v40, %v6411_v14  ;;  %v6408_v13 = vmul.f32 0.2, %v6392_v1  ;;  %v6409_v16 = vmul.f32 0.2, %v6393_v2  ;;  %v6410_v29 = vmul.f32 0.2, %v6394_v6 }
 0xf4d   :  { %v6415_v15 = vsel %vm6399_vm3, %v6391_v42, %v6407_v11  ;;  %vm6401_vm12 = vcmp.ge.f32.partialorder %v6393_v2, 0.0  ;;  %vm6402_vm13 = vcmp.ge.f32.partialorder %v6394_v6, 0.0 }
 0xf4e   :  { %8107 = vmatprep.mubr.bf16.mxu0 %v6435_v31  ;;  %v6416_v37 = vsel %vm6400_vm11, %v6392_v1, %v6408_v13  ;;  %v6417_v19 = vsel %vm6401_vm12, %v6393_v2, %v6409_v16  ;;  %v6418_v21 = vsel %vm6402_vm13, %v6394_v6, %v6410_v29 }
 0xf4f   :  { %8108 = vmatmul.mubr.bf16.vlgmr.msra.gmra.mxu0 %v6436_v10  ;;  %v6437_v17 = vpack.c.bf16 %v6416_v37, %v6415_v15  ;;  %v6438_v22 = vpack.c.bf16 %v6418_v21, %v6417_v19 }
 0xf51   :  { %8111 = vmatprep.mubr.bf16.mxu0 %v6437_v17 }
 0xf57   :  { %8112 = vmatmul.mubr.bf16.gmra.mxu0 %v6438_v22 }
0x100f   :  { %v8109_v27 = vpop.f32.mrf.mxu0 }
0x1010   :  { %v6561_v30 = vadd.f32 %v8109_v27, %v6941_v25 }
0x1011   :  { %v6521_v34 = vpop.f32.mrf.mxu0 }
0x1012   :  { %6569 = vst [vmem:[#allocation24 + $0x10] sm:$0xff] %v6561_v30  ;;  %v6559_v36 = vadd.f32 %v6941_v25, %v6521_v34 }
0x1013   :  { %v8110_v41 = vpop.f32.mrf.mxu0 }
0x1014   :  { %6567 = vst [vmem:[#allocation24] sm:$0xff] %v6559_v36  ;;  %v6562_v45 = vadd.f32 %v8110_v41, %v6941_v25 }
0x1015   :  { %v6524_v46 = vpop.f32.mrf.mxu0 }
0x1016   :  { %6570 = vst [vmem:[#allocation24 + $0x18] sm:$0xff] %v6562_v45  ;;  %v6560_v44 = vadd.f32 %v6941_v25, %v6524_v46 }
0x1017   :  { %v8113_v47 = vpop.f32.mrf.mxu0 }
0x1018   :  { %6568 = vst [vmem:[#allocation24 + $0x8] sm:$0xff] %v6560_v44  ;;  %v6565_v48 = vadd.f32 %v8113_v47, %v6941_v25 }
0x1019   :  { %v6537_v12 = vpop.f32.mrf.mxu0 }
0x101a   :  { %6573 = vst [vmem:[#allocation24 + $0x30] sm:$0xff] %v6565_v48  ;;  %v6563_v49 = vadd.f32 %v6941_v25, %v6537_v12 }
0x101b   :  { %v8114_v51 = vpop.f32.mrf.mxu0 }
0x101c   :  { %6571 = vst [vmem:[#allocation24 + $0x20] sm:$0xff] %v6563_v49  ;;  %v6566_v26 = vadd.f32 %v8114_v51, %v6941_v25 }
0x101d   :  { %v6540_v20 = vpop.f32.mrf.mxu0 }
0x101e   :  { %6574 = vst [vmem:[#allocation24 + $0x38] sm:$0xff] %v6566_v26  ;;  %v6564_v52 = vadd.f32 %v6941_v25, %v6540_v20 }
0x1020   :  { %6572 = vst [vmem:[#allocation24 + $0x28] sm:$0xff] %v6564_v52 }
0x1021   :  { %8709 = shalt.err (!%p8706_p13)
}
0x1022   :  { %s8755_s1 = smov 128   ;;  %s8756_s29 = smov 8  }
0x1023   :  { %6586 = dma.vmem_to_hbm [thread:$0]  %s6581_s18, 1024, %s9350_s19, [#allocation5], %s8755_s1, %s8755_s1, %s8756_s29  }
0x1024   :  { %8732 = dma.done.wait [#allocation5], 1024  }
0x1025   :  { %8733 = vsyncadd [#allocation5], 4294966272 }
0x1026   :  { %6590 = vsyncpa [#allocation4], 1 }
0x1027   :  { %6591 = vsyncpa [#allocation7], 1 }
0x1028   :  { %6592 = vsyncpa [#allocation10], 1 }
0x1029   :  { %6593 = vsyncpa [#allocation13], 1 }
0x102a   :  { %6594 = vsyncpa [#allocation16], 1 }
0x102b   :  { %6595 = vsyncpa [#allocation19], 1 }
0x102c   :  { %6596 = vsyncpa [#allocation22], 1 }
0x102d   :  { %6597 = vsyncpa [#allocation5], 1 }

</bundles_post_ra>
